<compile_context>
chip_gen: v6e
topology: v6e:2x2x1
jax: 0.10.0
libtpu: 0.0.40
codegen_flags: <defaults>
</compile_context>

<pallas_src>
import functools

import jax
import jax.numpy as jnp
from jax.experimental import pallas as pl
from jax.experimental.pallas import tpu as pltpu

FLAT_DIM = 1274 * 21  # 26754, hard-coded by the module's forward()
BN_EPS = 1e-5


def _classifier_kernel(n_layers, *refs):
    """Fused MLP: Linear0 -> ReLU -> [Linear -> ReLU]* -> Softmax.

    refs = (x_ref, w0_ref, b0_ref, [w_ref, b_ref] * (n_layers-1), y_ref)
    Grid = (batch_tiles,); the full reduction dim is a single block.
    """
    x_ref = refs[0]
    param_refs = refs[1:1 + 2 * n_layers]
    y_ref = refs[1 + 2 * n_layers]

    # Layer 0: bf16 x @ bf16 w0 on the MXU, f32 accumulation; bias (BN folded
    # in) + ReLU.
    h = jnp.dot(x_ref[...], param_refs[0][...], preferred_element_type=jnp.float32)
    h = jnp.maximum(h + param_refs[1][...], 0.0)

    # Remaining (small) layers: Linear -> ReLU.
    for l in range(1, n_layers):
        w = param_refs[2 * l][...]
        b = param_refs[2 * l + 1][...]
        h = jnp.dot(h.astype(w.dtype), w, preferred_element_type=jnp.float32) + b
        h = jnp.maximum(h, 0.0)

    # Softmax over the class axis (max-subtracted, exact normalization).
    m = jnp.max(h, axis=-1, keepdims=True)
    e = jnp.exp(h - m)
    denom = jnp.sum(e, axis=-1, keepdims=True)
    y_ref[...] = e / denom


def init_classifier_params(key, classification_dim):
    """PyTorch-default Linear init with eval-mode BatchNorm folded in.

    Returns a flat list [w, b] per layer, weights transposed to (in, out).
    Large weights (in_size >= 512) are stored in bfloat16.
    """
    params = []
    for in_size, out_size in zip(classification_dim[:-1], classification_dim[1:]):
        key, kw, kb = jax.random.split(key, 3)
        bound = 1.0 / jnp.sqrt(jnp.float32(in_size))
        w = jax.random.uniform(kw, (in_size, out_size), jnp.float32, -bound, bound)
        b = jax.random.uniform(kb, (1, out_size), jnp.float32, -bound, bound)
        # BatchNorm1d eval-mode defaults: gamma=1, beta=0, mean=0, var=1.
        gamma = jnp.ones((1, out_size), jnp.float32)
        beta = jnp.zeros((1, out_size), jnp.float32)
        running_mean = jnp.zeros((1, out_size), jnp.float32)
        running_var = jnp.ones((1, out_size), jnp.float32)
        bn_scale = gamma / jnp.sqrt(running_var + BN_EPS)
        bn_shift = beta - running_mean * bn_scale
        w_folded = w * bn_scale              # (in, out) * (1, out)
        b_folded = b * bn_scale + bn_shift
        if in_size >= 512:
            w_folded = w_folded.astype(jnp.bfloat16)
        params += [w_folded, b_folded]
    return params


def classifier_forward(x, params, classification_dim):
    """Flatten, run the fused Pallas kernel, return (x_flat, y)."""
    n_layers = len(classification_dim) - 1
    assert n_layers >= 1
    x_flat = x.reshape(-1, FLAT_DIM).astype(jnp.float32)
    batch = x_flat.shape[0]
    n_classes = classification_dim[-1]
    h0 = classification_dim[1]

    # Batch tile: sublane granularity (8), capped at 128 rows per tile.
    tm = min(128, 8 * pl.cdiv(batch, 8))
    m_pad = pl.cdiv(batch, tm) * tm

    # Stream activations into the kernel as bf16 (f32 MXU accumulation inside).
    x_bf = x_flat.astype(jnp.bfloat16)
    if m_pad != batch:
        x_bf = jnp.pad(x_bf, ((0, m_pad - batch), (0, 0)))

    grid = (m_pad // tm,)

    in_specs = [
        pl.BlockSpec((tm, FLAT_DIM), lambda i: (i, 0)),    # x tile (full K)
        pl.BlockSpec((FLAT_DIM, h0), lambda i: (0, 0)),    # layer-0 weight (resident)
        pl.BlockSpec((1, h0), lambda i: (0, 0)),           # layer-0 bias
    ]
    for l in range(1, n_layers):
        d_in, d_out = classification_dim[l], classification_dim[l + 1]
        in_specs.append(pl.BlockSpec((d_in, d_out), lambda i: (0, 0)))
        in_specs.append(pl.BlockSpec((1, d_out), lambda i: (0, 0)))

    kernel = functools.partial(_classifier_kernel, n_layers)

    y_pad = pl.pallas_call(
        kernel,
        out_shape=jax.ShapeDtypeStruct((m_pad, n_classes), jnp.float32),
        grid_spec=pltpu.PrefetchScalarGridSpec(
            num_scalar_prefetch=0,
            grid=grid,
            in_specs=in_specs,
            out_specs=pl.BlockSpec((tm, n_classes), lambda i: (i, 0)),
        ),
        compiler_params=pltpu.CompilerParams(
            dimension_semantics=("parallel",)),
    )(x_bf, *params)

    # forward() also returns the flattened input -- return it directly from the
    # wrapper instead of copying it through the kernel.
    return x_flat, y_pad[:batch]


def reference_forward(x, params, classification_dim):
    """Pure-JAX reference (same folded params / dtypes) for correctness checking."""
    n_layers = len(classification_dim) - 1
    h = x.reshape(-1, FLAT_DIM).astype(jnp.float32)
    x_flat = h
    for l in range(n_layers):
        w, b = params[2 * l:2 * l + 2]
        h = jnp.dot(h.astype(w.dtype), w, preferred_element_type=jnp.float32) + b
        h = jnp.maximum(h, 0.0)
    y = jax.nn.softmax(h, axis=-1)
    return x_flat, y


if __name__ == "__main__":
    # "Single hidden layer classifier": [input_dim, hidden, num_classes]
    classification_dim = [FLAT_DIM, 64, 10]
    batch = 2

    key = jax.random.PRNGKey(0)
    key_x, key_p = jax.random.split(key)

    # Input shaped like the pre-flatten tensor the module expects.
    x = jax.random.normal(key_x, (batch, 1274, 21), dtype=jnp.float32)
    params = init_classifier_params(key_p, classification_dim)

    x_flat, y = classifier_forward(x, params, classification_dim)
    x_flat = jax.block_until_ready(x_flat)
    y = jax.block_until_ready(y)

    x_ref, y_ref = reference_forward(x, params, classification_dim)
    assert x_flat.shape == (batch, FLAT_DIM)
    assert y.shape == (batch, classification_dim[-1])
    assert jnp.allclose(x_flat, x_ref, atol=1e-5, rtol=1e-5)
    # bf16 x / weights in layer 0 -> slightly relaxed tol vs. pure-f32.
    assert jnp.allclose(y, y_ref, atol=1e-3, rtol=1e-3)
    assert jnp.allclose(jnp.sum(y, axis=-1), 1.0, atol=1e-3)

    print("KERNEL_OK")
</pallas_src>

<mosaic_0001>
module attributes {stable_mosaic.version = 11 : i64} {
  func.func @_classifier_kernel(%arg0: i32, %arg1: memref<8x26754xbf16, #tpu.memory_space<vmem>>, %arg2: memref<26754x64xbf16, #tpu.memory_space<vmem>>, %arg3: memref<1x64xf32, #tpu.memory_space<vmem>>, %arg4: memref<64x10xf32, #tpu.memory_space<vmem>>, %arg5: memref<1x10xf32, #tpu.memory_space<vmem>>, %arg6: memref<8x10xf32, #tpu.memory_space<vmem>>) attributes {dimension_semantics = [#tpu.dimension_semantics<parallel>], iteration_bounds = array<i64: 1>, scalar_prefetch = 0 : i64, scratch_operands = 0 : i64, tpu.core_type = #tpu.core_type<tc>, window_params = [{transform_indices = @transform_0, window_bounds = array<i64: 8, 26754>}, {pipeline_mode = #tpu.pipeline_mode<synchronous>, transform_indices = @transform_1, window_bounds = array<i64: 26754, 64>}, {pipeline_mode = #tpu.pipeline_mode<synchronous>, transform_indices = @transform_2, window_bounds = array<i64: 1, 64>}, {pipeline_mode = #tpu.pipeline_mode<synchronous>, transform_indices = @transform_3, window_bounds = array<i64: 64, 10>}, {pipeline_mode = #tpu.pipeline_mode<synchronous>, transform_indices = @transform_4, window_bounds = array<i64: 1, 10>}, {transform_indices = @transform_5, window_bounds = array<i64: 8, 10>}]} {
    %c0 = arith.constant 0 : index
    %c0_0 = arith.constant 0 : index
    %0 = vector.load %arg1[%c0, %c0_0] : memref<8x26754xbf16, #tpu.memory_space<vmem>>, vector<8x26754xbf16>
    %c0_1 = arith.constant 0 : index
    %c0_2 = arith.constant 0 : index
    %1 = vector.load %arg2[%c0_1, %c0_2] : memref<26754x64xbf16, #tpu.memory_space<vmem>>, vector<26754x64xbf16>
    %cst = arith.constant dense<0.000000e+00> : vector<8x64xf32>
    %2 = tpu.matmul %0, %1, %cst {dimension_numbers = #tpu.dot_dimension_numbers<[1], [0], [0], [1], [0, 0, 1, 1], [], []>} : vector<8x26754xbf16>, vector<26754x64xbf16>, vector<8x64xf32> -> vector<8x64xf32>
    %c0_3 = arith.constant 0 : index
    %c0_4 = arith.constant 0 : index
    %3 = vector.load %arg3[%c0_3, %c0_4] : memref<1x64xf32, #tpu.memory_space<vmem>>, vector<1x64xf32>
    %4 = vector.broadcast %3 : vector<1x64xf32> to vector<8x64xf32>
    %5 = arith.addf %2, %4 : vector<8x64xf32>
    %cst_5 = arith.constant 0.000000e+00 : f32
    %6 = vector.broadcast %cst_5 : f32 to vector<8x64xf32>
    %7 = arith.maximumf %5, %6 : vector<8x64xf32>
    %c0_6 = arith.constant 0 : index
    %c0_7 = arith.constant 0 : index
    %8 = vector.load %arg4[%c0_6, %c0_7] : memref<64x10xf32, #tpu.memory_space<vmem>>, vector<64x10xf32>
    %c0_8 = arith.constant 0 : index
    %c0_9 = arith.constant 0 : index
    %9 = vector.load %arg5[%c0_8, %c0_9] : memref<1x10xf32, #tpu.memory_space<vmem>>, vector<1x10xf32>
    %cst_10 = arith.constant dense<0.000000e+00> : vector<8x10xf32>
    %10 = tpu.matmul %7, %8, %cst_10 {dimension_numbers = #tpu.dot_dimension_numbers<[1], [0], [0], [1], [0, 0, 1, 1], [], []>} : vector<8x64xf32>, vector<64x10xf32>, vector<8x10xf32> -> vector<8x10xf32>
    %11 = vector.broadcast %9 : vector<1x10xf32> to vector<8x10xf32>
    %12 = arith.addf %10, %11 : vector<8x10xf32>
    %cst_11 = arith.constant 0.000000e+00 : f32
    %13 = vector.broadcast %cst_11 : f32 to vector<8x10xf32>
    %14 = arith.maximumf %12, %13 : vector<8x10xf32>
    %cst_12 = arith.constant dense<0xFF800000> : vector<8xf32>
    %15 = vector.multi_reduction <maximumf>, %14, %cst_12 [1] : vector<8x10xf32> to vector<8xf32>
    %16 = vector.shape_cast %15 : vector<8xf32> to vector<8x1xf32>
    %17 = vector.broadcast %16 : vector<8x1xf32> to vector<8x10xf32>
    %18 = arith.subf %14, %17 : vector<8x10xf32>
    %19 = math.exp %18 : vector<8x10xf32>
    %cst_13 = arith.constant dense<0.000000e+00> : vector<8xf32>
    %20 = vector.multi_reduction <add>, %19, %cst_13 [1] : vector<8x10xf32> to vector<8xf32>
    %21 = vector.shape_cast %20 : vector<8xf32> to vector<8x1xf32>
    %22 = vector.broadcast %21 : vector<8x1xf32> to vector<8x10xf32>
    %23 = arith.divf %19, %22 : vector<8x10xf32>
    %c0_14 = arith.constant 0 : index
    %c0_15 = arith.constant 0 : index
    %24 = vector.load %arg6[%c0_14, %c0_15] : memref<8x10xf32, #tpu.memory_space<vmem>>, vector<8x10xf32>
    tpu.vector_store %arg6[%c0_14, %c0_15], %23 {strides = array<i32>} : memref<8x10xf32, #tpu.memory_space<vmem>>, vector<8x10xf32>,
    return
  }
  func.func @transform_0(%arg0: i32) -> (i32, i32) {
    %c0_i32 = arith.constant 0 : i32
    %c0_i32_0 = arith.constant 0 : i32
    return %arg0, %c0_i32 : i32, i32
  }
  func.func @transform_1(%arg0: i32) -> (i32, i32) {
    %c0_i32 = arith.constant 0 : i32
    %c0_i32_0 = arith.constant 0 : i32
    %c0_i32_1 = arith.constant 0 : i32
    return %c0_i32, %c0_i32_0 : i32, i32
  }
  func.func @transform_2(%arg0: i32) -> (i32, i32) {
    %c0_i32 = arith.constant 0 : i32
    %c0_i32_0 = arith.constant 0 : i32
    %c0_i32_1 = arith.constant 0 : i32
    return %c0_i32, %c0_i32_0 : i32, i32
  }
  func.func @transform_3(%arg0: i32) -> (i32, i32) {
    %c0_i32 = arith.constant 0 : i32
    %c0_i32_0 = arith.constant 0 : i32
    %c0_i32_1 = arith.constant 0 : i32
    return %c0_i32, %c0_i32_0 : i32, i32
  }
  func.func @transform_4(%arg0: i32) -> (i32, i32) {
    %c0_i32 = arith.constant 0 : i32
    %c0_i32_0 = arith.constant 0 : i32
    %c0_i32_1 = arith.constant 0 : i32
    return %c0_i32, %c0_i32_0 : i32, i32
  }
  func.func @transform_5(%arg0: i32) -> (i32, i32) {
    %c0_i32 = arith.constant 0 : i32
    %c0_i32_0 = arith.constant 0 : i32
    return %arg0, %c0_i32 : i32, i32
  }
}

</mosaic_0001>

<bundles_post_ra>
// kernel: tpu_custom_call.1
= control target key start
LH: loop header
LB: loop body
LE: loop exit
PB: predicated region body
PF: predicated region fallthrough
CT: control target
= control target key end

     0   :  { %vm14248_vm0 = vcmask 15360   ;;  %s30229_s0 = inlined_call_operand.vmem [shape: bf16[8,26754], index: 0, kind: input, shape index: {}]   ;;  %s30230_s1 = inlined_call_operand.vmem [shape: bf16[26754,64], index: 1, kind: input, shape index: {}]   ;;  %s30231_s2 = inlined_call_operand.vmem [shape: f32[1,64], index: 2, kind: input, shape index: {}]   ;;  %s30232_s3 = inlined_call_operand.vmem [shape: f32[64,10], index: 3, kind: input, shape index: {}]   ;;  %s30233_s4 = inlined_call_operand.vmem [shape: f32[1,10], index: 4, kind: input, shape index: {}]   ;;  %s30234_s5 = inlined_call_operand.hbm [shape: f32[8,10], index: 5, kind: output, shape index: {}]  }
   0x1   :  { %v22781_v0 = vld [vmem:[%s30230_s1 + $0x78] sm:$0xff]   ;;  %v22785_v4 = vld [vmem:[%s30230_s1 + $0x70] sm:$0xff]   ;;  %v22789_v8 = vld [vmem:[%s30230_s1 + $0x68] sm:$0xff]  }
   0x2   :  { %v22782_v1 = vld [vmem:[%s30230_s1 + $0x38] sm:$0xff]   ;;  %20461 = vmatprep.subr.bf16.mxu0 %v22781_v0  ;;  %v22786_v5 = vld [vmem:[%s30230_s1 + $0x30] sm:$0xff]   ;;  %v22790_v9 = vld [vmem:[%s30230_s1 + $0x28] sm:$0xff]  }
   0x3   :  { %v22783_v2 = vld [vmem:[%s30230_s1 + $0xf8] sm:$0xff]   ;;  %20462 = vmatpush3.bf16.msra.mxu0 %v22782_v1  ;;  %v22787_v6 = vld [vmem:[%s30230_s1 + $0xf0] sm:$0xff]   ;;  %v22791_v10 = vld [vmem:[%s30230_s1 + $0xe8] sm:$0xff]  }
   0x4   :  { %v22784_v3 = vld [vmem:[%s30230_s1 + $0xb8] sm:$0xff]   ;;  %20483 = vmatprep.subr.bf16.mxu1 %v22783_v2  ;;  %20463 = vmatprep.subr.bf16.mxu0 %v22785_v4  ;;  %v22788_v7 = vld [vmem:[%s30230_s1 + $0xb0] sm:$0xff]   ;;  %v22792_v11 = vld [vmem:[%s30230_s1 + $0xa8] sm:$0xff]  }
   0x5   :  { %20484 = vmatpush3.bf16.msra.mxu1 %v22784_v3  ;;  %v22793_v12 = vld [vmem:[%s30230_s1 + $0x60] sm:$0xff]   ;;  %v22797_v16 = vld [vmem:[%s30230_s1 + $0x58] sm:$0xff]   ;;  %v22801_v20 = vld [vmem:[%s30230_s1 + $0x50] sm:$0xff]  }
   0x6   :  { %20485 = vmatprep.subr.bf16.mxu1 %v22787_v6  ;;  %v22794_v13 = vld [vmem:[%s30230_s1 + $0x20] sm:$0xff]   ;;  %v22798_v17 = vld [vmem:[%s30230_s1 + $0x18] sm:$0xff]   ;;  %v22802_v21 = vld [vmem:[%s30230_s1 + $0x10] sm:$0xff]  }
   0x7   :  { %20464 = vmatpush3.bf16.msra.mxu0 %v22786_v5  ;;  %v22795_v14 = vld [vmem:[%s30230_s1 + $0xe0] sm:$0xff]   ;;  %v22799_v18 = vld [vmem:[%s30230_s1 + $0xd8] sm:$0xff]   ;;  %v22803_v22 = vld [vmem:[%s30230_s1 + $0xd0] sm:$0xff]  }
   0x8   :  { %20465 = vmatprep.subr.bf16.mxu0 %v22789_v8  ;;  %v22796_v15 = vld [vmem:[%s30230_s1 + $0xa0] sm:$0xff]   ;;  %v22800_v19 = vld [vmem:[%s30230_s1 + $0x98] sm:$0xff]   ;;  %v22804_v23 = vld [vmem:[%s30230_s1 + $0x90] sm:$0xff]  }
   0x9   :  { %20486 = vmatpush3.bf16.msra.mxu1 %v22788_v7  ;;  %v22805_v24 = vld [vmem:[%s30230_s1 + $0x48] sm:$0xff]   ;;  %v22809_v28 = vld [vmem:[%s30230_s1 + $0x40] sm:$0xff]   ;;  %v22815_v35 = vld [vmem:[%s30230_s1 + $0x178] sm:$0xff]  }
   0xa   :  { %20487 = vmatprep.subr.bf16.mxu1 %v22791_v10  ;;  %v22806_v25 = vld [vmem:[%s30230_s1 + $0x8] sm:$0xff]   ;;  %v22810_v29 = vld [vmem:[%s30230_s1] sm:$0xff]   ;;  %v22818_v39 = vld [vmem:[%s30230_s1 + $0x138] sm:$0xff]  }
   0xb   :  { %20466 = vmatpush3.bf16.msra.mxu0 %v22790_v9  ;;  %v22807_v26 = vld [vmem:[%s30230_s1 + $0xc8] sm:$0xff]   ;;  %v22811_v30 = vld [vmem:[%s30230_s1 + $0xc0] sm:$0xff]   ;;  %v22819_v40 = vld [vmem:[%s30230_s1 + $0x1f8] sm:$0xff]  }
   0xc   :  { %20467 = vmatprep.subr.bf16.mxu0 %v22793_v12  ;;  %v22808_v27 = vld [vmem:[%s30230_s1 + $0x88] sm:$0xff]   ;;  %v22_v31 = vld [vmem:[%s30229_s0] sm:$0xff]  ;;  %v22820_v41 = vld [vmem:[%s30230_s1 + $0x1b8] sm:$0xff]  }
   0xd   :  { %20488 = vmatpush3.bf16.msra.mxu1 %v22792_v11  ;;  %v18575_v32 = vcombine.low %v22_v31, %v22_v31  ;;  %v18576_v33 = vcombine.high %v22_v31, %v22_v31  ;;  %v22814_v34 = vld [vmem:[%s30230_s1 + $0x80] sm:$0xff]   ;;  %v23_v36 = vld [vmem:[%s30229_s0 + $0x8] sm:$0xff]  ;;  %v22821_v42 = vld [vmem:[%s30230_s1 + $0x170] sm:$0xff]  }
   0xe   :  { %20489 = vmatprep.subr.bf16.mxu1 %v22795_v14  ;;  %v18577_v37 = vcombine.low %v23_v36, %v23_v36  ;;  %v18578_v38 = vcombine.high %v23_v36, %v23_v36  ;;  %v22822_v43 = vld [vmem:[%s30230_s1 + $0x130] sm:$0xff]   ;;  %v22825_v46 = vld [vmem:[%s30230_s1 + $0x168] sm:$0xff]   ;;  %v22829_v50 = vld [vmem:[%s30230_s1 + $0x160] sm:$0xff]  }
   0xf   :  { %20468 = vmatpush3.bf16.msra.mxu0 %v22794_v13  ;;  %14288 = vmatprep.mubr.bf16.mxu0 %v18576_v33  ;;  %v22823_v44 = vld [vmem:[%s30230_s1 + $0x1f0] sm:$0xff]   ;;  %v22826_v47 = vld [vmem:[%s30230_s1 + $0x128] sm:$0xff]   ;;  %v22830_v51 = vld [vmem:[%s30230_s1 + $0x120] sm:$0xff]  }
  0x10   :  { %20469 = vmatprep.subr.bf16.mxu0 %v22797_v16  ;;  %14328 = vmatprep.mubr.bf16.mxu1 %v18578_v38  ;;  %v22824_v45 = vld [vmem:[%s30230_s1 + $0x1b0] sm:$0xff]   ;;  %v22827_v48 = vld [vmem:[%s30230_s1 + $0x1e8] sm:$0xff]   ;;  %v22831_v52 = vld [vmem:[%s30230_s1 + $0x1e0] sm:$0xff]  }
  0x11   :  { %20490 = vmatpush3.bf16.msra.mxu1 %v22796_v15  ;;  %v22828_v49 = vld [vmem:[%s30230_s1 + $0x1a8] sm:$0xff]   ;;  %v22832_v53 = vld [vmem:[%s30230_s1 + $0x1a0] sm:$0xff]   ;;  %v22833_v54 = vld [vmem:[%s30230_s1 + $0x158] sm:$0xff]  }
  0x12   :  { %20491 = vmatprep.subr.bf16.mxu1 %v22799_v18  ;;  %v22834_v55 = vld [vmem:[%s30230_s1 + $0x118] sm:$0xff]   ;;  %v22837_v58 = vld [vmem:[%s30230_s1 + $0x150] sm:$0xff]   ;;  %v22841_v62 = vld [vmem:[%s30230_s1 + $0x148] sm:$0xff]  }
  0x13   :  { %20470 = vmatpush3.bf16.msra.mxu0 %v22798_v17  ;;  %v22835_v56 = vld [vmem:[%s30230_s1 + $0x1d8] sm:$0xff]   ;;  %v22838_v59 = vld [vmem:[%s30230_s1 + $0x110] sm:$0xff]   ;;  %v22842_v63 = vld [vmem:[%s30230_s1 + $0x108] sm:$0xff]  }
  0x14   :  { %20471 = vmatprep.subr.bf16.mxu0 %v22801_v20  ;;  %v22836_v57 = vld [vmem:[%s30230_s1 + $0x198] sm:$0xff]   ;;  %v22839_v60 = vld [vmem:[%s30230_s1 + $0x1d0] sm:$0xff]   ;;  %v22843_v0 = vld [vmem:[%s30230_s1 + $0x1c8] sm:$0xff]  }
  0x15   :  { %20492 = vmatpush3.bf16.msra.mxu1 %v22800_v19  ;;  %v22840_v61 = vld [vmem:[%s30230_s1 + $0x190] sm:$0xff]   ;;  %v22844_v1 = vld [vmem:[%s30230_s1 + $0x188] sm:$0xff]   ;;  %v22845_v2 = vld [vmem:[%s30230_s1 + $0x140] sm:$0xff]  }
  0x16   :  { %20493 = vmatprep.subr.bf16.mxu1 %v22803_v22  ;;  %v22846_v3 = vld [vmem:[%s30230_s1 + $0x100] sm:$0xff]   ;;  %v24_v5 = vld [vmem:[%s30229_s0 + $0x10] sm:$0xff]  ;;  %v22851_v9 = vld [vmem:[%s30230_s1 + $0x278] sm:$0xff]  }
  0x17   :  { %20472 = vmatpush3.bf16.msra.mxu0 %v22802_v21  ;;  %v22847_v4 = vld [vmem:[%s30230_s1 + $0x1c0] sm:$0xff]   ;;  %v18579_v6 = vcombine.low %v24_v5, %v24_v5  ;;  %v18580_v7 = vcombine.high %v24_v5, %v24_v5  ;;  %v25_v10 = vld [vmem:[%s30229_s0 + $0x18] sm:$0xff]  ;;  %v22857_v16 = vld [vmem:[%s30230_s1 + $0x270] sm:$0xff]  }
  0x18   :  { %20473 = vmatprep.subr.bf16.mxu0 %v22805_v24  ;;  %v22850_v8 = vld [vmem:[%s30230_s1 + $0x180] sm:$0xff]   ;;  %v18581_v11 = vcombine.low %v25_v10, %v25_v10  ;;  %v18582_v12 = vcombine.high %v25_v10, %v25_v10  ;;  %v22854_v13 = vld [vmem:[%s30230_s1 + $0x238] sm:$0xff]   ;;  %v22858_v17 = vld [vmem:[%s30230_s1 + $0x230] sm:$0xff]  }
  0x19   :  { %20494 = vmatpush3.bf16.msra.mxu1 %v22804_v23  ;;  %v22855_v14 = vld [vmem:[%s30230_s1 + $0x2f8] sm:$0xff]   ;;  %v22859_v18 = vld [vmem:[%s30230_s1 + $0x2f0] sm:$0xff]   ;;  %v22861_v20 = vld [vmem:[%s30230_s1 + $0x268] sm:$0xff]  }
  0x1a   :  { %20495 = vmatprep.subr.bf16.mxu1 %v22807_v26  ;;  %v22856_v15 = vld [vmem:[%s30230_s1 + $0x2b8] sm:$0xff]   ;;  %v22860_v19 = vld [vmem:[%s30230_s1 + $0x2b0] sm:$0xff]   ;;  %v22862_v21 = vld [vmem:[%s30230_s1 + $0x228] sm:$0xff]  }
  0x1b   :  { %20474 = vmatpush3.bf16.msra.mxu0 %v22806_v25  ;;  %v22863_v22 = vld [vmem:[%s30230_s1 + $0x2e8] sm:$0xff]   ;;  %v22865_v24 = vld [vmem:[%s30230_s1 + $0x260] sm:$0xff]   ;;  %v22872_v31 = vld [vmem:[%s30230_s1 + $0x298] sm:$0xff]  }
  0x1c   :  { %20475 = vmatprep.subr.bf16.mxu0 %v22809_v28  ;;  %v22864_v23 = vld [vmem:[%s30230_s1 + $0x2a8] sm:$0xff]   ;;  %v22866_v25 = vld [vmem:[%s30230_s1 + $0x220] sm:$0xff]   ;;  %v22869_v28 = vld [vmem:[%s30230_s1 + $0x258] sm:$0xff]  }
  0x1d   :  { %20496 = vmatpush3.bf16.msra.mxu1 %v22808_v27  ;;  %v22867_v26 = vld [vmem:[%s30230_s1 + $0x2e0] sm:$0xff]   ;;  %v22874_v33 = vld [vmem:[%s30230_s1 + $0x210] sm:$0xff]   ;;  %v22877_v36 = vld [vmem:[%s30230_s1 + $0x248] sm:$0xff]  }
  0x1e   :  { %20497 = vmatprep.subr.bf16.mxu1 %v22811_v30  ;;  %v22868_v27 = vld [vmem:[%s30230_s1 + $0x2a0] sm:$0xff]   ;;  %v22871_v30 = vld [vmem:[%s30230_s1 + $0x2d8] sm:$0xff]   ;;  %v22879_v38 = vld [vmem:[%s30230_s1 + $0x2c8] sm:$0xff]  }
  0x1f   :  { %20476 = vmatpush3.bf16.msra.mxu0 %v22810_v29  ;;  %v22870_v29 = vld [vmem:[%s30230_s1 + $0x218] sm:$0xff]   ;;  %v22913_v10 = vld [vmem:[%s30230_s1 + $0x348] sm:$0xff]  }
  0x20   :  { %20505 = vmatprep.subr.bf16.mxu0 %v22815_v35  ;;  %v22876_v35 = vld [vmem:[%s30230_s1 + $0x290] sm:$0xff]   ;;  %v22908_v5 = vld [vmem:[%s30230_s1 + $0x398] sm:$0xff]  }
  0x21   :  { %20498 = vmatpush3.bf16.msra.mxu1 %v22814_v34  ;;  %v22875_v34 = vld [vmem:[%s30230_s1 + $0x2d0] sm:$0xff]  }
  0x22   :  { %14289 = vmatmul.mubr.bf16.vlgmr.msra.gmra.mxu0 %v18575_v32  ;;  %20527 = vmatprep.subr.bf16.mxu1 %v22819_v40  ;;  %v22873_v32 = vld [vmem:[%s30230_s1 + $0x250] sm:$0xff]   ;;  %v22881_v40 = vld [vmem:[%s30230_s1 + $0x240] sm:$0xff]  }
  0x23   :  { %20506 = vmatpush3.bf16.msra.mxu0 %v22818_v39  ;;  %14368 = vmatprep.mubr.bf16.mxu0 %v18580_v7  ;;  %v22880_v39 = vld [vmem:[%s30230_s1 + $0x288] sm:$0xff]   ;;  %v22910_v7 = vld [vmem:[%s30230_s1 + $0x310] sm:$0xff]  }
  0x24   :  { %14329 = vmatmul.mubr.bf16.vlgmr.msra.gmra.mxu1 %v18577_v37  ;;  %20507 = vmatprep.subr.bf16.mxu0 %v22821_v42  ;;  %v22878_v37 = vld [vmem:[%s30230_s1 + $0x208] sm:$0xff]   ;;  %v22883_v42 = vld [vmem:[%s30230_s1 + $0x2c0] sm:$0xff]  }
  0x25   :  { %20528 = vmatpush3.bf16.msra.mxu1 %v22820_v41  ;;  %14408 = vmatprep.mubr.bf16.mxu1 %v18582_v12  ;;  %v22882_v41 = vld [vmem:[%s30230_s1 + $0x200] sm:$0xff]   ;;  %v22915_v12 = vld [vmem:[%s30230_s1 + $0x3c8] sm:$0xff]  }
  0x26   :  { %20529 = vmatprep.subr.bf16.mxu1 %v22823_v44 }
  0x27   :  { %20508 = vmatpush3.bf16.msra.mxu0 %v22822_v43  ;;  %v26_v43 = vld [vmem:[%s30229_s0 + $0x20] sm:$0xff] }
  0x28   :  { %20509 = vmatprep.subr.bf16.mxu0 %v22825_v46  ;;  %v18583_v44 = vcombine.low %v26_v43, %v26_v43  ;;  %v22886_v46 = vld [vmem:[%s30230_s1 + $0x280] sm:$0xff]  }
  0x29   :  { %20530 = vmatpush3.bf16.msra.mxu1 %v22824_v45  ;;  %v18584_v45 = vcombine.high %v26_v43, %v26_v43  ;;  %v22944_v43 = vld [vmem:[%s30230_s1 + $0x498] sm:$0xff]  }
  0x2a   :  { %20531 = vmatprep.subr.bf16.mxu1 %v22827_v48  ;;  %v27_v48 = vld [vmem:[%s30229_s0 + $0x28] sm:$0xff] }
  0x2b   :  { %20510 = vmatpush3.bf16.msra.mxu0 %v22826_v47  ;;  %v22887_v47 = vld [vmem:[%s30230_s1 + $0x378] sm:$0xff]  }
  0x2c   :  { %20511 = vmatprep.subr.bf16.mxu0 %v22829_v50  ;;  %v18586_v50 = vcombine.high %v27_v48, %v27_v48 }
  0x2d   :  { %20532 = vmatpush3.bf16.msra.mxu1 %v22828_v49  ;;  %v18585_v49 = vcombine.low %v27_v48, %v27_v48  ;;  %v22949_v48 = vld [vmem:[%s30230_s1 + $0x448] sm:$0xff]  }
  0x2e   :  { %20533 = vmatprep.subr.bf16.mxu1 %v22831_v52  ;;  %v22891_v52 = vld [vmem:[%s30230_s1 + $0x3f8] sm:$0xff]  }
  0x2f   :  { %20512 = vmatpush3.bf16.msra.mxu0 %v22830_v51  ;;  %v22890_v51 = vld [vmem:[%s30230_s1 + $0x338] sm:$0xff]  }
  0x30   :  { %20513 = vmatprep.subr.bf16.mxu0 %v22833_v54  ;;  %v22893_v54 = vld [vmem:[%s30230_s1 + $0x370] sm:$0xff]  }
  0x31   :  { %20534 = vmatpush3.bf16.msra.mxu1 %v22832_v53  ;;  %v22892_v53 = vld [vmem:[%s30230_s1 + $0x3b8] sm:$0xff]  }
  0x32   :  { %20535 = vmatprep.subr.bf16.mxu1 %v22835_v56  ;;  %v22895_v56 = vld [vmem:[%s30230_s1 + $0x3f0] sm:$0xff]  }
  0x33   :  { %20514 = vmatpush3.bf16.msra.mxu0 %v22834_v55  ;;  %v22894_v55 = vld [vmem:[%s30230_s1 + $0x330] sm:$0xff]  }
  0x34   :  { %20515 = vmatprep.subr.bf16.mxu0 %v22837_v58  ;;  %v22897_v58 = vld [vmem:[%s30230_s1 + $0x368] sm:$0xff]  }
  0x35   :  { %20536 = vmatpush3.bf16.msra.mxu1 %v22836_v57  ;;  %v22896_v57 = vld [vmem:[%s30230_s1 + $0x3b0] sm:$0xff]  }
  0x36   :  { %20537 = vmatprep.subr.bf16.mxu1 %v22839_v60  ;;  %v22899_v60 = vld [vmem:[%s30230_s1 + $0x3e8] sm:$0xff]  }
  0x37   :  { %20516 = vmatpush3.bf16.msra.mxu0 %v22838_v59  ;;  %v22898_v59 = vld [vmem:[%s30230_s1 + $0x328] sm:$0xff]  }
  0x38   :  { %20517 = vmatprep.subr.bf16.mxu0 %v22841_v62  ;;  %v22901_v62 = vld [vmem:[%s30230_s1 + $0x360] sm:$0xff]  }
  0x39   :  { %20538 = vmatpush3.bf16.msra.mxu1 %v22840_v61  ;;  %v22900_v61 = vld [vmem:[%s30230_s1 + $0x3a8] sm:$0xff]  }
  0x3a   :  { %20539 = vmatprep.subr.bf16.mxu1 %v22843_v0  ;;  %v22903_v0 = vld [vmem:[%s30230_s1 + $0x3e0] sm:$0xff]  }
  0x3b   :  { %20518 = vmatpush3.bf16.msra.mxu0 %v22842_v63  ;;  %v22902_v63 = vld [vmem:[%s30230_s1 + $0x320] sm:$0xff]  }
  0x3c   :  { %20519 = vmatprep.subr.bf16.mxu0 %v22845_v2  ;;  %v22905_v2 = vld [vmem:[%s30230_s1 + $0x358] sm:$0xff]  }
  0x3d   :  { %20540 = vmatpush3.bf16.msra.mxu1 %v22844_v1  ;;  %v22904_v1 = vld [vmem:[%s30230_s1 + $0x3a0] sm:$0xff]  }
  0x3e   :  { %20541 = vmatprep.subr.bf16.mxu1 %v22847_v4  ;;  %v22907_v4 = vld [vmem:[%s30230_s1 + $0x3d8] sm:$0xff]  }
  0x3f   :  { %20520 = vmatpush3.bf16.msra.mxu0 %v22846_v3  ;;  %v22906_v3 = vld [vmem:[%s30230_s1 + $0x318] sm:$0xff]  }
  0x40   :  { %20549 = vmatprep.subr.bf16.mxu0 %v22851_v9  ;;  %v22912_v9 = vld [vmem:[%s30230_s1 + $0x390] sm:$0xff]  }
  0x41   :  { %20542 = vmatpush3.bf16.msra.mxu1 %v22850_v8  ;;  %v22911_v8 = vld [vmem:[%s30230_s1 + $0x3d0] sm:$0xff]  }
  0x42   :  { %14369 = vmatmul.mubr.bf16.vlgmr.msra.gmra.mxu0 %v18579_v6  ;;  %20571 = vmatprep.subr.bf16.mxu1 %v22855_v14  ;;  %v22909_v6 = vld [vmem:[%s30230_s1 + $0x350] sm:$0xff]   ;;  %v22917_v14 = vld [vmem:[%s30230_s1 + $0x340] sm:$0xff]  }
  0x43   :  { %20550 = vmatpush3.bf16.msra.mxu0 %v22854_v13  ;;  %14448 = vmatprep.mubr.bf16.mxu0 %v18584_v45  ;;  %v22916_v13 = vld [vmem:[%s30230_s1 + $0x388] sm:$0xff]   ;;  %v22946_v45 = vld [vmem:[%s30230_s1 + $0x410] sm:$0xff]  }
  0x44   :  { %14409 = vmatmul.mubr.bf16.vlgmr.msra.gmra.mxu1 %v18581_v11  ;;  %20551 = vmatprep.subr.bf16.mxu0 %v22857_v16  ;;  %v22914_v11 = vld [vmem:[%s30230_s1 + $0x308] sm:$0xff]   ;;  %v22919_v16 = vld [vmem:[%s30230_s1 + $0x3c0] sm:$0xff]  }
  0x45   :  { %20572 = vmatpush3.bf16.msra.mxu1 %v22856_v15  ;;  %14488 = vmatprep.mubr.bf16.mxu1 %v18586_v50  ;;  %v22918_v15 = vld [vmem:[%s30230_s1 + $0x300] sm:$0xff]   ;;  %v22951_v50 = vld [vmem:[%s30230_s1 + $0x4c8] sm:$0xff]  }
  0x46   :  { %20573 = vmatprep.subr.bf16.mxu1 %v22859_v18 }
  0x47   :  { %20552 = vmatpush3.bf16.msra.mxu0 %v22858_v17  ;;  %v28_v17 = vld [vmem:[%s30229_s0 + $0x30] sm:$0xff] }
  0x48   :  { %20553 = vmatprep.subr.bf16.mxu0 %v22861_v20  ;;  %v18587_v18 = vcombine.low %v28_v17, %v28_v17  ;;  %v22922_v20 = vld [vmem:[%s30230_s1 + $0x380] sm:$0xff]  }
  0x49   :  { %20574 = vmatpush3.bf16.msra.mxu1 %v22860_v19  ;;  %v18588_v19 = vcombine.high %v28_v17, %v28_v17  ;;  %v22980_v17 = vld [vmem:[%s30230_s1 + $0x598] sm:$0xff]  }
  0x4a   :  { %20575 = vmatprep.subr.bf16.mxu1 %v22863_v22  ;;  %v29_v22 = vld [vmem:[%s30229_s0 + $0x38] sm:$0xff] }
  0x4b   :  { %20554 = vmatpush3.bf16.msra.mxu0 %v22862_v21  ;;  %v22923_v21 = vld [vmem:[%s30230_s1 + $0x478] sm:$0xff]  }
  0x4c   :  { %20555 = vmatprep.subr.bf16.mxu0 %v22865_v24  ;;  %v18590_v24 = vcombine.high %v29_v22, %v29_v22 }
  0x4d   :  { %20576 = vmatpush3.bf16.msra.mxu1 %v22864_v23  ;;  %v18589_v23 = vcombine.low %v29_v22, %v29_v22  ;;  %v22985_v22 = vld [vmem:[%s30230_s1 + $0x548] sm:$0xff]  }
  0x4e   :  { %20577 = vmatprep.subr.bf16.mxu1 %v22867_v26  ;;  %v22927_v26 = vld [vmem:[%s30230_s1 + $0x4f8] sm:$0xff]  }
  0x4f   :  { %20556 = vmatpush3.bf16.msra.mxu0 %v22866_v25  ;;  %v22926_v25 = vld [vmem:[%s30230_s1 + $0x438] sm:$0xff]  }
  0x50   :  { %20557 = vmatprep.subr.bf16.mxu0 %v22869_v28  ;;  %v22929_v28 = vld [vmem:[%s30230_s1 + $0x470] sm:$0xff]  }
  0x51   :  { %20578 = vmatpush3.bf16.msra.mxu1 %v22868_v27  ;;  %v22928_v27 = vld [vmem:[%s30230_s1 + $0x4b8] sm:$0xff]  }
  0x52   :  { %20579 = vmatprep.subr.bf16.mxu1 %v22871_v30  ;;  %v22931_v30 = vld [vmem:[%s30230_s1 + $0x4f0] sm:$0xff]  }
  0x53   :  { %20558 = vmatpush3.bf16.msra.mxu0 %v22870_v29  ;;  %v22930_v29 = vld [vmem:[%s30230_s1 + $0x430] sm:$0xff]  }
  0x54   :  { %20559 = vmatprep.subr.bf16.mxu0 %v22873_v32  ;;  %v22933_v32 = vld [vmem:[%s30230_s1 + $0x468] sm:$0xff]  }
  0x55   :  { %20580 = vmatpush3.bf16.msra.mxu1 %v22872_v31  ;;  %v22932_v31 = vld [vmem:[%s30230_s1 + $0x4b0] sm:$0xff]  }
  0x56   :  { %20581 = vmatprep.subr.bf16.mxu1 %v22875_v34  ;;  %v22935_v34 = vld [vmem:[%s30230_s1 + $0x4e8] sm:$0xff]  }
  0x57   :  { %20560 = vmatpush3.bf16.msra.mxu0 %v22874_v33  ;;  %v22934_v33 = vld [vmem:[%s30230_s1 + $0x428] sm:$0xff]  }
  0x58   :  { %20561 = vmatprep.subr.bf16.mxu0 %v22877_v36  ;;  %v22937_v36 = vld [vmem:[%s30230_s1 + $0x460] sm:$0xff]  }
  0x59   :  { %20582 = vmatpush3.bf16.msra.mxu1 %v22876_v35  ;;  %v22936_v35 = vld [vmem:[%s30230_s1 + $0x4a8] sm:$0xff]  }
  0x5a   :  { %20583 = vmatprep.subr.bf16.mxu1 %v22879_v38  ;;  %v22939_v38 = vld [vmem:[%s30230_s1 + $0x4e0] sm:$0xff]  }
  0x5b   :  { %20562 = vmatpush3.bf16.msra.mxu0 %v22878_v37  ;;  %v22938_v37 = vld [vmem:[%s30230_s1 + $0x420] sm:$0xff]  }
  0x5c   :  { %20563 = vmatprep.subr.bf16.mxu0 %v22881_v40  ;;  %v22941_v40 = vld [vmem:[%s30230_s1 + $0x458] sm:$0xff]  }
  0x5d   :  { %20584 = vmatpush3.bf16.msra.mxu1 %v22880_v39  ;;  %v22940_v39 = vld [vmem:[%s30230_s1 + $0x4a0] sm:$0xff]  }
  0x5e   :  { %20585 = vmatprep.subr.bf16.mxu1 %v22883_v42  ;;  %v22943_v42 = vld [vmem:[%s30230_s1 + $0x4d8] sm:$0xff]  }
  0x5f   :  { %20564 = vmatpush3.bf16.msra.mxu0 %v22882_v41  ;;  %v22942_v41 = vld [vmem:[%s30230_s1 + $0x418] sm:$0xff]  }
  0x60   :  { %20593 = vmatprep.subr.bf16.mxu0 %v22887_v47  ;;  %v22948_v47 = vld [vmem:[%s30230_s1 + $0x490] sm:$0xff]  }
  0x61   :  { %20586 = vmatpush3.bf16.msra.mxu1 %v22886_v46  ;;  %v22947_v46 = vld [vmem:[%s30230_s1 + $0x4d0] sm:$0xff]  }
  0x62   :  { %14449 = vmatmul.mubr.bf16.vlgmr.msra.gmra.mxu0 %v18583_v44  ;;  %20615 = vmatprep.subr.bf16.mxu1 %v22891_v52  ;;  %v22945_v44 = vld [vmem:[%s30230_s1 + $0x450] sm:$0xff]   ;;  %v22953_v52 = vld [vmem:[%s30230_s1 + $0x440] sm:$0xff]  }
  0x63   :  { %20594 = vmatpush3.bf16.msra.mxu0 %v22890_v51  ;;  %14528 = vmatprep.mubr.bf16.mxu0 %v18588_v19  ;;  %v22952_v51 = vld [vmem:[%s30230_s1 + $0x488] sm:$0xff]   ;;  %v22982_v19 = vld [vmem:[%s30230_s1 + $0x510] sm:$0xff]  }
  0x64   :  { %14489 = vmatmul.mubr.bf16.vlgmr.msra.gmra.mxu1 %v18585_v49  ;;  %20595 = vmatprep.subr.bf16.mxu0 %v22893_v54  ;;  %v22950_v49 = vld [vmem:[%s30230_s1 + $0x408] sm:$0xff]   ;;  %v22955_v54 = vld [vmem:[%s30230_s1 + $0x4c0] sm:$0xff]  }
  0x65   :  { %20616 = vmatpush3.bf16.msra.mxu1 %v22892_v53  ;;  %14568 = vmatprep.mubr.bf16.mxu1 %v18590_v24  ;;  %v22954_v53 = vld [vmem:[%s30230_s1 + $0x400] sm:$0xff]   ;;  %v22987_v24 = vld [vmem:[%s30230_s1 + $0x5c8] sm:$0xff]  }
  0x66   :  { %20617 = vmatprep.subr.bf16.mxu1 %v22895_v56 }
  0x67   :  { %20596 = vmatpush3.bf16.msra.mxu0 %v22894_v55  ;;  %v30_v55 = vld [vmem:[%s30229_s0 + $0x40] sm:$0xff] }
  0x68   :  { %20597 = vmatprep.subr.bf16.mxu0 %v22897_v58  ;;  %v18591_v56 = vcombine.low %v30_v55, %v30_v55  ;;  %v22958_v58 = vld [vmem:[%s30230_s1 + $0x480] sm:$0xff]  }
  0x69   :  { %20618 = vmatpush3.bf16.msra.mxu1 %v22896_v57  ;;  %v18592_v57 = vcombine.high %v30_v55, %v30_v55  ;;  %v23016_v55 = vld [vmem:[%s30230_s1 + $0x698] sm:$0xff]  }
  0x6a   :  { %20619 = vmatprep.subr.bf16.mxu1 %v22899_v60  ;;  %v31_v60 = vld [vmem:[%s30229_s0 + $0x48] sm:$0xff] }
  0x6b   :  { %20598 = vmatpush3.bf16.msra.mxu0 %v22898_v59  ;;  %v22959_v59 = vld [vmem:[%s30230_s1 + $0x578] sm:$0xff]  }
  0x6c   :  { %20599 = vmatprep.subr.bf16.mxu0 %v22901_v62  ;;  %v18594_v62 = vcombine.high %v31_v60, %v31_v60 }
  0x6d   :  { %20620 = vmatpush3.bf16.msra.mxu1 %v22900_v61  ;;  %v18593_v61 = vcombine.low %v31_v60, %v31_v60  ;;  %v23021_v60 = vld [vmem:[%s30230_s1 + $0x648] sm:$0xff]  }
  0x6e   :  { %20621 = vmatprep.subr.bf16.mxu1 %v22903_v0  ;;  %v22963_v0 = vld [vmem:[%s30230_s1 + $0x5f8] sm:$0xff]  }
  0x6f   :  { %20600 = vmatpush3.bf16.msra.mxu0 %v22902_v63  ;;  %v22962_v63 = vld [vmem:[%s30230_s1 + $0x538] sm:$0xff]  }
  0x70   :  { %20601 = vmatprep.subr.bf16.mxu0 %v22905_v2  ;;  %v22965_v2 = vld [vmem:[%s30230_s1 + $0x570] sm:$0xff]  }
  0x71   :  { %20622 = vmatpush3.bf16.msra.mxu1 %v22904_v1  ;;  %v22964_v1 = vld [vmem:[%s30230_s1 + $0x5b8] sm:$0xff]  }
  0x72   :  { %20623 = vmatprep.subr.bf16.mxu1 %v22907_v4  ;;  %v22967_v4 = vld [vmem:[%s30230_s1 + $0x5f0] sm:$0xff]  }
  0x73   :  { %20602 = vmatpush3.bf16.msra.mxu0 %v22906_v3  ;;  %v22966_v3 = vld [vmem:[%s30230_s1 + $0x530] sm:$0xff]  }
  0x74   :  { %20603 = vmatprep.subr.bf16.mxu0 %v22909_v6  ;;  %v22969_v6 = vld [vmem:[%s30230_s1 + $0x568] sm:$0xff]  }
  0x75   :  { %20624 = vmatpush3.bf16.msra.mxu1 %v22908_v5  ;;  %v22968_v5 = vld [vmem:[%s30230_s1 + $0x5b0] sm:$0xff]  }
  0x76   :  { %20625 = vmatprep.subr.bf16.mxu1 %v22911_v8  ;;  %v22971_v8 = vld [vmem:[%s30230_s1 + $0x5e8] sm:$0xff]  }
  0x77   :  { %20604 = vmatpush3.bf16.msra.mxu0 %v22910_v7  ;;  %v22970_v7 = vld [vmem:[%s30230_s1 + $0x528] sm:$0xff]  }
  0x78   :  { %20605 = vmatprep.subr.bf16.mxu0 %v22913_v10  ;;  %v22973_v10 = vld [vmem:[%s30230_s1 + $0x560] sm:$0xff]  }
  0x79   :  { %20626 = vmatpush3.bf16.msra.mxu1 %v22912_v9  ;;  %v22972_v9 = vld [vmem:[%s30230_s1 + $0x5a8] sm:$0xff]  }
  0x7a   :  { %20627 = vmatprep.subr.bf16.mxu1 %v22915_v12  ;;  %v22975_v12 = vld [vmem:[%s30230_s1 + $0x5e0] sm:$0xff]  }
  0x7b   :  { %20606 = vmatpush3.bf16.msra.mxu0 %v22914_v11  ;;  %v22974_v11 = vld [vmem:[%s30230_s1 + $0x520] sm:$0xff]  }
  0x7c   :  { %20607 = vmatprep.subr.bf16.mxu0 %v22917_v14  ;;  %v22977_v14 = vld [vmem:[%s30230_s1 + $0x558] sm:$0xff]  }
  0x7d   :  { %20628 = vmatpush3.bf16.msra.mxu1 %v22916_v13  ;;  %v22976_v13 = vld [vmem:[%s30230_s1 + $0x5a0] sm:$0xff]  }
  0x7e   :  { %20629 = vmatprep.subr.bf16.mxu1 %v22919_v16  ;;  %v22979_v16 = vld [vmem:[%s30230_s1 + $0x5d8] sm:$0xff]  }
  0x7f   :  { %20608 = vmatpush3.bf16.msra.mxu0 %v22918_v15  ;;  %v22978_v15 = vld [vmem:[%s30230_s1 + $0x518] sm:$0xff]  }
  0x80   :  { %20637 = vmatprep.subr.bf16.mxu0 %v22923_v21  ;;  %v22984_v21 = vld [vmem:[%s30230_s1 + $0x590] sm:$0xff]  }
  0x81   :  { %20630 = vmatpush3.bf16.msra.mxu1 %v22922_v20  ;;  %v22983_v20 = vld [vmem:[%s30230_s1 + $0x5d0] sm:$0xff]  }
  0x82   :  { %14529 = vmatmul.mubr.bf16.vlgmr.msra.gmra.mxu0 %v18587_v18  ;;  %20659 = vmatprep.subr.bf16.mxu1 %v22927_v26  ;;  %v22981_v18 = vld [vmem:[%s30230_s1 + $0x550] sm:$0xff]   ;;  %v22989_v26 = vld [vmem:[%s30230_s1 + $0x540] sm:$0xff]  }
  0x83   :  { %20638 = vmatpush3.bf16.msra.mxu0 %v22926_v25  ;;  %14608 = vmatprep.mubr.bf16.mxu0 %v18592_v57  ;;  %v22988_v25 = vld [vmem:[%s30230_s1 + $0x588] sm:$0xff]   ;;  %v23018_v57 = vld [vmem:[%s30230_s1 + $0x610] sm:$0xff]  }
  0x84   :  { %14569 = vmatmul.mubr.bf16.vlgmr.msra.gmra.mxu1 %v18589_v23  ;;  %20639 = vmatprep.subr.bf16.mxu0 %v22929_v28  ;;  %v22986_v23 = vld [vmem:[%s30230_s1 + $0x508] sm:$0xff]   ;;  %v22991_v28 = vld [vmem:[%s30230_s1 + $0x5c0] sm:$0xff]  }
  0x85   :  { %20660 = vmatpush3.bf16.msra.mxu1 %v22928_v27  ;;  %14648 = vmatprep.mubr.bf16.mxu1 %v18594_v62  ;;  %v22990_v27 = vld [vmem:[%s30230_s1 + $0x500] sm:$0xff]   ;;  %v23023_v62 = vld [vmem:[%s30230_s1 + $0x6c8] sm:$0xff]  }
  0x86   :  { %20661 = vmatprep.subr.bf16.mxu1 %v22931_v30 }
  0x87   :  { %20640 = vmatpush3.bf16.msra.mxu0 %v22930_v29  ;;  %v32_v29 = vld [vmem:[%s30229_s0 + $0x50] sm:$0xff] }
  0x88   :  { %20641 = vmatprep.subr.bf16.mxu0 %v22933_v32  ;;  %v18595_v30 = vcombine.low %v32_v29, %v32_v29  ;;  %v22994_v32 = vld [vmem:[%s30230_s1 + $0x580] sm:$0xff]  }
  0x89   :  { %20662 = vmatpush3.bf16.msra.mxu1 %v22932_v31  ;;  %v18596_v31 = vcombine.high %v32_v29, %v32_v29 }
  0x8a   :  { %20663 = vmatprep.subr.bf16.mxu1 %v22935_v34  ;;  %v33_v34 = vld [vmem:[%s30229_s0 + $0x58] sm:$0xff] }
  0x8b   :  { %20642 = vmatpush3.bf16.msra.mxu0 %v22934_v33  ;;  %v22995_v33 = vld [vmem:[%s30230_s1 + $0x678] sm:$0xff]  }
  0x8c   :  { %20643 = vmatprep.subr.bf16.mxu0 %v22937_v36  ;;  %v18598_v36 = vcombine.high %v33_v34, %v33_v34 }
  0x8d   :  { %20664 = vmatpush3.bf16.msra.mxu1 %v22936_v35  ;;  %v18597_v35 = vcombine.low %v33_v34, %v33_v34  ;;  %v23044_v34 = vld [vmem:[%s30230_s1 + $0x7a8] sm:$0xff]  }
  0x8e   :  { %20665 = vmatprep.subr.bf16.mxu1 %v22939_v38  ;;  %v22999_v38 = vld [vmem:[%s30230_s1 + $0x6f8] sm:$0xff]  }
  0x8f   :  { %20644 = vmatpush3.bf16.msra.mxu0 %v22938_v37  ;;  %v22998_v37 = vld [vmem:[%s30230_s1 + $0x638] sm:$0xff]  }
  0x90   :  { %20645 = vmatprep.subr.bf16.mxu0 %v22941_v40  ;;  %v23001_v40 = vld [vmem:[%s30230_s1 + $0x670] sm:$0xff]  }
  0x91   :  { %20666 = vmatpush3.bf16.msra.mxu1 %v22940_v39  ;;  %v23000_v39 = vld [vmem:[%s30230_s1 + $0x6b8] sm:$0xff]  }
  0x92   :  { %20667 = vmatprep.subr.bf16.mxu1 %v22943_v42  ;;  %v23003_v42 = vld [vmem:[%s30230_s1 + $0x6f0] sm:$0xff]  }
  0x93   :  { %20646 = vmatpush3.bf16.msra.mxu0 %v22942_v41  ;;  %v23002_v41 = vld [vmem:[%s30230_s1 + $0x630] sm:$0xff]  }
  0x94   :  { %20647 = vmatprep.subr.bf16.mxu0 %v22945_v44  ;;  %v23005_v44 = vld [vmem:[%s30230_s1 + $0x668] sm:$0xff]  }
  0x95   :  { %20668 = vmatpush3.bf16.msra.mxu1 %v22944_v43  ;;  %v23004_v43 = vld [vmem:[%s30230_s1 + $0x6b0] sm:$0xff]  }
  0x96   :  { %20669 = vmatprep.subr.bf16.mxu1 %v22947_v46  ;;  %v23007_v46 = vld [vmem:[%s30230_s1 + $0x6e8] sm:$0xff]  }
  0x97   :  { %20648 = vmatpush3.bf16.msra.mxu0 %v22946_v45  ;;  %v23006_v45 = vld [vmem:[%s30230_s1 + $0x628] sm:$0xff]  }
  0x98   :  { %20649 = vmatprep.subr.bf16.mxu0 %v22949_v48  ;;  %v23009_v48 = vld [vmem:[%s30230_s1 + $0x660] sm:$0xff]  }
  0x99   :  { %20670 = vmatpush3.bf16.msra.mxu1 %v22948_v47  ;;  %v23008_v47 = vld [vmem:[%s30230_s1 + $0x6a8] sm:$0xff]  }
  0x9a   :  { %20671 = vmatprep.subr.bf16.mxu1 %v22951_v50  ;;  %v23011_v50 = vld [vmem:[%s30230_s1 + $0x6e0] sm:$0xff]  }
  0x9b   :  { %20650 = vmatpush3.bf16.msra.mxu0 %v22950_v49  ;;  %v23010_v49 = vld [vmem:[%s30230_s1 + $0x620] sm:$0xff]  }
  0x9c   :  { %20651 = vmatprep.subr.bf16.mxu0 %v22953_v52  ;;  %v23013_v52 = vld [vmem:[%s30230_s1 + $0x658] sm:$0xff]  }
  0x9d   :  { %20672 = vmatpush3.bf16.msra.mxu1 %v22952_v51  ;;  %v23012_v51 = vld [vmem:[%s30230_s1 + $0x6a0] sm:$0xff]  }
  0x9e   :  { %20673 = vmatprep.subr.bf16.mxu1 %v22955_v54  ;;  %v23015_v54 = vld [vmem:[%s30230_s1 + $0x6d8] sm:$0xff]  }
  0x9f   :  { %20652 = vmatpush3.bf16.msra.mxu0 %v22954_v53  ;;  %v23014_v53 = vld [vmem:[%s30230_s1 + $0x618] sm:$0xff]  }
  0xa0   :  { %20681 = vmatprep.subr.bf16.mxu0 %v22959_v59  ;;  %v23020_v59 = vld [vmem:[%s30230_s1 + $0x690] sm:$0xff]  }
  0xa1   :  { %20674 = vmatpush3.bf16.msra.mxu1 %v22958_v58  ;;  %v23019_v58 = vld [vmem:[%s30230_s1 + $0x6d0] sm:$0xff]  }
  0xa2   :  { %14609 = vmatmul.mubr.bf16.vlgmr.msra.gmra.mxu0 %v18591_v56  ;;  %20703 = vmatprep.subr.bf16.mxu1 %v22963_v0  ;;  %v23017_v56 = vld [vmem:[%s30230_s1 + $0x650] sm:$0xff]   ;;  %v23025_v0 = vld [vmem:[%s30230_s1 + $0x640] sm:$0xff]  }
  0xa3   :  { %20682 = vmatpush3.bf16.msra.mxu0 %v22962_v63  ;;  %14688 = vmatprep.mubr.bf16.mxu0 %v18596_v31  ;;  %v23024_v63 = vld [vmem:[%s30230_s1 + $0x688] sm:$0xff]  }
  0xa4   :  { %14649 = vmatmul.mubr.bf16.vlgmr.msra.gmra.mxu1 %v18593_v61  ;;  %20683 = vmatprep.subr.bf16.mxu0 %v22965_v2  ;;  %v23022_v61 = vld [vmem:[%s30230_s1 + $0x608] sm:$0xff]   ;;  %v23027_v2 = vld [vmem:[%s30230_s1 + $0x6c0] sm:$0xff]  }
  0xa5   :  { %20704 = vmatpush3.bf16.msra.mxu1 %v22964_v1  ;;  %14728 = vmatprep.mubr.bf16.mxu1 %v18598_v36  ;;  %v23026_v1 = vld [vmem:[%s30230_s1 + $0x600] sm:$0xff]   ;;  %v23041_v31 = vld [vmem:[%s30230_s1 + $0x768] sm:$0xff]  }
  0xa6   :  { %20705 = vmatprep.subr.bf16.mxu1 %v22967_v4  ;;  %v23046_v36 = vld [vmem:[%s30230_s1 + $0x720] sm:$0xff]  }
  0xa7   :  { %20684 = vmatpush3.bf16.msra.mxu0 %v22966_v3  ;;  %v34_v3 = vld [vmem:[%s30229_s0 + $0x60] sm:$0xff] }
  0xa8   :  { %20685 = vmatprep.subr.bf16.mxu0 %v22969_v6  ;;  %v18600_v6 = vcombine.high %v34_v3, %v34_v3 }
  0xa9   :  { %20706 = vmatpush3.bf16.msra.mxu1 %v22968_v5  ;;  %v18599_v5 = vcombine.low %v34_v3, %v34_v3 }
  0xaa   :  { %20707 = vmatprep.subr.bf16.mxu1 %v22971_v8  ;;  %v23031_v8 = vld [vmem:[%s30230_s1 + $0x778] sm:$0xff]  }
  0xab   :  { %20686 = vmatpush3.bf16.msra.mxu0 %v22970_v7  ;;  %v23030_v7 = vld [vmem:[%s30230_s1 + $0x680] sm:$0xff]  }
  0xac   :  { %20687 = vmatprep.subr.bf16.mxu0 %v22973_v10 }
  0xad   :  { %20708 = vmatpush3.bf16.msra.mxu1 %v22972_v9  ;;  %v35_v9 = vld [vmem:[%s30229_s0 + $0x68] sm:$0xff] }
  0xae   :  { %20709 = vmatprep.subr.bf16.mxu1 %v22975_v12  ;;  %v18601_v12 = vcombine.low %v35_v9, %v35_v9 }
  0xaf   :  { %20688 = vmatpush3.bf16.msra.mxu0 %v22974_v11 }
  0xb0   :  { %20689 = vmatprep.subr.bf16.mxu0 %v22977_v14  ;;  %v23034_v14 = vld [vmem:[%s30230_s1 + $0x738] sm:$0xff]  }
  0xb1   :  { %20710 = vmatpush3.bf16.msra.mxu1 %v22976_v13  ;;  %v18602_v13 = vcombine.high %v35_v9, %v35_v9 }
  0xb2   :  { %20711 = vmatprep.subr.bf16.mxu1 %v22979_v16 }
  0xb3   :  { %20690 = vmatpush3.bf16.msra.mxu0 %v22978_v15  ;;  %v18574_v15 = vld [vmem:[%s30231_s2] ss:$0 sm:$0xff] }
  0xb4   :  { %20691 = vmatprep.subr.bf16.mxu0 %v22981_v18 }
  0xb5   :  { %20712 = vmatpush3.bf16.msra.mxu1 %v22980_v17  ;;  %v23035_v17 = vld [vmem:[%s30230_s1 + $0x7f8] sm:$0xff]  }
  0xb6   :  { %20713 = vmatprep.subr.bf16.mxu1 %v22983_v20 }
  0xb7   :  { %20692 = vmatpush3.bf16.msra.mxu0 %v22982_v19 }
  0xb8   :  { %20693 = vmatprep.subr.bf16.mxu0 %v22985_v22 }
  0xb9   :  { %20714 = vmatpush3.bf16.msra.mxu1 %v22984_v21  ;;  %v23036_v21 = vld [vmem:[%s30230_s1 + $0x7b8] sm:$0xff]  }
  0xba   :  { %20715 = vmatprep.subr.bf16.mxu1 %v22987_v24 }
  0xbb   :  { %20694 = vmatpush3.bf16.msra.mxu0 %v22986_v23  ;;  %v23037_v23 = vld [vmem:[%s30230_s1 + $0x770] sm:$0xff]  }
  0xbc   :  { %20695 = vmatprep.subr.bf16.mxu0 %v22989_v26 }
  0xbd   :  { %20716 = vmatpush3.bf16.msra.mxu1 %v22988_v25 }
  0xbe   :  { %20717 = vmatprep.subr.bf16.mxu1 %v22991_v28  ;;  %v23039_v28 = vld [vmem:[%s30230_s1 + $0x7f0] sm:$0xff]  }
  0xbf   :  { %20696 = vmatpush3.bf16.msra.mxu0 %v22990_v27  ;;  %v23038_v27 = vld [vmem:[%s30230_s1 + $0x730] sm:$0xff]  }
  0xc0   :  { %20725 = vmatprep.subr.bf16.mxu0 %v22995_v33  ;;  %v23043_v33 = vld [vmem:[%s30230_s1 + $0x7e8] sm:$0xff]  }
  0xc1   :  { %20718 = vmatpush3.bf16.msra.mxu1 %v22994_v32  ;;  %v23042_v32 = vld [vmem:[%s30230_s1 + $0x728] sm:$0xff]  }
  0xc2   :  { %14689 = vmatmul.mubr.bf16.vlgmr.msra.gmra.mxu0 %v18595_v30  ;;  %20747 = vmatprep.subr.bf16.mxu1 %v22999_v38  ;;  %v23040_v30 = vld [vmem:[%s30230_s1 + $0x7b0] sm:$0xff]   ;;  %v23048_v38 = vld [vmem:[%s30230_s1 + $0x7a0] sm:$0xff]  }
  0xc3   :  { %20726 = vmatpush3.bf16.msra.mxu0 %v22998_v37  ;;  %14768 = vmatprep.mubr.bf16.mxu0 %v18600_v6  ;;  %v23047_v37 = vld [vmem:[%s30230_s1 + $0x7e0] sm:$0xff]  }
  0xc4   :  { %14729 = vmatmul.mubr.bf16.vlgmr.msra.gmra.mxu1 %v18597_v35  ;;  %20727 = vmatprep.subr.bf16.mxu0 %v23001_v40  ;;  %v23045_v35 = vld [vmem:[%s30230_s1 + $0x760] sm:$0xff]   ;;  %v23050_v40 = vld [vmem:[%s30230_s1 + $0x718] sm:$0xff]  }
  0xc5   :  { %20748 = vmatpush3.bf16.msra.mxu1 %v23000_v39  ;;  %14808 = vmatprep.mubr.bf16.mxu1 %v18602_v13  ;;  %v23049_v39 = vld [vmem:[%s30230_s1 + $0x758] sm:$0xff]   ;;  %v23074_v13 = vld [vmem:[%s30230_s1 + $0x830] sm:$0xff]  }
  0xc6   :  { %20749 = vmatprep.subr.bf16.mxu1 %v23003_v42  ;;  %v23052_v42 = vld [vmem:[%s30230_s1 + $0x798] sm:$0xff]  }
  0xc7   :  { %20728 = vmatpush3.bf16.msra.mxu0 %v23002_v41  ;;  %v23051_v41 = vld [vmem:[%s30230_s1 + $0x7d8] sm:$0xff]  }
  0xc8   :  { %20729 = vmatprep.subr.bf16.mxu0 %v23005_v44  ;;  %v23054_v44 = vld [vmem:[%s30230_s1 + $0x710] sm:$0xff]  }
  0xc9   :  { %20750 = vmatpush3.bf16.msra.mxu1 %v23004_v43  ;;  %v23053_v43 = vld [vmem:[%s30230_s1 + $0x750] sm:$0xff]  }
  0xca   :  { %20751 = vmatprep.subr.bf16.mxu1 %v23007_v46  ;;  %v23056_v46 = vld [vmem:[%s30230_s1 + $0x790] sm:$0xff]  }
  0xcb   :  { %20730 = vmatpush3.bf16.msra.mxu0 %v23006_v45  ;;  %v23055_v45 = vld [vmem:[%s30230_s1 + $0x7d0] sm:$0xff]  }
  0xcc   :  { %20731 = vmatprep.subr.bf16.mxu0 %v23009_v48  ;;  %v23058_v48 = vld [vmem:[%s30230_s1 + $0x708] sm:$0xff]  }
  0xcd   :  { %20752 = vmatpush3.bf16.msra.mxu1 %v23008_v47  ;;  %v23057_v47 = vld [vmem:[%s30230_s1 + $0x748] sm:$0xff]  }
  0xce   :  { %20753 = vmatprep.subr.bf16.mxu1 %v23011_v50  ;;  %v23060_v50 = vld [vmem:[%s30230_s1 + $0x788] sm:$0xff]  }
  0xcf   :  { %20732 = vmatpush3.bf16.msra.mxu0 %v23010_v49  ;;  %v23059_v49 = vld [vmem:[%s30230_s1 + $0x7c8] sm:$0xff]  }
  0xd0   :  { %20733 = vmatprep.subr.bf16.mxu0 %v23013_v52  ;;  %v23062_v52 = vld [vmem:[%s30230_s1 + $0x700] sm:$0xff]  }
  0xd1   :  { %20754 = vmatpush3.bf16.msra.mxu1 %v23012_v51  ;;  %v23061_v51 = vld [vmem:[%s30230_s1 + $0x740] sm:$0xff]  }
  0xd2   :  { %20755 = vmatprep.subr.bf16.mxu1 %v23015_v54 }
  0xd3   :  { %20734 = vmatpush3.bf16.msra.mxu0 %v23014_v53  ;;  %v23063_v53 = vld [vmem:[%s30230_s1 + $0x7c0] sm:$0xff]  }
  0xd4   :  { %20735 = vmatprep.subr.bf16.mxu0 %v23017_v56 }
  0xd5   :  { %20756 = vmatpush3.bf16.msra.mxu1 %v23016_v55  ;;  %v36_v55 = vld [vmem:[%s30229_s0 + $0x70] sm:$0xff] }
  0xd6   :  { %20757 = vmatprep.subr.bf16.mxu1 %v23019_v58  ;;  %v18603_v56 = vcombine.low %v36_v55, %v36_v55  ;;  %v23066_v58 = vld [vmem:[%s30230_s1 + $0x780] sm:$0xff]  }
  0xd7   :  { %20736 = vmatpush3.bf16.msra.mxu0 %v23018_v57  ;;  %v18604_v57 = vcombine.high %v36_v55, %v36_v55 }
  0xd8   :  { %20737 = vmatprep.subr.bf16.mxu0 %v23021_v60  ;;  %v23067_v60 = vld [vmem:[%s30230_s1 + $0x878] sm:$0xff]  }
  0xd9   :  { %20758 = vmatpush3.bf16.msra.mxu1 %v23020_v59 }
  0xda   :  { %20759 = vmatprep.subr.bf16.mxu1 %v23023_v62 }
  0xdb   :  { %20738 = vmatpush3.bf16.msra.mxu0 %v23022_v61  ;;  %v37_v61 = vld [vmem:[%s30229_s0 + $0x78] sm:$0xff] }
  0xdc   :  { %20739 = vmatprep.subr.bf16.mxu0 %v23025_v0  ;;  %v18605_v0 = vcombine.low %v37_v61, %v37_v61 }
  0xdd   :  { %20760 = vmatpush3.bf16.msra.mxu1 %v23024_v63 }
  0xde   :  { %20761 = vmatprep.subr.bf16.mxu1 %v23027_v2  ;;  %v23070_v2 = vld [vmem:[%s30230_s1 + $0x838] sm:$0xff]  }
  0xdf   :  { %20740 = vmatpush3.bf16.msra.mxu0 %v23026_v1  ;;  %v18606_v1 = vcombine.high %v37_v61, %v37_v61 }
  0xe0   :  { %20769 = vmatprep.subr.bf16.mxu0 %v23031_v8 }
  0xe1   :  { %20762 = vmatpush3.bf16.msra.mxu1 %v23030_v7  ;;  %v23072_v7 = vld [vmem:[%s30230_s1 + $0x8b8] sm:$0xff]  }
  0xe2   :  { %v20477_v4 = vpop.f32.mrf.mxu0  ;;  %14769 = vmatmul.mubr.bf16.vlgmr.msra.gmra.mxu0 %v18599_v5  ;;  %20791 = vmatprep.subr.bf16.mxu1 %v23035_v17  ;;  %v23071_v5 = vld [vmem:[%s30230_s1 + $0x8f8] sm:$0xff]   ;;  %v23077_v17 = vld [vmem:[%s30230_s1 + $0x868] sm:$0xff]  }
  0xe3   :  { %20770 = vmatpush3.bf16.msra.mxu0 %v23034_v14  ;;  %14848 = vmatprep.mubr.bf16.mxu0 %v18604_v57  ;;  %v23075_v14 = vld [vmem:[%s30230_s1 + $0x8f0] sm:$0xff]  }
  0xe4   :  { %v20478_v10 = vpop.f32.mrf.mxu0  ;;  %v20499_v11 = vpop.f32.mrf.mxu1  ;;  %14809 = vmatmul.mubr.bf16.vlgmr.msra.gmra.mxu1 %v18601_v12  ;;  %20771 = vmatprep.subr.bf16.mxu0 %v23037_v23  ;;  %v23083_v23 = vld [vmem:[%s30230_s1 + $0x8e0] sm:$0xff]  }
  0xe5   :  { %v20479_v16 = vadd.f32 %v20478_v10, %v20477_v4  ;;  %20792 = vmatpush3.bf16.msra.mxu1 %v23036_v21  ;;  %14888 = vmatprep.mubr.bf16.mxu1 %v18606_v1  ;;  %v23073_v10 = vld [vmem:[%s30230_s1 + $0x870] sm:$0xff]   ;;  %v23081_v21 = vld [vmem:[%s30230_s1 + $0x860] sm:$0xff]  }
  0xe6   :  { %v20480_v18 = vpop.f32.mrf.mxu0  ;;  %v20500_v19 = vpop.f32.mrf.mxu1  ;;  %20793 = vmatprep.subr.bf16.mxu1 %v23039_v28  ;;  %v23088_v28 = vld [vmem:[%s30230_s1 + $0x898] sm:$0xff]   ;;  %v23111_v1 = vld [vmem:[%s30230_s1 + $0x9f0] sm:$0xff]  }
  0xe7   :  { %v14291_v20 = vadd.f32 %v20479_v16, %v18574_v15  ;;  %v20501_v22 = vadd.f32 %v20500_v19, %v20499_v11  ;;  %20772 = vmatpush3.bf16.msra.mxu0 %v23038_v27  ;;  %v23076_v16 = vld [vmem:[%s30230_s1 + $0x8b0] sm:$0xff]   ;;  %v23078_v18 = vld [vmem:[%s30230_s1 + $0x828] sm:$0xff]   ;;  %v23087_v27 = vld [vmem:[%s30230_s1 + $0x8d8] sm:$0xff]  }
  0xe8   :  { %v20481_v24 = vpop.f32.mrf.mxu0  ;;  %v20502_v25 = vpop.f32.mrf.mxu1  ;;  %20773 = vmatprep.subr.bf16.mxu0 %v23041_v31  ;;  %v23079_v19 = vld [vmem:[%s30230_s1 + $0x8e8] sm:$0xff]   ;;  %v23091_v31 = vld [vmem:[%s30230_s1 + $0x8d0] sm:$0xff]  }
  0xe9   :  { %v25456_v26 = vadd.f32 %v20501_v22, %v14291_v20  ;;  %20794 = vmatpush3.bf16.msra.mxu1 %v23040_v30  ;;  %v23080_v20 = vld [vmem:[%s30230_s1 + $0x8a8] sm:$0xff]   ;;  %v23082_v22 = vld [vmem:[%s30230_s1 + $0x820] sm:$0xff]   ;;  %v23085_v25 = vld [vmem:[%s30230_s1 + $0x858] sm:$0xff]  }
  0xea   :  { %v20503_v29 = vpop.f32.mrf.mxu1  ;;  %20795 = vmatprep.subr.bf16.mxu1 %v23043_v33  ;;  %v23084_v24 = vld [vmem:[%s30230_s1 + $0x8a0] sm:$0xff]   ;;  %v23090_v30 = vld [vmem:[%s30230_s1 + $0x810] sm:$0xff]   ;;  %v23093_v33 = vld [vmem:[%s30230_s1 + $0x848] sm:$0xff]  }
  0xeb   :  { %20774 = vmatpush3.bf16.msra.mxu0 %v23042_v32  ;;  %v23089_v29 = vld [vmem:[%s30230_s1 + $0x850] sm:$0xff]  }
  0xec   :  { %20775 = vmatprep.subr.bf16.mxu0 %v23045_v35  ;;  %v23092_v32 = vld [vmem:[%s30230_s1 + $0x890] sm:$0xff]   ;;  %v23095_v35 = vld [vmem:[%s30230_s1 + $0x8c8] sm:$0xff]  }
  0xed   :  { %20796 = vmatpush3.bf16.msra.mxu1 %v23044_v34  ;;  %v23094_v34 = vld [vmem:[%s30230_s1 + $0x808] sm:$0xff]  }
  0xee   :  { %20797 = vmatprep.subr.bf16.mxu1 %v23047_v37  ;;  %v23097_v37 = vld [vmem:[%s30230_s1 + $0x840] sm:$0xff]  }
  0xef   :  { %20776 = vmatpush3.bf16.msra.mxu0 %v23046_v36  ;;  %v23096_v36 = vld [vmem:[%s30230_s1 + $0x888] sm:$0xff]  }
  0xf0   :  { %20777 = vmatprep.subr.bf16.mxu0 %v23049_v39  ;;  %v23099_v39 = vld [vmem:[%s30230_s1 + $0x8c0] sm:$0xff]  }
  0xf1   :  { %20798 = vmatpush3.bf16.msra.mxu1 %v23048_v38  ;;  %v23098_v38 = vld [vmem:[%s30230_s1 + $0x800] sm:$0xff]  }
  0xf2   :  { %20799 = vmatprep.subr.bf16.mxu1 %v23051_v41 }
  0xf3   :  { %20778 = vmatpush3.bf16.msra.mxu0 %v23050_v40  ;;  %v38_v40 = vld [vmem:[%s30229_s0 + $0x80] sm:$0xff] }
  0xf4   :  { %20779 = vmatprep.subr.bf16.mxu0 %v23053_v43  ;;  %v18608_v43 = vcombine.high %v38_v40, %v38_v40 }
  0xf5   :  { %20800 = vmatpush3.bf16.msra.mxu1 %v23052_v42  ;;  %v18607_v42 = vcombine.low %v38_v40, %v38_v40 }
  0xf6   :  { %20801 = vmatprep.subr.bf16.mxu1 %v23055_v45  ;;  %v23103_v45 = vld [vmem:[%s30230_s1 + $0x978] sm:$0xff]  }
  0xf7   :  { %20780 = vmatpush3.bf16.msra.mxu0 %v23054_v44  ;;  %v23102_v44 = vld [vmem:[%s30230_s1 + $0x880] sm:$0xff]  }
  0xf8   :  { %20781 = vmatprep.subr.bf16.mxu0 %v23057_v47 }
  0xf9   :  { %20802 = vmatpush3.bf16.msra.mxu1 %v23056_v46 }
  0xfa   :  { %20803 = vmatprep.subr.bf16.mxu1 %v23059_v49 }
  0xfb   :  { %20782 = vmatpush3.bf16.msra.mxu0 %v23058_v48  ;;  %v39_v48 = vld [vmem:[%s30229_s0 + $0x88] sm:$0xff] }
  0xfc   :  { %20783 = vmatprep.subr.bf16.mxu0 %v23061_v51  ;;  %v18610_v51 = vcombine.high %v39_v48, %v39_v48 }
  0xfd   :  { %20804 = vmatpush3.bf16.msra.mxu1 %v23060_v50  ;;  %v18609_v50 = vcombine.low %v39_v48, %v39_v48 }
  0xfe   :  { %20805 = vmatprep.subr.bf16.mxu1 %v23063_v53 }
  0xff   :  { %20784 = vmatpush3.bf16.msra.mxu0 %v23062_v52  ;;  %v23106_v52 = vld [vmem:[%s30230_s1 + $0x938] sm:$0xff]  }
 0x100   :  { %20813 = vmatprep.subr.bf16.mxu0 %v23067_v60 }
 0x101   :  { %20806 = vmatpush3.bf16.msra.mxu1 %v23066_v58  ;;  %v23108_v58 = vld [vmem:[%s30230_s1 + $0x9b8] sm:$0xff]  }
 0x102   :  { %v20521_v54 = vpop.f32.mrf.mxu0  ;;  %14849 = vmatmul.mubr.bf16.vlgmr.msra.gmra.mxu0 %v18603_v56  ;;  %20835 = vmatprep.subr.bf16.mxu1 %v23071_v5  ;;  %v23107_v56 = vld [vmem:[%s30230_s1 + $0x9f8] sm:$0xff]   ;;  %v23115_v5 = vld [vmem:[%s30230_s1 + $0x9e8] sm:$0xff]  }
 0x103   :  { %20814 = vmatpush3.bf16.msra.mxu0 %v23070_v2  ;;  %14928 = vmatprep.mubr.bf16.mxu0 %v18608_v43  ;;  %v23112_v2 = vld [vmem:[%s30230_s1 + $0x9b0] sm:$0xff]   ;;  %v23144_v43 = vld [vmem:[%s30230_s1 + $0xab8] sm:$0xff]  }
 0x104   :  { %v20522_v59 = vpop.f32.mrf.mxu0  ;;  %v20543_v63 = vpop.f32.mrf.mxu1  ;;  %14889 = vmatmul.mubr.bf16.vlgmr.msra.gmra.mxu1 %v18605_v0  ;;  %20815 = vmatprep.subr.bf16.mxu0 %v23073_v10  ;;  %v23120_v10 = vld [vmem:[%s30230_s1 + $0x9a0] sm:$0xff]  }
 0x105   :  { %v20523_v62 = vadd.f32 %v20522_v59, %v20521_v54  ;;  %20836 = vmatpush3.bf16.msra.mxu1 %v23072_v7  ;;  %14968 = vmatprep.mubr.bf16.mxu1 %v18610_v51  ;;  %v23117_v7 = vld [vmem:[%s30230_s1 + $0x960] sm:$0xff]  }
 0x106   :  { %v20524_v3 = vpop.f32.mrf.mxu0  ;;  %v20544_v6 = vpop.f32.mrf.mxu1  ;;  %20837 = vmatprep.subr.bf16.mxu1 %v23075_v14  ;;  %v23124_v14 = vld [vmem:[%s30230_s1 + $0x998] sm:$0xff]  }
 0x107   :  { %v14371_v4 = vadd.f32 %v20523_v62, %v25456_v26  ;;  %v20545_v8 = vadd.f32 %v20544_v6, %v20543_v63  ;;  %20816 = vmatpush3.bf16.msra.mxu0 %v23074_v13  ;;  %v23086_v26 = vld [vmem:[%s30230_s1 + $0x818] sm:$0xff]   ;;  %v23109_v62 = vld [vmem:[%s30230_s1 + $0x970] sm:$0xff]   ;;  %v23113_v3 = vld [vmem:[%s30230_s1 + $0x968] sm:$0xff]  }
 0x108   :  { %v20525_v9 = vpop.f32.mrf.mxu0  ;;  %v20546_v11 = vpop.f32.mrf.mxu1  ;;  %20817 = vmatprep.subr.bf16.mxu0 %v23077_v17  ;;  %v23110_v63 = vld [vmem:[%s30230_s1 + $0x930] sm:$0xff]   ;;  %v23116_v6 = vld [vmem:[%s30230_s1 + $0x9a8] sm:$0xff]   ;;  %v23123_v13 = vld [vmem:[%s30230_s1 + $0x9d8] sm:$0xff]  }
 0x109   :  { %v25561_v12 = vadd.f32 %v20545_v8, %v14371_v4  ;;  %20838 = vmatpush3.bf16.msra.mxu1 %v23076_v16  ;;  %v23114_v4 = vld [vmem:[%s30230_s1 + $0x928] sm:$0xff]   ;;  %v23118_v8 = vld [vmem:[%s30230_s1 + $0x920] sm:$0xff]   ;;  %v23121_v11 = vld [vmem:[%s30230_s1 + $0x958] sm:$0xff]  }
 0x10a   :  { %v20547_v15 = vpop.f32.mrf.mxu1  ;;  %20839 = vmatprep.subr.bf16.mxu1 %v23079_v19  ;;  %v23119_v9 = vld [vmem:[%s30230_s1 + $0x9e0] sm:$0xff]   ;;  %v23126_v16 = vld [vmem:[%s30230_s1 + $0x910] sm:$0xff]   ;;  %v23129_v19 = vld [vmem:[%s30230_s1 + $0x948] sm:$0xff]  }
 0x10b   :  { %20818 = vmatpush3.bf16.msra.mxu0 %v23078_v18  ;;  %v23125_v15 = vld [vmem:[%s30230_s1 + $0x950] sm:$0xff]  }
 0x10c   :  { %20819 = vmatprep.subr.bf16.mxu0 %v23081_v21  ;;  %v23127_v17 = vld [vmem:[%s30230_s1 + $0x9d0] sm:$0xff]   ;;  %v23131_v21 = vld [vmem:[%s30230_s1 + $0x9c8] sm:$0xff]  }
 0x10d   :  { %20840 = vmatpush3.bf16.msra.mxu1 %v23080_v20  ;;  %v23128_v18 = vld [vmem:[%s30230_s1 + $0x990] sm:$0xff]   ;;  %v23130_v20 = vld [vmem:[%s30230_s1 + $0x908] sm:$0xff]  }
 0x10e   :  { %20841 = vmatprep.subr.bf16.mxu1 %v23083_v23  ;;  %v23133_v23 = vld [vmem:[%s30230_s1 + $0x940] sm:$0xff]  }
 0x10f   :  { %20820 = vmatpush3.bf16.msra.mxu0 %v23082_v22  ;;  %v23132_v22 = vld [vmem:[%s30230_s1 + $0x988] sm:$0xff]  }
 0x110   :  { %20821 = vmatprep.subr.bf16.mxu0 %v23085_v25  ;;  %v23135_v25 = vld [vmem:[%s30230_s1 + $0x9c0] sm:$0xff]  }
 0x111   :  { %20842 = vmatpush3.bf16.msra.mxu1 %v23084_v24  ;;  %v23134_v24 = vld [vmem:[%s30230_s1 + $0x900] sm:$0xff]  }
 0x112   :  { %20843 = vmatprep.subr.bf16.mxu1 %v23087_v27 }
 0x113   :  { %20822 = vmatpush3.bf16.msra.mxu0 %v23086_v26  ;;  %v40_v26 = vld [vmem:[%s30229_s0 + $0x90] sm:$0xff] }
 0x114   :  { %20823 = vmatprep.subr.bf16.mxu0 %v23089_v29  ;;  %v18612_v29 = vcombine.high %v40_v26, %v40_v26 }
 0x115   :  { %20844 = vmatpush3.bf16.msra.mxu1 %v23088_v28  ;;  %v18611_v28 = vcombine.low %v40_v26, %v40_v26 }
 0x116   :  { %20845 = vmatprep.subr.bf16.mxu1 %v23091_v31  ;;  %v23139_v31 = vld [vmem:[%s30230_s1 + $0xa78] sm:$0xff]  }
 0x117   :  { %20824 = vmatpush3.bf16.msra.mxu0 %v23090_v30  ;;  %v23138_v30 = vld [vmem:[%s30230_s1 + $0x980] sm:$0xff]  }
 0x118   :  { %20825 = vmatprep.subr.bf16.mxu0 %v23093_v33 }
 0x119   :  { %20846 = vmatpush3.bf16.msra.mxu1 %v23092_v32  ;;  %v41_v32 = vld [vmem:[%s30229_s0 + $0x98] sm:$0xff] }
 0x11a   :  { %20847 = vmatprep.subr.bf16.mxu1 %v23095_v35  ;;  %v18613_v35 = vcombine.low %v41_v32, %v41_v32 }
 0x11b   :  { %20826 = vmatpush3.bf16.msra.mxu0 %v23094_v34 }
 0x11c   :  { %20827 = vmatprep.subr.bf16.mxu0 %v23097_v37  ;;  %v23142_v37 = vld [vmem:[%s30230_s1 + $0xa38] sm:$0xff]  }
 0x11d   :  { %20848 = vmatpush3.bf16.msra.mxu1 %v23096_v36  ;;  %v18614_v36 = vcombine.high %v41_v32, %v41_v32  ;;  %v23181_v32 = vld [vmem:[%s30230_s1 + $0xb70] sm:$0xff]  }
 0x11e   :  { %20849 = vmatprep.subr.bf16.mxu1 %v23099_v39  ;;  %v23143_v39 = vld [vmem:[%s30230_s1 + $0xaf8] sm:$0xff]  }
 0x11f   :  { %20828 = vmatpush3.bf16.msra.mxu0 %v23098_v38 }
 0x120   :  { %20857 = vmatprep.subr.bf16.mxu0 %v23103_v45  ;;  %v23145_v45 = vld [vmem:[%s30230_s1 + $0xa70] sm:$0xff]  }
 0x121   :  { %20850 = vmatpush3.bf16.msra.mxu1 %v23102_v44 }
 0x122   :  { %v20565_v41 = vpop.f32.mrf.mxu0  ;;  %14929 = vmatmul.mubr.bf16.vlgmr.msra.gmra.mxu0 %v18607_v42  ;;  %20879 = vmatprep.subr.bf16.mxu1 %v23107_v56  ;;  %v23152_v56 = vld [vmem:[%s30230_s1 + $0xaa8] sm:$0xff]  }
 0x123   :  { %20858 = vmatpush3.bf16.msra.mxu0 %v23106_v52  ;;  %15008 = vmatprep.mubr.bf16.mxu0 %v18612_v29  ;;  %v23148_v52 = vld [vmem:[%s30230_s1 + $0xab0] sm:$0xff]   ;;  %v23180_v29 = vld [vmem:[%s30230_s1 + $0xbb8] sm:$0xff]  }
 0x124   :  { %v20566_v46 = vpop.f32.mrf.mxu0  ;;  %v20587_v47 = vpop.f32.mrf.mxu1  ;;  %14969 = vmatmul.mubr.bf16.vlgmr.msra.gmra.mxu1 %v18609_v50  ;;  %20859 = vmatprep.subr.bf16.mxu0 %v23109_v62  ;;  %v23147_v50 = vld [vmem:[%s30230_s1 + $0xaf0] sm:$0xff]   ;;  %v23158_v62 = vld [vmem:[%s30230_s1 + $0xa18] sm:$0xff]  }
 0x125   :  { %v20567_v49 = vadd.f32 %v20566_v46, %v20565_v41  ;;  %20880 = vmatpush3.bf16.msra.mxu1 %v23108_v58  ;;  %15048 = vmatprep.mubr.bf16.mxu1 %v18614_v36  ;;  %v23154_v58 = vld [vmem:[%s30230_s1 + $0xa20] sm:$0xff]   ;;  %v23183_v36 = vld [vmem:[%s30230_s1 + $0xbf0] sm:$0xff]  }
 0x126   :  { %v20568_v53 = vpop.f32.mrf.mxu0  ;;  %v20588_v54 = vpop.f32.mrf.mxu1  ;;  %20881 = vmatprep.subr.bf16.mxu1 %v23111_v1  ;;  %v23161_v1 = vld [vmem:[%s30230_s1 + $0xa50] sm:$0xff]  }
 0x127   :  { %v14451_v55 = vadd.f32 %v20567_v49, %v25561_v12  ;;  %v20589_v57 = vadd.f32 %v20588_v54, %v20587_v47  ;;  %20860 = vmatpush3.bf16.msra.mxu0 %v23110_v63  ;;  %v23122_v12 = vld [vmem:[%s30230_s1 + $0x918] sm:$0xff]   ;;  %v23146_v49 = vld [vmem:[%s30230_s1 + $0xa30] sm:$0xff]   ;;  %v23149_v53 = vld [vmem:[%s30230_s1 + $0xa68] sm:$0xff]  }
 0x128   :  { %v20569_v59 = vpop.f32.mrf.mxu0  ;;  %v20590_v60 = vpop.f32.mrf.mxu1  ;;  %20861 = vmatprep.subr.bf16.mxu0 %v23113_v3  ;;  %v23150_v54 = vld [vmem:[%s30230_s1 + $0xa28] sm:$0xff]   ;;  %v23159_v63 = vld [vmem:[%s30230_s1 + $0xad8] sm:$0xff]   ;;  %v23163_v3 = vld [vmem:[%s30230_s1 + $0xad0] sm:$0xff]  }
 0x129   :  { %v25663_v61 = vadd.f32 %v20589_v57, %v14451_v55  ;;  %20882 = vmatpush3.bf16.msra.mxu1 %v23112_v2  ;;  %v23151_v55 = vld [vmem:[%s30230_s1 + $0xae8] sm:$0xff]   ;;  %v23153_v57 = vld [vmem:[%s30230_s1 + $0xa60] sm:$0xff]   ;;  %v23162_v2 = vld [vmem:[%s30230_s1 + $0xa10] sm:$0xff]  }
 0x12a   :  { %v20591_v0 = vpop.f32.mrf.mxu1  ;;  %20883 = vmatprep.subr.bf16.mxu1 %v23115_v5  ;;  %v23155_v59 = vld [vmem:[%s30230_s1 + $0xae0] sm:$0xff]   ;;  %v23165_v5 = vld [vmem:[%s30230_s1 + $0xa48] sm:$0xff]  }
 0x12b   :  { %20862 = vmatpush3.bf16.msra.mxu0 %v23114_v4  ;;  %v23156_v60 = vld [vmem:[%s30230_s1 + $0xaa0] sm:$0xff]   ;;  %v23160_v0 = vld [vmem:[%s30230_s1 + $0xa98] sm:$0xff]   ;;  %v23164_v4 = vld [vmem:[%s30230_s1 + $0xa90] sm:$0xff]  }
 0x12c   :  { %20863 = vmatprep.subr.bf16.mxu0 %v23117_v7  ;;  %v23167_v7 = vld [vmem:[%s30230_s1 + $0xac8] sm:$0xff]  }
 0x12d   :  { %20884 = vmatpush3.bf16.msra.mxu1 %v23116_v6  ;;  %v23166_v6 = vld [vmem:[%s30230_s1 + $0xa08] sm:$0xff]  }
 0x12e   :  { %20885 = vmatprep.subr.bf16.mxu1 %v23119_v9  ;;  %v23169_v9 = vld [vmem:[%s30230_s1 + $0xa40] sm:$0xff]  }
 0x12f   :  { %20864 = vmatpush3.bf16.msra.mxu0 %v23118_v8  ;;  %v23168_v8 = vld [vmem:[%s30230_s1 + $0xa88] sm:$0xff]  }
 0x130   :  { %20865 = vmatprep.subr.bf16.mxu0 %v23121_v11  ;;  %v23171_v11 = vld [vmem:[%s30230_s1 + $0xac0] sm:$0xff]  }
 0x131   :  { %20886 = vmatpush3.bf16.msra.mxu1 %v23120_v10  ;;  %v23170_v10 = vld [vmem:[%s30230_s1 + $0xa00] sm:$0xff]  }
 0x132   :  { %20887 = vmatprep.subr.bf16.mxu1 %v23123_v13  ;;  %v42_v13 = vld [vmem:[%s30229_s0 + $0xa0] sm:$0xff] }
 0x133   :  { %20866 = vmatpush3.bf16.msra.mxu0 %v23122_v12 }
 0x134   :  { %20867 = vmatprep.subr.bf16.mxu0 %v23125_v15  ;;  %v18616_v15 = vcombine.high %v42_v13, %v42_v13 }
 0x135   :  { %20888 = vmatpush3.bf16.msra.mxu1 %v23124_v14  ;;  %v18615_v14 = vcombine.low %v42_v13, %v42_v13 }
 0x136   :  { %20889 = vmatprep.subr.bf16.mxu1 %v23127_v17 }
 0x137   :  { %20868 = vmatpush3.bf16.msra.mxu0 %v23126_v16  ;;  %v23174_v16 = vld [vmem:[%s30230_s1 + $0xa80] sm:$0xff]  }
 0x138   :  { %20869 = vmatprep.subr.bf16.mxu0 %v23129_v19  ;;  %v43_v19 = vld [vmem:[%s30229_s0 + $0xa8] sm:$0xff] }
 0x139   :  { %20890 = vmatpush3.bf16.msra.mxu1 %v23128_v18  ;;  %v23175_v18 = vld [vmem:[%s30230_s1 + $0xb78] sm:$0xff]  }
 0x13a   :  { %20891 = vmatprep.subr.bf16.mxu1 %v23131_v21 }
 0x13b   :  { %20870 = vmatpush3.bf16.msra.mxu0 %v23130_v20 }
 0x13c   :  { %20871 = vmatprep.subr.bf16.mxu0 %v23133_v23  ;;  %v18618_v23 = vcombine.high %v43_v19, %v43_v19 }
 0x13d   :  { %20892 = vmatpush3.bf16.msra.mxu1 %v23132_v22  ;;  %v18617_v22 = vcombine.low %v43_v19, %v43_v19 }
 0x13e   :  { %20893 = vmatprep.subr.bf16.mxu1 %v23135_v25 }
 0x13f   :  { %20872 = vmatpush3.bf16.msra.mxu0 %v23134_v24  ;;  %v23178_v24 = vld [vmem:[%s30230_s1 + $0xb38] sm:$0xff]  }
 0x140   :  { %20901 = vmatprep.subr.bf16.mxu0 %v23139_v31 }
 0x141   :  { %20894 = vmatpush3.bf16.msra.mxu1 %v23138_v30 }
 0x142   :  { %v20609_v27 = vpop.f32.mrf.mxu0  ;;  %15009 = vmatmul.mubr.bf16.vlgmr.msra.gmra.mxu0 %v18611_v28  ;;  %20923 = vmatprep.subr.bf16.mxu1 %v23143_v39  ;;  %v23185_v39 = vld [vmem:[%s30230_s1 + $0xb68] sm:$0xff]  }
 0x143   :  { %20902 = vmatpush3.bf16.msra.mxu0 %v23142_v37  ;;  %15088 = vmatprep.mubr.bf16.mxu0 %v18616_v15 }
 0x144   :  { %v20610_v33 = vpop.f32.mrf.mxu0  ;;  %v20631_v34 = vpop.f32.mrf.mxu1  ;;  %15049 = vmatmul.mubr.bf16.vlgmr.msra.gmra.mxu1 %v18613_v35  ;;  %20903 = vmatprep.subr.bf16.mxu0 %v23145_v45  ;;  %v23182_v35 = vld [vmem:[%s30230_s1 + $0xb30] sm:$0xff]   ;;  %v23191_v45 = vld [vmem:[%s30230_s1 + $0xbe0] sm:$0xff]  }
 0x145   :  { %v20611_v38 = vadd.f32 %v20610_v33, %v20609_v27  ;;  %20924 = vmatpush3.bf16.msra.mxu1 %v23144_v43  ;;  %v23179_v27 = vld [vmem:[%s30230_s1 + $0xbf8] sm:$0xff]   ;;  %15128 = vmatprep.mubr.bf16.mxu1 %v18618_v23  ;;  %v23189_v43 = vld [vmem:[%s30230_s1 + $0xb60] sm:$0xff]   ;;  %v23219_v23 = vld [vmem:[%s30230_s1 + $0xcf0] sm:$0xff]  }
 0x146   :  { %v20612_v40 = vpop.f32.mrf.mxu0  ;;  %v20632_v41 = vpop.f32.mrf.mxu1  ;;  %20925 = vmatprep.subr.bf16.mxu1 %v23147_v50  ;;  %v23196_v50 = vld [vmem:[%s30230_s1 + $0xb98] sm:$0xff]  }
 0x147   :  { %v14531_v42 = vadd.f32 %v20611_v38, %v25663_v61  ;;  %v20633_v44 = vadd.f32 %v20632_v41, %v20631_v34  ;;  %20904 = vmatpush3.bf16.msra.mxu0 %v23146_v49  ;;  %v23157_v61 = vld [vmem:[%s30230_s1 + $0xa58] sm:$0xff]   ;;  %v23184_v38 = vld [vmem:[%s30230_s1 + $0xbb0] sm:$0xff]   ;;  %v23186_v40 = vld [vmem:[%s30230_s1 + $0xb28] sm:$0xff]  }
 0x148   :  { %v20613_v46 = vpop.f32.mrf.mxu0  ;;  %v20634_v47 = vpop.f32.mrf.mxu1  ;;  %20905 = vmatprep.subr.bf16.mxu0 %v23149_v53  ;;  %v23187_v41 = vld [vmem:[%s30230_s1 + $0xbe8] sm:$0xff]   ;;  %v23195_v49 = vld [vmem:[%s30230_s1 + $0xbd8] sm:$0xff]   ;;  %v23199_v53 = vld [vmem:[%s30230_s1 + $0xbd0] sm:$0xff]  }
 0x149   :  { %v25771_v48 = vadd.f32 %v20633_v44, %v14531_v42  ;;  %20926 = vmatpush3.bf16.msra.mxu1 %v23148_v52  ;;  %v23188_v42 = vld [vmem:[%s30230_s1 + $0xba8] sm:$0xff]   ;;  %v23190_v44 = vld [vmem:[%s30230_s1 + $0xb20] sm:$0xff]   ;;  %v23193_v47 = vld [vmem:[%s30230_s1 + $0xb58] sm:$0xff]  }
 0x14a   :  { %v20635_v51 = vpop.f32.mrf.mxu1  ;;  %20927 = vmatprep.subr.bf16.mxu1 %v23151_v55  ;;  %v23192_v46 = vld [vmem:[%s30230_s1 + $0xba0] sm:$0xff]   ;;  %v23198_v52 = vld [vmem:[%s30230_s1 + $0xb10] sm:$0xff]   ;;  %v23201_v55 = vld [vmem:[%s30230_s1 + $0xb48] sm:$0xff]  }
 0x14b   :  { %20906 = vmatpush3.bf16.msra.mxu0 %v23150_v54  ;;  %v23197_v51 = vld [vmem:[%s30230_s1 + $0xb50] sm:$0xff]  }
 0x14c   :  { %20907 = vmatprep.subr.bf16.mxu0 %v23153_v57  ;;  %v23200_v54 = vld [vmem:[%s30230_s1 + $0xb90] sm:$0xff]   ;;  %v23203_v57 = vld [vmem:[%s30230_s1 + $0xbc8] sm:$0xff]  }
 0x14d   :  { %20928 = vmatpush3.bf16.msra.mxu1 %v23152_v56  ;;  %v23202_v56 = vld [vmem:[%s30230_s1 + $0xb08] sm:$0xff]  }
 0x14e   :  { %20929 = vmatprep.subr.bf16.mxu1 %v23155_v59  ;;  %v23205_v59 = vld [vmem:[%s30230_s1 + $0xb40] sm:$0xff]  }
 0x14f   :  { %20908 = vmatpush3.bf16.msra.mxu0 %v23154_v58  ;;  %v23204_v58 = vld [vmem:[%s30230_s1 + $0xb88] sm:$0xff]  }
 0x150   :  { %20909 = vmatprep.subr.bf16.mxu0 %v23157_v61  ;;  %v23207_v61 = vld [vmem:[%s30230_s1 + $0xbc0] sm:$0xff]  }
 0x151   :  { %20930 = vmatpush3.bf16.msra.mxu1 %v23156_v60  ;;  %v23206_v60 = vld [vmem:[%s30230_s1 + $0xb00] sm:$0xff]  }
 0x152   :  { %20931 = vmatprep.subr.bf16.mxu1 %v23159_v63 }
 0x153   :  { %20910 = vmatpush3.bf16.msra.mxu0 %v23158_v62  ;;  %v44_v62 = vld [vmem:[%s30229_s0 + $0xb0] sm:$0xff] }
 0x154   :  { %20911 = vmatprep.subr.bf16.mxu0 %v23161_v1  ;;  %v18620_v1 = vcombine.high %v44_v62, %v44_v62 }
 0x155   :  { %20932 = vmatpush3.bf16.msra.mxu1 %v23160_v0  ;;  %v18619_v0 = vcombine.low %v44_v62, %v44_v62 }
 0x156   :  { %20933 = vmatprep.subr.bf16.mxu1 %v23163_v3  ;;  %v23211_v3 = vld [vmem:[%s30230_s1 + $0xc78] sm:$0xff]  }
 0x157   :  { %20912 = vmatpush3.bf16.msra.mxu0 %v23162_v2  ;;  %v23210_v2 = vld [vmem:[%s30230_s1 + $0xb80] sm:$0xff]  }
 0x158   :  { %20913 = vmatprep.subr.bf16.mxu0 %v23165_v5 }
 0x159   :  { %20934 = vmatpush3.bf16.msra.mxu1 %v23164_v4 }
 0x15a   :  { %20935 = vmatprep.subr.bf16.mxu1 %v23167_v7 }
 0x15b   :  { %20914 = vmatpush3.bf16.msra.mxu0 %v23166_v6  ;;  %v45_v6 = vld [vmem:[%s30229_s0 + $0xb8] sm:$0xff] }
 0x15c   :  { %20915 = vmatprep.subr.bf16.mxu0 %v23169_v9  ;;  %v18622_v9 = vcombine.high %v45_v6, %v45_v6 }
 0x15d   :  { %20936 = vmatpush3.bf16.msra.mxu1 %v23168_v8  ;;  %v18621_v8 = vcombine.low %v45_v6, %v45_v6 }
 0x15e   :  { %20937 = vmatprep.subr.bf16.mxu1 %v23171_v11 }
 0x15f   :  { %20916 = vmatpush3.bf16.msra.mxu0 %v23170_v10  ;;  %v23214_v10 = vld [vmem:[%s30230_s1 + $0xc38] sm:$0xff]  }
 0x160   :  { %20945 = vmatprep.subr.bf16.mxu0 %v23175_v18 }
 0x161   :  { %20938 = vmatpush3.bf16.msra.mxu1 %v23174_v16  ;;  %v23216_v16 = vld [vmem:[%s30230_s1 + $0xcb8] sm:$0xff]  }
 0x162   :  { %v20653_v12 = vpop.f32.mrf.mxu0  ;;  %15089 = vmatmul.mubr.bf16.vlgmr.msra.gmra.mxu0 %v18615_v14  ;;  %20967 = vmatprep.subr.bf16.mxu1 %v23179_v27  ;;  %v23215_v14 = vld [vmem:[%s30230_s1 + $0xcf8] sm:$0xff]   ;;  %v23223_v27 = vld [vmem:[%s30230_s1 + $0xce8] sm:$0xff]  }
 0x163   :  { %20946 = vmatpush3.bf16.msra.mxu0 %v23178_v24  ;;  %15168 = vmatprep.mubr.bf16.mxu0 %v18620_v1  ;;  %v23220_v24 = vld [vmem:[%s30230_s1 + $0xcb0] sm:$0xff]   ;;  %v23252_v1 = vld [vmem:[%s30230_s1 + $0xdb8] sm:$0xff]  }
 0x164   :  { %v20654_v17 = vpop.f32.mrf.mxu0  ;;  %v20675_v21 = vpop.f32.mrf.mxu1  ;;  %15129 = vmatmul.mubr.bf16.vlgmr.msra.gmra.mxu1 %v18617_v22  ;;  %20947 = vmatprep.subr.bf16.mxu0 %v23181_v32  ;;  %v23228_v32 = vld [vmem:[%s30230_s1 + $0xca0] sm:$0xff]  }
 0x165   :  { %v20655_v20 = vadd.f32 %v20654_v17, %v20653_v12  ;;  %20968 = vmatpush3.bf16.msra.mxu1 %v23180_v29  ;;  %15208 = vmatprep.mubr.bf16.mxu1 %v18622_v9  ;;  %v23225_v29 = vld [vmem:[%s30230_s1 + $0xc60] sm:$0xff]  }
 0x166   :  { %v20656_v25 = vpop.f32.mrf.mxu0  ;;  %v20676_v28 = vpop.f32.mrf.mxu1  ;;  %20969 = vmatprep.subr.bf16.mxu1 %v23183_v36  ;;  %v23232_v36 = vld [vmem:[%s30230_s1 + $0xc98] sm:$0xff]  }
 0x167   :  { %v14611_v26 = vadd.f32 %v20655_v20, %v25771_v48  ;;  %v20677_v30 = vadd.f32 %v20676_v28, %v20675_v21  ;;  %20948 = vmatpush3.bf16.msra.mxu0 %v23182_v35  ;;  %v23194_v48 = vld [vmem:[%s30230_s1 + $0xb18] sm:$0xff]   ;;  %v23217_v20 = vld [vmem:[%s30230_s1 + $0xc70] sm:$0xff]   ;;  %v23221_v25 = vld [vmem:[%s30230_s1 + $0xc68] sm:$0xff]  }
 0x168   :  { %v20657_v31 = vpop.f32.mrf.mxu0  ;;  %v20678_v33 = vpop.f32.mrf.mxu1  ;;  %20949 = vmatprep.subr.bf16.mxu0 %v23185_v39  ;;  %v23218_v21 = vld [vmem:[%s30230_s1 + $0xc30] sm:$0xff]   ;;  %v23224_v28 = vld [vmem:[%s30230_s1 + $0xca8] sm:$0xff]   ;;  %v23231_v35 = vld [vmem:[%s30230_s1 + $0xcd8] sm:$0xff]  }
 0x169   :  { %v25876_v34 = vadd.f32 %v20677_v30, %v14611_v26  ;;  %20970 = vmatpush3.bf16.msra.mxu1 %v23184_v38  ;;  %v23222_v26 = vld [vmem:[%s30230_s1 + $0xc28] sm:$0xff]   ;;  %v23226_v30 = vld [vmem:[%s30230_s1 + $0xc20] sm:$0xff]   ;;  %v23229_v33 = vld [vmem:[%s30230_s1 + $0xc58] sm:$0xff]  }
 0x16a   :  { %v20679_v37 = vpop.f32.mrf.mxu1  ;;  %20971 = vmatprep.subr.bf16.mxu1 %v23187_v41  ;;  %v23227_v31 = vld [vmem:[%s30230_s1 + $0xce0] sm:$0xff]   ;;  %v23234_v38 = vld [vmem:[%s30230_s1 + $0xc10] sm:$0xff]   ;;  %v23237_v41 = vld [vmem:[%s30230_s1 + $0xc48] sm:$0xff]  }
 0x16b   :  { %20950 = vmatpush3.bf16.msra.mxu0 %v23186_v40  ;;  %v23233_v37 = vld [vmem:[%s30230_s1 + $0xc50] sm:$0xff]  }
 0x16c   :  { %20951 = vmatprep.subr.bf16.mxu0 %v23189_v43  ;;  %v23235_v39 = vld [vmem:[%s30230_s1 + $0xcd0] sm:$0xff]   ;;  %v23239_v43 = vld [vmem:[%s30230_s1 + $0xcc8] sm:$0xff]  }
 0x16d   :  { %20972 = vmatpush3.bf16.msra.mxu1 %v23188_v42  ;;  %v23236_v40 = vld [vmem:[%s30230_s1 + $0xc90] sm:$0xff]   ;;  %v23238_v42 = vld [vmem:[%s30230_s1 + $0xc08] sm:$0xff]  }
 0x16e   :  { %20973 = vmatprep.subr.bf16.mxu1 %v23191_v45  ;;  %v23241_v45 = vld [vmem:[%s30230_s1 + $0xc40] sm:$0xff]  }
 0x16f   :  { %20952 = vmatpush3.bf16.msra.mxu0 %v23190_v44  ;;  %v23240_v44 = vld [vmem:[%s30230_s1 + $0xc88] sm:$0xff]  }
 0x170   :  { %20953 = vmatprep.subr.bf16.mxu0 %v23193_v47  ;;  %v23243_v47 = vld [vmem:[%s30230_s1 + $0xcc0] sm:$0xff]  }
 0x171   :  { %20974 = vmatpush3.bf16.msra.mxu1 %v23192_v46  ;;  %v23242_v46 = vld [vmem:[%s30230_s1 + $0xc00] sm:$0xff]  }
 0x172   :  { %20975 = vmatprep.subr.bf16.mxu1 %v23195_v49 }
 0x173   :  { %20954 = vmatpush3.bf16.msra.mxu0 %v23194_v48  ;;  %v46_v48 = vld [vmem:[%s30229_s0 + $0xc0] sm:$0xff] }
 0x174   :  { %20955 = vmatprep.subr.bf16.mxu0 %v23197_v51  ;;  %v18624_v51 = vcombine.high %v46_v48, %v46_v48 }
 0x175   :  { %20976 = vmatpush3.bf16.msra.mxu1 %v23196_v50  ;;  %v18623_v50 = vcombine.low %v46_v48, %v46_v48 }
 0x176   :  { %20977 = vmatprep.subr.bf16.mxu1 %v23199_v53  ;;  %v23247_v53 = vld [vmem:[%s30230_s1 + $0xd78] sm:$0xff]  }
 0x177   :  { %20956 = vmatpush3.bf16.msra.mxu0 %v23198_v52  ;;  %v23246_v52 = vld [vmem:[%s30230_s1 + $0xc80] sm:$0xff]  }
 0x178   :  { %20957 = vmatprep.subr.bf16.mxu0 %v23201_v55 }
 0x179   :  { %20978 = vmatpush3.bf16.msra.mxu1 %v23200_v54  ;;  %v47_v54 = vld [vmem:[%s30229_s0 + $0xc8] sm:$0xff] }
 0x17a   :  { %20979 = vmatprep.subr.bf16.mxu1 %v23203_v57  ;;  %v18625_v57 = vcombine.low %v47_v54, %v47_v54 }
 0x17b   :  { %20958 = vmatpush3.bf16.msra.mxu0 %v23202_v56 }
 0x17c   :  { %20959 = vmatprep.subr.bf16.mxu0 %v23205_v59  ;;  %v23250_v59 = vld [vmem:[%s30230_s1 + $0xd38] sm:$0xff]  }
 0x17d   :  { %20980 = vmatpush3.bf16.msra.mxu1 %v23204_v58  ;;  %v18626_v58 = vcombine.high %v47_v54, %v47_v54 }
 0x17e   :  { %20981 = vmatprep.subr.bf16.mxu1 %v23207_v61  ;;  %v23251_v61 = vld [vmem:[%s30230_s1 + $0xdf8] sm:$0xff]  }
 0x17f   :  { %20960 = vmatpush3.bf16.msra.mxu0 %v23206_v60 }
 0x180   :  { %20989 = vmatprep.subr.bf16.mxu0 %v23211_v3  ;;  %v23253_v3 = vld [vmem:[%s30230_s1 + $0xd70] sm:$0xff]  }
 0x181   :  { %20982 = vmatpush3.bf16.msra.mxu1 %v23210_v2 }
 0x182   :  { %v20697_v63 = vpop.f32.mrf.mxu0  ;;  %15169 = vmatmul.mubr.bf16.vlgmr.msra.gmra.mxu0 %v18619_v0  ;;  %21011 = vmatprep.subr.bf16.mxu1 %v23215_v14  ;;  %v23260_v14 = vld [vmem:[%s30230_s1 + $0xda8] sm:$0xff]  }
 0x183   :  { %20990 = vmatpush3.bf16.msra.mxu0 %v23214_v10  ;;  %15248 = vmatprep.mubr.bf16.mxu0 %v18624_v51  ;;  %v23256_v10 = vld [vmem:[%s30230_s1 + $0xdb0] sm:$0xff]   ;;  %v23288_v51 = vld [vmem:[%s30230_s1 + $0xeb8] sm:$0xff]  }
 0x184   :  { %v20698_v4 = vpop.f32.mrf.mxu0  ;;  %v20719_v5 = vpop.f32.mrf.mxu1  ;;  %15209 = vmatmul.mubr.bf16.vlgmr.msra.gmra.mxu1 %v18621_v8  ;;  %20991 = vmatprep.subr.bf16.mxu0 %v23217_v20  ;;  %v23255_v8 = vld [vmem:[%s30230_s1 + $0xdf0] sm:$0xff]   ;;  %v23266_v20 = vld [vmem:[%s30230_s1 + $0xd18] sm:$0xff]  }
 0x185   :  { %v20699_v7 = vadd.f32 %v20698_v4, %v20697_v63  ;;  %21012 = vmatpush3.bf16.msra.mxu1 %v23216_v16  ;;  %15288 = vmatprep.mubr.bf16.mxu1 %v18626_v58  ;;  %v23262_v16 = vld [vmem:[%s30230_s1 + $0xd20] sm:$0xff]   ;;  %v23291_v58 = vld [vmem:[%s30230_s1 + $0xef0] sm:$0xff]  }
 0x186   :  { %v20700_v11 = vpop.f32.mrf.mxu0  ;;  %v20720_v12 = vpop.f32.mrf.mxu1  ;;  %21013 = vmatprep.subr.bf16.mxu1 %v23219_v23  ;;  %v23269_v23 = vld [vmem:[%s30230_s1 + $0xd50] sm:$0xff]  }
 0x187   :  { %v14691_v13 = vadd.f32 %v20699_v7, %v25876_v34  ;;  %v20721_v15 = vadd.f32 %v20720_v12, %v20719_v5  ;;  %20992 = vmatpush3.bf16.msra.mxu0 %v23218_v21  ;;  %v23230_v34 = vld [vmem:[%s30230_s1 + $0xc18] sm:$0xff]   ;;  %v23254_v7 = vld [vmem:[%s30230_s1 + $0xd30] sm:$0xff]   ;;  %v23257_v11 = vld [vmem:[%s30230_s1 + $0xd68] sm:$0xff]  }
 0x188   :  { %v20701_v17 = vpop.f32.mrf.mxu0  ;;  %v20722_v18 = vpop.f32.mrf.mxu1  ;;  %20993 = vmatprep.subr.bf16.mxu0 %v23221_v25  ;;  %v23258_v12 = vld [vmem:[%s30230_s1 + $0xd28] sm:$0xff]   ;;  %v23267_v21 = vld [vmem:[%s30230_s1 + $0xdd8] sm:$0xff]   ;;  %v23271_v25 = vld [vmem:[%s30230_s1 + $0xdd0] sm:$0xff]  }
 0x189   :  { %v25978_v19 = vadd.f32 %v20721_v15, %v14691_v13  ;;  %21014 = vmatpush3.bf16.msra.mxu1 %v23220_v24  ;;  %v23259_v13 = vld [vmem:[%s30230_s1 + $0xde8] sm:$0xff]   ;;  %v23261_v15 = vld [vmem:[%s30230_s1 + $0xd60] sm:$0xff]   ;;  %v23270_v24 = vld [vmem:[%s30230_s1 + $0xd10] sm:$0xff]  }
 0x18a   :  { %v20723_v22 = vpop.f32.mrf.mxu1  ;;  %21015 = vmatprep.subr.bf16.mxu1 %v23223_v27  ;;  %v23263_v17 = vld [vmem:[%s30230_s1 + $0xde0] sm:$0xff]   ;;  %v23273_v27 = vld [vmem:[%s30230_s1 + $0xd48] sm:$0xff]  }
 0x18b   :  { %20994 = vmatpush3.bf16.msra.mxu0 %v23222_v26  ;;  %v23264_v18 = vld [vmem:[%s30230_s1 + $0xda0] sm:$0xff]   ;;  %v23268_v22 = vld [vmem:[%s30230_s1 + $0xd98] sm:$0xff]   ;;  %v23272_v26 = vld [vmem:[%s30230_s1 + $0xd90] sm:$0xff]  }
 0x18c   :  { %20995 = vmatprep.subr.bf16.mxu0 %v23225_v29  ;;  %v23275_v29 = vld [vmem:[%s30230_s1 + $0xdc8] sm:$0xff]  }
 0x18d   :  { %21016 = vmatpush3.bf16.msra.mxu1 %v23224_v28  ;;  %v23274_v28 = vld [vmem:[%s30230_s1 + $0xd08] sm:$0xff]  }
 0x18e   :  { %21017 = vmatprep.subr.bf16.mxu1 %v23227_v31  ;;  %v23277_v31 = vld [vmem:[%s30230_s1 + $0xd40] sm:$0xff]  }
 0x18f   :  { %20996 = vmatpush3.bf16.msra.mxu0 %v23226_v30  ;;  %v23276_v30 = vld [vmem:[%s30230_s1 + $0xd88] sm:$0xff]  }
 0x190   :  { %20997 = vmatprep.subr.bf16.mxu0 %v23229_v33  ;;  %v23279_v33 = vld [vmem:[%s30230_s1 + $0xdc0] sm:$0xff]  }
 0x191   :  { %21018 = vmatpush3.bf16.msra.mxu1 %v23228_v32  ;;  %v23278_v32 = vld [vmem:[%s30230_s1 + $0xd00] sm:$0xff]  }
 0x192   :  { %21019 = vmatprep.subr.bf16.mxu1 %v23231_v35 }
 0x193   :  { %20998 = vmatpush3.bf16.msra.mxu0 %v23230_v34  ;;  %v48_v34 = vld [vmem:[%s30229_s0 + $0xd0] sm:$0xff] }
 0x194   :  { %20999 = vmatprep.subr.bf16.mxu0 %v23233_v37  ;;  %v18628_v37 = vcombine.high %v48_v34, %v48_v34 }
 0x195   :  { %21020 = vmatpush3.bf16.msra.mxu1 %v23232_v36  ;;  %v18627_v36 = vcombine.low %v48_v34, %v48_v34 }
 0x196   :  { %21021 = vmatprep.subr.bf16.mxu1 %v23235_v39  ;;  %v23283_v39 = vld [vmem:[%s30230_s1 + $0xe78] sm:$0xff]  }
 0x197   :  { %21000 = vmatpush3.bf16.msra.mxu0 %v23234_v38  ;;  %v23282_v38 = vld [vmem:[%s30230_s1 + $0xd80] sm:$0xff]  }
 0x198   :  { %21001 = vmatprep.subr.bf16.mxu0 %v23237_v41 }
 0x199   :  { %21022 = vmatpush3.bf16.msra.mxu1 %v23236_v40  ;;  %v49_v40 = vld [vmem:[%s30229_s0 + $0xd8] sm:$0xff] }
 0x19a   :  { %21023 = vmatprep.subr.bf16.mxu1 %v23239_v43  ;;  %v18629_v43 = vcombine.low %v49_v40, %v49_v40 }
 0x19b   :  { %21002 = vmatpush3.bf16.msra.mxu0 %v23238_v42 }
 0x19c   :  { %21003 = vmatprep.subr.bf16.mxu0 %v23241_v45  ;;  %v23286_v45 = vld [vmem:[%s30230_s1 + $0xe38] sm:$0xff]  }
 0x19d   :  { %21024 = vmatpush3.bf16.msra.mxu1 %v23240_v44  ;;  %v18630_v44 = vcombine.high %v49_v40, %v49_v40  ;;  %v23325_v40 = vld [vmem:[%s30230_s1 + $0xf70] sm:$0xff]  }
 0x19e   :  { %21025 = vmatprep.subr.bf16.mxu1 %v23243_v47  ;;  %v23287_v47 = vld [vmem:[%s30230_s1 + $0xef8] sm:$0xff]  }
 0x19f   :  { %21004 = vmatpush3.bf16.msra.mxu0 %v23242_v46 }
 0x1a0   :  { %21033 = vmatprep.subr.bf16.mxu0 %v23247_v53  ;;  %v23289_v53 = vld [vmem:[%s30230_s1 + $0xe70] sm:$0xff]  }
 0x1a1   :  { %21026 = vmatpush3.bf16.msra.mxu1 %v23246_v52 }
 0x1a2   :  { %v20741_v49 = vpop.f32.mrf.mxu0  ;;  %15249 = vmatmul.mubr.bf16.vlgmr.msra.gmra.mxu0 %v18623_v50  ;;  %21055 = vmatprep.subr.bf16.mxu1 %v23251_v61  ;;  %v23293_v61 = vld [vmem:[%s30230_s1 + $0xe68] sm:$0xff]  }
 0x1a3   :  { %21034 = vmatpush3.bf16.msra.mxu0 %v23250_v59  ;;  %15328 = vmatprep.mubr.bf16.mxu0 %v18628_v37  ;;  %v23324_v37 = vld [vmem:[%s30230_s1 + $0xfb8] sm:$0xff]  }
 0x1a4   :  { %v20742_v55 = vpop.f32.mrf.mxu0  ;;  %v20763_v56 = vpop.f32.mrf.mxu1  ;;  %15289 = vmatmul.mubr.bf16.vlgmr.msra.gmra.mxu1 %v18625_v57  ;;  %21035 = vmatprep.subr.bf16.mxu0 %v23253_v3  ;;  %v23290_v57 = vld [vmem:[%s30230_s1 + $0xe30] sm:$0xff]   ;;  %v23299_v3 = vld [vmem:[%s30230_s1 + $0xee0] sm:$0xff]  }
 0x1a5   :  { %v20743_v60 = vadd.f32 %v20742_v55, %v20741_v49  ;;  %21056 = vmatpush3.bf16.msra.mxu1 %v23252_v1  ;;  %15368 = vmatprep.mubr.bf16.mxu1 %v18630_v44  ;;  %v23297_v1 = vld [vmem:[%s30230_s1 + $0xe60] sm:$0xff]   ;;  %v23327_v44 = vld [vmem:[%s30230_s1 + $0xff0] sm:$0xff]  }
 0x1a6   :  { %v20744_v62 = vpop.f32.mrf.mxu0  ;;  %v20764_v63 = vpop.f32.mrf.mxu1  ;;  %21057 = vmatprep.subr.bf16.mxu1 %v23255_v8  ;;  %v23304_v8 = vld [vmem:[%s30230_s1 + $0xe98] sm:$0xff]  }
 0x1a7   :  { %v14771_v0 = vadd.f32 %v20743_v60, %v25978_v19  ;;  %v20765_v2 = vadd.f32 %v20764_v63, %v20763_v56  ;;  %21036 = vmatpush3.bf16.msra.mxu0 %v23254_v7  ;;  %v23265_v19 = vld [vmem:[%s30230_s1 + $0xd58] sm:$0xff]   ;;  %v23292_v60 = vld [vmem:[%s30230_s1 + $0xeb0] sm:$0xff]   ;;  %v23294_v62 = vld [vmem:[%s30230_s1 + $0xe28] sm:$0xff]  }
 0x1a8   :  { %v20745_v4 = vpop.f32.mrf.mxu0  ;;  %v20766_v5 = vpop.f32.mrf.mxu1  ;;  %21037 = vmatprep.subr.bf16.mxu0 %v23257_v11  ;;  %v23295_v63 = vld [vmem:[%s30230_s1 + $0xee8] sm:$0xff]   ;;  %v23303_v7 = vld [vmem:[%s30230_s1 + $0xed8] sm:$0xff]   ;;  %v23307_v11 = vld [vmem:[%s30230_s1 + $0xed0] sm:$0xff]  }
 0x1a9   :  { %v26086_v6 = vadd.f32 %v20765_v2, %v14771_v0  ;;  %21058 = vmatpush3.bf16.msra.mxu1 %v23256_v10  ;;  %v23296_v0 = vld [vmem:[%s30230_s1 + $0xea8] sm:$0xff]   ;;  %v23298_v2 = vld [vmem:[%s30230_s1 + $0xe20] sm:$0xff]   ;;  %v23301_v5 = vld [vmem:[%s30230_s1 + $0xe58] sm:$0xff]  }
 0x1aa   :  { %v20767_v9 = vpop.f32.mrf.mxu1  ;;  %21059 = vmatprep.subr.bf16.mxu1 %v23259_v13  ;;  %v23300_v4 = vld [vmem:[%s30230_s1 + $0xea0] sm:$0xff]   ;;  %v23306_v10 = vld [vmem:[%s30230_s1 + $0xe10] sm:$0xff]   ;;  %v23309_v13 = vld [vmem:[%s30230_s1 + $0xe48] sm:$0xff]  }
 0x1ab   :  { %21038 = vmatpush3.bf16.msra.mxu0 %v23258_v12  ;;  %v23305_v9 = vld [vmem:[%s30230_s1 + $0xe50] sm:$0xff]  }
 0x1ac   :  { %21039 = vmatprep.subr.bf16.mxu0 %v23261_v15  ;;  %v23308_v12 = vld [vmem:[%s30230_s1 + $0xe90] sm:$0xff]   ;;  %v23311_v15 = vld [vmem:[%s30230_s1 + $0xec8] sm:$0xff]  }
 0x1ad   :  { %21060 = vmatpush3.bf16.msra.mxu1 %v23260_v14  ;;  %v23310_v14 = vld [vmem:[%s30230_s1 + $0xe08] sm:$0xff]  }
 0x1ae   :  { %21061 = vmatprep.subr.bf16.mxu1 %v23263_v17  ;;  %v23313_v17 = vld [vmem:[%s30230_s1 + $0xe40] sm:$0xff]  }
 0x1af   :  { %21040 = vmatpush3.bf16.msra.mxu0 %v23262_v16  ;;  %v23312_v16 = vld [vmem:[%s30230_s1 + $0xe88] sm:$0xff]  }
 0x1b0   :  { %21041 = vmatprep.subr.bf16.mxu0 %v23265_v19  ;;  %v23315_v19 = vld [vmem:[%s30230_s1 + $0xec0] sm:$0xff]  }
 0x1b1   :  { %21062 = vmatpush3.bf16.msra.mxu1 %v23264_v18  ;;  %v23314_v18 = vld [vmem:[%s30230_s1 + $0xe00] sm:$0xff]  }
 0x1b2   :  { %21063 = vmatprep.subr.bf16.mxu1 %v23267_v21 }
 0x1b3   :  { %21042 = vmatpush3.bf16.msra.mxu0 %v23266_v20  ;;  %v50_v20 = vld [vmem:[%s30229_s0 + $0xe0] sm:$0xff] }
 0x1b4   :  { %21043 = vmatprep.subr.bf16.mxu0 %v23269_v23  ;;  %v18632_v23 = vcombine.high %v50_v20, %v50_v20 }
 0x1b5   :  { %21064 = vmatpush3.bf16.msra.mxu1 %v23268_v22  ;;  %v18631_v22 = vcombine.low %v50_v20, %v50_v20 }
 0x1b6   :  { %21065 = vmatprep.subr.bf16.mxu1 %v23271_v25  ;;  %v23319_v25 = vld [vmem:[%s30230_s1 + $0xf78] sm:$0xff]  }
 0x1b7   :  { %21044 = vmatpush3.bf16.msra.mxu0 %v23270_v24  ;;  %v23318_v24 = vld [vmem:[%s30230_s1 + $0xe80] sm:$0xff]  }
 0x1b8   :  { %21045 = vmatprep.subr.bf16.mxu0 %v23273_v27  ;;  %v51_v27 = vld [vmem:[%s30229_s0 + $0xe8] sm:$0xff] }
 0x1b9   :  { %21066 = vmatpush3.bf16.msra.mxu1 %v23272_v26 }
 0x1ba   :  { %21067 = vmatprep.subr.bf16.mxu1 %v23275_v29 }
 0x1bb   :  { %21046 = vmatpush3.bf16.msra.mxu0 %v23274_v28 }
 0x1bc   :  { %21047 = vmatprep.subr.bf16.mxu0 %v23277_v31  ;;  %v18634_v31 = vcombine.high %v51_v27, %v51_v27 }
 0x1bd   :  { %21068 = vmatpush3.bf16.msra.mxu1 %v23276_v30  ;;  %v18633_v30 = vcombine.low %v51_v27, %v51_v27 }
 0x1be   :  { %21069 = vmatprep.subr.bf16.mxu1 %v23279_v33 }
 0x1bf   :  { %21048 = vmatpush3.bf16.msra.mxu0 %v23278_v32  ;;  %v23322_v32 = vld [vmem:[%s30230_s1 + $0xf38] sm:$0xff]  }
 0x1c0   :  { %21077 = vmatprep.subr.bf16.mxu0 %v23283_v39 }
 0x1c1   :  { %21070 = vmatpush3.bf16.msra.mxu1 %v23282_v38 }
 0x1c2   :  { %v20785_v35 = vpop.f32.mrf.mxu0  ;;  %15329 = vmatmul.mubr.bf16.vlgmr.msra.gmra.mxu0 %v18627_v36  ;;  %21099 = vmatprep.subr.bf16.mxu1 %v23287_v47  ;;  %v23329_v47 = vld [vmem:[%s30230_s1 + $0xf68] sm:$0xff]  }
 0x1c3   :  { %21078 = vmatpush3.bf16.msra.mxu0 %v23286_v45  ;;  %15408 = vmatprep.mubr.bf16.mxu0 %v18632_v23  ;;  %v23360_v23 = vld [vmem:[%s30230_s1 + $0x10b8] sm:$0xff]  }
 0x1c4   :  { %v20786_v41 = vpop.f32.mrf.mxu0  ;;  %v20807_v42 = vpop.f32.mrf.mxu1  ;;  %15369 = vmatmul.mubr.bf16.vlgmr.msra.gmra.mxu1 %v18629_v43  ;;  %21079 = vmatprep.subr.bf16.mxu0 %v23289_v53  ;;  %v23326_v43 = vld [vmem:[%s30230_s1 + $0xf30] sm:$0xff]   ;;  %v23335_v53 = vld [vmem:[%s30230_s1 + $0xfe0] sm:$0xff]  }
 0x1c5   :  { %v20787_v46 = vadd.f32 %v20786_v41, %v20785_v35  ;;  %21100 = vmatpush3.bf16.msra.mxu1 %v23288_v51  ;;  %v23323_v35 = vld [vmem:[%s30230_s1 + $0xff8] sm:$0xff]   ;;  %15448 = vmatprep.mubr.bf16.mxu1 %v18634_v31  ;;  %v23333_v51 = vld [vmem:[%s30230_s1 + $0xf60] sm:$0xff]  }
 0x1c6   :  { %v20788_v48 = vpop.f32.mrf.mxu0  ;;  %v20808_v49 = vpop.f32.mrf.mxu1  ;;  %21101 = vmatprep.subr.bf16.mxu1 %v23291_v58  ;;  %v23340_v58 = vld [vmem:[%s30230_s1 + $0xf98] sm:$0xff]  }
 0x1c7   :  { %v14851_v50 = vadd.f32 %v20787_v46, %v26086_v6  ;;  %v20809_v52 = vadd.f32 %v20808_v49, %v20807_v42  ;;  %21080 = vmatpush3.bf16.msra.mxu0 %v23290_v57  ;;  %v23302_v6 = vld [vmem:[%s30230_s1 + $0xe18] sm:$0xff]   ;;  %v23328_v46 = vld [vmem:[%s30230_s1 + $0xfb0] sm:$0xff]   ;;  %v23330_v48 = vld [vmem:[%s30230_s1 + $0xf28] sm:$0xff]  }
 0x1c8   :  { %v20789_v54 = vpop.f32.mrf.mxu0  ;;  %v20810_v55 = vpop.f32.mrf.mxu1  ;;  %21081 = vmatprep.subr.bf16.mxu0 %v23293_v61  ;;  %v23331_v49 = vld [vmem:[%s30230_s1 + $0xfe8] sm:$0xff]   ;;  %v23339_v57 = vld [vmem:[%s30230_s1 + $0xfd8] sm:$0xff]   ;;  %v23343_v61 = vld [vmem:[%s30230_s1 + $0xfd0] sm:$0xff]  }
 0x1c9   :  { %v26191_v56 = vadd.f32 %v20809_v52, %v14851_v50  ;;  %21102 = vmatpush3.bf16.msra.mxu1 %v23292_v60  ;;  %v23332_v50 = vld [vmem:[%s30230_s1 + $0xfa8] sm:$0xff]   ;;  %v23334_v52 = vld [vmem:[%s30230_s1 + $0xf20] sm:$0xff]   ;;  %v23337_v55 = vld [vmem:[%s30230_s1 + $0xf58] sm:$0xff]  }
 0x1ca   :  { %v20811_v59 = vpop.f32.mrf.mxu1  ;;  %21103 = vmatprep.subr.bf16.mxu1 %v23295_v63  ;;  %v23336_v54 = vld [vmem:[%s30230_s1 + $0xfa0] sm:$0xff]   ;;  %v23342_v60 = vld [vmem:[%s30230_s1 + $0xf10] sm:$0xff]   ;;  %v23345_v63 = vld [vmem:[%s30230_s1 + $0xf48] sm:$0xff]  }
 0x1cb   :  { %21082 = vmatpush3.bf16.msra.mxu0 %v23294_v62  ;;  %v23341_v59 = vld [vmem:[%s30230_s1 + $0xf50] sm:$0xff]  }
 0x1cc   :  { %21083 = vmatprep.subr.bf16.mxu0 %v23297_v1  ;;  %v23344_v62 = vld [vmem:[%s30230_s1 + $0xf90] sm:$0xff]   ;;  %v23347_v1 = vld [vmem:[%s30230_s1 + $0xfc8] sm:$0xff]  }
 0x1cd   :  { %21104 = vmatpush3.bf16.msra.mxu1 %v23296_v0  ;;  %v23346_v0 = vld [vmem:[%s30230_s1 + $0xf08] sm:$0xff]  }
 0x1ce   :  { %21105 = vmatprep.subr.bf16.mxu1 %v23299_v3  ;;  %v23349_v3 = vld [vmem:[%s30230_s1 + $0xf40] sm:$0xff]  }
 0x1cf   :  { %21084 = vmatpush3.bf16.msra.mxu0 %v23298_v2  ;;  %v23348_v2 = vld [vmem:[%s30230_s1 + $0xf88] sm:$0xff]  }
 0x1d0   :  { %21085 = vmatprep.subr.bf16.mxu0 %v23301_v5  ;;  %v23351_v5 = vld [vmem:[%s30230_s1 + $0xfc0] sm:$0xff]  }
 0x1d1   :  { %21106 = vmatpush3.bf16.msra.mxu1 %v23300_v4  ;;  %v23350_v4 = vld [vmem:[%s30230_s1 + $0xf00] sm:$0xff]  }
 0x1d2   :  { %21107 = vmatprep.subr.bf16.mxu1 %v23303_v7 }
 0x1d3   :  { %21086 = vmatpush3.bf16.msra.mxu0 %v23302_v6  ;;  %v52_v6 = vld [vmem:[%s30229_s0 + $0xf0] sm:$0xff] }
 0x1d4   :  { %21087 = vmatprep.subr.bf16.mxu0 %v23305_v9  ;;  %v18636_v9 = vcombine.high %v52_v6, %v52_v6 }
 0x1d5   :  { %21108 = vmatpush3.bf16.msra.mxu1 %v23304_v8  ;;  %v18635_v8 = vcombine.low %v52_v6, %v52_v6 }
 0x1d6   :  { %21109 = vmatprep.subr.bf16.mxu1 %v23307_v11  ;;  %v23355_v11 = vld [vmem:[%s30230_s1 + $0x1078] sm:$0xff]  }
 0x1d7   :  { %21088 = vmatpush3.bf16.msra.mxu0 %v23306_v10  ;;  %v23354_v10 = vld [vmem:[%s30230_s1 + $0xf80] sm:$0xff]  }
 0x1d8   :  { %21089 = vmatprep.subr.bf16.mxu0 %v23309_v13 }
 0x1d9   :  { %21110 = vmatpush3.bf16.msra.mxu1 %v23308_v12  ;;  %v53_v12 = vld [vmem:[%s30229_s0 + $0xf8] sm:$0xff] }
 0x1da   :  { %21111 = vmatprep.subr.bf16.mxu1 %v23311_v15  ;;  %v18637_v15 = vcombine.low %v53_v12, %v53_v12 }
 0x1db   :  { %21090 = vmatpush3.bf16.msra.mxu0 %v23310_v14 }
 0x1dc   :  { %21091 = vmatprep.subr.bf16.mxu0 %v23313_v17  ;;  %v23358_v17 = vld [vmem:[%s30230_s1 + $0x1038] sm:$0xff]  }
 0x1dd   :  { %21112 = vmatpush3.bf16.msra.mxu1 %v23312_v16  ;;  %v18638_v16 = vcombine.high %v53_v12, %v53_v12 }
 0x1de   :  { %21113 = vmatprep.subr.bf16.mxu1 %v23315_v19  ;;  %v23359_v19 = vld [vmem:[%s30230_s1 + $0x10f8] sm:$0xff]  }
 0x1df   :  { %21092 = vmatpush3.bf16.msra.mxu0 %v23314_v18 }
 0x1e0   :  { %21121 = vmatprep.subr.bf16.mxu0 %v23319_v25  ;;  %v23361_v25 = vld [vmem:[%s30230_s1 + $0x1070] sm:$0xff]  }
 0x1e1   :  { %21114 = vmatpush3.bf16.msra.mxu1 %v23318_v24 }
 0x1e2   :  { %v20829_v21 = vpop.f32.mrf.mxu0  ;;  %15409 = vmatmul.mubr.bf16.vlgmr.msra.gmra.mxu0 %v18631_v22  ;;  %21143 = vmatprep.subr.bf16.mxu1 %v23323_v35  ;;  %v23367_v35 = vld [vmem:[%s30230_s1 + $0x10e8] sm:$0xff]  }
 0x1e3   :  { %21122 = vmatpush3.bf16.msra.mxu0 %v23322_v32  ;;  %15488 = vmatprep.mubr.bf16.mxu0 %v18636_v9  ;;  %v23364_v32 = vld [vmem:[%s30230_s1 + $0x10b0] sm:$0xff]   ;;  %v23396_v9 = vld [vmem:[%s30230_s1 + $0x11b8] sm:$0xff]  }
 0x1e4   :  { %v20830_v26 = vpop.f32.mrf.mxu0  ;;  %v20851_v29 = vpop.f32.mrf.mxu1  ;;  %15449 = vmatmul.mubr.bf16.vlgmr.msra.gmra.mxu1 %v18633_v30  ;;  %21123 = vmatprep.subr.bf16.mxu0 %v23325_v40  ;;  %v23363_v30 = vld [vmem:[%s30230_s1 + $0x10f0] sm:$0xff]   ;;  %v23372_v40 = vld [vmem:[%s30230_s1 + $0x10a0] sm:$0xff]  }
 0x1e5   :  { %v20831_v28 = vadd.f32 %v20830_v26, %v20829_v21  ;;  %21144 = vmatpush3.bf16.msra.mxu1 %v23324_v37  ;;  %15528 = vmatprep.mubr.bf16.mxu1 %v18638_v16  ;;  %v23369_v37 = vld [vmem:[%s30230_s1 + $0x1060] sm:$0xff]   ;;  %v23399_v16 = vld [vmem:[%s30230_s1 + $0x11f0] sm:$0xff]  }
 0x1e6   :  { %v20832_v33 = vpop.f32.mrf.mxu0  ;;  %v20852_v36 = vpop.f32.mrf.mxu1  ;;  %21145 = vmatprep.subr.bf16.mxu1 %v23327_v44  ;;  %v23376_v44 = vld [vmem:[%s30230_s1 + $0x1098] sm:$0xff]  }
 0x1e7   :  { %v14931_v34 = vadd.f32 %v20831_v28, %v26191_v56  ;;  %v20853_v38 = vadd.f32 %v20852_v36, %v20851_v29  ;;  %21124 = vmatpush3.bf16.msra.mxu0 %v23326_v43  ;;  %v23338_v56 = vld [vmem:[%s30230_s1 + $0xf18] sm:$0xff]   ;;  %v23362_v29 = vld [vmem:[%s30230_s1 + $0x1030] sm:$0xff]   ;;  %v23365_v33 = vld [vmem:[%s30230_s1 + $0x1068] sm:$0xff]  }
 0x1e8   :  { %v20833_v39 = vpop.f32.mrf.mxu0  ;;  %v20854_v41 = vpop.f32.mrf.mxu1  ;;  %21125 = vmatprep.subr.bf16.mxu0 %v23329_v47  ;;  %v23368_v36 = vld [vmem:[%s30230_s1 + $0x10a8] sm:$0xff]   ;;  %v23375_v43 = vld [vmem:[%s30230_s1 + $0x10d8] sm:$0xff]   ;;  %v23379_v47 = vld [vmem:[%s30230_s1 + $0x10d0] sm:$0xff]  }
 0x1e9   :  { %v26296_v42 = vadd.f32 %v20853_v38, %v14931_v34  ;;  %21146 = vmatpush3.bf16.msra.mxu1 %v23328_v46  ;;  %v23366_v34 = vld [vmem:[%s30230_s1 + $0x1028] sm:$0xff]   ;;  %v23370_v38 = vld [vmem:[%s30230_s1 + $0x1020] sm:$0xff]   ;;  %v23373_v41 = vld [vmem:[%s30230_s1 + $0x1058] sm:$0xff]  }
 0x1ea   :  { %v20855_v45 = vpop.f32.mrf.mxu1  ;;  %21147 = vmatprep.subr.bf16.mxu1 %v23331_v49  ;;  %v23371_v39 = vld [vmem:[%s30230_s1 + $0x10e0] sm:$0xff]   ;;  %v23378_v46 = vld [vmem:[%s30230_s1 + $0x1010] sm:$0xff]   ;;  %v23381_v49 = vld [vmem:[%s30230_s1 + $0x1048] sm:$0xff]  }
 0x1eb   :  { %21126 = vmatpush3.bf16.msra.mxu0 %v23330_v48  ;;  %v23377_v45 = vld [vmem:[%s30230_s1 + $0x1050] sm:$0xff]  }
 0x1ec   :  { %21127 = vmatprep.subr.bf16.mxu0 %v23333_v51  ;;  %v23380_v48 = vld [vmem:[%s30230_s1 + $0x1090] sm:$0xff]   ;;  %v23383_v51 = vld [vmem:[%s30230_s1 + $0x10c8] sm:$0xff]  }
 0x1ed   :  { %21148 = vmatpush3.bf16.msra.mxu1 %v23332_v50  ;;  %v23382_v50 = vld [vmem:[%s30230_s1 + $0x1008] sm:$0xff]  }
 0x1ee   :  { %21149 = vmatprep.subr.bf16.mxu1 %v23335_v53  ;;  %v23385_v53 = vld [vmem:[%s30230_s1 + $0x1040] sm:$0xff]  }
 0x1ef   :  { %21128 = vmatpush3.bf16.msra.mxu0 %v23334_v52  ;;  %v23384_v52 = vld [vmem:[%s30230_s1 + $0x1088] sm:$0xff]  }
 0x1f0   :  { %21129 = vmatprep.subr.bf16.mxu0 %v23337_v55  ;;  %v23387_v55 = vld [vmem:[%s30230_s1 + $0x10c0] sm:$0xff]  }
 0x1f1   :  { %21150 = vmatpush3.bf16.msra.mxu1 %v23336_v54  ;;  %v23386_v54 = vld [vmem:[%s30230_s1 + $0x1000] sm:$0xff]  }
 0x1f2   :  { %21151 = vmatprep.subr.bf16.mxu1 %v23339_v57 }
 0x1f3   :  { %21130 = vmatpush3.bf16.msra.mxu0 %v23338_v56  ;;  %v54_v56 = vld [vmem:[%s30229_s0 + $0x100] sm:$0xff] }
 0x1f4   :  { %21131 = vmatprep.subr.bf16.mxu0 %v23341_v59  ;;  %v18640_v59 = vcombine.high %v54_v56, %v54_v56 }
 0x1f5   :  { %21152 = vmatpush3.bf16.msra.mxu1 %v23340_v58  ;;  %v18639_v58 = vcombine.low %v54_v56, %v54_v56 }
 0x1f6   :  { %21153 = vmatprep.subr.bf16.mxu1 %v23343_v61  ;;  %v23391_v61 = vld [vmem:[%s30230_s1 + $0x1178] sm:$0xff]  }
 0x1f7   :  { %21132 = vmatpush3.bf16.msra.mxu0 %v23342_v60  ;;  %v23390_v60 = vld [vmem:[%s30230_s1 + $0x1080] sm:$0xff]  }
 0x1f8   :  { %21133 = vmatprep.subr.bf16.mxu0 %v23345_v63 }
 0x1f9   :  { %21154 = vmatpush3.bf16.msra.mxu1 %v23344_v62  ;;  %v55_v62 = vld [vmem:[%s30229_s0 + $0x108] sm:$0xff] }
 0x1fa   :  { %21155 = vmatprep.subr.bf16.mxu1 %v23347_v1  ;;  %v18641_v1 = vcombine.low %v55_v62, %v55_v62 }
 0x1fb   :  { %21134 = vmatpush3.bf16.msra.mxu0 %v23346_v0 }
 0x1fc   :  { %21135 = vmatprep.subr.bf16.mxu0 %v23349_v3  ;;  %v23394_v3 = vld [vmem:[%s30230_s1 + $0x1138] sm:$0xff]  }
 0x1fd   :  { %21156 = vmatpush3.bf16.msra.mxu1 %v23348_v2  ;;  %v18642_v2 = vcombine.high %v55_v62, %v55_v62  ;;  %v23433_v62 = vld [vmem:[%s30230_s1 + $0x1270] sm:$0xff]  }
 0x1fe   :  { %21157 = vmatprep.subr.bf16.mxu1 %v23351_v5  ;;  %v23395_v5 = vld [vmem:[%s30230_s1 + $0x11f8] sm:$0xff]  }
 0x1ff   :  { %21136 = vmatpush3.bf16.msra.mxu0 %v23350_v4 }
 0x200   :  { %21165 = vmatprep.subr.bf16.mxu0 %v23355_v11  ;;  %v23397_v11 = vld [vmem:[%s30230_s1 + $0x1170] sm:$0xff]  }
 0x201   :  { %21158 = vmatpush3.bf16.msra.mxu1 %v23354_v10 }
 0x202   :  { %v20873_v7 = vpop.f32.mrf.mxu0  ;;  %15489 = vmatmul.mubr.bf16.vlgmr.msra.gmra.mxu0 %v18635_v8  ;;  %21187 = vmatprep.subr.bf16.mxu1 %v23359_v19  ;;  %v23401_v19 = vld [vmem:[%s30230_s1 + $0x1168] sm:$0xff]  }
 0x203   :  { %21166 = vmatpush3.bf16.msra.mxu0 %v23358_v17  ;;  %15568 = vmatprep.mubr.bf16.mxu0 %v18640_v59  ;;  %v23432_v59 = vld [vmem:[%s30230_s1 + $0x12b8] sm:$0xff]  }
 0x204   :  { %v20874_v13 = vpop.f32.mrf.mxu0  ;;  %v20895_v14 = vpop.f32.mrf.mxu1  ;;  %15529 = vmatmul.mubr.bf16.vlgmr.msra.gmra.mxu1 %v18637_v15  ;;  %21167 = vmatprep.subr.bf16.mxu0 %v23361_v25  ;;  %v23398_v15 = vld [vmem:[%s30230_s1 + $0x1130] sm:$0xff]   ;;  %v23407_v25 = vld [vmem:[%s30230_s1 + $0x11e0] sm:$0xff]  }
 0x205   :  { %v20875_v18 = vadd.f32 %v20874_v13, %v20873_v7  ;;  %21188 = vmatpush3.bf16.msra.mxu1 %v23360_v23  ;;  %15608 = vmatprep.mubr.bf16.mxu1 %v18642_v2  ;;  %v23405_v23 = vld [vmem:[%s30230_s1 + $0x1160] sm:$0xff]   ;;  %v23435_v2 = vld [vmem:[%s30230_s1 + $0x12f0] sm:$0xff]  }
 0x206   :  { %v20876_v20 = vpop.f32.mrf.mxu0  ;;  %v20896_v21 = vpop.f32.mrf.mxu1  ;;  %21189 = vmatprep.subr.bf16.mxu1 %v23363_v30  ;;  %v23412_v30 = vld [vmem:[%s30230_s1 + $0x1198] sm:$0xff]  }
 0x207   :  { %v15011_v22 = vadd.f32 %v20875_v18, %v26296_v42  ;;  %v20897_v24 = vadd.f32 %v20896_v21, %v20895_v14  ;;  %21168 = vmatpush3.bf16.msra.mxu0 %v23362_v29  ;;  %v23374_v42 = vld [vmem:[%s30230_s1 + $0x1018] sm:$0xff]   ;;  %v23400_v18 = vld [vmem:[%s30230_s1 + $0x11b0] sm:$0xff]   ;;  %v23402_v20 = vld [vmem:[%s30230_s1 + $0x1128] sm:$0xff]  }
 0x208   :  { %v20877_v26 = vpop.f32.mrf.mxu0  ;;  %v20898_v27 = vpop.f32.mrf.mxu1  ;;  %21169 = vmatprep.subr.bf16.mxu0 %v23365_v33  ;;  %v23403_v21 = vld [vmem:[%s30230_s1 + $0x11e8] sm:$0xff]   ;;  %v23411_v29 = vld [vmem:[%s30230_s1 + $0x11d8] sm:$0xff]   ;;  %v23415_v33 = vld [vmem:[%s30230_s1 + $0x11d0] sm:$0xff]  }
 0x209   :  { %v26401_v28 = vadd.f32 %v20897_v24, %v15011_v22  ;;  %21190 = vmatpush3.bf16.msra.mxu1 %v23364_v32  ;;  %v23404_v22 = vld [vmem:[%s30230_s1 + $0x11a8] sm:$0xff]   ;;  %v23406_v24 = vld [vmem:[%s30230_s1 + $0x1120] sm:$0xff]   ;;  %v23409_v27 = vld [vmem:[%s30230_s1 + $0x1158] sm:$0xff]  }
 0x20a   :  { %v20899_v31 = vpop.f32.mrf.mxu1  ;;  %21191 = vmatprep.subr.bf16.mxu1 %v23367_v35  ;;  %v23408_v26 = vld [vmem:[%s30230_s1 + $0x11a0] sm:$0xff]   ;;  %v23414_v32 = vld [vmem:[%s30230_s1 + $0x1110] sm:$0xff]   ;;  %v23417_v35 = vld [vmem:[%s30230_s1 + $0x1148] sm:$0xff]  }
 0x20b   :  { %21170 = vmatpush3.bf16.msra.mxu0 %v23366_v34  ;;  %v23413_v31 = vld [vmem:[%s30230_s1 + $0x1150] sm:$0xff]  }
 0x20c   :  { %21171 = vmatprep.subr.bf16.mxu0 %v23369_v37  ;;  %v23416_v34 = vld [vmem:[%s30230_s1 + $0x1190] sm:$0xff]   ;;  %v23419_v37 = vld [vmem:[%s30230_s1 + $0x11c8] sm:$0xff]  }
 0x20d   :  { %21192 = vmatpush3.bf16.msra.mxu1 %v23368_v36  ;;  %v23418_v36 = vld [vmem:[%s30230_s1 + $0x1108] sm:$0xff]  }
 0x20e   :  { %21193 = vmatprep.subr.bf16.mxu1 %v23371_v39  ;;  %v23421_v39 = vld [vmem:[%s30230_s1 + $0x1140] sm:$0xff]  }
 0x20f   :  { %21172 = vmatpush3.bf16.msra.mxu0 %v23370_v38  ;;  %v23420_v38 = vld [vmem:[%s30230_s1 + $0x1188] sm:$0xff]  }
 0x210   :  { %21173 = vmatprep.subr.bf16.mxu0 %v23373_v41  ;;  %v23423_v41 = vld [vmem:[%s30230_s1 + $0x11c0] sm:$0xff]  }
 0x211   :  { %21194 = vmatpush3.bf16.msra.mxu1 %v23372_v40  ;;  %v23422_v40 = vld [vmem:[%s30230_s1 + $0x1100] sm:$0xff]  }
 0x212   :  { %21195 = vmatprep.subr.bf16.mxu1 %v23375_v43 }
 0x213   :  { %21174 = vmatpush3.bf16.msra.mxu0 %v23374_v42  ;;  %v56_v42 = vld [vmem:[%s30229_s0 + $0x110] sm:$0xff] }
 0x214   :  { %21175 = vmatprep.subr.bf16.mxu0 %v23377_v45  ;;  %v18644_v45 = vcombine.high %v56_v42, %v56_v42 }
 0x215   :  { %21196 = vmatpush3.bf16.msra.mxu1 %v23376_v44  ;;  %v18643_v44 = vcombine.low %v56_v42, %v56_v42 }
 0x216   :  { %21197 = vmatprep.subr.bf16.mxu1 %v23379_v47  ;;  %v23427_v47 = vld [vmem:[%s30230_s1 + $0x1278] sm:$0xff]  }
 0x217   :  { %21176 = vmatpush3.bf16.msra.mxu0 %v23378_v46  ;;  %v23426_v46 = vld [vmem:[%s30230_s1 + $0x1180] sm:$0xff]  }
 0x218   :  { %21177 = vmatprep.subr.bf16.mxu0 %v23381_v49  ;;  %v57_v49 = vld [vmem:[%s30229_s0 + $0x118] sm:$0xff] }
 0x219   :  { %21198 = vmatpush3.bf16.msra.mxu1 %v23380_v48 }
 0x21a   :  { %21199 = vmatprep.subr.bf16.mxu1 %v23383_v51 }
 0x21b   :  { %21178 = vmatpush3.bf16.msra.mxu0 %v23382_v50 }
 0x21c   :  { %21179 = vmatprep.subr.bf16.mxu0 %v23385_v53  ;;  %v18646_v53 = vcombine.high %v57_v49, %v57_v49 }
 0x21d   :  { %21200 = vmatpush3.bf16.msra.mxu1 %v23384_v52  ;;  %v18645_v52 = vcombine.low %v57_v49, %v57_v49 }
 0x21e   :  { %21201 = vmatprep.subr.bf16.mxu1 %v23387_v55 }
 0x21f   :  { %21180 = vmatpush3.bf16.msra.mxu0 %v23386_v54  ;;  %v23430_v54 = vld [vmem:[%s30230_s1 + $0x1238] sm:$0xff]  }
 0x220   :  { %21209 = vmatprep.subr.bf16.mxu0 %v23391_v61 }
 0x221   :  { %21202 = vmatpush3.bf16.msra.mxu1 %v23390_v60 }
 0x222   :  { %v20917_v57 = vpop.f32.mrf.mxu0  ;;  %15569 = vmatmul.mubr.bf16.vlgmr.msra.gmra.mxu0 %v18639_v58  ;;  %21231 = vmatprep.subr.bf16.mxu1 %v23395_v5  ;;  %v23437_v5 = vld [vmem:[%s30230_s1 + $0x1268] sm:$0xff]  }
 0x223   :  { %21210 = vmatpush3.bf16.msra.mxu0 %v23394_v3  ;;  %15648 = vmatprep.mubr.bf16.mxu0 %v18644_v45  ;;  %v23468_v45 = vld [vmem:[%s30230_s1 + $0x13b8] sm:$0xff]  }
 0x224   :  { %v20918_v63 = vpop.f32.mrf.mxu0  ;;  %v20939_v0 = vpop.f32.mrf.mxu1  ;;  %15609 = vmatmul.mubr.bf16.vlgmr.msra.gmra.mxu1 %v18641_v1  ;;  %21211 = vmatprep.subr.bf16.mxu0 %v23397_v11  ;;  %v23434_v1 = vld [vmem:[%s30230_s1 + $0x1230] sm:$0xff]   ;;  %v23443_v11 = vld [vmem:[%s30230_s1 + $0x12e0] sm:$0xff]  }
 0x225   :  { %v20919_v4 = vadd.f32 %v20918_v63, %v20917_v57  ;;  %21232 = vmatpush3.bf16.msra.mxu1 %v23396_v9  ;;  %v23431_v57 = vld [vmem:[%s30230_s1 + $0x12f8] sm:$0xff]   ;;  %15688 = vmatprep.mubr.bf16.mxu1 %v18646_v53  ;;  %v23441_v9 = vld [vmem:[%s30230_s1 + $0x1260] sm:$0xff]  }
 0x226   :  { %v20920_v6 = vpop.f32.mrf.mxu0  ;;  %v20940_v7 = vpop.f32.mrf.mxu1  ;;  %21233 = vmatprep.subr.bf16.mxu1 %v23399_v16  ;;  %v23448_v16 = vld [vmem:[%s30230_s1 + $0x1298] sm:$0xff]  }
 0x227   :  { %v15091_v8 = vadd.f32 %v20919_v4, %v26401_v28  ;;  %v20941_v10 = vadd.f32 %v20940_v7, %v20939_v0  ;;  %21212 = vmatpush3.bf16.msra.mxu0 %v23398_v15  ;;  %v23410_v28 = vld [vmem:[%s30230_s1 + $0x1118] sm:$0xff]   ;;  %v23436_v4 = vld [vmem:[%s30230_s1 + $0x12b0] sm:$0xff]   ;;  %v23438_v6 = vld [vmem:[%s30230_s1 + $0x1228] sm:$0xff]  }
 0x228   :  { %v20921_v12 = vpop.f32.mrf.mxu0  ;;  %v20942_v13 = vpop.f32.mrf.mxu1  ;;  %21213 = vmatprep.subr.bf16.mxu0 %v23401_v19  ;;  %v23439_v7 = vld [vmem:[%s30230_s1 + $0x12e8] sm:$0xff]   ;;  %v23447_v15 = vld [vmem:[%s30230_s1 + $0x12d8] sm:$0xff]   ;;  %v23451_v19 = vld [vmem:[%s30230_s1 + $0x12d0] sm:$0xff]  }
 0x229   :  { %v26506_v14 = vadd.f32 %v20941_v10, %v15091_v8  ;;  %21234 = vmatpush3.bf16.msra.mxu1 %v23400_v18  ;;  %v23440_v8 = vld [vmem:[%s30230_s1 + $0x12a8] sm:$0xff]   ;;  %v23442_v10 = vld [vmem:[%s30230_s1 + $0x1220] sm:$0xff]   ;;  %v23445_v13 = vld [vmem:[%s30230_s1 + $0x1258] sm:$0xff]  }
 0x22a   :  { %v20943_v17 = vpop.f32.mrf.mxu1  ;;  %21235 = vmatprep.subr.bf16.mxu1 %v23403_v21  ;;  %v23444_v12 = vld [vmem:[%s30230_s1 + $0x12a0] sm:$0xff]   ;;  %v23450_v18 = vld [vmem:[%s30230_s1 + $0x1210] sm:$0xff]   ;;  %v23453_v21 = vld [vmem:[%s30230_s1 + $0x1248] sm:$0xff]  }
 0x22b   :  { %21214 = vmatpush3.bf16.msra.mxu0 %v23402_v20  ;;  %v23449_v17 = vld [vmem:[%s30230_s1 + $0x1250] sm:$0xff]  }
 0x22c   :  { %21215 = vmatprep.subr.bf16.mxu0 %v23405_v23  ;;  %v23452_v20 = vld [vmem:[%s30230_s1 + $0x1290] sm:$0xff]   ;;  %v23455_v23 = vld [vmem:[%s30230_s1 + $0x12c8] sm:$0xff]  }
 0x22d   :  { %21236 = vmatpush3.bf16.msra.mxu1 %v23404_v22  ;;  %v23454_v22 = vld [vmem:[%s30230_s1 + $0x1208] sm:$0xff]  }
 0x22e   :  { %21237 = vmatprep.subr.bf16.mxu1 %v23407_v25  ;;  %v23457_v25 = vld [vmem:[%s30230_s1 + $0x1240] sm:$0xff]  }
 0x22f   :  { %21216 = vmatpush3.bf16.msra.mxu0 %v23406_v24  ;;  %v23456_v24 = vld [vmem:[%s30230_s1 + $0x1288] sm:$0xff]  }
 0x230   :  { %21217 = vmatprep.subr.bf16.mxu0 %v23409_v27  ;;  %v23459_v27 = vld [vmem:[%s30230_s1 + $0x12c0] sm:$0xff]  }
 0x231   :  { %21238 = vmatpush3.bf16.msra.mxu1 %v23408_v26  ;;  %v23458_v26 = vld [vmem:[%s30230_s1 + $0x1200] sm:$0xff]  }
 0x232   :  { %21239 = vmatprep.subr.bf16.mxu1 %v23411_v29 }
 0x233   :  { %21218 = vmatpush3.bf16.msra.mxu0 %v23410_v28  ;;  %v58_v28 = vld [vmem:[%s30229_s0 + $0x120] sm:$0xff] }
 0x234   :  { %21219 = vmatprep.subr.bf16.mxu0 %v23413_v31  ;;  %v18648_v31 = vcombine.high %v58_v28, %v58_v28 }
 0x235   :  { %21240 = vmatpush3.bf16.msra.mxu1 %v23412_v30  ;;  %v18647_v30 = vcombine.low %v58_v28, %v58_v28 }
 0x236   :  { %21241 = vmatprep.subr.bf16.mxu1 %v23415_v33  ;;  %v23463_v33 = vld [vmem:[%s30230_s1 + $0x1378] sm:$0xff]  }
 0x237   :  { %21220 = vmatpush3.bf16.msra.mxu0 %v23414_v32  ;;  %v23462_v32 = vld [vmem:[%s30230_s1 + $0x1280] sm:$0xff]  }
 0x238   :  { %21221 = vmatprep.subr.bf16.mxu0 %v23417_v35 }
 0x239   :  { %21242 = vmatpush3.bf16.msra.mxu1 %v23416_v34  ;;  %v59_v34 = vld [vmem:[%s30229_s0 + $0x128] sm:$0xff] }
 0x23a   :  { %21243 = vmatprep.subr.bf16.mxu1 %v23419_v37  ;;  %v18649_v37 = vcombine.low %v59_v34, %v59_v34 }
 0x23b   :  { %21222 = vmatpush3.bf16.msra.mxu0 %v23418_v36 }
 0x23c   :  { %21223 = vmatprep.subr.bf16.mxu0 %v23421_v39  ;;  %v23466_v39 = vld [vmem:[%s30230_s1 + $0x1338] sm:$0xff]  }
 0x23d   :  { %21244 = vmatpush3.bf16.msra.mxu1 %v23420_v38  ;;  %v18650_v38 = vcombine.high %v59_v34, %v59_v34 }
 0x23e   :  { %21245 = vmatprep.subr.bf16.mxu1 %v23423_v41  ;;  %v23467_v41 = vld [vmem:[%s30230_s1 + $0x13f8] sm:$0xff]  }
 0x23f   :  { %21224 = vmatpush3.bf16.msra.mxu0 %v23422_v40 }
 0x240   :  { %21253 = vmatprep.subr.bf16.mxu0 %v23427_v47  ;;  %v23469_v47 = vld [vmem:[%s30230_s1 + $0x1370] sm:$0xff]  }
 0x241   :  { %21246 = vmatpush3.bf16.msra.mxu1 %v23426_v46 }
 0x242   :  { %v20961_v43 = vpop.f32.mrf.mxu0  ;;  %15649 = vmatmul.mubr.bf16.vlgmr.msra.gmra.mxu0 %v18643_v44  ;;  %21275 = vmatprep.subr.bf16.mxu1 %v23431_v57  ;;  %v23475_v57 = vld [vmem:[%s30230_s1 + $0x13e8] sm:$0xff]  }
 0x243   :  { %21254 = vmatpush3.bf16.msra.mxu0 %v23430_v54  ;;  %15728 = vmatprep.mubr.bf16.mxu0 %v18648_v31  ;;  %v23472_v54 = vld [vmem:[%s30230_s1 + $0x13b0] sm:$0xff]   ;;  %v23504_v31 = vld [vmem:[%s30230_s1 + $0x14b8] sm:$0xff]  }
 0x244   :  { %v20962_v48 = vpop.f32.mrf.mxu0  ;;  %v20983_v51 = vpop.f32.mrf.mxu1  ;;  %15689 = vmatmul.mubr.bf16.vlgmr.msra.gmra.mxu1 %v18645_v52  ;;  %21255 = vmatprep.subr.bf16.mxu0 %v23433_v62  ;;  %v23471_v52 = vld [vmem:[%s30230_s1 + $0x13f0] sm:$0xff]   ;;  %v23480_v62 = vld [vmem:[%s30230_s1 + $0x13a0] sm:$0xff]  }
 0x245   :  { %v20963_v50 = vadd.f32 %v20962_v48, %v20961_v43  ;;  %21276 = vmatpush3.bf16.msra.mxu1 %v23432_v59  ;;  %15768 = vmatprep.mubr.bf16.mxu1 %v18650_v38  ;;  %v23477_v59 = vld [vmem:[%s30230_s1 + $0x1360] sm:$0xff]   ;;  %v23507_v38 = vld [vmem:[%s30230_s1 + $0x14f0] sm:$0xff]  }
 0x246   :  { %v20964_v55 = vpop.f32.mrf.mxu0  ;;  %v20984_v58 = vpop.f32.mrf.mxu1  ;;  %21277 = vmatprep.subr.bf16.mxu1 %v23435_v2  ;;  %v23484_v2 = vld [vmem:[%s30230_s1 + $0x1398] sm:$0xff]  }
 0x247   :  { %v15171_v56 = vadd.f32 %v20963_v50, %v26506_v14  ;;  %v20985_v60 = vadd.f32 %v20984_v58, %v20983_v51  ;;  %21256 = vmatpush3.bf16.msra.mxu0 %v23434_v1  ;;  %v23446_v14 = vld [vmem:[%s30230_s1 + $0x1218] sm:$0xff]   ;;  %v23470_v51 = vld [vmem:[%s30230_s1 + $0x1330] sm:$0xff]   ;;  %v23473_v55 = vld [vmem:[%s30230_s1 + $0x1368] sm:$0xff]  }
 0x248   :  { %v20965_v61 = vpop.f32.mrf.mxu0  ;;  %v20986_v63 = vpop.f32.mrf.mxu1  ;;  %21257 = vmatprep.subr.bf16.mxu0 %v23437_v5  ;;  %v23476_v58 = vld [vmem:[%s30230_s1 + $0x13a8] sm:$0xff]   ;;  %v23483_v1 = vld [vmem:[%s30230_s1 + $0x13d8] sm:$0xff]   ;;  %v23487_v5 = vld [vmem:[%s30230_s1 + $0x13d0] sm:$0xff]  }
 0x249   :  { %v26611_v0 = vadd.f32 %v20985_v60, %v15171_v56  ;;  %21278 = vmatpush3.bf16.msra.mxu1 %v23436_v4  ;;  %v23474_v56 = vld [vmem:[%s30230_s1 + $0x1328] sm:$0xff]   ;;  %v23478_v60 = vld [vmem:[%s30230_s1 + $0x1320] sm:$0xff]   ;;  %v23481_v63 = vld [vmem:[%s30230_s1 + $0x1358] sm:$0xff]  }
 0x24a   :  { %v20987_v3 = vpop.f32.mrf.mxu1  ;;  %21279 = vmatprep.subr.bf16.mxu1 %v23439_v7  ;;  %v23479_v61 = vld [vmem:[%s30230_s1 + $0x13e0] sm:$0xff]   ;;  %v23486_v4 = vld [vmem:[%s30230_s1 + $0x1310] sm:$0xff]   ;;  %v23489_v7 = vld [vmem:[%s30230_s1 + $0x1348] sm:$0xff]  }
 0x24b   :  { %21258 = vmatpush3.bf16.msra.mxu0 %v23438_v6  ;;  %v23485_v3 = vld [vmem:[%s30230_s1 + $0x1350] sm:$0xff]  }
 0x24c   :  { %21259 = vmatprep.subr.bf16.mxu0 %v23441_v9  ;;  %v23488_v6 = vld [vmem:[%s30230_s1 + $0x1390] sm:$0xff]   ;;  %v23491_v9 = vld [vmem:[%s30230_s1 + $0x13c8] sm:$0xff]  }
 0x24d   :  { %21280 = vmatpush3.bf16.msra.mxu1 %v23440_v8  ;;  %v23490_v8 = vld [vmem:[%s30230_s1 + $0x1308] sm:$0xff]  }
 0x24e   :  { %21281 = vmatprep.subr.bf16.mxu1 %v23443_v11  ;;  %v23493_v11 = vld [vmem:[%s30230_s1 + $0x1340] sm:$0xff]  }
 0x24f   :  { %21260 = vmatpush3.bf16.msra.mxu0 %v23442_v10  ;;  %v23492_v10 = vld [vmem:[%s30230_s1 + $0x1388] sm:$0xff]  }
 0x250   :  { %21261 = vmatprep.subr.bf16.mxu0 %v23445_v13  ;;  %v23495_v13 = vld [vmem:[%s30230_s1 + $0x13c0] sm:$0xff]  }
 0x251   :  { %21282 = vmatpush3.bf16.msra.mxu1 %v23444_v12  ;;  %v23494_v12 = vld [vmem:[%s30230_s1 + $0x1300] sm:$0xff]  }
 0x252   :  { %21283 = vmatprep.subr.bf16.mxu1 %v23447_v15 }
 0x253   :  { %21262 = vmatpush3.bf16.msra.mxu0 %v23446_v14  ;;  %v60_v14 = vld [vmem:[%s30229_s0 + $0x130] sm:$0xff] }
 0x254   :  { %21263 = vmatprep.subr.bf16.mxu0 %v23449_v17  ;;  %v18652_v17 = vcombine.high %v60_v14, %v60_v14 }
 0x255   :  { %21284 = vmatpush3.bf16.msra.mxu1 %v23448_v16  ;;  %v18651_v16 = vcombine.low %v60_v14, %v60_v14 }
 0x256   :  { %21285 = vmatprep.subr.bf16.mxu1 %v23451_v19  ;;  %v23499_v19 = vld [vmem:[%s30230_s1 + $0x1478] sm:$0xff]  }
 0x257   :  { %21264 = vmatpush3.bf16.msra.mxu0 %v23450_v18  ;;  %v23498_v18 = vld [vmem:[%s30230_s1 + $0x1380] sm:$0xff]  }
 0x258   :  { %21265 = vmatprep.subr.bf16.mxu0 %v23453_v21 }
 0x259   :  { %21286 = vmatpush3.bf16.msra.mxu1 %v23452_v20  ;;  %v61_v20 = vld [vmem:[%s30229_s0 + $0x138] sm:$0xff] }
 0x25a   :  { %21287 = vmatprep.subr.bf16.mxu1 %v23455_v23  ;;  %v18653_v23 = vcombine.low %v61_v20, %v61_v20 }
 0x25b   :  { %21266 = vmatpush3.bf16.msra.mxu0 %v23454_v22 }
 0x25c   :  { %21267 = vmatprep.subr.bf16.mxu0 %v23457_v25  ;;  %v23502_v25 = vld [vmem:[%s30230_s1 + $0x1438] sm:$0xff]  }
 0x25d   :  { %21288 = vmatpush3.bf16.msra.mxu1 %v23456_v24  ;;  %v18654_v24 = vcombine.high %v61_v20, %v61_v20  ;;  %v23541_v20 = vld [vmem:[%s30230_s1 + $0x1570] sm:$0xff]  }
 0x25e   :  { %21289 = vmatprep.subr.bf16.mxu1 %v23459_v27  ;;  %v23503_v27 = vld [vmem:[%s30230_s1 + $0x14f8] sm:$0xff]  }
 0x25f   :  { %21268 = vmatpush3.bf16.msra.mxu0 %v23458_v26 }
 0x260   :  { %21297 = vmatprep.subr.bf16.mxu0 %v23463_v33  ;;  %v23505_v33 = vld [vmem:[%s30230_s1 + $0x1470] sm:$0xff]  }
 0x261   :  { %21290 = vmatpush3.bf16.msra.mxu1 %v23462_v32 }
 0x262   :  { %v21005_v29 = vpop.f32.mrf.mxu0  ;;  %15729 = vmatmul.mubr.bf16.vlgmr.msra.gmra.mxu0 %v18647_v30  ;;  %21319 = vmatprep.subr.bf16.mxu1 %v23467_v41  ;;  %v23509_v41 = vld [vmem:[%s30230_s1 + $0x1468] sm:$0xff]  }
 0x263   :  { %21298 = vmatpush3.bf16.msra.mxu0 %v23466_v39  ;;  %15808 = vmatprep.mubr.bf16.mxu0 %v18652_v17  ;;  %v23540_v17 = vld [vmem:[%s30230_s1 + $0x15b8] sm:$0xff]  }
 0x264   :  { %v21006_v35 = vpop.f32.mrf.mxu0  ;;  %v21027_v36 = vpop.f32.mrf.mxu1  ;;  %15769 = vmatmul.mubr.bf16.vlgmr.msra.gmra.mxu1 %v18649_v37  ;;  %21299 = vmatprep.subr.bf16.mxu0 %v23469_v47  ;;  %v23506_v37 = vld [vmem:[%s30230_s1 + $0x1430] sm:$0xff]   ;;  %v23515_v47 = vld [vmem:[%s30230_s1 + $0x14e0] sm:$0xff]  }
 0x265   :  { %v21007_v40 = vadd.f32 %v21006_v35, %v21005_v29  ;;  %21320 = vmatpush3.bf16.msra.mxu1 %v23468_v45  ;;  %15848 = vmatprep.mubr.bf16.mxu1 %v18654_v24  ;;  %v23513_v45 = vld [vmem:[%s30230_s1 + $0x1460] sm:$0xff]   ;;  %v23543_v24 = vld [vmem:[%s30230_s1 + $0x15f0] sm:$0xff]  }
 0x266   :  { %v21008_v42 = vpop.f32.mrf.mxu0  ;;  %v21028_v43 = vpop.f32.mrf.mxu1  ;;  %21321 = vmatprep.subr.bf16.mxu1 %v23471_v52  ;;  %v23520_v52 = vld [vmem:[%s30230_s1 + $0x1498] sm:$0xff]  }
 0x267   :  { %v15251_v44 = vadd.f32 %v21007_v40, %v26611_v0  ;;  %v21029_v46 = vadd.f32 %v21028_v43, %v21027_v36  ;;  %21300 = vmatpush3.bf16.msra.mxu0 %v23470_v51  ;;  %v23482_v0 = vld [vmem:[%s30230_s1 + $0x1318] sm:$0xff]   ;;  %v23508_v40 = vld [vmem:[%s30230_s1 + $0x14b0] sm:$0xff]   ;;  %v23510_v42 = vld [vmem:[%s30230_s1 + $0x1428] sm:$0xff]  }
 0x268   :  { %v21009_v48 = vpop.f32.mrf.mxu0  ;;  %v21030_v49 = vpop.f32.mrf.mxu1  ;;  %21301 = vmatprep.subr.bf16.mxu0 %v23473_v55  ;;  %v23511_v43 = vld [vmem:[%s30230_s1 + $0x14e8] sm:$0xff]   ;;  %v23519_v51 = vld [vmem:[%s30230_s1 + $0x14d8] sm:$0xff]   ;;  %v23523_v55 = vld [vmem:[%s30230_s1 + $0x14d0] sm:$0xff]  }
 0x269   :  { %v26716_v50 = vadd.f32 %v21029_v46, %v15251_v44  ;;  %21322 = vmatpush3.bf16.msra.mxu1 %v23472_v54  ;;  %v23512_v44 = vld [vmem:[%s30230_s1 + $0x14a8] sm:$0xff]   ;;  %v23514_v46 = vld [vmem:[%s30230_s1 + $0x1420] sm:$0xff]   ;;  %v23517_v49 = vld [vmem:[%s30230_s1 + $0x1458] sm:$0xff]  }
 0x26a   :  { %v21031_v53 = vpop.f32.mrf.mxu1  ;;  %21323 = vmatprep.subr.bf16.mxu1 %v23475_v57  ;;  %v23516_v48 = vld [vmem:[%s30230_s1 + $0x14a0] sm:$0xff]   ;;  %v23522_v54 = vld [vmem:[%s30230_s1 + $0x1410] sm:$0xff]   ;;  %v23525_v57 = vld [vmem:[%s30230_s1 + $0x1448] sm:$0xff]  }
 0x26b   :  { %21302 = vmatpush3.bf16.msra.mxu0 %v23474_v56  ;;  %v23521_v53 = vld [vmem:[%s30230_s1 + $0x1450] sm:$0xff]  }
 0x26c   :  { %21303 = vmatprep.subr.bf16.mxu0 %v23477_v59  ;;  %v23524_v56 = vld [vmem:[%s30230_s1 + $0x1490] sm:$0xff]   ;;  %v23527_v59 = vld [vmem:[%s30230_s1 + $0x14c8] sm:$0xff]  }
 0x26d   :  { %21324 = vmatpush3.bf16.msra.mxu1 %v23476_v58  ;;  %v23526_v58 = vld [vmem:[%s30230_s1 + $0x1408] sm:$0xff]  }
 0x26e   :  { %21325 = vmatprep.subr.bf16.mxu1 %v23479_v61  ;;  %v23529_v61 = vld [vmem:[%s30230_s1 + $0x1440] sm:$0xff]  }
 0x26f   :  { %21304 = vmatpush3.bf16.msra.mxu0 %v23478_v60  ;;  %v23528_v60 = vld [vmem:[%s30230_s1 + $0x1488] sm:$0xff]  }
 0x270   :  { %21305 = vmatprep.subr.bf16.mxu0 %v23481_v63  ;;  %v23531_v63 = vld [vmem:[%s30230_s1 + $0x14c0] sm:$0xff]  }
 0x271   :  { %21326 = vmatpush3.bf16.msra.mxu1 %v23480_v62  ;;  %v23530_v62 = vld [vmem:[%s30230_s1 + $0x1400] sm:$0xff]  }
 0x272   :  { %21327 = vmatprep.subr.bf16.mxu1 %v23483_v1 }
 0x273   :  { %21306 = vmatpush3.bf16.msra.mxu0 %v23482_v0  ;;  %v62_v0 = vld [vmem:[%s30229_s0 + $0x140] sm:$0xff] }
 0x274   :  { %21307 = vmatprep.subr.bf16.mxu0 %v23485_v3  ;;  %v18656_v3 = vcombine.high %v62_v0, %v62_v0 }
 0x275   :  { %21328 = vmatpush3.bf16.msra.mxu1 %v23484_v2  ;;  %v18655_v2 = vcombine.low %v62_v0, %v62_v0 }
 0x276   :  { %21329 = vmatprep.subr.bf16.mxu1 %v23487_v5  ;;  %v23535_v5 = vld [vmem:[%s30230_s1 + $0x1578] sm:$0xff]  }
 0x277   :  { %21308 = vmatpush3.bf16.msra.mxu0 %v23486_v4  ;;  %v23534_v4 = vld [vmem:[%s30230_s1 + $0x1480] sm:$0xff]  }
 0x278   :  { %21309 = vmatprep.subr.bf16.mxu0 %v23489_v7  ;;  %v63_v7 = vld [vmem:[%s30229_s0 + $0x148] sm:$0xff] }
 0x279   :  { %21330 = vmatpush3.bf16.msra.mxu1 %v23488_v6 }
 0x27a   :  { %21331 = vmatprep.subr.bf16.mxu1 %v23491_v9 }
 0x27b   :  { %21310 = vmatpush3.bf16.msra.mxu0 %v23490_v8 }
 0x27c   :  { %21311 = vmatprep.subr.bf16.mxu0 %v23493_v11  ;;  %v18658_v11 = vcombine.high %v63_v7, %v63_v7 }
 0x27d   :  { %21332 = vmatpush3.bf16.msra.mxu1 %v23492_v10  ;;  %v18657_v10 = vcombine.low %v63_v7, %v63_v7 }
 0x27e   :  { %21333 = vmatprep.subr.bf16.mxu1 %v23495_v13 }
 0x27f   :  { %21312 = vmatpush3.bf16.msra.mxu0 %v23494_v12  ;;  %v23538_v12 = vld [vmem:[%s30230_s1 + $0x1538] sm:$0xff]  }
 0x280   :  { %21341 = vmatprep.subr.bf16.mxu0 %v23499_v19 }
 0x281   :  { %21334 = vmatpush3.bf16.msra.mxu1 %v23498_v18 }
 0x282   :  { %v21049_v15 = vpop.f32.mrf.mxu0  ;;  %15809 = vmatmul.mubr.bf16.vlgmr.msra.gmra.mxu0 %v18651_v16  ;;  %21363 = vmatprep.subr.bf16.mxu1 %v23503_v27  ;;  %v23545_v27 = vld [vmem:[%s30230_s1 + $0x1568] sm:$0xff]  }
 0x283   :  { %21342 = vmatpush3.bf16.msra.mxu0 %v23502_v25  ;;  %15888 = vmatprep.mubr.bf16.mxu0 %v18656_v3  ;;  %v23576_v3 = vld [vmem:[%s30230_s1 + $0x16b8] sm:$0xff]  }
 0x284   :  { %v21050_v21 = vpop.f32.mrf.mxu0  ;;  %v21071_v22 = vpop.f32.mrf.mxu1  ;;  %15849 = vmatmul.mubr.bf16.vlgmr.msra.gmra.mxu1 %v18653_v23  ;;  %21343 = vmatprep.subr.bf16.mxu0 %v23505_v33  ;;  %v23542_v23 = vld [vmem:[%s30230_s1 + $0x1530] sm:$0xff]   ;;  %v23551_v33 = vld [vmem:[%s30230_s1 + $0x15e0] sm:$0xff]  }
 0x285   :  { %v21051_v26 = vadd.f32 %v21050_v21, %v21049_v15  ;;  %21364 = vmatpush3.bf16.msra.mxu1 %v23504_v31  ;;  %v23539_v15 = vld [vmem:[%s30230_s1 + $0x15f8] sm:$0xff]   ;;  %15928 = vmatprep.mubr.bf16.mxu1 %v18658_v11  ;;  %v23549_v31 = vld [vmem:[%s30230_s1 + $0x1560] sm:$0xff]  }
 0x286   :  { %v21052_v28 = vpop.f32.mrf.mxu0  ;;  %v21072_v29 = vpop.f32.mrf.mxu1  ;;  %21365 = vmatprep.subr.bf16.mxu1 %v23507_v38  ;;  %v23556_v38 = vld [vmem:[%s30230_s1 + $0x1598] sm:$0xff]  }
 0x287   :  { %v15331_v30 = vadd.f32 %v21051_v26, %v26716_v50  ;;  %v21073_v32 = vadd.f32 %v21072_v29, %v21071_v22  ;;  %21344 = vmatpush3.bf16.msra.mxu0 %v23506_v37  ;;  %v23518_v50 = vld [vmem:[%s30230_s1 + $0x1418] sm:$0xff]   ;;  %v23544_v26 = vld [vmem:[%s30230_s1 + $0x15b0] sm:$0xff]   ;;  %v23546_v28 = vld [vmem:[%s30230_s1 + $0x1528] sm:$0xff]  }
 0x288   :  { %v21053_v34 = vpop.f32.mrf.mxu0  ;;  %v21074_v35 = vpop.f32.mrf.mxu1  ;;  %21345 = vmatprep.subr.bf16.mxu0 %v23509_v41  ;;  %v23547_v29 = vld [vmem:[%s30230_s1 + $0x15e8] sm:$0xff]   ;;  %v23555_v37 = vld [vmem:[%s30230_s1 + $0x15d8] sm:$0xff]   ;;  %v23559_v41 = vld [vmem:[%s30230_s1 + $0x15d0] sm:$0xff]  }
 0x289   :  { %v26821_v36 = vadd.f32 %v21073_v32, %v15331_v30  ;;  %21366 = vmatpush3.bf16.msra.mxu1 %v23508_v40  ;;  %v23548_v30 = vld [vmem:[%s30230_s1 + $0x15a8] sm:$0xff]   ;;  %v23550_v32 = vld [vmem:[%s30230_s1 + $0x1520] sm:$0xff]   ;;  %v23553_v35 = vld [vmem:[%s30230_s1 + $0x1558] sm:$0xff]  }
 0x28a   :  { %v21075_v39 = vpop.f32.mrf.mxu1  ;;  %21367 = vmatprep.subr.bf16.mxu1 %v23511_v43  ;;  %v23552_v34 = vld [vmem:[%s30230_s1 + $0x15a0] sm:$0xff]   ;;  %v23558_v40 = vld [vmem:[%s30230_s1 + $0x1510] sm:$0xff]   ;;  %v23561_v43 = vld [vmem:[%s30230_s1 + $0x1548] sm:$0xff]  }
 0x28b   :  { %21346 = vmatpush3.bf16.msra.mxu0 %v23510_v42  ;;  %v23557_v39 = vld [vmem:[%s30230_s1 + $0x1550] sm:$0xff]  }
 0x28c   :  { %21347 = vmatprep.subr.bf16.mxu0 %v23513_v45  ;;  %v23560_v42 = vld [vmem:[%s30230_s1 + $0x1590] sm:$0xff]   ;;  %v23563_v45 = vld [vmem:[%s30230_s1 + $0x15c8] sm:$0xff]  }
 0x28d   :  { %21368 = vmatpush3.bf16.msra.mxu1 %v23512_v44  ;;  %v23562_v44 = vld [vmem:[%s30230_s1 + $0x1508] sm:$0xff]  }
 0x28e   :  { %21369 = vmatprep.subr.bf16.mxu1 %v23515_v47  ;;  %v23565_v47 = vld [vmem:[%s30230_s1 + $0x1540] sm:$0xff]  }
 0x28f   :  { %21348 = vmatpush3.bf16.msra.mxu0 %v23514_v46  ;;  %v23564_v46 = vld [vmem:[%s30230_s1 + $0x1588] sm:$0xff]  }
 0x290   :  { %21349 = vmatprep.subr.bf16.mxu0 %v23517_v49  ;;  %v23567_v49 = vld [vmem:[%s30230_s1 + $0x15c0] sm:$0xff]  }
 0x291   :  { %21370 = vmatpush3.bf16.msra.mxu1 %v23516_v48  ;;  %v23566_v48 = vld [vmem:[%s30230_s1 + $0x1500] sm:$0xff]  }
 0x292   :  { %21371 = vmatprep.subr.bf16.mxu1 %v23519_v51 }
 0x293   :  { %21350 = vmatpush3.bf16.msra.mxu0 %v23518_v50  ;;  %v64_v50 = vld [vmem:[%s30229_s0 + $0x150] sm:$0xff] }
 0x294   :  { %21351 = vmatprep.subr.bf16.mxu0 %v23521_v53  ;;  %v18660_v53 = vcombine.high %v64_v50, %v64_v50 }
 0x295   :  { %21372 = vmatpush3.bf16.msra.mxu1 %v23520_v52  ;;  %v18659_v52 = vcombine.low %v64_v50, %v64_v50 }
 0x296   :  { %21373 = vmatprep.subr.bf16.mxu1 %v23523_v55  ;;  %v23571_v55 = vld [vmem:[%s30230_s1 + $0x1678] sm:$0xff]  }
 0x297   :  { %21352 = vmatpush3.bf16.msra.mxu0 %v23522_v54  ;;  %v23570_v54 = vld [vmem:[%s30230_s1 + $0x1580] sm:$0xff]  }
 0x298   :  { %21353 = vmatprep.subr.bf16.mxu0 %v23525_v57 }
 0x299   :  { %21374 = vmatpush3.bf16.msra.mxu1 %v23524_v56  ;;  %v65_v56 = vld [vmem:[%s30229_s0 + $0x158] sm:$0xff] }
 0x29a   :  { %21375 = vmatprep.subr.bf16.mxu1 %v23527_v59  ;;  %v18661_v59 = vcombine.low %v65_v56, %v65_v56 }
 0x29b   :  { %21354 = vmatpush3.bf16.msra.mxu0 %v23526_v58 }
 0x29c   :  { %21355 = vmatprep.subr.bf16.mxu0 %v23529_v61  ;;  %v23574_v61 = vld [vmem:[%s30230_s1 + $0x1638] sm:$0xff]  }
 0x29d   :  { %21376 = vmatpush3.bf16.msra.mxu1 %v23528_v60  ;;  %v18662_v60 = vcombine.high %v65_v56, %v65_v56 }
 0x29e   :  { %21377 = vmatprep.subr.bf16.mxu1 %v23531_v63  ;;  %v23575_v63 = vld [vmem:[%s30230_s1 + $0x16f8] sm:$0xff]  }
 0x29f   :  { %21356 = vmatpush3.bf16.msra.mxu0 %v23530_v62 }
 0x2a0   :  { %21385 = vmatprep.subr.bf16.mxu0 %v23535_v5  ;;  %v23577_v5 = vld [vmem:[%s30230_s1 + $0x1670] sm:$0xff]  }
 0x2a1   :  { %21378 = vmatpush3.bf16.msra.mxu1 %v23534_v4 }
 0x2a2   :  { %v21093_v1 = vpop.f32.mrf.mxu0  ;;  %15889 = vmatmul.mubr.bf16.vlgmr.msra.gmra.mxu0 %v18655_v2  ;;  %21407 = vmatprep.subr.bf16.mxu1 %v23539_v15  ;;  %v23583_v15 = vld [vmem:[%s30230_s1 + $0x16e8] sm:$0xff]  }
 0x2a3   :  { %21386 = vmatpush3.bf16.msra.mxu0 %v23538_v12  ;;  %15968 = vmatprep.mubr.bf16.mxu0 %v18660_v53  ;;  %v23580_v12 = vld [vmem:[%s30230_s1 + $0x16b0] sm:$0xff]   ;;  %v23612_v53 = vld [vmem:[%s30230_s1 + $0x17b8] sm:$0xff]  }
 0x2a4   :  { %v21094_v6 = vpop.f32.mrf.mxu0  ;;  %v21115_v9 = vpop.f32.mrf.mxu1  ;;  %15929 = vmatmul.mubr.bf16.vlgmr.msra.gmra.mxu1 %v18657_v10  ;;  %21387 = vmatprep.subr.bf16.mxu0 %v23541_v20  ;;  %v23579_v10 = vld [vmem:[%s30230_s1 + $0x16f0] sm:$0xff]   ;;  %v23588_v20 = vld [vmem:[%s30230_s1 + $0x16a0] sm:$0xff]  }
 0x2a5   :  { %v21095_v8 = vadd.f32 %v21094_v6, %v21093_v1  ;;  %21408 = vmatpush3.bf16.msra.mxu1 %v23540_v17  ;;  %16008 = vmatprep.mubr.bf16.mxu1 %v18662_v60  ;;  %v23585_v17 = vld [vmem:[%s30230_s1 + $0x1660] sm:$0xff]   ;;  %v23615_v60 = vld [vmem:[%s30230_s1 + $0x17f0] sm:$0xff]  }
 0x2a6   :  { %v21096_v13 = vpop.f32.mrf.mxu0  ;;  %v21116_v16 = vpop.f32.mrf.mxu1  ;;  %21409 = vmatprep.subr.bf16.mxu1 %v23543_v24  ;;  %v23592_v24 = vld [vmem:[%s30230_s1 + $0x1698] sm:$0xff]  }
 0x2a7   :  { %v15411_v14 = vadd.f32 %v21095_v8, %v26821_v36  ;;  %v21117_v18 = vadd.f32 %v21116_v16, %v21115_v9  ;;  %21388 = vmatpush3.bf16.msra.mxu0 %v23542_v23  ;;  %v23554_v36 = vld [vmem:[%s30230_s1 + $0x1518] sm:$0xff]   ;;  %v23578_v9 = vld [vmem:[%s30230_s1 + $0x1630] sm:$0xff]   ;;  %v23581_v13 = vld [vmem:[%s30230_s1 + $0x1668] sm:$0xff]  }
 0x2a8   :  { %v21097_v19 = vpop.f32.mrf.mxu0  ;;  %v21118_v21 = vpop.f32.mrf.mxu1  ;;  %21389 = vmatprep.subr.bf16.mxu0 %v23545_v27  ;;  %v23584_v16 = vld [vmem:[%s30230_s1 + $0x16a8] sm:$0xff]   ;;  %v23591_v23 = vld [vmem:[%s30230_s1 + $0x16d8] sm:$0xff]   ;;  %v23595_v27 = vld [vmem:[%s30230_s1 + $0x16d0] sm:$0xff]  }
 0x2a9   :  { %v26926_v22 = vadd.f32 %v21117_v18, %v15411_v14  ;;  %21410 = vmatpush3.bf16.msra.mxu1 %v23544_v26  ;;  %v23582_v14 = vld [vmem:[%s30230_s1 + $0x1628] sm:$0xff]   ;;  %v23586_v18 = vld [vmem:[%s30230_s1 + $0x1620] sm:$0xff]   ;;  %v23589_v21 = vld [vmem:[%s30230_s1 + $0x1658] sm:$0xff]  }
 0x2aa   :  { %v21119_v25 = vpop.f32.mrf.mxu1  ;;  %21411 = vmatprep.subr.bf16.mxu1 %v23547_v29  ;;  %v23587_v19 = vld [vmem:[%s30230_s1 + $0x16e0] sm:$0xff]   ;;  %v23594_v26 = vld [vmem:[%s30230_s1 + $0x1610] sm:$0xff]   ;;  %v23597_v29 = vld [vmem:[%s30230_s1 + $0x1648] sm:$0xff]  }
 0x2ab   :  { %21390 = vmatpush3.bf16.msra.mxu0 %v23546_v28  ;;  %v23593_v25 = vld [vmem:[%s30230_s1 + $0x1650] sm:$0xff]  }
 0x2ac   :  { %21391 = vmatprep.subr.bf16.mxu0 %v23549_v31  ;;  %v23596_v28 = vld [vmem:[%s30230_s1 + $0x1690] sm:$0xff]   ;;  %v23599_v31 = vld [vmem:[%s30230_s1 + $0x16c8] sm:$0xff]  }
 0x2ad   :  { %21412 = vmatpush3.bf16.msra.mxu1 %v23548_v30  ;;  %v23598_v30 = vld [vmem:[%s30230_s1 + $0x1608] sm:$0xff]  }
 0x2ae   :  { %21413 = vmatprep.subr.bf16.mxu1 %v23551_v33  ;;  %v23601_v33 = vld [vmem:[%s30230_s1 + $0x1640] sm:$0xff]  }
 0x2af   :  { %21392 = vmatpush3.bf16.msra.mxu0 %v23550_v32  ;;  %v23600_v32 = vld [vmem:[%s30230_s1 + $0x1688] sm:$0xff]  }
 0x2b0   :  { %21393 = vmatprep.subr.bf16.mxu0 %v23553_v35  ;;  %v23603_v35 = vld [vmem:[%s30230_s1 + $0x16c0] sm:$0xff]  }
 0x2b1   :  { %21414 = vmatpush3.bf16.msra.mxu1 %v23552_v34  ;;  %v23602_v34 = vld [vmem:[%s30230_s1 + $0x1600] sm:$0xff]  }
 0x2b2   :  { %21415 = vmatprep.subr.bf16.mxu1 %v23555_v37 }
 0x2b3   :  { %21394 = vmatpush3.bf16.msra.mxu0 %v23554_v36  ;;  %v66_v36 = vld [vmem:[%s30229_s0 + $0x160] sm:$0xff] }
 0x2b4   :  { %21395 = vmatprep.subr.bf16.mxu0 %v23557_v39  ;;  %v18664_v39 = vcombine.high %v66_v36, %v66_v36 }
 0x2b5   :  { %21416 = vmatpush3.bf16.msra.mxu1 %v23556_v38  ;;  %v18663_v38 = vcombine.low %v66_v36, %v66_v36 }
 0x2b6   :  { %21417 = vmatprep.subr.bf16.mxu1 %v23559_v41  ;;  %v23607_v41 = vld [vmem:[%s30230_s1 + $0x1778] sm:$0xff]  }
 0x2b7   :  { %21396 = vmatpush3.bf16.msra.mxu0 %v23558_v40  ;;  %v23606_v40 = vld [vmem:[%s30230_s1 + $0x1680] sm:$0xff]  }
 0x2b8   :  { %21397 = vmatprep.subr.bf16.mxu0 %v23561_v43 }
 0x2b9   :  { %21418 = vmatpush3.bf16.msra.mxu1 %v23560_v42  ;;  %v67_v42 = vld [vmem:[%s30229_s0 + $0x168] sm:$0xff] }
 0x2ba   :  { %21419 = vmatprep.subr.bf16.mxu1 %v23563_v45  ;;  %v18665_v45 = vcombine.low %v67_v42, %v67_v42 }
 0x2bb   :  { %21398 = vmatpush3.bf16.msra.mxu0 %v23562_v44 }
 0x2bc   :  { %21399 = vmatprep.subr.bf16.mxu0 %v23565_v47  ;;  %v23610_v47 = vld [vmem:[%s30230_s1 + $0x1738] sm:$0xff]  }
 0x2bd   :  { %21420 = vmatpush3.bf16.msra.mxu1 %v23564_v46  ;;  %v18666_v46 = vcombine.high %v67_v42, %v67_v42  ;;  %v23649_v42 = vld [vmem:[%s30230_s1 + $0x1870] sm:$0xff]  }
 0x2be   :  { %21421 = vmatprep.subr.bf16.mxu1 %v23567_v49  ;;  %v23611_v49 = vld [vmem:[%s30230_s1 + $0x17f8] sm:$0xff]  }
 0x2bf   :  { %21400 = vmatpush3.bf16.msra.mxu0 %v23566_v48 }
 0x2c0   :  { %21429 = vmatprep.subr.bf16.mxu0 %v23571_v55  ;;  %v23613_v55 = vld [vmem:[%s30230_s1 + $0x1770] sm:$0xff]  }
 0x2c1   :  { %21422 = vmatpush3.bf16.msra.mxu1 %v23570_v54 }
 0x2c2   :  { %v21137_v51 = vpop.f32.mrf.mxu0  ;;  %15969 = vmatmul.mubr.bf16.vlgmr.msra.gmra.mxu0 %v18659_v52  ;;  %21451 = vmatprep.subr.bf16.mxu1 %v23575_v63  ;;  %v23617_v63 = vld [vmem:[%s30230_s1 + $0x1768] sm:$0xff]  }
 0x2c3   :  { %21430 = vmatpush3.bf16.msra.mxu0 %v23574_v61  ;;  %16048 = vmatprep.mubr.bf16.mxu0 %v18664_v39  ;;  %v23648_v39 = vld [vmem:[%s30230_s1 + $0x18b8] sm:$0xff]  }
 0x2c4   :  { %v21138_v57 = vpop.f32.mrf.mxu0  ;;  %v21159_v58 = vpop.f32.mrf.mxu1  ;;  %16009 = vmatmul.mubr.bf16.vlgmr.msra.gmra.mxu1 %v18661_v59  ;;  %21431 = vmatprep.subr.bf16.mxu0 %v23577_v5  ;;  %v23614_v59 = vld [vmem:[%s30230_s1 + $0x1730] sm:$0xff]   ;;  %v23623_v5 = vld [vmem:[%s30230_s1 + $0x17e0] sm:$0xff]  }
 0x2c5   :  { %v21139_v62 = vadd.f32 %v21138_v57, %v21137_v51  ;;  %21452 = vmatpush3.bf16.msra.mxu1 %v23576_v3  ;;  %16088 = vmatprep.mubr.bf16.mxu1 %v18666_v46  ;;  %v23621_v3 = vld [vmem:[%s30230_s1 + $0x1760] sm:$0xff]   ;;  %v23651_v46 = vld [vmem:[%s30230_s1 + $0x18f0] sm:$0xff]  }
 0x2c6   :  { %v21140_v0 = vpop.f32.mrf.mxu0  ;;  %v21160_v1 = vpop.f32.mrf.mxu1  ;;  %21453 = vmatprep.subr.bf16.mxu1 %v23579_v10  ;;  %v23628_v10 = vld [vmem:[%s30230_s1 + $0x1798] sm:$0xff]  }
 0x2c7   :  { %v15491_v2 = vadd.f32 %v21139_v62, %v26926_v22  ;;  %v21161_v4 = vadd.f32 %v21160_v1, %v21159_v58  ;;  %21432 = vmatpush3.bf16.msra.mxu0 %v23578_v9  ;;  %v23590_v22 = vld [vmem:[%s30230_s1 + $0x1618] sm:$0xff]   ;;  %v23616_v62 = vld [vmem:[%s30230_s1 + $0x17b0] sm:$0xff]   ;;  %v23618_v0 = vld [vmem:[%s30230_s1 + $0x1728] sm:$0xff]  }
 0x2c8   :  { %v21141_v6 = vpop.f32.mrf.mxu0  ;;  %v21162_v7 = vpop.f32.mrf.mxu1  ;;  %21433 = vmatprep.subr.bf16.mxu0 %v23581_v13  ;;  %v23619_v1 = vld [vmem:[%s30230_s1 + $0x17e8] sm:$0xff]   ;;  %v23627_v9 = vld [vmem:[%s30230_s1 + $0x17d8] sm:$0xff]   ;;  %v23631_v13 = vld [vmem:[%s30230_s1 + $0x17d0] sm:$0xff]  }
 0x2c9   :  { %v27031_v8 = vadd.f32 %v21161_v4, %v15491_v2  ;;  %21454 = vmatpush3.bf16.msra.mxu1 %v23580_v12  ;;  %v23620_v2 = vld [vmem:[%s30230_s1 + $0x17a8] sm:$0xff]   ;;  %v23622_v4 = vld [vmem:[%s30230_s1 + $0x1720] sm:$0xff]   ;;  %v23625_v7 = vld [vmem:[%s30230_s1 + $0x1758] sm:$0xff]  }
 0x2ca   :  { %v21163_v11 = vpop.f32.mrf.mxu1  ;;  %21455 = vmatprep.subr.bf16.mxu1 %v23583_v15  ;;  %v23624_v6 = vld [vmem:[%s30230_s1 + $0x17a0] sm:$0xff]   ;;  %v23630_v12 = vld [vmem:[%s30230_s1 + $0x1710] sm:$0xff]   ;;  %v23633_v15 = vld [vmem:[%s30230_s1 + $0x1748] sm:$0xff]  }
 0x2cb   :  { %21434 = vmatpush3.bf16.msra.mxu0 %v23582_v14  ;;  %v23629_v11 = vld [vmem:[%s30230_s1 + $0x1750] sm:$0xff]  }
 0x2cc   :  { %21435 = vmatprep.subr.bf16.mxu0 %v23585_v17  ;;  %v23632_v14 = vld [vmem:[%s30230_s1 + $0x1790] sm:$0xff]   ;;  %v23635_v17 = vld [vmem:[%s30230_s1 + $0x17c8] sm:$0xff]  }
 0x2cd   :  { %21456 = vmatpush3.bf16.msra.mxu1 %v23584_v16  ;;  %v23634_v16 = vld [vmem:[%s30230_s1 + $0x1708] sm:$0xff]  }
 0x2ce   :  { %21457 = vmatprep.subr.bf16.mxu1 %v23587_v19  ;;  %v23637_v19 = vld [vmem:[%s30230_s1 + $0x1740] sm:$0xff]  }
 0x2cf   :  { %21436 = vmatpush3.bf16.msra.mxu0 %v23586_v18  ;;  %v23636_v18 = vld [vmem:[%s30230_s1 + $0x1788] sm:$0xff]  }
 0x2d0   :  { %21437 = vmatprep.subr.bf16.mxu0 %v23589_v21  ;;  %v23639_v21 = vld [vmem:[%s30230_s1 + $0x17c0] sm:$0xff]  }
 0x2d1   :  { %21458 = vmatpush3.bf16.msra.mxu1 %v23588_v20  ;;  %v23638_v20 = vld [vmem:[%s30230_s1 + $0x1700] sm:$0xff]  }
 0x2d2   :  { %21459 = vmatprep.subr.bf16.mxu1 %v23591_v23 }
 0x2d3   :  { %21438 = vmatpush3.bf16.msra.mxu0 %v23590_v22  ;;  %v68_v22 = vld [vmem:[%s30229_s0 + $0x170] sm:$0xff] }
 0x2d4   :  { %21439 = vmatprep.subr.bf16.mxu0 %v23593_v25  ;;  %v18668_v25 = vcombine.high %v68_v22, %v68_v22 }
 0x2d5   :  { %21460 = vmatpush3.bf16.msra.mxu1 %v23592_v24  ;;  %v18667_v24 = vcombine.low %v68_v22, %v68_v22 }
 0x2d6   :  { %21461 = vmatprep.subr.bf16.mxu1 %v23595_v27  ;;  %v23643_v27 = vld [vmem:[%s30230_s1 + $0x1878] sm:$0xff]  }
 0x2d7   :  { %21440 = vmatpush3.bf16.msra.mxu0 %v23594_v26  ;;  %v23642_v26 = vld [vmem:[%s30230_s1 + $0x1780] sm:$0xff]  }
 0x2d8   :  { %21441 = vmatprep.subr.bf16.mxu0 %v23597_v29  ;;  %v69_v29 = vld [vmem:[%s30229_s0 + $0x178] sm:$0xff] }
 0x2d9   :  { %21462 = vmatpush3.bf16.msra.mxu1 %v23596_v28 }
 0x2da   :  { %21463 = vmatprep.subr.bf16.mxu1 %v23599_v31 }
 0x2db   :  { %21442 = vmatpush3.bf16.msra.mxu0 %v23598_v30 }
 0x2dc   :  { %21443 = vmatprep.subr.bf16.mxu0 %v23601_v33  ;;  %v18670_v33 = vcombine.high %v69_v29, %v69_v29 }
 0x2dd   :  { %21464 = vmatpush3.bf16.msra.mxu1 %v23600_v32  ;;  %v18669_v32 = vcombine.low %v69_v29, %v69_v29 }
 0x2de   :  { %21465 = vmatprep.subr.bf16.mxu1 %v23603_v35 }
 0x2df   :  { %21444 = vmatpush3.bf16.msra.mxu0 %v23602_v34  ;;  %v23646_v34 = vld [vmem:[%s30230_s1 + $0x1838] sm:$0xff]  }
 0x2e0   :  { %21473 = vmatprep.subr.bf16.mxu0 %v23607_v41 }
 0x2e1   :  { %21466 = vmatpush3.bf16.msra.mxu1 %v23606_v40 }
 0x2e2   :  { %v21181_v37 = vpop.f32.mrf.mxu0  ;;  %16049 = vmatmul.mubr.bf16.vlgmr.msra.gmra.mxu0 %v18663_v38  ;;  %21495 = vmatprep.subr.bf16.mxu1 %v23611_v49  ;;  %v23653_v49 = vld [vmem:[%s30230_s1 + $0x1868] sm:$0xff]  }
 0x2e3   :  { %21474 = vmatpush3.bf16.msra.mxu0 %v23610_v47  ;;  %16128 = vmatprep.mubr.bf16.mxu0 %v18668_v25  ;;  %v23684_v25 = vld [vmem:[%s30230_s1 + $0x19b8] sm:$0xff]  }
 0x2e4   :  { %v21182_v43 = vpop.f32.mrf.mxu0  ;;  %v21203_v44 = vpop.f32.mrf.mxu1  ;;  %16089 = vmatmul.mubr.bf16.vlgmr.msra.gmra.mxu1 %v18665_v45  ;;  %21475 = vmatprep.subr.bf16.mxu0 %v23613_v55  ;;  %v23650_v45 = vld [vmem:[%s30230_s1 + $0x1830] sm:$0xff]   ;;  %v23659_v55 = vld [vmem:[%s30230_s1 + $0x18e0] sm:$0xff]  }
 0x2e5   :  { %v21183_v48 = vadd.f32 %v21182_v43, %v21181_v37  ;;  %21496 = vmatpush3.bf16.msra.mxu1 %v23612_v53  ;;  %v23647_v37 = vld [vmem:[%s30230_s1 + $0x18f8] sm:$0xff]   ;;  %16168 = vmatprep.mubr.bf16.mxu1 %v18670_v33  ;;  %v23657_v53 = vld [vmem:[%s30230_s1 + $0x1860] sm:$0xff]  }
 0x2e6   :  { %v21184_v50 = vpop.f32.mrf.mxu0  ;;  %v21204_v51 = vpop.f32.mrf.mxu1  ;;  %21497 = vmatprep.subr.bf16.mxu1 %v23615_v60  ;;  %v23664_v60 = vld [vmem:[%s30230_s1 + $0x1898] sm:$0xff]  }
 0x2e7   :  { %v15571_v52 = vadd.f32 %v21183_v48, %v27031_v8  ;;  %v21205_v54 = vadd.f32 %v21204_v51, %v21203_v44  ;;  %21476 = vmatpush3.bf16.msra.mxu0 %v23614_v59  ;;  %v23626_v8 = vld [vmem:[%s30230_s1 + $0x1718] sm:$0xff]   ;;  %v23652_v48 = vld [vmem:[%s30230_s1 + $0x18b0] sm:$0xff]   ;;  %v23654_v50 = vld [vmem:[%s30230_s1 + $0x1828] sm:$0xff]  }
 0x2e8   :  { %v21185_v56 = vpop.f32.mrf.mxu0  ;;  %v21206_v57 = vpop.f32.mrf.mxu1  ;;  %21477 = vmatprep.subr.bf16.mxu0 %v23617_v63  ;;  %v23655_v51 = vld [vmem:[%s30230_s1 + $0x18e8] sm:$0xff]   ;;  %v23663_v59 = vld [vmem:[%s30230_s1 + $0x18d8] sm:$0xff]   ;;  %v23667_v63 = vld [vmem:[%s30230_s1 + $0x18d0] sm:$0xff]  }
 0x2e9   :  { %v27136_v58 = vadd.f32 %v21205_v54, %v15571_v52  ;;  %21498 = vmatpush3.bf16.msra.mxu1 %v23616_v62  ;;  %v23656_v52 = vld [vmem:[%s30230_s1 + $0x18a8] sm:$0xff]   ;;  %v23658_v54 = vld [vmem:[%s30230_s1 + $0x1820] sm:$0xff]   ;;  %v23661_v57 = vld [vmem:[%s30230_s1 + $0x1858] sm:$0xff]  }
 0x2ea   :  { %v21207_v61 = vpop.f32.mrf.mxu1  ;;  %21499 = vmatprep.subr.bf16.mxu1 %v23619_v1  ;;  %v23660_v56 = vld [vmem:[%s30230_s1 + $0x18a0] sm:$0xff]   ;;  %v23666_v62 = vld [vmem:[%s30230_s1 + $0x1810] sm:$0xff]   ;;  %v23669_v1 = vld [vmem:[%s30230_s1 + $0x1848] sm:$0xff]  }
 0x2eb   :  { %21478 = vmatpush3.bf16.msra.mxu0 %v23618_v0  ;;  %v23665_v61 = vld [vmem:[%s30230_s1 + $0x1850] sm:$0xff]  }
 0x2ec   :  { %21479 = vmatprep.subr.bf16.mxu0 %v23621_v3  ;;  %v23668_v0 = vld [vmem:[%s30230_s1 + $0x1890] sm:$0xff]   ;;  %v23671_v3 = vld [vmem:[%s30230_s1 + $0x18c8] sm:$0xff]  }
 0x2ed   :  { %21500 = vmatpush3.bf16.msra.mxu1 %v23620_v2  ;;  %v23670_v2 = vld [vmem:[%s30230_s1 + $0x1808] sm:$0xff]  }
 0x2ee   :  { %21501 = vmatprep.subr.bf16.mxu1 %v23623_v5  ;;  %v23673_v5 = vld [vmem:[%s30230_s1 + $0x1840] sm:$0xff]  }
 0x2ef   :  { %21480 = vmatpush3.bf16.msra.mxu0 %v23622_v4  ;;  %v23672_v4 = vld [vmem:[%s30230_s1 + $0x1888] sm:$0xff]  }
 0x2f0   :  { %21481 = vmatprep.subr.bf16.mxu0 %v23625_v7  ;;  %v23675_v7 = vld [vmem:[%s30230_s1 + $0x18c0] sm:$0xff]  }
 0x2f1   :  { %21502 = vmatpush3.bf16.msra.mxu1 %v23624_v6  ;;  %v23674_v6 = vld [vmem:[%s30230_s1 + $0x1800] sm:$0xff]  }
 0x2f2   :  { %21503 = vmatprep.subr.bf16.mxu1 %v23627_v9 }
 0x2f3   :  { %21482 = vmatpush3.bf16.msra.mxu0 %v23626_v8  ;;  %v70_v8 = vld [vmem:[%s30229_s0 + $0x180] sm:$0xff] }
 0x2f4   :  { %21483 = vmatprep.subr.bf16.mxu0 %v23629_v11  ;;  %v18672_v11 = vcombine.high %v70_v8, %v70_v8 }
 0x2f5   :  { %21504 = vmatpush3.bf16.msra.mxu1 %v23628_v10  ;;  %v18671_v10 = vcombine.low %v70_v8, %v70_v8 }
 0x2f6   :  { %21505 = vmatprep.subr.bf16.mxu1 %v23631_v13  ;;  %v23679_v13 = vld [vmem:[%s30230_s1 + $0x1978] sm:$0xff]  }
 0x2f7   :  { %21484 = vmatpush3.bf16.msra.mxu0 %v23630_v12  ;;  %v23678_v12 = vld [vmem:[%s30230_s1 + $0x1880] sm:$0xff]  }
 0x2f8   :  { %21485 = vmatprep.subr.bf16.mxu0 %v23633_v15 }
 0x2f9   :  { %21506 = vmatpush3.bf16.msra.mxu1 %v23632_v14  ;;  %v71_v14 = vld [vmem:[%s30229_s0 + $0x188] sm:$0xff] }
 0x2fa   :  { %21507 = vmatprep.subr.bf16.mxu1 %v23635_v17  ;;  %v18673_v17 = vcombine.low %v71_v14, %v71_v14 }
 0x2fb   :  { %21486 = vmatpush3.bf16.msra.mxu0 %v23634_v16 }
 0x2fc   :  { %21487 = vmatprep.subr.bf16.mxu0 %v23637_v19  ;;  %v23682_v19 = vld [vmem:[%s30230_s1 + $0x1938] sm:$0xff]  }
 0x2fd   :  { %21508 = vmatpush3.bf16.msra.mxu1 %v23636_v18  ;;  %v18674_v18 = vcombine.high %v71_v14, %v71_v14 }
 0x2fe   :  { %21509 = vmatprep.subr.bf16.mxu1 %v23639_v21  ;;  %v23683_v21 = vld [vmem:[%s30230_s1 + $0x19f8] sm:$0xff]  }
 0x2ff   :  { %21488 = vmatpush3.bf16.msra.mxu0 %v23638_v20 }
 0x300   :  { %21517 = vmatprep.subr.bf16.mxu0 %v23643_v27  ;;  %v23685_v27 = vld [vmem:[%s30230_s1 + $0x1970] sm:$0xff]  }
 0x301   :  { %21510 = vmatpush3.bf16.msra.mxu1 %v23642_v26 }
 0x302   :  { %v21225_v23 = vpop.f32.mrf.mxu0  ;;  %16129 = vmatmul.mubr.bf16.vlgmr.msra.gmra.mxu0 %v18667_v24  ;;  %21539 = vmatprep.subr.bf16.mxu1 %v23647_v37  ;;  %v23691_v37 = vld [vmem:[%s30230_s1 + $0x19e8] sm:$0xff]  }
 0x303   :  { %21518 = vmatpush3.bf16.msra.mxu0 %v23646_v34  ;;  %16208 = vmatprep.mubr.bf16.mxu0 %v18672_v11  ;;  %v23688_v34 = vld [vmem:[%s30230_s1 + $0x19b0] sm:$0xff]   ;;  %v23720_v11 = vld [vmem:[%s30230_s1 + $0x1ab8] sm:$0xff]  }
 0x304   :  { %v21226_v28 = vpop.f32.mrf.mxu0  ;;  %v21247_v31 = vpop.f32.mrf.mxu1  ;;  %16169 = vmatmul.mubr.bf16.vlgmr.msra.gmra.mxu1 %v18669_v32  ;;  %21519 = vmatprep.subr.bf16.mxu0 %v23649_v42  ;;  %v23687_v32 = vld [vmem:[%s30230_s1 + $0x19f0] sm:$0xff]   ;;  %v23696_v42 = vld [vmem:[%s30230_s1 + $0x19a0] sm:$0xff]  }
 0x305   :  { %v21227_v30 = vadd.f32 %v21226_v28, %v21225_v23  ;;  %21540 = vmatpush3.bf16.msra.mxu1 %v23648_v39  ;;  %16248 = vmatprep.mubr.bf16.mxu1 %v18674_v18  ;;  %v23693_v39 = vld [vmem:[%s30230_s1 + $0x1960] sm:$0xff]   ;;  %v23723_v18 = vld [vmem:[%s30230_s1 + $0x1af0] sm:$0xff]  }
 0x306   :  { %v21228_v35 = vpop.f32.mrf.mxu0  ;;  %v21248_v38 = vpop.f32.mrf.mxu1  ;;  %21541 = vmatprep.subr.bf16.mxu1 %v23651_v46  ;;  %v23700_v46 = vld [vmem:[%s30230_s1 + $0x1998] sm:$0xff]  }
 0x307   :  { %v15651_v36 = vadd.f32 %v21227_v30, %v27136_v58  ;;  %v21249_v40 = vadd.f32 %v21248_v38, %v21247_v31  ;;  %21520 = vmatpush3.bf16.msra.mxu0 %v23650_v45  ;;  %v23662_v58 = vld [vmem:[%s30230_s1 + $0x1818] sm:$0xff]   ;;  %v23686_v31 = vld [vmem:[%s30230_s1 + $0x1930] sm:$0xff]   ;;  %v23689_v35 = vld [vmem:[%s30230_s1 + $0x1968] sm:$0xff]  }
 0x308   :  { %v21229_v41 = vpop.f32.mrf.mxu0  ;;  %v21250_v43 = vpop.f32.mrf.mxu1  ;;  %21521 = vmatprep.subr.bf16.mxu0 %v23653_v49  ;;  %v23692_v38 = vld [vmem:[%s30230_s1 + $0x19a8] sm:$0xff]   ;;  %v23699_v45 = vld [vmem:[%s30230_s1 + $0x19d8] sm:$0xff]   ;;  %v23703_v49 = vld [vmem:[%s30230_s1 + $0x19d0] sm:$0xff]  }
 0x309   :  { %v27241_v44 = vadd.f32 %v21249_v40, %v15651_v36  ;;  %21542 = vmatpush3.bf16.msra.mxu1 %v23652_v48  ;;  %v23690_v36 = vld [vmem:[%s30230_s1 + $0x1928] sm:$0xff]   ;;  %v23694_v40 = vld [vmem:[%s30230_s1 + $0x1920] sm:$0xff]   ;;  %v23697_v43 = vld [vmem:[%s30230_s1 + $0x1958] sm:$0xff]  }
 0x30a   :  { %v21251_v47 = vpop.f32.mrf.mxu1  ;;  %21543 = vmatprep.subr.bf16.mxu1 %v23655_v51  ;;  %v23695_v41 = vld [vmem:[%s30230_s1 + $0x19e0] sm:$0xff]   ;;  %v23702_v48 = vld [vmem:[%s30230_s1 + $0x1910] sm:$0xff]   ;;  %v23705_v51 = vld [vmem:[%s30230_s1 + $0x1948] sm:$0xff]  }
 0x30b   :  { %21522 = vmatpush3.bf16.msra.mxu0 %v23654_v50  ;;  %v23701_v47 = vld [vmem:[%s30230_s1 + $0x1950] sm:$0xff]  }
 0x30c   :  { %21523 = vmatprep.subr.bf16.mxu0 %v23657_v53  ;;  %v23704_v50 = vld [vmem:[%s30230_s1 + $0x1990] sm:$0xff]   ;;  %v23707_v53 = vld [vmem:[%s30230_s1 + $0x19c8] sm:$0xff]  }
 0x30d   :  { %21544 = vmatpush3.bf16.msra.mxu1 %v23656_v52  ;;  %v23706_v52 = vld [vmem:[%s30230_s1 + $0x1908] sm:$0xff]  }
 0x30e   :  { %21545 = vmatprep.subr.bf16.mxu1 %v23659_v55  ;;  %v23709_v55 = vld [vmem:[%s30230_s1 + $0x1940] sm:$0xff]  }
 0x30f   :  { %21524 = vmatpush3.bf16.msra.mxu0 %v23658_v54  ;;  %v23708_v54 = vld [vmem:[%s30230_s1 + $0x1988] sm:$0xff]  }
 0x310   :  { %21525 = vmatprep.subr.bf16.mxu0 %v23661_v57  ;;  %v23711_v57 = vld [vmem:[%s30230_s1 + $0x19c0] sm:$0xff]  }
 0x311   :  { %21546 = vmatpush3.bf16.msra.mxu1 %v23660_v56  ;;  %v23710_v56 = vld [vmem:[%s30230_s1 + $0x1900] sm:$0xff]  }
 0x312   :  { %21547 = vmatprep.subr.bf16.mxu1 %v23663_v59 }
 0x313   :  { %21526 = vmatpush3.bf16.msra.mxu0 %v23662_v58  ;;  %v72_v58 = vld [vmem:[%s30229_s0 + $0x190] sm:$0xff] }
 0x314   :  { %21527 = vmatprep.subr.bf16.mxu0 %v23665_v61  ;;  %v18676_v61 = vcombine.high %v72_v58, %v72_v58 }
 0x315   :  { %21548 = vmatpush3.bf16.msra.mxu1 %v23664_v60  ;;  %v18675_v60 = vcombine.low %v72_v58, %v72_v58 }
 0x316   :  { %21549 = vmatprep.subr.bf16.mxu1 %v23667_v63  ;;  %v23715_v63 = vld [vmem:[%s30230_s1 + $0x1a78] sm:$0xff]  }
 0x317   :  { %21528 = vmatpush3.bf16.msra.mxu0 %v23666_v62  ;;  %v23714_v62 = vld [vmem:[%s30230_s1 + $0x1980] sm:$0xff]  }
 0x318   :  { %21529 = vmatprep.subr.bf16.mxu0 %v23669_v1 }
 0x319   :  { %21550 = vmatpush3.bf16.msra.mxu1 %v23668_v0  ;;  %v73_v0 = vld [vmem:[%s30229_s0 + $0x198] sm:$0xff] }
 0x31a   :  { %21551 = vmatprep.subr.bf16.mxu1 %v23671_v3  ;;  %v18677_v3 = vcombine.low %v73_v0, %v73_v0 }
 0x31b   :  { %21530 = vmatpush3.bf16.msra.mxu0 %v23670_v2 }
 0x31c   :  { %21531 = vmatprep.subr.bf16.mxu0 %v23673_v5  ;;  %v23718_v5 = vld [vmem:[%s30230_s1 + $0x1a38] sm:$0xff]  }
 0x31d   :  { %21552 = vmatpush3.bf16.msra.mxu1 %v23672_v4  ;;  %v18678_v4 = vcombine.high %v73_v0, %v73_v0  ;;  %v23757_v0 = vld [vmem:[%s30230_s1 + $0x1b70] sm:$0xff]  }
 0x31e   :  { %21553 = vmatprep.subr.bf16.mxu1 %v23675_v7  ;;  %v23719_v7 = vld [vmem:[%s30230_s1 + $0x1af8] sm:$0xff]  }
 0x31f   :  { %21532 = vmatpush3.bf16.msra.mxu0 %v23674_v6 }
 0x320   :  { %21561 = vmatprep.subr.bf16.mxu0 %v23679_v13  ;;  %v23721_v13 = vld [vmem:[%s30230_s1 + $0x1a70] sm:$0xff]  }
 0x321   :  { %21554 = vmatpush3.bf16.msra.mxu1 %v23678_v12 }
 0x322   :  { %v21269_v9 = vpop.f32.mrf.mxu0  ;;  %16209 = vmatmul.mubr.bf16.vlgmr.msra.gmra.mxu0 %v18671_v10  ;;  %21583 = vmatprep.subr.bf16.mxu1 %v23683_v21  ;;  %v23725_v21 = vld [vmem:[%s30230_s1 + $0x1a68] sm:$0xff]  }
 0x323   :  { %21562 = vmatpush3.bf16.msra.mxu0 %v23682_v19  ;;  %16288 = vmatprep.mubr.bf16.mxu0 %v18676_v61  ;;  %v23756_v61 = vld [vmem:[%s30230_s1 + $0x1bb8] sm:$0xff]  }
 0x324   :  { %v21270_v15 = vpop.f32.mrf.mxu0  ;;  %v21291_v16 = vpop.f32.mrf.mxu1  ;;  %16249 = vmatmul.mubr.bf16.vlgmr.msra.gmra.mxu1 %v18673_v17  ;;  %21563 = vmatprep.subr.bf16.mxu0 %v23685_v27  ;;  %v23722_v17 = vld [vmem:[%s30230_s1 + $0x1a30] sm:$0xff]   ;;  %v23731_v27 = vld [vmem:[%s30230_s1 + $0x1ae0] sm:$0xff]  }
 0x325   :  { %v21271_v20 = vadd.f32 %v21270_v15, %v21269_v9  ;;  %21584 = vmatpush3.bf16.msra.mxu1 %v23684_v25  ;;  %16328 = vmatprep.mubr.bf16.mxu1 %v18678_v4  ;;  %v23729_v25 = vld [vmem:[%s30230_s1 + $0x1a60] sm:$0xff]   ;;  %v23759_v4 = vld [vmem:[%s30230_s1 + $0x1bf0] sm:$0xff]  }
 0x326   :  { %v21272_v22 = vpop.f32.mrf.mxu0  ;;  %v21292_v23 = vpop.f32.mrf.mxu1  ;;  %21585 = vmatprep.subr.bf16.mxu1 %v23687_v32  ;;  %v23736_v32 = vld [vmem:[%s30230_s1 + $0x1a98] sm:$0xff]  }
 0x327   :  { %v15731_v24 = vadd.f32 %v21271_v20, %v27241_v44  ;;  %v21293_v26 = vadd.f32 %v21292_v23, %v21291_v16  ;;  %21564 = vmatpush3.bf16.msra.mxu0 %v23686_v31  ;;  %v23698_v44 = vld [vmem:[%s30230_s1 + $0x1918] sm:$0xff]   ;;  %v23724_v20 = vld [vmem:[%s30230_s1 + $0x1ab0] sm:$0xff]   ;;  %v23726_v22 = vld [vmem:[%s30230_s1 + $0x1a28] sm:$0xff]  }
 0x328   :  { %v21273_v28 = vpop.f32.mrf.mxu0  ;;  %v21294_v29 = vpop.f32.mrf.mxu1  ;;  %21565 = vmatprep.subr.bf16.mxu0 %v23689_v35  ;;  %v23727_v23 = vld [vmem:[%s30230_s1 + $0x1ae8] sm:$0xff]   ;;  %v23735_v31 = vld [vmem:[%s30230_s1 + $0x1ad8] sm:$0xff]   ;;  %v23739_v35 = vld [vmem:[%s30230_s1 + $0x1ad0] sm:$0xff]  }
 0x329   :  { %v27346_v30 = vadd.f32 %v21293_v26, %v15731_v24  ;;  %21586 = vmatpush3.bf16.msra.mxu1 %v23688_v34  ;;  %v23728_v24 = vld [vmem:[%s30230_s1 + $0x1aa8] sm:$0xff]   ;;  %v23730_v26 = vld [vmem:[%s30230_s1 + $0x1a20] sm:$0xff]   ;;  %v23733_v29 = vld [vmem:[%s30230_s1 + $0x1a58] sm:$0xff]  }
 0x32a   :  { %v21295_v33 = vpop.f32.mrf.mxu1  ;;  %21587 = vmatprep.subr.bf16.mxu1 %v23691_v37  ;;  %v23732_v28 = vld [vmem:[%s30230_s1 + $0x1aa0] sm:$0xff]   ;;  %v23738_v34 = vld [vmem:[%s30230_s1 + $0x1a10] sm:$0xff]   ;;  %v23741_v37 = vld [vmem:[%s30230_s1 + $0x1a48] sm:$0xff]  }
 0x32b   :  { %21566 = vmatpush3.bf16.msra.mxu0 %v23690_v36  ;;  %v23737_v33 = vld [vmem:[%s30230_s1 + $0x1a50] sm:$0xff]  }
 0x32c   :  { %21567 = vmatprep.subr.bf16.mxu0 %v23693_v39  ;;  %v23740_v36 = vld [vmem:[%s30230_s1 + $0x1a90] sm:$0xff]   ;;  %v23743_v39 = vld [vmem:[%s30230_s1 + $0x1ac8] sm:$0xff]  }
 0x32d   :  { %21588 = vmatpush3.bf16.msra.mxu1 %v23692_v38  ;;  %v23742_v38 = vld [vmem:[%s30230_s1 + $0x1a08] sm:$0xff]  }
 0x32e   :  { %21589 = vmatprep.subr.bf16.mxu1 %v23695_v41  ;;  %v23745_v41 = vld [vmem:[%s30230_s1 + $0x1a40] sm:$0xff]  }
 0x32f   :  { %21568 = vmatpush3.bf16.msra.mxu0 %v23694_v40  ;;  %v23744_v40 = vld [vmem:[%s30230_s1 + $0x1a88] sm:$0xff]  }
 0x330   :  { %21569 = vmatprep.subr.bf16.mxu0 %v23697_v43  ;;  %v23747_v43 = vld [vmem:[%s30230_s1 + $0x1ac0] sm:$0xff]  }
 0x331   :  { %21590 = vmatpush3.bf16.msra.mxu1 %v23696_v42  ;;  %v23746_v42 = vld [vmem:[%s30230_s1 + $0x1a00] sm:$0xff]  }
 0x332   :  { %21591 = vmatprep.subr.bf16.mxu1 %v23699_v45 }
 0x333   :  { %21570 = vmatpush3.bf16.msra.mxu0 %v23698_v44  ;;  %v74_v44 = vld [vmem:[%s30229_s0 + $0x1a0] sm:$0xff] }
 0x334   :  { %21571 = vmatprep.subr.bf16.mxu0 %v23701_v47  ;;  %v18680_v47 = vcombine.high %v74_v44, %v74_v44 }
 0x335   :  { %21592 = vmatpush3.bf16.msra.mxu1 %v23700_v46  ;;  %v18679_v46 = vcombine.low %v74_v44, %v74_v44 }
 0x336   :  { %21593 = vmatprep.subr.bf16.mxu1 %v23703_v49  ;;  %v23751_v49 = vld [vmem:[%s30230_s1 + $0x1b78] sm:$0xff]  }
 0x337   :  { %21572 = vmatpush3.bf16.msra.mxu0 %v23702_v48  ;;  %v23750_v48 = vld [vmem:[%s30230_s1 + $0x1a80] sm:$0xff]  }
 0x338   :  { %21573 = vmatprep.subr.bf16.mxu0 %v23705_v51  ;;  %v75_v51 = vld [vmem:[%s30229_s0 + $0x1a8] sm:$0xff] }
 0x339   :  { %21594 = vmatpush3.bf16.msra.mxu1 %v23704_v50 }
 0x33a   :  { %21595 = vmatprep.subr.bf16.mxu1 %v23707_v53 }
 0x33b   :  { %21574 = vmatpush3.bf16.msra.mxu0 %v23706_v52 }
 0x33c   :  { %21575 = vmatprep.subr.bf16.mxu0 %v23709_v55  ;;  %v18682_v55 = vcombine.high %v75_v51, %v75_v51 }
 0x33d   :  { %21596 = vmatpush3.bf16.msra.mxu1 %v23708_v54  ;;  %v18681_v54 = vcombine.low %v75_v51, %v75_v51 }
 0x33e   :  { %21597 = vmatprep.subr.bf16.mxu1 %v23711_v57 }
 0x33f   :  { %21576 = vmatpush3.bf16.msra.mxu0 %v23710_v56  ;;  %v23754_v56 = vld [vmem:[%s30230_s1 + $0x1b38] sm:$0xff]  }
 0x340   :  { %21605 = vmatprep.subr.bf16.mxu0 %v23715_v63 }
 0x341   :  { %21598 = vmatpush3.bf16.msra.mxu1 %v23714_v62 }
 0x342   :  { %v21313_v59 = vpop.f32.mrf.mxu0  ;;  %16289 = vmatmul.mubr.bf16.vlgmr.msra.gmra.mxu0 %v18675_v60  ;;  %21627 = vmatprep.subr.bf16.mxu1 %v23719_v7  ;;  %v23761_v7 = vld [vmem:[%s30230_s1 + $0x1b68] sm:$0xff]  }
 0x343   :  { %21606 = vmatpush3.bf16.msra.mxu0 %v23718_v5  ;;  %16368 = vmatprep.mubr.bf16.mxu0 %v18680_v47  ;;  %v23792_v47 = vld [vmem:[%s30230_s1 + $0x1cb8] sm:$0xff]  }
 0x344   :  { %v21314_v1 = vpop.f32.mrf.mxu0  ;;  %v21335_v2 = vpop.f32.mrf.mxu1  ;;  %16329 = vmatmul.mubr.bf16.vlgmr.msra.gmra.mxu1 %v18677_v3  ;;  %21607 = vmatprep.subr.bf16.mxu0 %v23721_v13  ;;  %v23758_v3 = vld [vmem:[%s30230_s1 + $0x1b30] sm:$0xff]   ;;  %v23767_v13 = vld [vmem:[%s30230_s1 + $0x1be0] sm:$0xff]  }
 0x345   :  { %v21315_v6 = vadd.f32 %v21314_v1, %v21313_v59  ;;  %21628 = vmatpush3.bf16.msra.mxu1 %v23720_v11  ;;  %v23755_v59 = vld [vmem:[%s30230_s1 + $0x1bf8] sm:$0xff]   ;;  %16408 = vmatprep.mubr.bf16.mxu1 %v18682_v55  ;;  %v23765_v11 = vld [vmem:[%s30230_s1 + $0x1b60] sm:$0xff]  }
 0x346   :  { %v21316_v8 = vpop.f32.mrf.mxu0  ;;  %v21336_v9 = vpop.f32.mrf.mxu1  ;;  %21629 = vmatprep.subr.bf16.mxu1 %v23723_v18  ;;  %v23772_v18 = vld [vmem:[%s30230_s1 + $0x1b98] sm:$0xff]  }
 0x347   :  { %v15811_v10 = vadd.f32 %v21315_v6, %v27346_v30  ;;  %v21337_v12 = vadd.f32 %v21336_v9, %v21335_v2  ;;  %21608 = vmatpush3.bf16.msra.mxu0 %v23722_v17  ;;  %v23734_v30 = vld [vmem:[%s30230_s1 + $0x1a18] sm:$0xff]   ;;  %v23760_v6 = vld [vmem:[%s30230_s1 + $0x1bb0] sm:$0xff]   ;;  %v23762_v8 = vld [vmem:[%s30230_s1 + $0x1b28] sm:$0xff]  }
 0x348   :  { %v21317_v14 = vpop.f32.mrf.mxu0  ;;  %v21338_v15 = vpop.f32.mrf.mxu1  ;;  %21609 = vmatprep.subr.bf16.mxu0 %v23725_v21  ;;  %v23763_v9 = vld [vmem:[%s30230_s1 + $0x1be8] sm:$0xff]   ;;  %v23771_v17 = vld [vmem:[%s30230_s1 + $0x1bd8] sm:$0xff]   ;;  %v23775_v21 = vld [vmem:[%s30230_s1 + $0x1bd0] sm:$0xff]  }
 0x349   :  { %v27451_v16 = vadd.f32 %v21337_v12, %v15811_v10  ;;  %21630 = vmatpush3.bf16.msra.mxu1 %v23724_v20  ;;  %v23764_v10 = vld [vmem:[%s30230_s1 + $0x1ba8] sm:$0xff]   ;;  %v23766_v12 = vld [vmem:[%s30230_s1 + $0x1b20] sm:$0xff]   ;;  %v23769_v15 = vld [vmem:[%s30230_s1 + $0x1b58] sm:$0xff]  }
 0x34a   :  { %v21339_v19 = vpop.f32.mrf.mxu1  ;;  %21631 = vmatprep.subr.bf16.mxu1 %v23727_v23  ;;  %v23768_v14 = vld [vmem:[%s30230_s1 + $0x1ba0] sm:$0xff]   ;;  %v23774_v20 = vld [vmem:[%s30230_s1 + $0x1b10] sm:$0xff]   ;;  %v23777_v23 = vld [vmem:[%s30230_s1 + $0x1b48] sm:$0xff]  }
 0x34b   :  { %21610 = vmatpush3.bf16.msra.mxu0 %v23726_v22  ;;  %v23773_v19 = vld [vmem:[%s30230_s1 + $0x1b50] sm:$0xff]  }
 0x34c   :  { %21611 = vmatprep.subr.bf16.mxu0 %v23729_v25  ;;  %v23776_v22 = vld [vmem:[%s30230_s1 + $0x1b90] sm:$0xff]   ;;  %v23779_v25 = vld [vmem:[%s30230_s1 + $0x1bc8] sm:$0xff]  }
 0x34d   :  { %21632 = vmatpush3.bf16.msra.mxu1 %v23728_v24  ;;  %v23778_v24 = vld [vmem:[%s30230_s1 + $0x1b08] sm:$0xff]  }
 0x34e   :  { %21633 = vmatprep.subr.bf16.mxu1 %v23731_v27  ;;  %v23781_v27 = vld [vmem:[%s30230_s1 + $0x1b40] sm:$0xff]  }
 0x34f   :  { %21612 = vmatpush3.bf16.msra.mxu0 %v23730_v26  ;;  %v23780_v26 = vld [vmem:[%s30230_s1 + $0x1b88] sm:$0xff]  }
 0x350   :  { %21613 = vmatprep.subr.bf16.mxu0 %v23733_v29  ;;  %v23783_v29 = vld [vmem:[%s30230_s1 + $0x1bc0] sm:$0xff]  }
 0x351   :  { %21634 = vmatpush3.bf16.msra.mxu1 %v23732_v28  ;;  %v23782_v28 = vld [vmem:[%s30230_s1 + $0x1b00] sm:$0xff]  }
 0x352   :  { %21635 = vmatprep.subr.bf16.mxu1 %v23735_v31 }
 0x353   :  { %21614 = vmatpush3.bf16.msra.mxu0 %v23734_v30  ;;  %v76_v30 = vld [vmem:[%s30229_s0 + $0x1b0] sm:$0xff] }
 0x354   :  { %21615 = vmatprep.subr.bf16.mxu0 %v23737_v33  ;;  %v18684_v33 = vcombine.high %v76_v30, %v76_v30 }
 0x355   :  { %21636 = vmatpush3.bf16.msra.mxu1 %v23736_v32  ;;  %v18683_v32 = vcombine.low %v76_v30, %v76_v30 }
 0x356   :  { %21637 = vmatprep.subr.bf16.mxu1 %v23739_v35  ;;  %v23787_v35 = vld [vmem:[%s30230_s1 + $0x1c78] sm:$0xff]  }
 0x357   :  { %21616 = vmatpush3.bf16.msra.mxu0 %v23738_v34  ;;  %v23786_v34 = vld [vmem:[%s30230_s1 + $0x1b80] sm:$0xff]  }
 0x358   :  { %21617 = vmatprep.subr.bf16.mxu0 %v23741_v37 }
 0x359   :  { %21638 = vmatpush3.bf16.msra.mxu1 %v23740_v36  ;;  %v77_v36 = vld [vmem:[%s30229_s0 + $0x1b8] sm:$0xff] }
 0x35a   :  { %21639 = vmatprep.subr.bf16.mxu1 %v23743_v39  ;;  %v18685_v39 = vcombine.low %v77_v36, %v77_v36 }
 0x35b   :  { %21618 = vmatpush3.bf16.msra.mxu0 %v23742_v38 }
 0x35c   :  { %21619 = vmatprep.subr.bf16.mxu0 %v23745_v41  ;;  %v23790_v41 = vld [vmem:[%s30230_s1 + $0x1c38] sm:$0xff]  }
 0x35d   :  { %21640 = vmatpush3.bf16.msra.mxu1 %v23744_v40  ;;  %v18686_v40 = vcombine.high %v77_v36, %v77_v36 }
 0x35e   :  { %21641 = vmatprep.subr.bf16.mxu1 %v23747_v43  ;;  %v23791_v43 = vld [vmem:[%s30230_s1 + $0x1cf8] sm:$0xff]  }
 0x35f   :  { %21620 = vmatpush3.bf16.msra.mxu0 %v23746_v42 }
 0x360   :  { %21649 = vmatprep.subr.bf16.mxu0 %v23751_v49  ;;  %v23793_v49 = vld [vmem:[%s30230_s1 + $0x1c70] sm:$0xff]  }
 0x361   :  { %21642 = vmatpush3.bf16.msra.mxu1 %v23750_v48 }
 0x362   :  { %v21357_v45 = vpop.f32.mrf.mxu0  ;;  %16369 = vmatmul.mubr.bf16.vlgmr.msra.gmra.mxu0 %v18679_v46  ;;  %21671 = vmatprep.subr.bf16.mxu1 %v23755_v59  ;;  %v23799_v59 = vld [vmem:[%s30230_s1 + $0x1ce8] sm:$0xff]  }
 0x363   :  { %21650 = vmatpush3.bf16.msra.mxu0 %v23754_v56  ;;  %16448 = vmatprep.mubr.bf16.mxu0 %v18684_v33  ;;  %v23796_v56 = vld [vmem:[%s30230_s1 + $0x1cb0] sm:$0xff]   ;;  %v23828_v33 = vld [vmem:[%s30230_s1 + $0x1db8] sm:$0xff]  }
 0x364   :  { %v21358_v50 = vpop.f32.mrf.mxu0  ;;  %v21379_v53 = vpop.f32.mrf.mxu1  ;;  %16409 = vmatmul.mubr.bf16.vlgmr.msra.gmra.mxu1 %v18681_v54  ;;  %21651 = vmatprep.subr.bf16.mxu0 %v23757_v0  ;;  %v23795_v54 = vld [vmem:[%s30230_s1 + $0x1cf0] sm:$0xff]   ;;  %v23804_v0 = vld [vmem:[%s30230_s1 + $0x1ca0] sm:$0xff]  }
 0x365   :  { %v21359_v52 = vadd.f32 %v21358_v50, %v21357_v45  ;;  %21672 = vmatpush3.bf16.msra.mxu1 %v23756_v61  ;;  %16488 = vmatprep.mubr.bf16.mxu1 %v18686_v40  ;;  %v23801_v61 = vld [vmem:[%s30230_s1 + $0x1c60] sm:$0xff]   ;;  %v23831_v40 = vld [vmem:[%s30230_s1 + $0x1df0] sm:$0xff]  }
 0x366   :  { %v21360_v57 = vpop.f32.mrf.mxu0  ;;  %v21380_v60 = vpop.f32.mrf.mxu1  ;;  %21673 = vmatprep.subr.bf16.mxu1 %v23759_v4  ;;  %v23808_v4 = vld [vmem:[%s30230_s1 + $0x1c98] sm:$0xff]  }
 0x367   :  { %v15891_v58 = vadd.f32 %v21359_v52, %v27451_v16  ;;  %v21381_v62 = vadd.f32 %v21380_v60, %v21379_v53  ;;  %21652 = vmatpush3.bf16.msra.mxu0 %v23758_v3  ;;  %v23770_v16 = vld [vmem:[%s30230_s1 + $0x1b18] sm:$0xff]   ;;  %v23794_v53 = vld [vmem:[%s30230_s1 + $0x1c30] sm:$0xff]   ;;  %v23797_v57 = vld [vmem:[%s30230_s1 + $0x1c68] sm:$0xff]  }
 0x368   :  { %v21361_v63 = vpop.f32.mrf.mxu0  ;;  %v21382_v1 = vpop.f32.mrf.mxu1  ;;  %21653 = vmatprep.subr.bf16.mxu0 %v23761_v7  ;;  %v23800_v60 = vld [vmem:[%s30230_s1 + $0x1ca8] sm:$0xff]   ;;  %v23807_v3 = vld [vmem:[%s30230_s1 + $0x1cd8] sm:$0xff]   ;;  %v23811_v7 = vld [vmem:[%s30230_s1 + $0x1cd0] sm:$0xff]  }
 0x369   :  { %v27556_v2 = vadd.f32 %v21381_v62, %v15891_v58  ;;  %21674 = vmatpush3.bf16.msra.mxu1 %v23760_v6  ;;  %v23798_v58 = vld [vmem:[%s30230_s1 + $0x1c28] sm:$0xff]   ;;  %v23802_v62 = vld [vmem:[%s30230_s1 + $0x1c20] sm:$0xff]   ;;  %v23805_v1 = vld [vmem:[%s30230_s1 + $0x1c58] sm:$0xff]  }
 0x36a   :  { %v21383_v5 = vpop.f32.mrf.mxu1  ;;  %21675 = vmatprep.subr.bf16.mxu1 %v23763_v9  ;;  %v23803_v63 = vld [vmem:[%s30230_s1 + $0x1ce0] sm:$0xff]   ;;  %v23810_v6 = vld [vmem:[%s30230_s1 + $0x1c10] sm:$0xff]   ;;  %v23813_v9 = vld [vmem:[%s30230_s1 + $0x1c48] sm:$0xff]  }
 0x36b   :  { %21654 = vmatpush3.bf16.msra.mxu0 %v23762_v8  ;;  %v23809_v5 = vld [vmem:[%s30230_s1 + $0x1c50] sm:$0xff]  }
 0x36c   :  { %21655 = vmatprep.subr.bf16.mxu0 %v23765_v11  ;;  %v23812_v8 = vld [vmem:[%s30230_s1 + $0x1c90] sm:$0xff]   ;;  %v23815_v11 = vld [vmem:[%s30230_s1 + $0x1cc8] sm:$0xff]  }
 0x36d   :  { %21676 = vmatpush3.bf16.msra.mxu1 %v23764_v10  ;;  %v23814_v10 = vld [vmem:[%s30230_s1 + $0x1c08] sm:$0xff]  }
 0x36e   :  { %21677 = vmatprep.subr.bf16.mxu1 %v23767_v13  ;;  %v23817_v13 = vld [vmem:[%s30230_s1 + $0x1c40] sm:$0xff]  }
 0x36f   :  { %21656 = vmatpush3.bf16.msra.mxu0 %v23766_v12  ;;  %v23816_v12 = vld [vmem:[%s30230_s1 + $0x1c88] sm:$0xff]  }
 0x370   :  { %21657 = vmatprep.subr.bf16.mxu0 %v23769_v15  ;;  %v23819_v15 = vld [vmem:[%s30230_s1 + $0x1cc0] sm:$0xff]  }
 0x371   :  { %21678 = vmatpush3.bf16.msra.mxu1 %v23768_v14  ;;  %v23818_v14 = vld [vmem:[%s30230_s1 + $0x1c00] sm:$0xff]  }
 0x372   :  { %21679 = vmatprep.subr.bf16.mxu1 %v23771_v17 }
 0x373   :  { %21658 = vmatpush3.bf16.msra.mxu0 %v23770_v16  ;;  %v78_v16 = vld [vmem:[%s30229_s0 + $0x1c0] sm:$0xff] }
 0x374   :  { %21659 = vmatprep.subr.bf16.mxu0 %v23773_v19  ;;  %v18688_v19 = vcombine.high %v78_v16, %v78_v16 }
 0x375   :  { %21680 = vmatpush3.bf16.msra.mxu1 %v23772_v18  ;;  %v18687_v18 = vcombine.low %v78_v16, %v78_v16 }
 0x376   :  { %21681 = vmatprep.subr.bf16.mxu1 %v23775_v21  ;;  %v23823_v21 = vld [vmem:[%s30230_s1 + $0x1d78] sm:$0xff]  }
 0x377   :  { %21660 = vmatpush3.bf16.msra.mxu0 %v23774_v20  ;;  %v23822_v20 = vld [vmem:[%s30230_s1 + $0x1c80] sm:$0xff]  }
 0x378   :  { %21661 = vmatprep.subr.bf16.mxu0 %v23777_v23 }
 0x379   :  { %21682 = vmatpush3.bf16.msra.mxu1 %v23776_v22  ;;  %v79_v22 = vld [vmem:[%s30229_s0 + $0x1c8] sm:$0xff] }
 0x37a   :  { %21683 = vmatprep.subr.bf16.mxu1 %v23779_v25  ;;  %v18689_v25 = vcombine.low %v79_v22, %v79_v22 }
 0x37b   :  { %21662 = vmatpush3.bf16.msra.mxu0 %v23778_v24 }
 0x37c   :  { %21663 = vmatprep.subr.bf16.mxu0 %v23781_v27  ;;  %v23826_v27 = vld [vmem:[%s30230_s1 + $0x1d38] sm:$0xff]  }
 0x37d   :  { %21684 = vmatpush3.bf16.msra.mxu1 %v23780_v26  ;;  %v18690_v26 = vcombine.high %v79_v22, %v79_v22  ;;  %v23865_v22 = vld [vmem:[%s30230_s1 + $0x1e70] sm:$0xff]  }
 0x37e   :  { %21685 = vmatprep.subr.bf16.mxu1 %v23783_v29  ;;  %v23827_v29 = vld [vmem:[%s30230_s1 + $0x1df8] sm:$0xff]  }
 0x37f   :  { %21664 = vmatpush3.bf16.msra.mxu0 %v23782_v28 }
 0x380   :  { %21693 = vmatprep.subr.bf16.mxu0 %v23787_v35  ;;  %v23829_v35 = vld [vmem:[%s30230_s1 + $0x1d70] sm:$0xff]  }
 0x381   :  { %21686 = vmatpush3.bf16.msra.mxu1 %v23786_v34 }
 0x382   :  { %v21401_v31 = vpop.f32.mrf.mxu0  ;;  %16449 = vmatmul.mubr.bf16.vlgmr.msra.gmra.mxu0 %v18683_v32  ;;  %21715 = vmatprep.subr.bf16.mxu1 %v23791_v43  ;;  %v23833_v43 = vld [vmem:[%s30230_s1 + $0x1d68] sm:$0xff]  }
 0x383   :  { %21694 = vmatpush3.bf16.msra.mxu0 %v23790_v41  ;;  %16528 = vmatprep.mubr.bf16.mxu0 %v18688_v19  ;;  %v23864_v19 = vld [vmem:[%s30230_s1 + $0x1eb8] sm:$0xff]  }
 0x384   :  { %v21402_v37 = vpop.f32.mrf.mxu0  ;;  %v21423_v38 = vpop.f32.mrf.mxu1  ;;  %16489 = vmatmul.mubr.bf16.vlgmr.msra.gmra.mxu1 %v18685_v39  ;;  %21695 = vmatprep.subr.bf16.mxu0 %v23793_v49  ;;  %v23830_v39 = vld [vmem:[%s30230_s1 + $0x1d30] sm:$0xff]   ;;  %v23839_v49 = vld [vmem:[%s30230_s1 + $0x1de0] sm:$0xff]  }
 0x385   :  { %v21403_v42 = vadd.f32 %v21402_v37, %v21401_v31  ;;  %21716 = vmatpush3.bf16.msra.mxu1 %v23792_v47  ;;  %16568 = vmatprep.mubr.bf16.mxu1 %v18690_v26  ;;  %v23837_v47 = vld [vmem:[%s30230_s1 + $0x1d60] sm:$0xff]   ;;  %v23867_v26 = vld [vmem:[%s30230_s1 + $0x1ef0] sm:$0xff]  }
 0x386   :  { %v21404_v44 = vpop.f32.mrf.mxu0  ;;  %v21424_v45 = vpop.f32.mrf.mxu1  ;;  %21717 = vmatprep.subr.bf16.mxu1 %v23795_v54  ;;  %v23844_v54 = vld [vmem:[%s30230_s1 + $0x1d98] sm:$0xff]  }
 0x387   :  { %v15971_v46 = vadd.f32 %v21403_v42, %v27556_v2  ;;  %v21425_v48 = vadd.f32 %v21424_v45, %v21423_v38  ;;  %21696 = vmatpush3.bf16.msra.mxu0 %v23794_v53  ;;  %v23806_v2 = vld [vmem:[%s30230_s1 + $0x1c18] sm:$0xff]   ;;  %v23832_v42 = vld [vmem:[%s30230_s1 + $0x1db0] sm:$0xff]   ;;  %v23834_v44 = vld [vmem:[%s30230_s1 + $0x1d28] sm:$0xff]  }
 0x388   :  { %v21405_v50 = vpop.f32.mrf.mxu0  ;;  %v21426_v51 = vpop.f32.mrf.mxu1  ;;  %21697 = vmatprep.subr.bf16.mxu0 %v23797_v57  ;;  %v23835_v45 = vld [vmem:[%s30230_s1 + $0x1de8] sm:$0xff]   ;;  %v23843_v53 = vld [vmem:[%s30230_s1 + $0x1dd8] sm:$0xff]   ;;  %v23847_v57 = vld [vmem:[%s30230_s1 + $0x1dd0] sm:$0xff]  }
 0x389   :  { %v27661_v52 = vadd.f32 %v21425_v48, %v15971_v46  ;;  %21718 = vmatpush3.bf16.msra.mxu1 %v23796_v56  ;;  %v23836_v46 = vld [vmem:[%s30230_s1 + $0x1da8] sm:$0xff]   ;;  %v23838_v48 = vld [vmem:[%s30230_s1 + $0x1d20] sm:$0xff]   ;;  %v23841_v51 = vld [vmem:[%s30230_s1 + $0x1d58] sm:$0xff]  }
 0x38a   :  { %v21427_v55 = vpop.f32.mrf.mxu1  ;;  %21719 = vmatprep.subr.bf16.mxu1 %v23799_v59  ;;  %v23840_v50 = vld [vmem:[%s30230_s1 + $0x1da0] sm:$0xff]   ;;  %v23846_v56 = vld [vmem:[%s30230_s1 + $0x1d10] sm:$0xff]   ;;  %v23849_v59 = vld [vmem:[%s30230_s1 + $0x1d48] sm:$0xff]  }
 0x38b   :  { %21698 = vmatpush3.bf16.msra.mxu0 %v23798_v58  ;;  %v23845_v55 = vld [vmem:[%s30230_s1 + $0x1d50] sm:$0xff]  }
 0x38c   :  { %21699 = vmatprep.subr.bf16.mxu0 %v23801_v61  ;;  %v23848_v58 = vld [vmem:[%s30230_s1 + $0x1d90] sm:$0xff]   ;;  %v23851_v61 = vld [vmem:[%s30230_s1 + $0x1dc8] sm:$0xff]  }
 0x38d   :  { %21720 = vmatpush3.bf16.msra.mxu1 %v23800_v60  ;;  %v23850_v60 = vld [vmem:[%s30230_s1 + $0x1d08] sm:$0xff]  }
 0x38e   :  { %21721 = vmatprep.subr.bf16.mxu1 %v23803_v63  ;;  %v23853_v63 = vld [vmem:[%s30230_s1 + $0x1d40] sm:$0xff]  }
 0x38f   :  { %21700 = vmatpush3.bf16.msra.mxu0 %v23802_v62  ;;  %v23852_v62 = vld [vmem:[%s30230_s1 + $0x1d88] sm:$0xff]  }
 0x390   :  { %21701 = vmatprep.subr.bf16.mxu0 %v23805_v1  ;;  %v23855_v1 = vld [vmem:[%s30230_s1 + $0x1dc0] sm:$0xff]  }
 0x391   :  { %21722 = vmatpush3.bf16.msra.mxu1 %v23804_v0  ;;  %v23854_v0 = vld [vmem:[%s30230_s1 + $0x1d00] sm:$0xff]  }
 0x392   :  { %21723 = vmatprep.subr.bf16.mxu1 %v23807_v3 }
 0x393   :  { %21702 = vmatpush3.bf16.msra.mxu0 %v23806_v2  ;;  %v80_v2 = vld [vmem:[%s30229_s0 + $0x1d0] sm:$0xff] }
 0x394   :  { %21703 = vmatprep.subr.bf16.mxu0 %v23809_v5  ;;  %v18692_v5 = vcombine.high %v80_v2, %v80_v2 }
 0x395   :  { %21724 = vmatpush3.bf16.msra.mxu1 %v23808_v4  ;;  %v18691_v4 = vcombine.low %v80_v2, %v80_v2 }
 0x396   :  { %21725 = vmatprep.subr.bf16.mxu1 %v23811_v7  ;;  %v23859_v7 = vld [vmem:[%s30230_s1 + $0x1e78] sm:$0xff]  }
 0x397   :  { %21704 = vmatpush3.bf16.msra.mxu0 %v23810_v6  ;;  %v23858_v6 = vld [vmem:[%s30230_s1 + $0x1d80] sm:$0xff]  }
 0x398   :  { %21705 = vmatprep.subr.bf16.mxu0 %v23813_v9  ;;  %v81_v9 = vld [vmem:[%s30229_s0 + $0x1d8] sm:$0xff] }
 0x399   :  { %21726 = vmatpush3.bf16.msra.mxu1 %v23812_v8 }
 0x39a   :  { %21727 = vmatprep.subr.bf16.mxu1 %v23815_v11 }
 0x39b   :  { %21706 = vmatpush3.bf16.msra.mxu0 %v23814_v10 }
 0x39c   :  { %21707 = vmatprep.subr.bf16.mxu0 %v23817_v13  ;;  %v18694_v13 = vcombine.high %v81_v9, %v81_v9 }
 0x39d   :  { %21728 = vmatpush3.bf16.msra.mxu1 %v23816_v12  ;;  %v18693_v12 = vcombine.low %v81_v9, %v81_v9 }
 0x39e   :  { %21729 = vmatprep.subr.bf16.mxu1 %v23819_v15 }
 0x39f   :  { %21708 = vmatpush3.bf16.msra.mxu0 %v23818_v14  ;;  %v23862_v14 = vld [vmem:[%s30230_s1 + $0x1e38] sm:$0xff]  }
 0x3a0   :  { %21737 = vmatprep.subr.bf16.mxu0 %v23823_v21 }
 0x3a1   :  { %21730 = vmatpush3.bf16.msra.mxu1 %v23822_v20 }
 0x3a2   :  { %v21445_v17 = vpop.f32.mrf.mxu0  ;;  %16529 = vmatmul.mubr.bf16.vlgmr.msra.gmra.mxu0 %v18687_v18  ;;  %21759 = vmatprep.subr.bf16.mxu1 %v23827_v29  ;;  %v23869_v29 = vld [vmem:[%s30230_s1 + $0x1e68] sm:$0xff]  }
 0x3a3   :  { %21738 = vmatpush3.bf16.msra.mxu0 %v23826_v27  ;;  %16608 = vmatprep.mubr.bf16.mxu0 %v18692_v5  ;;  %v23900_v5 = vld [vmem:[%s30230_s1 + $0x1fb8] sm:$0xff]  }
 0x3a4   :  { %v21446_v23 = vpop.f32.mrf.mxu0  ;;  %v21467_v24 = vpop.f32.mrf.mxu1  ;;  %16569 = vmatmul.mubr.bf16.vlgmr.msra.gmra.mxu1 %v18689_v25  ;;  %21739 = vmatprep.subr.bf16.mxu0 %v23829_v35  ;;  %v23866_v25 = vld [vmem:[%s30230_s1 + $0x1e30] sm:$0xff]   ;;  %v23875_v35 = vld [vmem:[%s30230_s1 + $0x1ee0] sm:$0xff]  }
 0x3a5   :  { %v21447_v28 = vadd.f32 %v21446_v23, %v21445_v17  ;;  %21760 = vmatpush3.bf16.msra.mxu1 %v23828_v33  ;;  %v23863_v17 = vld [vmem:[%s30230_s1 + $0x1ef8] sm:$0xff]   ;;  %16648 = vmatprep.mubr.bf16.mxu1 %v18694_v13  ;;  %v23873_v33 = vld [vmem:[%s30230_s1 + $0x1e60] sm:$0xff]  }
 0x3a6   :  { %v21448_v30 = vpop.f32.mrf.mxu0  ;;  %v21468_v31 = vpop.f32.mrf.mxu1  ;;  %21761 = vmatprep.subr.bf16.mxu1 %v23831_v40  ;;  %v23880_v40 = vld [vmem:[%s30230_s1 + $0x1e98] sm:$0xff]  }
 0x3a7   :  { %v16051_v32 = vadd.f32 %v21447_v28, %v27661_v52  ;;  %v21469_v34 = vadd.f32 %v21468_v31, %v21467_v24  ;;  %21740 = vmatpush3.bf16.msra.mxu0 %v23830_v39  ;;  %v23842_v52 = vld [vmem:[%s30230_s1 + $0x1d18] sm:$0xff]   ;;  %v23868_v28 = vld [vmem:[%s30230_s1 + $0x1eb0] sm:$0xff]   ;;  %v23870_v30 = vld [vmem:[%s30230_s1 + $0x1e28] sm:$0xff]  }
 0x3a8   :  { %v21449_v36 = vpop.f32.mrf.mxu0  ;;  %v21470_v37 = vpop.f32.mrf.mxu1  ;;  %21741 = vmatprep.subr.bf16.mxu0 %v23833_v43  ;;  %v23871_v31 = vld [vmem:[%s30230_s1 + $0x1ee8] sm:$0xff]   ;;  %v23879_v39 = vld [vmem:[%s30230_s1 + $0x1ed8] sm:$0xff]   ;;  %v23883_v43 = vld [vmem:[%s30230_s1 + $0x1ed0] sm:$0xff]  }
 0x3a9   :  { %v27766_v38 = vadd.f32 %v21469_v34, %v16051_v32  ;;  %21762 = vmatpush3.bf16.msra.mxu1 %v23832_v42  ;;  %v23872_v32 = vld [vmem:[%s30230_s1 + $0x1ea8] sm:$0xff]   ;;  %v23874_v34 = vld [vmem:[%s30230_s1 + $0x1e20] sm:$0xff]   ;;  %v23877_v37 = vld [vmem:[%s30230_s1 + $0x1e58] sm:$0xff]  }
 0x3aa   :  { %v21471_v41 = vpop.f32.mrf.mxu1  ;;  %21763 = vmatprep.subr.bf16.mxu1 %v23835_v45  ;;  %v23876_v36 = vld [vmem:[%s30230_s1 + $0x1ea0] sm:$0xff]   ;;  %v23882_v42 = vld [vmem:[%s30230_s1 + $0x1e10] sm:$0xff]   ;;  %v23885_v45 = vld [vmem:[%s30230_s1 + $0x1e48] sm:$0xff]  }
 0x3ab   :  { %21742 = vmatpush3.bf16.msra.mxu0 %v23834_v44  ;;  %v23881_v41 = vld [vmem:[%s30230_s1 + $0x1e50] sm:$0xff]  }
 0x3ac   :  { %21743 = vmatprep.subr.bf16.mxu0 %v23837_v47  ;;  %v23884_v44 = vld [vmem:[%s30230_s1 + $0x1e90] sm:$0xff]   ;;  %v23887_v47 = vld [vmem:[%s30230_s1 + $0x1ec8] sm:$0xff]  }
 0x3ad   :  { %21764 = vmatpush3.bf16.msra.mxu1 %v23836_v46  ;;  %v23886_v46 = vld [vmem:[%s30230_s1 + $0x1e08] sm:$0xff]  }
 0x3ae   :  { %21765 = vmatprep.subr.bf16.mxu1 %v23839_v49  ;;  %v23889_v49 = vld [vmem:[%s30230_s1 + $0x1e40] sm:$0xff]  }
 0x3af   :  { %21744 = vmatpush3.bf16.msra.mxu0 %v23838_v48  ;;  %v23888_v48 = vld [vmem:[%s30230_s1 + $0x1e88] sm:$0xff]  }
 0x3b0   :  { %21745 = vmatprep.subr.bf16.mxu0 %v23841_v51  ;;  %v23891_v51 = vld [vmem:[%s30230_s1 + $0x1ec0] sm:$0xff]  }
 0x3b1   :  { %21766 = vmatpush3.bf16.msra.mxu1 %v23840_v50  ;;  %v23890_v50 = vld [vmem:[%s30230_s1 + $0x1e00] sm:$0xff]  }
 0x3b2   :  { %21767 = vmatprep.subr.bf16.mxu1 %v23843_v53 }
 0x3b3   :  { %21746 = vmatpush3.bf16.msra.mxu0 %v23842_v52  ;;  %v82_v52 = vld [vmem:[%s30229_s0 + $0x1e0] sm:$0xff] }
 0x3b4   :  { %21747 = vmatprep.subr.bf16.mxu0 %v23845_v55  ;;  %v18696_v55 = vcombine.high %v82_v52, %v82_v52 }
 0x3b5   :  { %21768 = vmatpush3.bf16.msra.mxu1 %v23844_v54  ;;  %v18695_v54 = vcombine.low %v82_v52, %v82_v52 }
 0x3b6   :  { %21769 = vmatprep.subr.bf16.mxu1 %v23847_v57  ;;  %v23895_v57 = vld [vmem:[%s30230_s1 + $0x1f78] sm:$0xff]  }
 0x3b7   :  { %21748 = vmatpush3.bf16.msra.mxu0 %v23846_v56  ;;  %v23894_v56 = vld [vmem:[%s30230_s1 + $0x1e80] sm:$0xff]  }
 0x3b8   :  { %21749 = vmatprep.subr.bf16.mxu0 %v23849_v59 }
 0x3b9   :  { %21770 = vmatpush3.bf16.msra.mxu1 %v23848_v58  ;;  %v83_v58 = vld [vmem:[%s30229_s0 + $0x1e8] sm:$0xff] }
 0x3ba   :  { %21771 = vmatprep.subr.bf16.mxu1 %v23851_v61  ;;  %v18697_v61 = vcombine.low %v83_v58, %v83_v58 }
 0x3bb   :  { %21750 = vmatpush3.bf16.msra.mxu0 %v23850_v60 }
 0x3bc   :  { %21751 = vmatprep.subr.bf16.mxu0 %v23853_v63  ;;  %v23898_v63 = vld [vmem:[%s30230_s1 + $0x1f38] sm:$0xff]  }
 0x3bd   :  { %21772 = vmatpush3.bf16.msra.mxu1 %v23852_v62  ;;  %v18698_v62 = vcombine.high %v83_v58, %v83_v58 }
 0x3be   :  { %21773 = vmatprep.subr.bf16.mxu1 %v23855_v1  ;;  %v23899_v1 = vld [vmem:[%s30230_s1 + $0x1ff8] sm:$0xff]  }
 0x3bf   :  { %21752 = vmatpush3.bf16.msra.mxu0 %v23854_v0 }
 0x3c0   :  { %21781 = vmatprep.subr.bf16.mxu0 %v23859_v7  ;;  %v23901_v7 = vld [vmem:[%s30230_s1 + $0x1f70] sm:$0xff]  }
 0x3c1   :  { %21774 = vmatpush3.bf16.msra.mxu1 %v23858_v6 }
 0x3c2   :  { %v21489_v3 = vpop.f32.mrf.mxu0  ;;  %16609 = vmatmul.mubr.bf16.vlgmr.msra.gmra.mxu0 %v18691_v4  ;;  %21803 = vmatprep.subr.bf16.mxu1 %v23863_v17  ;;  %v23907_v17 = vld [vmem:[%s30230_s1 + $0x1fe8] sm:$0xff]  }
 0x3c3   :  { %21782 = vmatpush3.bf16.msra.mxu0 %v23862_v14  ;;  %16688 = vmatprep.mubr.bf16.mxu0 %v18696_v55  ;;  %v23904_v14 = vld [vmem:[%s30230_s1 + $0x1fb0] sm:$0xff]   ;;  %v23936_v55 = vld [vmem:[%s30230_s1 + $0x20b8] sm:$0xff]  }
 0x3c4   :  { %v21490_v8 = vpop.f32.mrf.mxu0  ;;  %v21511_v11 = vpop.f32.mrf.mxu1  ;;  %16649 = vmatmul.mubr.bf16.vlgmr.msra.gmra.mxu1 %v18693_v12  ;;  %21783 = vmatprep.subr.bf16.mxu0 %v23865_v22  ;;  %v23903_v12 = vld [vmem:[%s30230_s1 + $0x1ff0] sm:$0xff]   ;;  %v23912_v22 = vld [vmem:[%s30230_s1 + $0x1fa0] sm:$0xff]  }
 0x3c5   :  { %v21491_v10 = vadd.f32 %v21490_v8, %v21489_v3  ;;  %21804 = vmatpush3.bf16.msra.mxu1 %v23864_v19  ;;  %16728 = vmatprep.mubr.bf16.mxu1 %v18698_v62  ;;  %v23909_v19 = vld [vmem:[%s30230_s1 + $0x1f60] sm:$0xff]   ;;  %v23939_v62 = vld [vmem:[%s30230_s1 + $0x20f0] sm:$0xff]  }
 0x3c6   :  { %v21492_v15 = vpop.f32.mrf.mxu0  ;;  %v21512_v18 = vpop.f32.mrf.mxu1  ;;  %21805 = vmatprep.subr.bf16.mxu1 %v23867_v26  ;;  %v23916_v26 = vld [vmem:[%s30230_s1 + $0x1f98] sm:$0xff]  }
 0x3c7   :  { %v16131_v16 = vadd.f32 %v21491_v10, %v27766_v38  ;;  %v21513_v20 = vadd.f32 %v21512_v18, %v21511_v11  ;;  %21784 = vmatpush3.bf16.msra.mxu0 %v23866_v25  ;;  %v23878_v38 = vld [vmem:[%s30230_s1 + $0x1e18] sm:$0xff]   ;;  %v23902_v11 = vld [vmem:[%s30230_s1 + $0x1f30] sm:$0xff]   ;;  %v23905_v15 = vld [vmem:[%s30230_s1 + $0x1f68] sm:$0xff]  }
 0x3c8   :  { %v21493_v21 = vpop.f32.mrf.mxu0  ;;  %v21514_v23 = vpop.f32.mrf.mxu1  ;;  %21785 = vmatprep.subr.bf16.mxu0 %v23869_v29  ;;  %v23908_v18 = vld [vmem:[%s30230_s1 + $0x1fa8] sm:$0xff]   ;;  %v23915_v25 = vld [vmem:[%s30230_s1 + $0x1fd8] sm:$0xff]   ;;  %v23919_v29 = vld [vmem:[%s30230_s1 + $0x1fd0] sm:$0xff]  }
 0x3c9   :  { %v27871_v24 = vadd.f32 %v21513_v20, %v16131_v16  ;;  %21806 = vmatpush3.bf16.msra.mxu1 %v23868_v28  ;;  %v23906_v16 = vld [vmem:[%s30230_s1 + $0x1f28] sm:$0xff]   ;;  %v23910_v20 = vld [vmem:[%s30230_s1 + $0x1f20] sm:$0xff]   ;;  %v23913_v23 = vld [vmem:[%s30230_s1 + $0x1f58] sm:$0xff]  }
 0x3ca   :  { %v21515_v27 = vpop.f32.mrf.mxu1  ;;  %21807 = vmatprep.subr.bf16.mxu1 %v23871_v31  ;;  %v23911_v21 = vld [vmem:[%s30230_s1 + $0x1fe0] sm:$0xff]   ;;  %v23918_v28 = vld [vmem:[%s30230_s1 + $0x1f10] sm:$0xff]   ;;  %v23921_v31 = vld [vmem:[%s30230_s1 + $0x1f48] sm:$0xff]  }
 0x3cb   :  { %21786 = vmatpush3.bf16.msra.mxu0 %v23870_v30  ;;  %v23917_v27 = vld [vmem:[%s30230_s1 + $0x1f50] sm:$0xff]  }
 0x3cc   :  { %21787 = vmatprep.subr.bf16.mxu0 %v23873_v33  ;;  %v23920_v30 = vld [vmem:[%s30230_s1 + $0x1f90] sm:$0xff]   ;;  %v23923_v33 = vld [vmem:[%s30230_s1 + $0x1fc8] sm:$0xff]  }
 0x3cd   :  { %21808 = vmatpush3.bf16.msra.mxu1 %v23872_v32  ;;  %v23922_v32 = vld [vmem:[%s30230_s1 + $0x1f08] sm:$0xff]  }
 0x3ce   :  { %21809 = vmatprep.subr.bf16.mxu1 %v23875_v35  ;;  %v23925_v35 = vld [vmem:[%s30230_s1 + $0x1f40] sm:$0xff]  }
 0x3cf   :  { %21788 = vmatpush3.bf16.msra.mxu0 %v23874_v34  ;;  %v23924_v34 = vld [vmem:[%s30230_s1 + $0x1f88] sm:$0xff]  }
 0x3d0   :  { %21789 = vmatprep.subr.bf16.mxu0 %v23877_v37  ;;  %v23927_v37 = vld [vmem:[%s30230_s1 + $0x1fc0] sm:$0xff]  }
 0x3d1   :  { %21810 = vmatpush3.bf16.msra.mxu1 %v23876_v36  ;;  %v23926_v36 = vld [vmem:[%s30230_s1 + $0x1f00] sm:$0xff]  }
 0x3d2   :  { %21811 = vmatprep.subr.bf16.mxu1 %v23879_v39 }
 0x3d3   :  { %21790 = vmatpush3.bf16.msra.mxu0 %v23878_v38  ;;  %v84_v38 = vld [vmem:[%s30229_s0 + $0x1f0] sm:$0xff] }
 0x3d4   :  { %21791 = vmatprep.subr.bf16.mxu0 %v23881_v41  ;;  %v18700_v41 = vcombine.high %v84_v38, %v84_v38 }
 0x3d5   :  { %21812 = vmatpush3.bf16.msra.mxu1 %v23880_v40  ;;  %v18699_v40 = vcombine.low %v84_v38, %v84_v38 }
 0x3d6   :  { %21813 = vmatprep.subr.bf16.mxu1 %v23883_v43  ;;  %v23931_v43 = vld [vmem:[%s30230_s1 + $0x2078] sm:$0xff]  }
 0x3d7   :  { %21792 = vmatpush3.bf16.msra.mxu0 %v23882_v42  ;;  %v23930_v42 = vld [vmem:[%s30230_s1 + $0x1f80] sm:$0xff]  }
 0x3d8   :  { %21793 = vmatprep.subr.bf16.mxu0 %v23885_v45 }
 0x3d9   :  { %21814 = vmatpush3.bf16.msra.mxu1 %v23884_v44  ;;  %v85_v44 = vld [vmem:[%s30229_s0 + $0x1f8] sm:$0xff] }
 0x3da   :  { %21815 = vmatprep.subr.bf16.mxu1 %v23887_v47  ;;  %v18701_v47 = vcombine.low %v85_v44, %v85_v44 }
 0x3db   :  { %21794 = vmatpush3.bf16.msra.mxu0 %v23886_v46 }
 0x3dc   :  { %21795 = vmatprep.subr.bf16.mxu0 %v23889_v49  ;;  %v23934_v49 = vld [vmem:[%s30230_s1 + $0x2038] sm:$0xff]  }
 0x3dd   :  { %21816 = vmatpush3.bf16.msra.mxu1 %v23888_v48  ;;  %v18702_v48 = vcombine.high %v85_v44, %v85_v44  ;;  %v23973_v44 = vld [vmem:[%s30230_s1 + $0x2170] sm:$0xff]  }
 0x3de   :  { %21817 = vmatprep.subr.bf16.mxu1 %v23891_v51  ;;  %v23935_v51 = vld [vmem:[%s30230_s1 + $0x20f8] sm:$0xff]  }
 0x3df   :  { %21796 = vmatpush3.bf16.msra.mxu0 %v23890_v50 }
 0x3e0   :  { %21825 = vmatprep.subr.bf16.mxu0 %v23895_v57  ;;  %v23937_v57 = vld [vmem:[%s30230_s1 + $0x2070] sm:$0xff]  }
 0x3e1   :  { %21818 = vmatpush3.bf16.msra.mxu1 %v23894_v56 }
 0x3e2   :  { %v21533_v53 = vpop.f32.mrf.mxu0  ;;  %16689 = vmatmul.mubr.bf16.vlgmr.msra.gmra.mxu0 %v18695_v54  ;;  %21847 = vmatprep.subr.bf16.mxu1 %v23899_v1  ;;  %v23941_v1 = vld [vmem:[%s30230_s1 + $0x2068] sm:$0xff]  }
 0x3e3   :  { %21826 = vmatpush3.bf16.msra.mxu0 %v23898_v63  ;;  %16768 = vmatprep.mubr.bf16.mxu0 %v18700_v41  ;;  %v23972_v41 = vld [vmem:[%s30230_s1 + $0x21b8] sm:$0xff]  }
 0x3e4   :  { %v21534_v59 = vpop.f32.mrf.mxu0  ;;  %v21555_v60 = vpop.f32.mrf.mxu1  ;;  %16729 = vmatmul.mubr.bf16.vlgmr.msra.gmra.mxu1 %v18697_v61  ;;  %21827 = vmatprep.subr.bf16.mxu0 %v23901_v7  ;;  %v23938_v61 = vld [vmem:[%s30230_s1 + $0x2030] sm:$0xff]   ;;  %v23947_v7 = vld [vmem:[%s30230_s1 + $0x20e0] sm:$0xff]  }
 0x3e5   :  { %v21535_v0 = vadd.f32 %v21534_v59, %v21533_v53  ;;  %21848 = vmatpush3.bf16.msra.mxu1 %v23900_v5  ;;  %16808 = vmatprep.mubr.bf16.mxu1 %v18702_v48  ;;  %v23945_v5 = vld [vmem:[%s30230_s1 + $0x2060] sm:$0xff]   ;;  %v23975_v48 = vld [vmem:[%s30230_s1 + $0x21f0] sm:$0xff]  }
 0x3e6   :  { %v21536_v2 = vpop.f32.mrf.mxu0  ;;  %v21556_v3 = vpop.f32.mrf.mxu1  ;;  %21849 = vmatprep.subr.bf16.mxu1 %v23903_v12  ;;  %v23952_v12 = vld [vmem:[%s30230_s1 + $0x2098] sm:$0xff]  }
 0x3e7   :  { %v16211_v4 = vadd.f32 %v21535_v0, %v27871_v24  ;;  %v21557_v6 = vadd.f32 %v21556_v3, %v21555_v60  ;;  %21828 = vmatpush3.bf16.msra.mxu0 %v23902_v11  ;;  %v23914_v24 = vld [vmem:[%s30230_s1 + $0x1f18] sm:$0xff]   ;;  %v23940_v0 = vld [vmem:[%s30230_s1 + $0x20b0] sm:$0xff]   ;;  %v23942_v2 = vld [vmem:[%s30230_s1 + $0x2028] sm:$0xff]  }
 0x3e8   :  { %v21537_v8 = vpop.f32.mrf.mxu0  ;;  %v21558_v9 = vpop.f32.mrf.mxu1  ;;  %21829 = vmatprep.subr.bf16.mxu0 %v23905_v15  ;;  %v23943_v3 = vld [vmem:[%s30230_s1 + $0x20e8] sm:$0xff]   ;;  %v23951_v11 = vld [vmem:[%s30230_s1 + $0x20d8] sm:$0xff]   ;;  %v23955_v15 = vld [vmem:[%s30230_s1 + $0x20d0] sm:$0xff]  }
 0x3e9   :  { %v27976_v10 = vadd.f32 %v21557_v6, %v16211_v4  ;;  %21850 = vmatpush3.bf16.msra.mxu1 %v23904_v14  ;;  %v23944_v4 = vld [vmem:[%s30230_s1 + $0x20a8] sm:$0xff]   ;;  %v23946_v6 = vld [vmem:[%s30230_s1 + $0x2020] sm:$0xff]   ;;  %v23949_v9 = vld [vmem:[%s30230_s1 + $0x2058] sm:$0xff]  }
 0x3ea   :  { %v21559_v13 = vpop.f32.mrf.mxu1  ;;  %21851 = vmatprep.subr.bf16.mxu1 %v23907_v17  ;;  %v23948_v8 = vld [vmem:[%s30230_s1 + $0x20a0] sm:$0xff]   ;;  %v23954_v14 = vld [vmem:[%s30230_s1 + $0x2010] sm:$0xff]   ;;  %v23957_v17 = vld [vmem:[%s30230_s1 + $0x2048] sm:$0xff]  }
 0x3eb   :  { %21830 = vmatpush3.bf16.msra.mxu0 %v23906_v16  ;;  %v23953_v13 = vld [vmem:[%s30230_s1 + $0x2050] sm:$0xff]  }
 0x3ec   :  { %21831 = vmatprep.subr.bf16.mxu0 %v23909_v19  ;;  %v23956_v16 = vld [vmem:[%s30230_s1 + $0x2090] sm:$0xff]   ;;  %v23959_v19 = vld [vmem:[%s30230_s1 + $0x20c8] sm:$0xff]  }
 0x3ed   :  { %21852 = vmatpush3.bf16.msra.mxu1 %v23908_v18  ;;  %v23958_v18 = vld [vmem:[%s30230_s1 + $0x2008] sm:$0xff]  }
 0x3ee   :  { %21853 = vmatprep.subr.bf16.mxu1 %v23911_v21  ;;  %v23961_v21 = vld [vmem:[%s30230_s1 + $0x2040] sm:$0xff]  }
 0x3ef   :  { %21832 = vmatpush3.bf16.msra.mxu0 %v23910_v20  ;;  %v23960_v20 = vld [vmem:[%s30230_s1 + $0x2088] sm:$0xff]  }
 0x3f0   :  { %21833 = vmatprep.subr.bf16.mxu0 %v23913_v23  ;;  %v23963_v23 = vld [vmem:[%s30230_s1 + $0x20c0] sm:$0xff]  }
 0x3f1   :  { %21854 = vmatpush3.bf16.msra.mxu1 %v23912_v22  ;;  %v23962_v22 = vld [vmem:[%s30230_s1 + $0x2000] sm:$0xff]  }
 0x3f2   :  { %21855 = vmatprep.subr.bf16.mxu1 %v23915_v25 }
 0x3f3   :  { %21834 = vmatpush3.bf16.msra.mxu0 %v23914_v24  ;;  %v86_v24 = vld [vmem:[%s30229_s0 + $0x200] sm:$0xff] }
 0x3f4   :  { %21835 = vmatprep.subr.bf16.mxu0 %v23917_v27  ;;  %v18704_v27 = vcombine.high %v86_v24, %v86_v24 }
 0x3f5   :  { %21856 = vmatpush3.bf16.msra.mxu1 %v23916_v26  ;;  %v18703_v26 = vcombine.low %v86_v24, %v86_v24 }
 0x3f6   :  { %21857 = vmatprep.subr.bf16.mxu1 %v23919_v29  ;;  %v23967_v29 = vld [vmem:[%s30230_s1 + $0x2178] sm:$0xff]  }
 0x3f7   :  { %21836 = vmatpush3.bf16.msra.mxu0 %v23918_v28  ;;  %v23966_v28 = vld [vmem:[%s30230_s1 + $0x2080] sm:$0xff]  }
 0x3f8   :  { %21837 = vmatprep.subr.bf16.mxu0 %v23921_v31  ;;  %v87_v31 = vld [vmem:[%s30229_s0 + $0x208] sm:$0xff] }
 0x3f9   :  { %21858 = vmatpush3.bf16.msra.mxu1 %v23920_v30 }
 0x3fa   :  { %21859 = vmatprep.subr.bf16.mxu1 %v23923_v33 }
 0x3fb   :  { %21838 = vmatpush3.bf16.msra.mxu0 %v23922_v32 }
 0x3fc   :  { %21839 = vmatprep.subr.bf16.mxu0 %v23925_v35  ;;  %v18706_v35 = vcombine.high %v87_v31, %v87_v31 }
 0x3fd   :  { %21860 = vmatpush3.bf16.msra.mxu1 %v23924_v34  ;;  %v18705_v34 = vcombine.low %v87_v31, %v87_v31 }
 0x3fe   :  { %21861 = vmatprep.subr.bf16.mxu1 %v23927_v37 }
 0x3ff   :  { %21840 = vmatpush3.bf16.msra.mxu0 %v23926_v36  ;;  %v23970_v36 = vld [vmem:[%s30230_s1 + $0x2138] sm:$0xff]  }
 0x400   :  { %21869 = vmatprep.subr.bf16.mxu0 %v23931_v43 }
 0x401   :  { %21862 = vmatpush3.bf16.msra.mxu1 %v23930_v42 }
 0x402   :  { %v21577_v39 = vpop.f32.mrf.mxu0  ;;  %16769 = vmatmul.mubr.bf16.vlgmr.msra.gmra.mxu0 %v18699_v40  ;;  %21891 = vmatprep.subr.bf16.mxu1 %v23935_v51  ;;  %v23977_v51 = vld [vmem:[%s30230_s1 + $0x2168] sm:$0xff]  }
 0x403   :  { %21870 = vmatpush3.bf16.msra.mxu0 %v23934_v49  ;;  %16848 = vmatprep.mubr.bf16.mxu0 %v18704_v27  ;;  %v24008_v27 = vld [vmem:[%s30230_s1 + $0x22b8] sm:$0xff]  }
 0x404   :  { %v21578_v45 = vpop.f32.mrf.mxu0  ;;  %v21599_v46 = vpop.f32.mrf.mxu1  ;;  %16809 = vmatmul.mubr.bf16.vlgmr.msra.gmra.mxu1 %v18701_v47  ;;  %21871 = vmatprep.subr.bf16.mxu0 %v23937_v57  ;;  %v23974_v47 = vld [vmem:[%s30230_s1 + $0x2130] sm:$0xff]   ;;  %v23983_v57 = vld [vmem:[%s30230_s1 + $0x21e0] sm:$0xff]  }
 0x405   :  { %v21579_v50 = vadd.f32 %v21578_v45, %v21577_v39  ;;  %21892 = vmatpush3.bf16.msra.mxu1 %v23936_v55  ;;  %v23971_v39 = vld [vmem:[%s30230_s1 + $0x21f8] sm:$0xff]   ;;  %16888 = vmatprep.mubr.bf16.mxu1 %v18706_v35  ;;  %v23981_v55 = vld [vmem:[%s30230_s1 + $0x2160] sm:$0xff]  }
 0x406   :  { %v21580_v52 = vpop.f32.mrf.mxu0  ;;  %v21600_v53 = vpop.f32.mrf.mxu1  ;;  %21893 = vmatprep.subr.bf16.mxu1 %v23939_v62  ;;  %v23988_v62 = vld [vmem:[%s30230_s1 + $0x2198] sm:$0xff]  }
 0x407   :  { %v16291_v54 = vadd.f32 %v21579_v50, %v27976_v10  ;;  %v21601_v56 = vadd.f32 %v21600_v53, %v21599_v46  ;;  %21872 = vmatpush3.bf16.msra.mxu0 %v23938_v61  ;;  %v23950_v10 = vld [vmem:[%s30230_s1 + $0x2018] sm:$0xff]   ;;  %v23976_v50 = vld [vmem:[%s30230_s1 + $0x21b0] sm:$0xff]   ;;  %v23978_v52 = vld [vmem:[%s30230_s1 + $0x2128] sm:$0xff]  }
 0x408   :  { %v21581_v58 = vpop.f32.mrf.mxu0  ;;  %v21602_v59 = vpop.f32.mrf.mxu1  ;;  %21873 = vmatprep.subr.bf16.mxu0 %v23941_v1  ;;  %v23979_v53 = vld [vmem:[%s30230_s1 + $0x21e8] sm:$0xff]   ;;  %v23987_v61 = vld [vmem:[%s30230_s1 + $0x21d8] sm:$0xff]   ;;  %v23991_v1 = vld [vmem:[%s30230_s1 + $0x21d0] sm:$0xff]  }
 0x409   :  { %v28081_v60 = vadd.f32 %v21601_v56, %v16291_v54  ;;  %21894 = vmatpush3.bf16.msra.mxu1 %v23940_v0  ;;  %v23980_v54 = vld [vmem:[%s30230_s1 + $0x21a8] sm:$0xff]   ;;  %v23982_v56 = vld [vmem:[%s30230_s1 + $0x2120] sm:$0xff]   ;;  %v23985_v59 = vld [vmem:[%s30230_s1 + $0x2158] sm:$0xff]  }
 0x40a   :  { %v21603_v63 = vpop.f32.mrf.mxu1  ;;  %21895 = vmatprep.subr.bf16.mxu1 %v23943_v3  ;;  %v23984_v58 = vld [vmem:[%s30230_s1 + $0x21a0] sm:$0xff]   ;;  %v23990_v0 = vld [vmem:[%s30230_s1 + $0x2110] sm:$0xff]   ;;  %v23993_v3 = vld [vmem:[%s30230_s1 + $0x2148] sm:$0xff]  }
 0x40b   :  { %21874 = vmatpush3.bf16.msra.mxu0 %v23942_v2  ;;  %v23989_v63 = vld [vmem:[%s30230_s1 + $0x2150] sm:$0xff]  }
 0x40c   :  { %21875 = vmatprep.subr.bf16.mxu0 %v23945_v5  ;;  %v23992_v2 = vld [vmem:[%s30230_s1 + $0x2190] sm:$0xff]   ;;  %v23995_v5 = vld [vmem:[%s30230_s1 + $0x21c8] sm:$0xff]  }
 0x40d   :  { %21896 = vmatpush3.bf16.msra.mxu1 %v23944_v4  ;;  %v23994_v4 = vld [vmem:[%s30230_s1 + $0x2108] sm:$0xff]  }
 0x40e   :  { %21897 = vmatprep.subr.bf16.mxu1 %v23947_v7  ;;  %v23997_v7 = vld [vmem:[%s30230_s1 + $0x2140] sm:$0xff]  }
 0x40f   :  { %21876 = vmatpush3.bf16.msra.mxu0 %v23946_v6  ;;  %v23996_v6 = vld [vmem:[%s30230_s1 + $0x2188] sm:$0xff]  }
 0x410   :  { %21877 = vmatprep.subr.bf16.mxu0 %v23949_v9  ;;  %v23999_v9 = vld [vmem:[%s30230_s1 + $0x21c0] sm:$0xff]  }
 0x411   :  { %21898 = vmatpush3.bf16.msra.mxu1 %v23948_v8  ;;  %v23998_v8 = vld [vmem:[%s30230_s1 + $0x2100] sm:$0xff]  }
 0x412   :  { %21899 = vmatprep.subr.bf16.mxu1 %v23951_v11 }
 0x413   :  { %21878 = vmatpush3.bf16.msra.mxu0 %v23950_v10  ;;  %v88_v10 = vld [vmem:[%s30229_s0 + $0x210] sm:$0xff] }
 0x414   :  { %21879 = vmatprep.subr.bf16.mxu0 %v23953_v13  ;;  %v18708_v13 = vcombine.high %v88_v10, %v88_v10 }
 0x415   :  { %21900 = vmatpush3.bf16.msra.mxu1 %v23952_v12  ;;  %v18707_v12 = vcombine.low %v88_v10, %v88_v10 }
 0x416   :  { %21901 = vmatprep.subr.bf16.mxu1 %v23955_v15  ;;  %v24003_v15 = vld [vmem:[%s30230_s1 + $0x2278] sm:$0xff]  }
 0x417   :  { %21880 = vmatpush3.bf16.msra.mxu0 %v23954_v14  ;;  %v24002_v14 = vld [vmem:[%s30230_s1 + $0x2180] sm:$0xff]  }
 0x418   :  { %21881 = vmatprep.subr.bf16.mxu0 %v23957_v17 }
 0x419   :  { %21902 = vmatpush3.bf16.msra.mxu1 %v23956_v16  ;;  %v89_v16 = vld [vmem:[%s30229_s0 + $0x218] sm:$0xff] }
 0x41a   :  { %21903 = vmatprep.subr.bf16.mxu1 %v23959_v19  ;;  %v18709_v19 = vcombine.low %v89_v16, %v89_v16 }
 0x41b   :  { %21882 = vmatpush3.bf16.msra.mxu0 %v23958_v18 }
 0x41c   :  { %21883 = vmatprep.subr.bf16.mxu0 %v23961_v21  ;;  %v24006_v21 = vld [vmem:[%s30230_s1 + $0x2238] sm:$0xff]  }
 0x41d   :  { %21904 = vmatpush3.bf16.msra.mxu1 %v23960_v20  ;;  %v18710_v20 = vcombine.high %v89_v16, %v89_v16 }
 0x41e   :  { %21905 = vmatprep.subr.bf16.mxu1 %v23963_v23  ;;  %v24007_v23 = vld [vmem:[%s30230_s1 + $0x22f8] sm:$0xff]  }
 0x41f   :  { %21884 = vmatpush3.bf16.msra.mxu0 %v23962_v22 }
 0x420   :  { %21913 = vmatprep.subr.bf16.mxu0 %v23967_v29  ;;  %v24009_v29 = vld [vmem:[%s30230_s1 + $0x2270] sm:$0xff]  }
 0x421   :  { %21906 = vmatpush3.bf16.msra.mxu1 %v23966_v28 }
 0x422   :  { %v21621_v25 = vpop.f32.mrf.mxu0  ;;  %16849 = vmatmul.mubr.bf16.vlgmr.msra.gmra.mxu0 %v18703_v26  ;;  %21935 = vmatprep.subr.bf16.mxu1 %v23971_v39  ;;  %v24015_v39 = vld [vmem:[%s30230_s1 + $0x22e8] sm:$0xff]  }
 0x423   :  { %21914 = vmatpush3.bf16.msra.mxu0 %v23970_v36  ;;  %16928 = vmatprep.mubr.bf16.mxu0 %v18708_v13  ;;  %v24012_v36 = vld [vmem:[%s30230_s1 + $0x22b0] sm:$0xff]   ;;  %v24044_v13 = vld [vmem:[%s30230_s1 + $0x23b8] sm:$0xff]  }
 0x424   :  { %v21622_v30 = vpop.f32.mrf.mxu0  ;;  %v21643_v33 = vpop.f32.mrf.mxu1  ;;  %16889 = vmatmul.mubr.bf16.vlgmr.msra.gmra.mxu1 %v18705_v34  ;;  %21915 = vmatprep.subr.bf16.mxu0 %v23973_v44  ;;  %v24011_v34 = vld [vmem:[%s30230_s1 + $0x22f0] sm:$0xff]   ;;  %v24020_v44 = vld [vmem:[%s30230_s1 + $0x22a0] sm:$0xff]  }
 0x425   :  { %v21623_v32 = vadd.f32 %v21622_v30, %v21621_v25  ;;  %21936 = vmatpush3.bf16.msra.mxu1 %v23972_v41  ;;  %16968 = vmatprep.mubr.bf16.mxu1 %v18710_v20  ;;  %v24017_v41 = vld [vmem:[%s30230_s1 + $0x2260] sm:$0xff]   ;;  %v24047_v20 = vld [vmem:[%s30230_s1 + $0x23f0] sm:$0xff]  }
 0x426   :  { %v21624_v37 = vpop.f32.mrf.mxu0  ;;  %v21644_v40 = vpop.f32.mrf.mxu1  ;;  %21937 = vmatprep.subr.bf16.mxu1 %v23975_v48  ;;  %v24024_v48 = vld [vmem:[%s30230_s1 + $0x2298] sm:$0xff]  }
 0x427   :  { %v16371_v38 = vadd.f32 %v21623_v32, %v28081_v60  ;;  %v21645_v42 = vadd.f32 %v21644_v40, %v21643_v33  ;;  %21916 = vmatpush3.bf16.msra.mxu0 %v23974_v47  ;;  %v23986_v60 = vld [vmem:[%s30230_s1 + $0x2118] sm:$0xff]   ;;  %v24010_v33 = vld [vmem:[%s30230_s1 + $0x2230] sm:$0xff]   ;;  %v24013_v37 = vld [vmem:[%s30230_s1 + $0x2268] sm:$0xff]  }
 0x428   :  { %v21625_v43 = vpop.f32.mrf.mxu0  ;;  %v21646_v45 = vpop.f32.mrf.mxu1  ;;  %21917 = vmatprep.subr.bf16.mxu0 %v23977_v51  ;;  %v24016_v40 = vld [vmem:[%s30230_s1 + $0x22a8] sm:$0xff]   ;;  %v24023_v47 = vld [vmem:[%s30230_s1 + $0x22d8] sm:$0xff]   ;;  %v24027_v51 = vld [vmem:[%s30230_s1 + $0x22d0] sm:$0xff]  }
 0x429   :  { %v28186_v46 = vadd.f32 %v21645_v42, %v16371_v38  ;;  %21938 = vmatpush3.bf16.msra.mxu1 %v23976_v50  ;;  %v24014_v38 = vld [vmem:[%s30230_s1 + $0x2228] sm:$0xff]   ;;  %v24018_v42 = vld [vmem:[%s30230_s1 + $0x2220] sm:$0xff]   ;;  %v24021_v45 = vld [vmem:[%s30230_s1 + $0x2258] sm:$0xff]  }
 0x42a   :  { %v21647_v49 = vpop.f32.mrf.mxu1  ;;  %21939 = vmatprep.subr.bf16.mxu1 %v23979_v53  ;;  %v24019_v43 = vld [vmem:[%s30230_s1 + $0x22e0] sm:$0xff]   ;;  %v24026_v50 = vld [vmem:[%s30230_s1 + $0x2210] sm:$0xff]   ;;  %v24029_v53 = vld [vmem:[%s30230_s1 + $0x2248] sm:$0xff]  }
 0x42b   :  { %21918 = vmatpush3.bf16.msra.mxu0 %v23978_v52  ;;  %v24025_v49 = vld [vmem:[%s30230_s1 + $0x2250] sm:$0xff]  }
 0x42c   :  { %21919 = vmatprep.subr.bf16.mxu0 %v23981_v55  ;;  %v24028_v52 = vld [vmem:[%s30230_s1 + $0x2290] sm:$0xff]   ;;  %v24031_v55 = vld [vmem:[%s30230_s1 + $0x22c8] sm:$0xff]  }
 0x42d   :  { %21940 = vmatpush3.bf16.msra.mxu1 %v23980_v54  ;;  %v24030_v54 = vld [vmem:[%s30230_s1 + $0x2208] sm:$0xff]  }
 0x42e   :  { %21941 = vmatprep.subr.bf16.mxu1 %v23983_v57  ;;  %v24033_v57 = vld [vmem:[%s30230_s1 + $0x2240] sm:$0xff]  }
 0x42f   :  { %21920 = vmatpush3.bf16.msra.mxu0 %v23982_v56  ;;  %v24032_v56 = vld [vmem:[%s30230_s1 + $0x2288] sm:$0xff]  }
 0x430   :  { %21921 = vmatprep.subr.bf16.mxu0 %v23985_v59  ;;  %v24035_v59 = vld [vmem:[%s30230_s1 + $0x22c0] sm:$0xff]  }
 0x431   :  { %21942 = vmatpush3.bf16.msra.mxu1 %v23984_v58  ;;  %v24034_v58 = vld [vmem:[%s30230_s1 + $0x2200] sm:$0xff]  }
 0x432   :  { %21943 = vmatprep.subr.bf16.mxu1 %v23987_v61 }
 0x433   :  { %21922 = vmatpush3.bf16.msra.mxu0 %v23986_v60  ;;  %v90_v60 = vld [vmem:[%s30229_s0 + $0x220] sm:$0xff] }
 0x434   :  { %21923 = vmatprep.subr.bf16.mxu0 %v23989_v63  ;;  %v18712_v63 = vcombine.high %v90_v60, %v90_v60 }
 0x435   :  { %21944 = vmatpush3.bf16.msra.mxu1 %v23988_v62  ;;  %v18711_v62 = vcombine.low %v90_v60, %v90_v60 }
 0x436   :  { %21945 = vmatprep.subr.bf16.mxu1 %v23991_v1  ;;  %v24039_v1 = vld [vmem:[%s30230_s1 + $0x2378] sm:$0xff]  }
 0x437   :  { %21924 = vmatpush3.bf16.msra.mxu0 %v23990_v0  ;;  %v24038_v0 = vld [vmem:[%s30230_s1 + $0x2280] sm:$0xff]  }
 0x438   :  { %21925 = vmatprep.subr.bf16.mxu0 %v23993_v3 }
 0x439   :  { %21946 = vmatpush3.bf16.msra.mxu1 %v23992_v2  ;;  %v91_v2 = vld [vmem:[%s30229_s0 + $0x228] sm:$0xff] }
 0x43a   :  { %21947 = vmatprep.subr.bf16.mxu1 %v23995_v5  ;;  %v18713_v5 = vcombine.low %v91_v2, %v91_v2 }
 0x43b   :  { %21926 = vmatpush3.bf16.msra.mxu0 %v23994_v4 }
 0x43c   :  { %21927 = vmatprep.subr.bf16.mxu0 %v23997_v7  ;;  %v24042_v7 = vld [vmem:[%s30230_s1 + $0x2338] sm:$0xff]  }
 0x43d   :  { %21948 = vmatpush3.bf16.msra.mxu1 %v23996_v6  ;;  %v18714_v6 = vcombine.high %v91_v2, %v91_v2  ;;  %v24081_v2 = vld [vmem:[%s30230_s1 + $0x2470] sm:$0xff]  }
 0x43e   :  { %21949 = vmatprep.subr.bf16.mxu1 %v23999_v9  ;;  %v24043_v9 = vld [vmem:[%s30230_s1 + $0x23f8] sm:$0xff]  }
 0x43f   :  { %21928 = vmatpush3.bf16.msra.mxu0 %v23998_v8 }
 0x440   :  { %21957 = vmatprep.subr.bf16.mxu0 %v24003_v15  ;;  %v24045_v15 = vld [vmem:[%s30230_s1 + $0x2370] sm:$0xff]  }
 0x441   :  { %21950 = vmatpush3.bf16.msra.mxu1 %v24002_v14 }
 0x442   :  { %v21665_v11 = vpop.f32.mrf.mxu0  ;;  %16929 = vmatmul.mubr.bf16.vlgmr.msra.gmra.mxu0 %v18707_v12  ;;  %21979 = vmatprep.subr.bf16.mxu1 %v24007_v23  ;;  %v24049_v23 = vld [vmem:[%s30230_s1 + $0x2368] sm:$0xff]  }
 0x443   :  { %21958 = vmatpush3.bf16.msra.mxu0 %v24006_v21  ;;  %17008 = vmatprep.mubr.bf16.mxu0 %v18712_v63  ;;  %v24080_v63 = vld [vmem:[%s30230_s1 + $0x24b8] sm:$0xff]  }
 0x444   :  { %v21666_v17 = vpop.f32.mrf.mxu0  ;;  %v21687_v18 = vpop.f32.mrf.mxu1  ;;  %16969 = vmatmul.mubr.bf16.vlgmr.msra.gmra.mxu1 %v18709_v19  ;;  %21959 = vmatprep.subr.bf16.mxu0 %v24009_v29  ;;  %v24046_v19 = vld [vmem:[%s30230_s1 + $0x2330] sm:$0xff]   ;;  %v24055_v29 = vld [vmem:[%s30230_s1 + $0x23e0] sm:$0xff]  }
 0x445   :  { %v21667_v22 = vadd.f32 %v21666_v17, %v21665_v11  ;;  %21980 = vmatpush3.bf16.msra.mxu1 %v24008_v27  ;;  %17048 = vmatprep.mubr.bf16.mxu1 %v18714_v6  ;;  %v24053_v27 = vld [vmem:[%s30230_s1 + $0x2360] sm:$0xff]   ;;  %v24083_v6 = vld [vmem:[%s30230_s1 + $0x24f0] sm:$0xff]  }
 0x446   :  { %v21668_v24 = vpop.f32.mrf.mxu0  ;;  %v21688_v25 = vpop.f32.mrf.mxu1  ;;  %21981 = vmatprep.subr.bf16.mxu1 %v24011_v34  ;;  %v24060_v34 = vld [vmem:[%s30230_s1 + $0x2398] sm:$0xff]  }
 0x447   :  { %v16451_v26 = vadd.f32 %v21667_v22, %v28186_v46  ;;  %v21689_v28 = vadd.f32 %v21688_v25, %v21687_v18  ;;  %21960 = vmatpush3.bf16.msra.mxu0 %v24010_v33  ;;  %v24022_v46 = vld [vmem:[%s30230_s1 + $0x2218] sm:$0xff]   ;;  %v24048_v22 = vld [vmem:[%s30230_s1 + $0x23b0] sm:$0xff]   ;;  %v24050_v24 = vld [vmem:[%s30230_s1 + $0x2328] sm:$0xff]  }
 0x448   :  { %v21669_v30 = vpop.f32.mrf.mxu0  ;;  %v21690_v31 = vpop.f32.mrf.mxu1  ;;  %21961 = vmatprep.subr.bf16.mxu0 %v24013_v37  ;;  %v24051_v25 = vld [vmem:[%s30230_s1 + $0x23e8] sm:$0xff]   ;;  %v24059_v33 = vld [vmem:[%s30230_s1 + $0x23d8] sm:$0xff]   ;;  %v24063_v37 = vld [vmem:[%s30230_s1 + $0x23d0] sm:$0xff]  }
 0x449   :  { %v28291_v32 = vadd.f32 %v21689_v28, %v16451_v26  ;;  %21982 = vmatpush3.bf16.msra.mxu1 %v24012_v36  ;;  %v24052_v26 = vld [vmem:[%s30230_s1 + $0x23a8] sm:$0xff]   ;;  %v24054_v28 = vld [vmem:[%s30230_s1 + $0x2320] sm:$0xff]   ;;  %v24057_v31 = vld [vmem:[%s30230_s1 + $0x2358] sm:$0xff]  }
 0x44a   :  { %v21691_v35 = vpop.f32.mrf.mxu1  ;;  %21983 = vmatprep.subr.bf16.mxu1 %v24015_v39  ;;  %v24056_v30 = vld [vmem:[%s30230_s1 + $0x23a0] sm:$0xff]   ;;  %v24062_v36 = vld [vmem:[%s30230_s1 + $0x2310] sm:$0xff]   ;;  %v24065_v39 = vld [vmem:[%s30230_s1 + $0x2348] sm:$0xff]  }
 0x44b   :  { %21962 = vmatpush3.bf16.msra.mxu0 %v24014_v38  ;;  %v24061_v35 = vld [vmem:[%s30230_s1 + $0x2350] sm:$0xff]  }
 0x44c   :  { %21963 = vmatprep.subr.bf16.mxu0 %v24017_v41  ;;  %v24064_v38 = vld [vmem:[%s30230_s1 + $0x2390] sm:$0xff]   ;;  %v24067_v41 = vld [vmem:[%s30230_s1 + $0x23c8] sm:$0xff]  }
 0x44d   :  { %21984 = vmatpush3.bf16.msra.mxu1 %v24016_v40  ;;  %v24066_v40 = vld [vmem:[%s30230_s1 + $0x2308] sm:$0xff]  }
 0x44e   :  { %21985 = vmatprep.subr.bf16.mxu1 %v24019_v43  ;;  %v24069_v43 = vld [vmem:[%s30230_s1 + $0x2340] sm:$0xff]  }
 0x44f   :  { %21964 = vmatpush3.bf16.msra.mxu0 %v24018_v42  ;;  %v24068_v42 = vld [vmem:[%s30230_s1 + $0x2388] sm:$0xff]  }
 0x450   :  { %21965 = vmatprep.subr.bf16.mxu0 %v24021_v45  ;;  %v24071_v45 = vld [vmem:[%s30230_s1 + $0x23c0] sm:$0xff]  }
 0x451   :  { %21986 = vmatpush3.bf16.msra.mxu1 %v24020_v44  ;;  %v24070_v44 = vld [vmem:[%s30230_s1 + $0x2300] sm:$0xff]  }
 0x452   :  { %21987 = vmatprep.subr.bf16.mxu1 %v24023_v47 }
 0x453   :  { %21966 = vmatpush3.bf16.msra.mxu0 %v24022_v46  ;;  %v92_v46 = vld [vmem:[%s30229_s0 + $0x230] sm:$0xff] }
 0x454   :  { %21967 = vmatprep.subr.bf16.mxu0 %v24025_v49  ;;  %v18716_v49 = vcombine.high %v92_v46, %v92_v46 }
 0x455   :  { %21988 = vmatpush3.bf16.msra.mxu1 %v24024_v48  ;;  %v18715_v48 = vcombine.low %v92_v46, %v92_v46 }
 0x456   :  { %21989 = vmatprep.subr.bf16.mxu1 %v24027_v51  ;;  %v24075_v51 = vld [vmem:[%s30230_s1 + $0x2478] sm:$0xff]  }
 0x457   :  { %21968 = vmatpush3.bf16.msra.mxu0 %v24026_v50  ;;  %v24074_v50 = vld [vmem:[%s30230_s1 + $0x2380] sm:$0xff]  }
 0x458   :  { %21969 = vmatprep.subr.bf16.mxu0 %v24029_v53  ;;  %v93_v53 = vld [vmem:[%s30229_s0 + $0x238] sm:$0xff] }
 0x459   :  { %21990 = vmatpush3.bf16.msra.mxu1 %v24028_v52 }
 0x45a   :  { %21991 = vmatprep.subr.bf16.mxu1 %v24031_v55 }
 0x45b   :  { %21970 = vmatpush3.bf16.msra.mxu0 %v24030_v54 }
 0x45c   :  { %21971 = vmatprep.subr.bf16.mxu0 %v24033_v57  ;;  %v18718_v57 = vcombine.high %v93_v53, %v93_v53 }
 0x45d   :  { %21992 = vmatpush3.bf16.msra.mxu1 %v24032_v56  ;;  %v18717_v56 = vcombine.low %v93_v53, %v93_v53 }
 0x45e   :  { %21993 = vmatprep.subr.bf16.mxu1 %v24035_v59 }
 0x45f   :  { %21972 = vmatpush3.bf16.msra.mxu0 %v24034_v58  ;;  %v24078_v58 = vld [vmem:[%s30230_s1 + $0x2438] sm:$0xff]  }
 0x460   :  { %22001 = vmatprep.subr.bf16.mxu0 %v24039_v1 }
 0x461   :  { %21994 = vmatpush3.bf16.msra.mxu1 %v24038_v0 }
 0x462   :  { %v21709_v61 = vpop.f32.mrf.mxu0  ;;  %17009 = vmatmul.mubr.bf16.vlgmr.msra.gmra.mxu0 %v18711_v62  ;;  %22023 = vmatprep.subr.bf16.mxu1 %v24043_v9  ;;  %v24085_v9 = vld [vmem:[%s30230_s1 + $0x2468] sm:$0xff]  }
 0x463   :  { %22002 = vmatpush3.bf16.msra.mxu0 %v24042_v7  ;;  %17088 = vmatprep.mubr.bf16.mxu0 %v18716_v49  ;;  %v24116_v49 = vld [vmem:[%s30230_s1 + $0x25b8] sm:$0xff]  }
 0x464   :  { %v21710_v3 = vpop.f32.mrf.mxu0  ;;  %v21731_v4 = vpop.f32.mrf.mxu1  ;;  %17049 = vmatmul.mubr.bf16.vlgmr.msra.gmra.mxu1 %v18713_v5  ;;  %22003 = vmatprep.subr.bf16.mxu0 %v24045_v15  ;;  %v24082_v5 = vld [vmem:[%s30230_s1 + $0x2430] sm:$0xff]   ;;  %v24091_v15 = vld [vmem:[%s30230_s1 + $0x24e0] sm:$0xff]  }
 0x465   :  { %v21711_v8 = vadd.f32 %v21710_v3, %v21709_v61  ;;  %22024 = vmatpush3.bf16.msra.mxu1 %v24044_v13  ;;  %v24079_v61 = vld [vmem:[%s30230_s1 + $0x24f8] sm:$0xff]   ;;  %17128 = vmatprep.mubr.bf16.mxu1 %v18718_v57  ;;  %v24089_v13 = vld [vmem:[%s30230_s1 + $0x2460] sm:$0xff]  }
 0x466   :  { %v21712_v10 = vpop.f32.mrf.mxu0  ;;  %v21732_v11 = vpop.f32.mrf.mxu1  ;;  %22025 = vmatprep.subr.bf16.mxu1 %v24047_v20  ;;  %v24096_v20 = vld [vmem:[%s30230_s1 + $0x2498] sm:$0xff]  }
 0x467   :  { %v16531_v12 = vadd.f32 %v21711_v8, %v28291_v32  ;;  %v21733_v14 = vadd.f32 %v21732_v11, %v21731_v4  ;;  %22004 = vmatpush3.bf16.msra.mxu0 %v24046_v19  ;;  %v24058_v32 = vld [vmem:[%s30230_s1 + $0x2318] sm:$0xff]   ;;  %v24084_v8 = vld [vmem:[%s30230_s1 + $0x24b0] sm:$0xff]   ;;  %v24086_v10 = vld [vmem:[%s30230_s1 + $0x2428] sm:$0xff]  }
 0x468   :  { %v21713_v16 = vpop.f32.mrf.mxu0  ;;  %v21734_v17 = vpop.f32.mrf.mxu1  ;;  %22005 = vmatprep.subr.bf16.mxu0 %v24049_v23  ;;  %v24087_v11 = vld [vmem:[%s30230_s1 + $0x24e8] sm:$0xff]   ;;  %v24095_v19 = vld [vmem:[%s30230_s1 + $0x24d8] sm:$0xff]   ;;  %v24099_v23 = vld [vmem:[%s30230_s1 + $0x24d0] sm:$0xff]  }
 0x469   :  { %v28396_v18 = vadd.f32 %v21733_v14, %v16531_v12  ;;  %22026 = vmatpush3.bf16.msra.mxu1 %v24048_v22  ;;  %v24088_v12 = vld [vmem:[%s30230_s1 + $0x24a8] sm:$0xff]   ;;  %v24090_v14 = vld [vmem:[%s30230_s1 + $0x2420] sm:$0xff]   ;;  %v24093_v17 = vld [vmem:[%s30230_s1 + $0x2458] sm:$0xff]  }
 0x46a   :  { %v21735_v21 = vpop.f32.mrf.mxu1  ;;  %22027 = vmatprep.subr.bf16.mxu1 %v24051_v25  ;;  %v24092_v16 = vld [vmem:[%s30230_s1 + $0x24a0] sm:$0xff]   ;;  %v24098_v22 = vld [vmem:[%s30230_s1 + $0x2410] sm:$0xff]   ;;  %v24101_v25 = vld [vmem:[%s30230_s1 + $0x2448] sm:$0xff]  }
 0x46b   :  { %22006 = vmatpush3.bf16.msra.mxu0 %v24050_v24  ;;  %v24097_v21 = vld [vmem:[%s30230_s1 + $0x2450] sm:$0xff]  }
 0x46c   :  { %22007 = vmatprep.subr.bf16.mxu0 %v24053_v27  ;;  %v24100_v24 = vld [vmem:[%s30230_s1 + $0x2490] sm:$0xff]   ;;  %v24103_v27 = vld [vmem:[%s30230_s1 + $0x24c8] sm:$0xff]  }
 0x46d   :  { %22028 = vmatpush3.bf16.msra.mxu1 %v24052_v26  ;;  %v24102_v26 = vld [vmem:[%s30230_s1 + $0x2408] sm:$0xff]  }
 0x46e   :  { %22029 = vmatprep.subr.bf16.mxu1 %v24055_v29  ;;  %v24105_v29 = vld [vmem:[%s30230_s1 + $0x2440] sm:$0xff]  }
 0x46f   :  { %22008 = vmatpush3.bf16.msra.mxu0 %v24054_v28  ;;  %v24104_v28 = vld [vmem:[%s30230_s1 + $0x2488] sm:$0xff]  }
 0x470   :  { %22009 = vmatprep.subr.bf16.mxu0 %v24057_v31  ;;  %v24107_v31 = vld [vmem:[%s30230_s1 + $0x24c0] sm:$0xff]  }
 0x471   :  { %22030 = vmatpush3.bf16.msra.mxu1 %v24056_v30  ;;  %v24106_v30 = vld [vmem:[%s30230_s1 + $0x2400] sm:$0xff]  }
 0x472   :  { %22031 = vmatprep.subr.bf16.mxu1 %v24059_v33 }
 0x473   :  { %22010 = vmatpush3.bf16.msra.mxu0 %v24058_v32  ;;  %v94_v32 = vld [vmem:[%s30229_s0 + $0x240] sm:$0xff] }
 0x474   :  { %22011 = vmatprep.subr.bf16.mxu0 %v24061_v35  ;;  %v18720_v35 = vcombine.high %v94_v32, %v94_v32 }
 0x475   :  { %22032 = vmatpush3.bf16.msra.mxu1 %v24060_v34  ;;  %v18719_v34 = vcombine.low %v94_v32, %v94_v32 }
 0x476   :  { %22033 = vmatprep.subr.bf16.mxu1 %v24063_v37  ;;  %v24111_v37 = vld [vmem:[%s30230_s1 + $0x2578] sm:$0xff]  }
 0x477   :  { %22012 = vmatpush3.bf16.msra.mxu0 %v24062_v36  ;;  %v24110_v36 = vld [vmem:[%s30230_s1 + $0x2480] sm:$0xff]  }
 0x478   :  { %22013 = vmatprep.subr.bf16.mxu0 %v24065_v39 }
 0x479   :  { %22034 = vmatpush3.bf16.msra.mxu1 %v24064_v38  ;;  %v95_v38 = vld [vmem:[%s30229_s0 + $0x248] sm:$0xff] }
 0x47a   :  { %22035 = vmatprep.subr.bf16.mxu1 %v24067_v41  ;;  %v18721_v41 = vcombine.low %v95_v38, %v95_v38 }
 0x47b   :  { %22014 = vmatpush3.bf16.msra.mxu0 %v24066_v40 }
 0x47c   :  { %22015 = vmatprep.subr.bf16.mxu0 %v24069_v43  ;;  %v24114_v43 = vld [vmem:[%s30230_s1 + $0x2538] sm:$0xff]  }
 0x47d   :  { %22036 = vmatpush3.bf16.msra.mxu1 %v24068_v42  ;;  %v18722_v42 = vcombine.high %v95_v38, %v95_v38 }
 0x47e   :  { %22037 = vmatprep.subr.bf16.mxu1 %v24071_v45  ;;  %v24115_v45 = vld [vmem:[%s30230_s1 + $0x25f8] sm:$0xff]  }
 0x47f   :  { %22016 = vmatpush3.bf16.msra.mxu0 %v24070_v44 }
 0x480   :  { %22045 = vmatprep.subr.bf16.mxu0 %v24075_v51  ;;  %v24117_v51 = vld [vmem:[%s30230_s1 + $0x2570] sm:$0xff]  }
 0x481   :  { %22038 = vmatpush3.bf16.msra.mxu1 %v24074_v50 }
 0x482   :  { %v21753_v47 = vpop.f32.mrf.mxu0  ;;  %17089 = vmatmul.mubr.bf16.vlgmr.msra.gmra.mxu0 %v18715_v48  ;;  %22067 = vmatprep.subr.bf16.mxu1 %v24079_v61  ;;  %v24123_v61 = vld [vmem:[%s30230_s1 + $0x25e8] sm:$0xff]  }
 0x483   :  { %22046 = vmatpush3.bf16.msra.mxu0 %v24078_v58  ;;  %17168 = vmatprep.mubr.bf16.mxu0 %v18720_v35  ;;  %v24120_v58 = vld [vmem:[%s30230_s1 + $0x25b0] sm:$0xff]   ;;  %v24152_v35 = vld [vmem:[%s30230_s1 + $0x26b8] sm:$0xff]  }
 0x484   :  { %v21754_v52 = vpop.f32.mrf.mxu0  ;;  %v21775_v55 = vpop.f32.mrf.mxu1  ;;  %17129 = vmatmul.mubr.bf16.vlgmr.msra.gmra.mxu1 %v18717_v56  ;;  %22047 = vmatprep.subr.bf16.mxu0 %v24081_v2  ;;  %v24119_v56 = vld [vmem:[%s30230_s1 + $0x25f0] sm:$0xff]   ;;  %v24128_v2 = vld [vmem:[%s30230_s1 + $0x25a0] sm:$0xff]  }
 0x485   :  { %v21755_v54 = vadd.f32 %v21754_v52, %v21753_v47  ;;  %22068 = vmatpush3.bf16.msra.mxu1 %v24080_v63  ;;  %17208 = vmatprep.mubr.bf16.mxu1 %v18722_v42  ;;  %v24125_v63 = vld [vmem:[%s30230_s1 + $0x2560] sm:$0xff]   ;;  %v24155_v42 = vld [vmem:[%s30230_s1 + $0x26f0] sm:$0xff]  }
 0x486   :  { %v21756_v59 = vpop.f32.mrf.mxu0  ;;  %v21776_v62 = vpop.f32.mrf.mxu1  ;;  %22069 = vmatprep.subr.bf16.mxu1 %v24083_v6  ;;  %v24132_v6 = vld [vmem:[%s30230_s1 + $0x2598] sm:$0xff]  }
 0x487   :  { %v16611_v60 = vadd.f32 %v21755_v54, %v28396_v18  ;;  %v21777_v0 = vadd.f32 %v21776_v62, %v21775_v55  ;;  %22048 = vmatpush3.bf16.msra.mxu0 %v24082_v5  ;;  %v24094_v18 = vld [vmem:[%s30230_s1 + $0x2418] sm:$0xff]   ;;  %v24118_v55 = vld [vmem:[%s30230_s1 + $0x2530] sm:$0xff]   ;;  %v24121_v59 = vld [vmem:[%s30230_s1 + $0x2568] sm:$0xff]  }
 0x488   :  { %v21757_v1 = vpop.f32.mrf.mxu0  ;;  %v21778_v3 = vpop.f32.mrf.mxu1  ;;  %22049 = vmatprep.subr.bf16.mxu0 %v24085_v9  ;;  %v24124_v62 = vld [vmem:[%s30230_s1 + $0x25a8] sm:$0xff]   ;;  %v24131_v5 = vld [vmem:[%s30230_s1 + $0x25d8] sm:$0xff]   ;;  %v24135_v9 = vld [vmem:[%s30230_s1 + $0x25d0] sm:$0xff]  }
 0x489   :  { %v28501_v4 = vadd.f32 %v21777_v0, %v16611_v60  ;;  %22070 = vmatpush3.bf16.msra.mxu1 %v24084_v8  ;;  %v24122_v60 = vld [vmem:[%s30230_s1 + $0x2528] sm:$0xff]   ;;  %v24126_v0 = vld [vmem:[%s30230_s1 + $0x2520] sm:$0xff]   ;;  %v24129_v3 = vld [vmem:[%s30230_s1 + $0x2558] sm:$0xff]  }
 0x48a   :  { %v21779_v7 = vpop.f32.mrf.mxu1  ;;  %22071 = vmatprep.subr.bf16.mxu1 %v24087_v11  ;;  %v24127_v1 = vld [vmem:[%s30230_s1 + $0x25e0] sm:$0xff]   ;;  %v24134_v8 = vld [vmem:[%s30230_s1 + $0x2510] sm:$0xff]   ;;  %v24137_v11 = vld [vmem:[%s30230_s1 + $0x2548] sm:$0xff]  }
 0x48b   :  { %22050 = vmatpush3.bf16.msra.mxu0 %v24086_v10  ;;  %v24133_v7 = vld [vmem:[%s30230_s1 + $0x2550] sm:$0xff]  }
 0x48c   :  { %22051 = vmatprep.subr.bf16.mxu0 %v24089_v13  ;;  %v24136_v10 = vld [vmem:[%s30230_s1 + $0x2590] sm:$0xff]   ;;  %v24139_v13 = vld [vmem:[%s30230_s1 + $0x25c8] sm:$0xff]  }
 0x48d   :  { %22072 = vmatpush3.bf16.msra.mxu1 %v24088_v12  ;;  %v24138_v12 = vld [vmem:[%s30230_s1 + $0x2508] sm:$0xff]  }
 0x48e   :  { %22073 = vmatprep.subr.bf16.mxu1 %v24091_v15  ;;  %v24141_v15 = vld [vmem:[%s30230_s1 + $0x2540] sm:$0xff]  }
 0x48f   :  { %22052 = vmatpush3.bf16.msra.mxu0 %v24090_v14  ;;  %v24140_v14 = vld [vmem:[%s30230_s1 + $0x2588] sm:$0xff]  }
 0x490   :  { %22053 = vmatprep.subr.bf16.mxu0 %v24093_v17  ;;  %v24143_v17 = vld [vmem:[%s30230_s1 + $0x25c0] sm:$0xff]  }
 0x491   :  { %22074 = vmatpush3.bf16.msra.mxu1 %v24092_v16  ;;  %v24142_v16 = vld [vmem:[%s30230_s1 + $0x2500] sm:$0xff]  }
 0x492   :  { %22075 = vmatprep.subr.bf16.mxu1 %v24095_v19 }
 0x493   :  { %22054 = vmatpush3.bf16.msra.mxu0 %v24094_v18  ;;  %v96_v18 = vld [vmem:[%s30229_s0 + $0x250] sm:$0xff] }
 0x494   :  { %22055 = vmatprep.subr.bf16.mxu0 %v24097_v21  ;;  %v18724_v21 = vcombine.high %v96_v18, %v96_v18 }
 0x495   :  { %22076 = vmatpush3.bf16.msra.mxu1 %v24096_v20  ;;  %v18723_v20 = vcombine.low %v96_v18, %v96_v18 }
 0x496   :  { %22077 = vmatprep.subr.bf16.mxu1 %v24099_v23  ;;  %v24147_v23 = vld [vmem:[%s30230_s1 + $0x2678] sm:$0xff]  }
 0x497   :  { %22056 = vmatpush3.bf16.msra.mxu0 %v24098_v22  ;;  %v24146_v22 = vld [vmem:[%s30230_s1 + $0x2580] sm:$0xff]  }
 0x498   :  { %22057 = vmatprep.subr.bf16.mxu0 %v24101_v25 }
 0x499   :  { %22078 = vmatpush3.bf16.msra.mxu1 %v24100_v24  ;;  %v97_v24 = vld [vmem:[%s30229_s0 + $0x258] sm:$0xff] }
 0x49a   :  { %22079 = vmatprep.subr.bf16.mxu1 %v24103_v27  ;;  %v18725_v27 = vcombine.low %v97_v24, %v97_v24 }
 0x49b   :  { %22058 = vmatpush3.bf16.msra.mxu0 %v24102_v26 }
 0x49c   :  { %22059 = vmatprep.subr.bf16.mxu0 %v24105_v29  ;;  %v24150_v29 = vld [vmem:[%s30230_s1 + $0x2638] sm:$0xff]  }
 0x49d   :  { %22080 = vmatpush3.bf16.msra.mxu1 %v24104_v28  ;;  %v18726_v28 = vcombine.high %v97_v24, %v97_v24  ;;  %v24189_v24 = vld [vmem:[%s30230_s1 + $0x2770] sm:$0xff]  }
 0x49e   :  { %22081 = vmatprep.subr.bf16.mxu1 %v24107_v31  ;;  %v24151_v31 = vld [vmem:[%s30230_s1 + $0x26f8] sm:$0xff]  }
 0x49f   :  { %22060 = vmatpush3.bf16.msra.mxu0 %v24106_v30 }
 0x4a0   :  { %22089 = vmatprep.subr.bf16.mxu0 %v24111_v37  ;;  %v24153_v37 = vld [vmem:[%s30230_s1 + $0x2670] sm:$0xff]  }
 0x4a1   :  { %22082 = vmatpush3.bf16.msra.mxu1 %v24110_v36 }
 0x4a2   :  { %v21797_v33 = vpop.f32.mrf.mxu0  ;;  %17169 = vmatmul.mubr.bf16.vlgmr.msra.gmra.mxu0 %v18719_v34  ;;  %22111 = vmatprep.subr.bf16.mxu1 %v24115_v45  ;;  %v24157_v45 = vld [vmem:[%s30230_s1 + $0x2668] sm:$0xff]  }
 0x4a3   :  { %22090 = vmatpush3.bf16.msra.mxu0 %v24114_v43  ;;  %17248 = vmatprep.mubr.bf16.mxu0 %v18724_v21  ;;  %v24188_v21 = vld [vmem:[%s30230_s1 + $0x27b8] sm:$0xff]  }
 0x4a4   :  { %v21798_v39 = vpop.f32.mrf.mxu0  ;;  %v21819_v40 = vpop.f32.mrf.mxu1  ;;  %17209 = vmatmul.mubr.bf16.vlgmr.msra.gmra.mxu1 %v18721_v41  ;;  %22091 = vmatprep.subr.bf16.mxu0 %v24117_v51  ;;  %v24154_v41 = vld [vmem:[%s30230_s1 + $0x2630] sm:$0xff]   ;;  %v24163_v51 = vld [vmem:[%s30230_s1 + $0x26e0] sm:$0xff]  }
 0x4a5   :  { %v21799_v44 = vadd.f32 %v21798_v39, %v21797_v33  ;;  %22112 = vmatpush3.bf16.msra.mxu1 %v24116_v49  ;;  %17288 = vmatprep.mubr.bf16.mxu1 %v18726_v28  ;;  %v24161_v49 = vld [vmem:[%s30230_s1 + $0x2660] sm:$0xff]   ;;  %v24191_v28 = vld [vmem:[%s30230_s1 + $0x27f0] sm:$0xff]  }
 0x4a6   :  { %v21800_v46 = vpop.f32.mrf.mxu0  ;;  %v21820_v47 = vpop.f32.mrf.mxu1  ;;  %22113 = vmatprep.subr.bf16.mxu1 %v24119_v56  ;;  %v24168_v56 = vld [vmem:[%s30230_s1 + $0x2698] sm:$0xff]  }
 0x4a7   :  { %v16691_v48 = vadd.f32 %v21799_v44, %v28501_v4  ;;  %v21821_v50 = vadd.f32 %v21820_v47, %v21819_v40  ;;  %22092 = vmatpush3.bf16.msra.mxu0 %v24118_v55  ;;  %v24130_v4 = vld [vmem:[%s30230_s1 + $0x2518] sm:$0xff]   ;;  %v24156_v44 = vld [vmem:[%s30230_s1 + $0x26b0] sm:$0xff]   ;;  %v24158_v46 = vld [vmem:[%s30230_s1 + $0x2628] sm:$0xff]  }
 0x4a8   :  { %v21801_v52 = vpop.f32.mrf.mxu0  ;;  %v21822_v53 = vpop.f32.mrf.mxu1  ;;  %22093 = vmatprep.subr.bf16.mxu0 %v24121_v59  ;;  %v24159_v47 = vld [vmem:[%s30230_s1 + $0x26e8] sm:$0xff]   ;;  %v24167_v55 = vld [vmem:[%s30230_s1 + $0x26d8] sm:$0xff]   ;;  %v24171_v59 = vld [vmem:[%s30230_s1 + $0x26d0] sm:$0xff]  }
 0x4a9   :  { %v28606_v54 = vadd.f32 %v21821_v50, %v16691_v48  ;;  %22114 = vmatpush3.bf16.msra.mxu1 %v24120_v58  ;;  %v24160_v48 = vld [vmem:[%s30230_s1 + $0x26a8] sm:$0xff]   ;;  %v24162_v50 = vld [vmem:[%s30230_s1 + $0x2620] sm:$0xff]   ;;  %v24165_v53 = vld [vmem:[%s30230_s1 + $0x2658] sm:$0xff]  }
 0x4aa   :  { %v21823_v57 = vpop.f32.mrf.mxu1  ;;  %22115 = vmatprep.subr.bf16.mxu1 %v24123_v61  ;;  %v24164_v52 = vld [vmem:[%s30230_s1 + $0x26a0] sm:$0xff]   ;;  %v24170_v58 = vld [vmem:[%s30230_s1 + $0x2610] sm:$0xff]   ;;  %v24173_v61 = vld [vmem:[%s30230_s1 + $0x2648] sm:$0xff]  }
 0x4ab   :  { %22094 = vmatpush3.bf16.msra.mxu0 %v24122_v60  ;;  %v24169_v57 = vld [vmem:[%s30230_s1 + $0x2650] sm:$0xff]  }
 0x4ac   :  { %22095 = vmatprep.subr.bf16.mxu0 %v24125_v63  ;;  %v24172_v60 = vld [vmem:[%s30230_s1 + $0x2690] sm:$0xff]   ;;  %v24175_v63 = vld [vmem:[%s30230_s1 + $0x26c8] sm:$0xff]  }
 0x4ad   :  { %22116 = vmatpush3.bf16.msra.mxu1 %v24124_v62  ;;  %v24174_v62 = vld [vmem:[%s30230_s1 + $0x2608] sm:$0xff]  }
 0x4ae   :  { %22117 = vmatprep.subr.bf16.mxu1 %v24127_v1  ;;  %v24177_v1 = vld [vmem:[%s30230_s1 + $0x2640] sm:$0xff]  }
 0x4af   :  { %22096 = vmatpush3.bf16.msra.mxu0 %v24126_v0  ;;  %v24176_v0 = vld [vmem:[%s30230_s1 + $0x2688] sm:$0xff]  }
 0x4b0   :  { %22097 = vmatprep.subr.bf16.mxu0 %v24129_v3  ;;  %v24179_v3 = vld [vmem:[%s30230_s1 + $0x26c0] sm:$0xff]  }
 0x4b1   :  { %22118 = vmatpush3.bf16.msra.mxu1 %v24128_v2  ;;  %v24178_v2 = vld [vmem:[%s30230_s1 + $0x2600] sm:$0xff]  }
 0x4b2   :  { %22119 = vmatprep.subr.bf16.mxu1 %v24131_v5 }
 0x4b3   :  { %22098 = vmatpush3.bf16.msra.mxu0 %v24130_v4  ;;  %v98_v4 = vld [vmem:[%s30229_s0 + $0x260] sm:$0xff] }
 0x4b4   :  { %22099 = vmatprep.subr.bf16.mxu0 %v24133_v7  ;;  %v18728_v7 = vcombine.high %v98_v4, %v98_v4 }
 0x4b5   :  { %22120 = vmatpush3.bf16.msra.mxu1 %v24132_v6  ;;  %v18727_v6 = vcombine.low %v98_v4, %v98_v4 }
 0x4b6   :  { %22121 = vmatprep.subr.bf16.mxu1 %v24135_v9  ;;  %v24183_v9 = vld [vmem:[%s30230_s1 + $0x2778] sm:$0xff]  }
 0x4b7   :  { %22100 = vmatpush3.bf16.msra.mxu0 %v24134_v8  ;;  %v24182_v8 = vld [vmem:[%s30230_s1 + $0x2680] sm:$0xff]  }
 0x4b8   :  { %22101 = vmatprep.subr.bf16.mxu0 %v24137_v11  ;;  %v99_v11 = vld [vmem:[%s30229_s0 + $0x268] sm:$0xff] }
 0x4b9   :  { %22122 = vmatpush3.bf16.msra.mxu1 %v24136_v10 }
 0x4ba   :  { %22123 = vmatprep.subr.bf16.mxu1 %v24139_v13 }
 0x4bb   :  { %22102 = vmatpush3.bf16.msra.mxu0 %v24138_v12 }
 0x4bc   :  { %22103 = vmatprep.subr.bf16.mxu0 %v24141_v15  ;;  %v18730_v15 = vcombine.high %v99_v11, %v99_v11 }
 0x4bd   :  { %22124 = vmatpush3.bf16.msra.mxu1 %v24140_v14  ;;  %v18729_v14 = vcombine.low %v99_v11, %v99_v11 }
 0x4be   :  { %22125 = vmatprep.subr.bf16.mxu1 %v24143_v17 }
 0x4bf   :  { %22104 = vmatpush3.bf16.msra.mxu0 %v24142_v16  ;;  %v24186_v16 = vld [vmem:[%s30230_s1 + $0x2738] sm:$0xff]  }
 0x4c0   :  { %22133 = vmatprep.subr.bf16.mxu0 %v24147_v23 }
 0x4c1   :  { %22126 = vmatpush3.bf16.msra.mxu1 %v24146_v22 }
 0x4c2   :  { %v21841_v19 = vpop.f32.mrf.mxu0  ;;  %17249 = vmatmul.mubr.bf16.vlgmr.msra.gmra.mxu0 %v18723_v20  ;;  %22155 = vmatprep.subr.bf16.mxu1 %v24151_v31  ;;  %v24193_v31 = vld [vmem:[%s30230_s1 + $0x2768] sm:$0xff]  }
 0x4c3   :  { %22134 = vmatpush3.bf16.msra.mxu0 %v24150_v29  ;;  %17328 = vmatprep.mubr.bf16.mxu0 %v18728_v7  ;;  %v24224_v7 = vld [vmem:[%s30230_s1 + $0x28b8] sm:$0xff]  }
 0x4c4   :  { %v21842_v25 = vpop.f32.mrf.mxu0  ;;  %v21863_v26 = vpop.f32.mrf.mxu1  ;;  %17289 = vmatmul.mubr.bf16.vlgmr.msra.gmra.mxu1 %v18725_v27  ;;  %22135 = vmatprep.subr.bf16.mxu0 %v24153_v37  ;;  %v24190_v27 = vld [vmem:[%s30230_s1 + $0x2730] sm:$0xff]   ;;  %v24199_v37 = vld [vmem:[%s30230_s1 + $0x27e0] sm:$0xff]  }
 0x4c5   :  { %v21843_v30 = vadd.f32 %v21842_v25, %v21841_v19  ;;  %22156 = vmatpush3.bf16.msra.mxu1 %v24152_v35  ;;  %v24187_v19 = vld [vmem:[%s30230_s1 + $0x27f8] sm:$0xff]   ;;  %17368 = vmatprep.mubr.bf16.mxu1 %v18730_v15  ;;  %v24197_v35 = vld [vmem:[%s30230_s1 + $0x2760] sm:$0xff]  }
 0x4c6   :  { %v21844_v32 = vpop.f32.mrf.mxu0  ;;  %v21864_v33 = vpop.f32.mrf.mxu1  ;;  %22157 = vmatprep.subr.bf16.mxu1 %v24155_v42  ;;  %v24204_v42 = vld [vmem:[%s30230_s1 + $0x2798] sm:$0xff]  }
 0x4c7   :  { %v16771_v34 = vadd.f32 %v21843_v30, %v28606_v54  ;;  %v21865_v36 = vadd.f32 %v21864_v33, %v21863_v26  ;;  %22136 = vmatpush3.bf16.msra.mxu0 %v24154_v41  ;;  %v24166_v54 = vld [vmem:[%s30230_s1 + $0x2618] sm:$0xff]   ;;  %v24192_v30 = vld [vmem:[%s30230_s1 + $0x27b0] sm:$0xff]   ;;  %v24194_v32 = vld [vmem:[%s30230_s1 + $0x2728] sm:$0xff]  }
 0x4c8   :  { %v21845_v38 = vpop.f32.mrf.mxu0  ;;  %v21866_v39 = vpop.f32.mrf.mxu1  ;;  %22137 = vmatprep.subr.bf16.mxu0 %v24157_v45  ;;  %v24195_v33 = vld [vmem:[%s30230_s1 + $0x27e8] sm:$0xff]   ;;  %v24203_v41 = vld [vmem:[%s30230_s1 + $0x27d8] sm:$0xff]   ;;  %v24207_v45 = vld [vmem:[%s30230_s1 + $0x27d0] sm:$0xff]  }
 0x4c9   :  { %v28711_v40 = vadd.f32 %v21865_v36, %v16771_v34  ;;  %22158 = vmatpush3.bf16.msra.mxu1 %v24156_v44  ;;  %v24196_v34 = vld [vmem:[%s30230_s1 + $0x27a8] sm:$0xff]   ;;  %v24198_v36 = vld [vmem:[%s30230_s1 + $0x2720] sm:$0xff]   ;;  %v24201_v39 = vld [vmem:[%s30230_s1 + $0x2758] sm:$0xff]  }
 0x4ca   :  { %v21867_v43 = vpop.f32.mrf.mxu1  ;;  %22159 = vmatprep.subr.bf16.mxu1 %v24159_v47  ;;  %v24200_v38 = vld [vmem:[%s30230_s1 + $0x27a0] sm:$0xff]   ;;  %v24206_v44 = vld [vmem:[%s30230_s1 + $0x2710] sm:$0xff]   ;;  %v24209_v47 = vld [vmem:[%s30230_s1 + $0x2748] sm:$0xff]  }
 0x4cb   :  { %22138 = vmatpush3.bf16.msra.mxu0 %v24158_v46  ;;  %v24205_v43 = vld [vmem:[%s30230_s1 + $0x2750] sm:$0xff]  }
 0x4cc   :  { %22139 = vmatprep.subr.bf16.mxu0 %v24161_v49  ;;  %v24208_v46 = vld [vmem:[%s30230_s1 + $0x2790] sm:$0xff]   ;;  %v24211_v49 = vld [vmem:[%s30230_s1 + $0x27c8] sm:$0xff]  }
 0x4cd   :  { %22160 = vmatpush3.bf16.msra.mxu1 %v24160_v48  ;;  %v24210_v48 = vld [vmem:[%s30230_s1 + $0x2708] sm:$0xff]  }
 0x4ce   :  { %22161 = vmatprep.subr.bf16.mxu1 %v24163_v51  ;;  %v24213_v51 = vld [vmem:[%s30230_s1 + $0x2740] sm:$0xff]  }
 0x4cf   :  { %22140 = vmatpush3.bf16.msra.mxu0 %v24162_v50  ;;  %v24212_v50 = vld [vmem:[%s30230_s1 + $0x2788] sm:$0xff]  }
 0x4d0   :  { %22141 = vmatprep.subr.bf16.mxu0 %v24165_v53  ;;  %v24215_v53 = vld [vmem:[%s30230_s1 + $0x27c0] sm:$0xff]  }
 0x4d1   :  { %22162 = vmatpush3.bf16.msra.mxu1 %v24164_v52  ;;  %v24214_v52 = vld [vmem:[%s30230_s1 + $0x2700] sm:$0xff]  }
 0x4d2   :  { %22163 = vmatprep.subr.bf16.mxu1 %v24167_v55 }
 0x4d3   :  { %22142 = vmatpush3.bf16.msra.mxu0 %v24166_v54  ;;  %v100_v54 = vld [vmem:[%s30229_s0 + $0x270] sm:$0xff] }
 0x4d4   :  { %22143 = vmatprep.subr.bf16.mxu0 %v24169_v57  ;;  %v18732_v57 = vcombine.high %v100_v54, %v100_v54 }
 0x4d5   :  { %22164 = vmatpush3.bf16.msra.mxu1 %v24168_v56  ;;  %v18731_v56 = vcombine.low %v100_v54, %v100_v54 }
 0x4d6   :  { %22165 = vmatprep.subr.bf16.mxu1 %v24171_v59  ;;  %v24219_v59 = vld [vmem:[%s30230_s1 + $0x2878] sm:$0xff]  }
 0x4d7   :  { %22144 = vmatpush3.bf16.msra.mxu0 %v24170_v58  ;;  %v24218_v58 = vld [vmem:[%s30230_s1 + $0x2780] sm:$0xff]  }
 0x4d8   :  { %22145 = vmatprep.subr.bf16.mxu0 %v24173_v61 }
 0x4d9   :  { %22166 = vmatpush3.bf16.msra.mxu1 %v24172_v60  ;;  %v101_v60 = vld [vmem:[%s30229_s0 + $0x278] sm:$0xff] }
 0x4da   :  { %22167 = vmatprep.subr.bf16.mxu1 %v24175_v63  ;;  %v18733_v63 = vcombine.low %v101_v60, %v101_v60 }
 0x4db   :  { %22146 = vmatpush3.bf16.msra.mxu0 %v24174_v62 }
 0x4dc   :  { %22147 = vmatprep.subr.bf16.mxu0 %v24177_v1  ;;  %v24222_v1 = vld [vmem:[%s30230_s1 + $0x2838] sm:$0xff]  }
 0x4dd   :  { %22168 = vmatpush3.bf16.msra.mxu1 %v24176_v0  ;;  %v18734_v0 = vcombine.high %v101_v60, %v101_v60 }
 0x4de   :  { %22169 = vmatprep.subr.bf16.mxu1 %v24179_v3  ;;  %v24223_v3 = vld [vmem:[%s30230_s1 + $0x28f8] sm:$0xff]  }
 0x4df   :  { %22148 = vmatpush3.bf16.msra.mxu0 %v24178_v2 }
 0x4e0   :  { %22177 = vmatprep.subr.bf16.mxu0 %v24183_v9  ;;  %v24225_v9 = vld [vmem:[%s30230_s1 + $0x2870] sm:$0xff]  }
 0x4e1   :  { %22170 = vmatpush3.bf16.msra.mxu1 %v24182_v8 }
 0x4e2   :  { %v21885_v5 = vpop.f32.mrf.mxu0  ;;  %17329 = vmatmul.mubr.bf16.vlgmr.msra.gmra.mxu0 %v18727_v6  ;;  %22199 = vmatprep.subr.bf16.mxu1 %v24187_v19  ;;  %v24231_v19 = vld [vmem:[%s30230_s1 + $0x28e8] sm:$0xff]  }
 0x4e3   :  { %22178 = vmatpush3.bf16.msra.mxu0 %v24186_v16  ;;  %17408 = vmatprep.mubr.bf16.mxu0 %v18732_v57  ;;  %v24228_v16 = vld [vmem:[%s30230_s1 + $0x28b0] sm:$0xff]   ;;  %v24260_v57 = vld [vmem:[%s30230_s1 + $0x29b8] sm:$0xff]  }
 0x4e4   :  { %v21886_v10 = vpop.f32.mrf.mxu0  ;;  %v21907_v13 = vpop.f32.mrf.mxu1  ;;  %17369 = vmatmul.mubr.bf16.vlgmr.msra.gmra.mxu1 %v18729_v14  ;;  %22179 = vmatprep.subr.bf16.mxu0 %v24189_v24  ;;  %v24227_v14 = vld [vmem:[%s30230_s1 + $0x28f0] sm:$0xff]   ;;  %v24236_v24 = vld [vmem:[%s30230_s1 + $0x28a0] sm:$0xff]  }
 0x4e5   :  { %v21887_v12 = vadd.f32 %v21886_v10, %v21885_v5  ;;  %22200 = vmatpush3.bf16.msra.mxu1 %v24188_v21  ;;  %17448 = vmatprep.mubr.bf16.mxu1 %v18734_v0  ;;  %v24233_v21 = vld [vmem:[%s30230_s1 + $0x2860] sm:$0xff]   ;;  %v24263_v0 = vld [vmem:[%s30230_s1 + $0x29f0] sm:$0xff]  }
 0x4e6   :  { %v21888_v17 = vpop.f32.mrf.mxu0  ;;  %v21908_v20 = vpop.f32.mrf.mxu1  ;;  %22201 = vmatprep.subr.bf16.mxu1 %v24191_v28  ;;  %v24240_v28 = vld [vmem:[%s30230_s1 + $0x2898] sm:$0xff]  }
 0x4e7   :  { %v16851_v18 = vadd.f32 %v21887_v12, %v28711_v40  ;;  %v21909_v22 = vadd.f32 %v21908_v20, %v21907_v13  ;;  %22180 = vmatpush3.bf16.msra.mxu0 %v24190_v27  ;;  %v24202_v40 = vld [vmem:[%s30230_s1 + $0x2718] sm:$0xff]   ;;  %v24226_v13 = vld [vmem:[%s30230_s1 + $0x2830] sm:$0xff]   ;;  %v24229_v17 = vld [vmem:[%s30230_s1 + $0x2868] sm:$0xff]  }
 0x4e8   :  { %v21889_v23 = vpop.f32.mrf.mxu0  ;;  %v21910_v25 = vpop.f32.mrf.mxu1  ;;  %22181 = vmatprep.subr.bf16.mxu0 %v24193_v31  ;;  %v24232_v20 = vld [vmem:[%s30230_s1 + $0x28a8] sm:$0xff]   ;;  %v24239_v27 = vld [vmem:[%s30230_s1 + $0x28d8] sm:$0xff]   ;;  %v24243_v31 = vld [vmem:[%s30230_s1 + $0x28d0] sm:$0xff]  }
 0x4e9   :  { %v28816_v26 = vadd.f32 %v21909_v22, %v16851_v18  ;;  %22202 = vmatpush3.bf16.msra.mxu1 %v24192_v30  ;;  %v24230_v18 = vld [vmem:[%s30230_s1 + $0x2828] sm:$0xff]   ;;  %v24234_v22 = vld [vmem:[%s30230_s1 + $0x2820] sm:$0xff]   ;;  %v24237_v25 = vld [vmem:[%s30230_s1 + $0x2858] sm:$0xff]  }
 0x4ea   :  { %v21911_v29 = vpop.f32.mrf.mxu1  ;;  %22203 = vmatprep.subr.bf16.mxu1 %v24195_v33  ;;  %v24235_v23 = vld [vmem:[%s30230_s1 + $0x28e0] sm:$0xff]   ;;  %v24242_v30 = vld [vmem:[%s30230_s1 + $0x2810] sm:$0xff]   ;;  %v24245_v33 = vld [vmem:[%s30230_s1 + $0x2848] sm:$0xff]  }
 0x4eb   :  { %22182 = vmatpush3.bf16.msra.mxu0 %v24194_v32  ;;  %v24241_v29 = vld [vmem:[%s30230_s1 + $0x2850] sm:$0xff]  }
 0x4ec   :  { %22183 = vmatprep.subr.bf16.mxu0 %v24197_v35  ;;  %v24244_v32 = vld [vmem:[%s30230_s1 + $0x2890] sm:$0xff]   ;;  %v24247_v35 = vld [vmem:[%s30230_s1 + $0x28c8] sm:$0xff]  }
 0x4ed   :  { %22204 = vmatpush3.bf16.msra.mxu1 %v24196_v34  ;;  %v24246_v34 = vld [vmem:[%s30230_s1 + $0x2808] sm:$0xff]  }
 0x4ee   :  { %22205 = vmatprep.subr.bf16.mxu1 %v24199_v37  ;;  %v24249_v37 = vld [vmem:[%s30230_s1 + $0x2840] sm:$0xff]  }
 0x4ef   :  { %22184 = vmatpush3.bf16.msra.mxu0 %v24198_v36  ;;  %v24248_v36 = vld [vmem:[%s30230_s1 + $0x2888] sm:$0xff]  }
 0x4f0   :  { %22185 = vmatprep.subr.bf16.mxu0 %v24201_v39  ;;  %v24251_v39 = vld [vmem:[%s30230_s1 + $0x28c0] sm:$0xff]  }
 0x4f1   :  { %22206 = vmatpush3.bf16.msra.mxu1 %v24200_v38  ;;  %v24250_v38 = vld [vmem:[%s30230_s1 + $0x2800] sm:$0xff]  }
 0x4f2   :  { %22207 = vmatprep.subr.bf16.mxu1 %v24203_v41 }
 0x4f3   :  { %22186 = vmatpush3.bf16.msra.mxu0 %v24202_v40  ;;  %v102_v40 = vld [vmem:[%s30229_s0 + $0x280] sm:$0xff] }
 0x4f4   :  { %22187 = vmatprep.subr.bf16.mxu0 %v24205_v43  ;;  %v18736_v43 = vcombine.high %v102_v40, %v102_v40 }
 0x4f5   :  { %22208 = vmatpush3.bf16.msra.mxu1 %v24204_v42  ;;  %v18735_v42 = vcombine.low %v102_v40, %v102_v40 }
 0x4f6   :  { %22209 = vmatprep.subr.bf16.mxu1 %v24207_v45  ;;  %v24255_v45 = vld [vmem:[%s30230_s1 + $0x2978] sm:$0xff]  }
 0x4f7   :  { %22188 = vmatpush3.bf16.msra.mxu0 %v24206_v44  ;;  %v24254_v44 = vld [vmem:[%s30230_s1 + $0x2880] sm:$0xff]  }
 0x4f8   :  { %22189 = vmatprep.subr.bf16.mxu0 %v24209_v47 }
 0x4f9   :  { %22210 = vmatpush3.bf16.msra.mxu1 %v24208_v46  ;;  %v103_v46 = vld [vmem:[%s30229_s0 + $0x288] sm:$0xff] }
 0x4fa   :  { %22211 = vmatprep.subr.bf16.mxu1 %v24211_v49  ;;  %v18737_v49 = vcombine.low %v103_v46, %v103_v46 }
 0x4fb   :  { %22190 = vmatpush3.bf16.msra.mxu0 %v24210_v48 }
 0x4fc   :  { %22191 = vmatprep.subr.bf16.mxu0 %v24213_v51  ;;  %v24258_v51 = vld [vmem:[%s30230_s1 + $0x2938] sm:$0xff]  }
 0x4fd   :  { %22212 = vmatpush3.bf16.msra.mxu1 %v24212_v50  ;;  %v18738_v50 = vcombine.high %v103_v46, %v103_v46  ;;  %v24297_v46 = vld [vmem:[%s30230_s1 + $0x2a70] sm:$0xff]  }
 0x4fe   :  { %22213 = vmatprep.subr.bf16.mxu1 %v24215_v53  ;;  %v24259_v53 = vld [vmem:[%s30230_s1 + $0x29f8] sm:$0xff]  }
 0x4ff   :  { %22192 = vmatpush3.bf16.msra.mxu0 %v24214_v52 }
 0x500   :  { %22221 = vmatprep.subr.bf16.mxu0 %v24219_v59  ;;  %v24261_v59 = vld [vmem:[%s30230_s1 + $0x2970] sm:$0xff]  }
 0x501   :  { %22214 = vmatpush3.bf16.msra.mxu1 %v24218_v58 }
 0x502   :  { %v21929_v55 = vpop.f32.mrf.mxu0  ;;  %17409 = vmatmul.mubr.bf16.vlgmr.msra.gmra.mxu0 %v18731_v56  ;;  %22243 = vmatprep.subr.bf16.mxu1 %v24223_v3  ;;  %v24265_v3 = vld [vmem:[%s30230_s1 + $0x2968] sm:$0xff]  }
 0x503   :  { %22222 = vmatpush3.bf16.msra.mxu0 %v24222_v1  ;;  %17488 = vmatprep.mubr.bf16.mxu0 %v18736_v43  ;;  %v24296_v43 = vld [vmem:[%s30230_s1 + $0x2ab8] sm:$0xff]  }
 0x504   :  { %v21930_v61 = vpop.f32.mrf.mxu0  ;;  %v21951_v62 = vpop.f32.mrf.mxu1  ;;  %17449 = vmatmul.mubr.bf16.vlgmr.msra.gmra.mxu1 %v18733_v63  ;;  %22223 = vmatprep.subr.bf16.mxu0 %v24225_v9  ;;  %v24262_v63 = vld [vmem:[%s30230_s1 + $0x2930] sm:$0xff]   ;;  %v24271_v9 = vld [vmem:[%s30230_s1 + $0x29e0] sm:$0xff]  }
 0x505   :  { %v21931_v2 = vadd.f32 %v21930_v61, %v21929_v55  ;;  %22244 = vmatpush3.bf16.msra.mxu1 %v24224_v7  ;;  %17528 = vmatprep.mubr.bf16.mxu1 %v18738_v50  ;;  %v24269_v7 = vld [vmem:[%s30230_s1 + $0x2960] sm:$0xff]   ;;  %v24299_v50 = vld [vmem:[%s30230_s1 + $0x2af0] sm:$0xff]  }
 0x506   :  { %v21932_v4 = vpop.f32.mrf.mxu0  ;;  %v21952_v5 = vpop.f32.mrf.mxu1  ;;  %22245 = vmatprep.subr.bf16.mxu1 %v24227_v14  ;;  %v24276_v14 = vld [vmem:[%s30230_s1 + $0x2998] sm:$0xff]  }
 0x507   :  { %v16931_v6 = vadd.f32 %v21931_v2, %v28816_v26  ;;  %v21953_v8 = vadd.f32 %v21952_v5, %v21951_v62  ;;  %22224 = vmatpush3.bf16.msra.mxu0 %v24226_v13  ;;  %v24238_v26 = vld [vmem:[%s30230_s1 + $0x2818] sm:$0xff]   ;;  %v24264_v2 = vld [vmem:[%s30230_s1 + $0x29b0] sm:$0xff]   ;;  %v24266_v4 = vld [vmem:[%s30230_s1 + $0x2928] sm:$0xff]  }
 0x508   :  { %v21933_v10 = vpop.f32.mrf.mxu0  ;;  %v21954_v11 = vpop.f32.mrf.mxu1  ;;  %22225 = vmatprep.subr.bf16.mxu0 %v24229_v17  ;;  %v24267_v5 = vld [vmem:[%s30230_s1 + $0x29e8] sm:$0xff]   ;;  %v24275_v13 = vld [vmem:[%s30230_s1 + $0x29d8] sm:$0xff]   ;;  %v24279_v17 = vld [vmem:[%s30230_s1 + $0x29d0] sm:$0xff]  }
 0x509   :  { %v28921_v12 = vadd.f32 %v21953_v8, %v16931_v6  ;;  %22246 = vmatpush3.bf16.msra.mxu1 %v24228_v16  ;;  %v24268_v6 = vld [vmem:[%s30230_s1 + $0x29a8] sm:$0xff]   ;;  %v24270_v8 = vld [vmem:[%s30230_s1 + $0x2920] sm:$0xff]   ;;  %v24273_v11 = vld [vmem:[%s30230_s1 + $0x2958] sm:$0xff]  }
 0x50a   :  { %v21955_v15 = vpop.f32.mrf.mxu1  ;;  %22247 = vmatprep.subr.bf16.mxu1 %v24231_v19  ;;  %v24272_v10 = vld [vmem:[%s30230_s1 + $0x29a0] sm:$0xff]   ;;  %v24278_v16 = vld [vmem:[%s30230_s1 + $0x2910] sm:$0xff]   ;;  %v24281_v19 = vld [vmem:[%s30230_s1 + $0x2948] sm:$0xff]  }
 0x50b   :  { %22226 = vmatpush3.bf16.msra.mxu0 %v24230_v18  ;;  %v24277_v15 = vld [vmem:[%s30230_s1 + $0x2950] sm:$0xff]  }
 0x50c   :  { %22227 = vmatprep.subr.bf16.mxu0 %v24233_v21  ;;  %v24280_v18 = vld [vmem:[%s30230_s1 + $0x2990] sm:$0xff]   ;;  %v24283_v21 = vld [vmem:[%s30230_s1 + $0x29c8] sm:$0xff]  }
 0x50d   :  { %22248 = vmatpush3.bf16.msra.mxu1 %v24232_v20  ;;  %v24282_v20 = vld [vmem:[%s30230_s1 + $0x2908] sm:$0xff]  }
 0x50e   :  { %22249 = vmatprep.subr.bf16.mxu1 %v24235_v23  ;;  %v24285_v23 = vld [vmem:[%s30230_s1 + $0x2940] sm:$0xff]  }
 0x50f   :  { %22228 = vmatpush3.bf16.msra.mxu0 %v24234_v22  ;;  %v24284_v22 = vld [vmem:[%s30230_s1 + $0x2988] sm:$0xff]  }
 0x510   :  { %22229 = vmatprep.subr.bf16.mxu0 %v24237_v25  ;;  %v24287_v25 = vld [vmem:[%s30230_s1 + $0x29c0] sm:$0xff]  }
 0x511   :  { %22250 = vmatpush3.bf16.msra.mxu1 %v24236_v24  ;;  %v24286_v24 = vld [vmem:[%s30230_s1 + $0x2900] sm:$0xff]  }
 0x512   :  { %22251 = vmatprep.subr.bf16.mxu1 %v24239_v27 }
 0x513   :  { %22230 = vmatpush3.bf16.msra.mxu0 %v24238_v26  ;;  %v104_v26 = vld [vmem:[%s30229_s0 + $0x290] sm:$0xff] }
 0x514   :  { %22231 = vmatprep.subr.bf16.mxu0 %v24241_v29  ;;  %v18740_v29 = vcombine.high %v104_v26, %v104_v26 }
 0x515   :  { %22252 = vmatpush3.bf16.msra.mxu1 %v24240_v28  ;;  %v18739_v28 = vcombine.low %v104_v26, %v104_v26 }
 0x516   :  { %22253 = vmatprep.subr.bf16.mxu1 %v24243_v31  ;;  %v24291_v31 = vld [vmem:[%s30230_s1 + $0x2a78] sm:$0xff]  }
 0x517   :  { %22232 = vmatpush3.bf16.msra.mxu0 %v24242_v30  ;;  %v24290_v30 = vld [vmem:[%s30230_s1 + $0x2980] sm:$0xff]  }
 0x518   :  { %22233 = vmatprep.subr.bf16.mxu0 %v24245_v33  ;;  %v105_v33 = vld [vmem:[%s30229_s0 + $0x298] sm:$0xff] }
 0x519   :  { %22254 = vmatpush3.bf16.msra.mxu1 %v24244_v32 }
 0x51a   :  { %22255 = vmatprep.subr.bf16.mxu1 %v24247_v35 }
 0x51b   :  { %22234 = vmatpush3.bf16.msra.mxu0 %v24246_v34 }
 0x51c   :  { %22235 = vmatprep.subr.bf16.mxu0 %v24249_v37  ;;  %v18742_v37 = vcombine.high %v105_v33, %v105_v33 }
 0x51d   :  { %22256 = vmatpush3.bf16.msra.mxu1 %v24248_v36  ;;  %v18741_v36 = vcombine.low %v105_v33, %v105_v33 }
 0x51e   :  { %22257 = vmatprep.subr.bf16.mxu1 %v24251_v39 }
 0x51f   :  { %22236 = vmatpush3.bf16.msra.mxu0 %v24250_v38  ;;  %v24294_v38 = vld [vmem:[%s30230_s1 + $0x2a38] sm:$0xff]  }
 0x520   :  { %22265 = vmatprep.subr.bf16.mxu0 %v24255_v45 }
 0x521   :  { %22258 = vmatpush3.bf16.msra.mxu1 %v24254_v44 }
 0x522   :  { %v21973_v41 = vpop.f32.mrf.mxu0  ;;  %17489 = vmatmul.mubr.bf16.vlgmr.msra.gmra.mxu0 %v18735_v42  ;;  %22287 = vmatprep.subr.bf16.mxu1 %v24259_v53  ;;  %v24301_v53 = vld [vmem:[%s30230_s1 + $0x2a68] sm:$0xff]  }
 0x523   :  { %22266 = vmatpush3.bf16.msra.mxu0 %v24258_v51  ;;  %17568 = vmatprep.mubr.bf16.mxu0 %v18740_v29  ;;  %v24332_v29 = vld [vmem:[%s30230_s1 + $0x2bb8] sm:$0xff]  }
 0x524   :  { %v21974_v47 = vpop.f32.mrf.mxu0  ;;  %v21995_v48 = vpop.f32.mrf.mxu1  ;;  %17529 = vmatmul.mubr.bf16.vlgmr.msra.gmra.mxu1 %v18737_v49  ;;  %22267 = vmatprep.subr.bf16.mxu0 %v24261_v59  ;;  %v24298_v49 = vld [vmem:[%s30230_s1 + $0x2a30] sm:$0xff]   ;;  %v24307_v59 = vld [vmem:[%s30230_s1 + $0x2ae0] sm:$0xff]  }
 0x525   :  { %v21975_v52 = vadd.f32 %v21974_v47, %v21973_v41  ;;  %22288 = vmatpush3.bf16.msra.mxu1 %v24260_v57  ;;  %v24295_v41 = vld [vmem:[%s30230_s1 + $0x2af8] sm:$0xff]   ;;  %17608 = vmatprep.mubr.bf16.mxu1 %v18742_v37  ;;  %v24305_v57 = vld [vmem:[%s30230_s1 + $0x2a60] sm:$0xff]  }
 0x526   :  { %v21976_v54 = vpop.f32.mrf.mxu0  ;;  %v21996_v55 = vpop.f32.mrf.mxu1  ;;  %22289 = vmatprep.subr.bf16.mxu1 %v24263_v0  ;;  %v24312_v0 = vld [vmem:[%s30230_s1 + $0x2a98] sm:$0xff]  }
 0x527   :  { %v17011_v56 = vadd.f32 %v21975_v52, %v28921_v12  ;;  %v21997_v58 = vadd.f32 %v21996_v55, %v21995_v48  ;;  %22268 = vmatpush3.bf16.msra.mxu0 %v24262_v63  ;;  %v24274_v12 = vld [vmem:[%s30230_s1 + $0x2918] sm:$0xff]   ;;  %v24300_v52 = vld [vmem:[%s30230_s1 + $0x2ab0] sm:$0xff]   ;;  %v24302_v54 = vld [vmem:[%s30230_s1 + $0x2a28] sm:$0xff]  }
 0x528   :  { %v21977_v60 = vpop.f32.mrf.mxu0  ;;  %v21998_v61 = vpop.f32.mrf.mxu1  ;;  %22269 = vmatprep.subr.bf16.mxu0 %v24265_v3  ;;  %v24303_v55 = vld [vmem:[%s30230_s1 + $0x2ae8] sm:$0xff]   ;;  %v24311_v63 = vld [vmem:[%s30230_s1 + $0x2ad8] sm:$0xff]   ;;  %v24315_v3 = vld [vmem:[%s30230_s1 + $0x2ad0] sm:$0xff]  }
 0x529   :  { %v29026_v62 = vadd.f32 %v21997_v58, %v17011_v56  ;;  %22290 = vmatpush3.bf16.msra.mxu1 %v24264_v2  ;;  %v24304_v56 = vld [vmem:[%s30230_s1 + $0x2aa8] sm:$0xff]   ;;  %v24306_v58 = vld [vmem:[%s30230_s1 + $0x2a20] sm:$0xff]   ;;  %v24309_v61 = vld [vmem:[%s30230_s1 + $0x2a58] sm:$0xff]  }
 0x52a   :  { %v21999_v1 = vpop.f32.mrf.mxu1  ;;  %22291 = vmatprep.subr.bf16.mxu1 %v24267_v5  ;;  %v24308_v60 = vld [vmem:[%s30230_s1 + $0x2aa0] sm:$0xff]   ;;  %v24314_v2 = vld [vmem:[%s30230_s1 + $0x2a10] sm:$0xff]   ;;  %v24317_v5 = vld [vmem:[%s30230_s1 + $0x2a48] sm:$0xff]  }
 0x52b   :  { %22270 = vmatpush3.bf16.msra.mxu0 %v24266_v4  ;;  %v24313_v1 = vld [vmem:[%s30230_s1 + $0x2a50] sm:$0xff]  }
 0x52c   :  { %22271 = vmatprep.subr.bf16.mxu0 %v24269_v7  ;;  %v24316_v4 = vld [vmem:[%s30230_s1 + $0x2a90] sm:$0xff]   ;;  %v24319_v7 = vld [vmem:[%s30230_s1 + $0x2ac8] sm:$0xff]  }
 0x52d   :  { %22292 = vmatpush3.bf16.msra.mxu1 %v24268_v6  ;;  %v24318_v6 = vld [vmem:[%s30230_s1 + $0x2a08] sm:$0xff]  }
 0x52e   :  { %22293 = vmatprep.subr.bf16.mxu1 %v24271_v9  ;;  %v24321_v9 = vld [vmem:[%s30230_s1 + $0x2a40] sm:$0xff]  }
 0x52f   :  { %22272 = vmatpush3.bf16.msra.mxu0 %v24270_v8  ;;  %v24320_v8 = vld [vmem:[%s30230_s1 + $0x2a88] sm:$0xff]  }
 0x530   :  { %22273 = vmatprep.subr.bf16.mxu0 %v24273_v11  ;;  %v24323_v11 = vld [vmem:[%s30230_s1 + $0x2ac0] sm:$0xff]  }
 0x531   :  { %22294 = vmatpush3.bf16.msra.mxu1 %v24272_v10  ;;  %v24322_v10 = vld [vmem:[%s30230_s1 + $0x2a00] sm:$0xff]  }
 0x532   :  { %22295 = vmatprep.subr.bf16.mxu1 %v24275_v13 }
 0x533   :  { %22274 = vmatpush3.bf16.msra.mxu0 %v24274_v12  ;;  %v106_v12 = vld [vmem:[%s30229_s0 + $0x2a0] sm:$0xff] }
 0x534   :  { %22275 = vmatprep.subr.bf16.mxu0 %v24277_v15  ;;  %v18744_v15 = vcombine.high %v106_v12, %v106_v12 }
 0x535   :  { %22296 = vmatpush3.bf16.msra.mxu1 %v24276_v14  ;;  %v18743_v14 = vcombine.low %v106_v12, %v106_v12 }
 0x536   :  { %22297 = vmatprep.subr.bf16.mxu1 %v24279_v17  ;;  %v24327_v17 = vld [vmem:[%s30230_s1 + $0x2b78] sm:$0xff]  }
 0x537   :  { %22276 = vmatpush3.bf16.msra.mxu0 %v24278_v16  ;;  %v24326_v16 = vld [vmem:[%s30230_s1 + $0x2a80] sm:$0xff]  }
 0x538   :  { %22277 = vmatprep.subr.bf16.mxu0 %v24281_v19 }
 0x539   :  { %22298 = vmatpush3.bf16.msra.mxu1 %v24280_v18  ;;  %v107_v18 = vld [vmem:[%s30229_s0 + $0x2a8] sm:$0xff] }
 0x53a   :  { %22299 = vmatprep.subr.bf16.mxu1 %v24283_v21  ;;  %v18745_v21 = vcombine.low %v107_v18, %v107_v18 }
 0x53b   :  { %22278 = vmatpush3.bf16.msra.mxu0 %v24282_v20 }
 0x53c   :  { %22279 = vmatprep.subr.bf16.mxu0 %v24285_v23  ;;  %v24330_v23 = vld [vmem:[%s30230_s1 + $0x2b38] sm:$0xff]  }
 0x53d   :  { %22300 = vmatpush3.bf16.msra.mxu1 %v24284_v22  ;;  %v18746_v22 = vcombine.high %v107_v18, %v107_v18 }
 0x53e   :  { %22301 = vmatprep.subr.bf16.mxu1 %v24287_v25  ;;  %v24331_v25 = vld [vmem:[%s30230_s1 + $0x2bf8] sm:$0xff]  }
 0x53f   :  { %22280 = vmatpush3.bf16.msra.mxu0 %v24286_v24 }
 0x540   :  { %22309 = vmatprep.subr.bf16.mxu0 %v24291_v31  ;;  %v24333_v31 = vld [vmem:[%s30230_s1 + $0x2b70] sm:$0xff]  }
 0x541   :  { %22302 = vmatpush3.bf16.msra.mxu1 %v24290_v30 }
 0x542   :  { %v22017_v27 = vpop.f32.mrf.mxu0  ;;  %17569 = vmatmul.mubr.bf16.vlgmr.msra.gmra.mxu0 %v18739_v28  ;;  %22331 = vmatprep.subr.bf16.mxu1 %v24295_v41  ;;  %v24339_v41 = vld [vmem:[%s30230_s1 + $0x2be8] sm:$0xff]  }
 0x543   :  { %22310 = vmatpush3.bf16.msra.mxu0 %v24294_v38  ;;  %17648 = vmatprep.mubr.bf16.mxu0 %v18744_v15  ;;  %v24336_v38 = vld [vmem:[%s30230_s1 + $0x2bb0] sm:$0xff]   ;;  %v24368_v15 = vld [vmem:[%s30230_s1 + $0x2cb8] sm:$0xff]  }
 0x544   :  { %v22018_v32 = vpop.f32.mrf.mxu0  ;;  %v22039_v35 = vpop.f32.mrf.mxu1  ;;  %17609 = vmatmul.mubr.bf16.vlgmr.msra.gmra.mxu1 %v18741_v36  ;;  %22311 = vmatprep.subr.bf16.mxu0 %v24297_v46  ;;  %v24335_v36 = vld [vmem:[%s30230_s1 + $0x2bf0] sm:$0xff]   ;;  %v24344_v46 = vld [vmem:[%s30230_s1 + $0x2ba0] sm:$0xff]  }
 0x545   :  { %v22019_v34 = vadd.f32 %v22018_v32, %v22017_v27  ;;  %22332 = vmatpush3.bf16.msra.mxu1 %v24296_v43  ;;  %17688 = vmatprep.mubr.bf16.mxu1 %v18746_v22  ;;  %v24341_v43 = vld [vmem:[%s30230_s1 + $0x2b60] sm:$0xff]   ;;  %v24371_v22 = vld [vmem:[%s30230_s1 + $0x2cf0] sm:$0xff]  }
 0x546   :  { %v22020_v39 = vpop.f32.mrf.mxu0  ;;  %v22040_v42 = vpop.f32.mrf.mxu1  ;;  %22333 = vmatprep.subr.bf16.mxu1 %v24299_v50  ;;  %v24348_v50 = vld [vmem:[%s30230_s1 + $0x2b98] sm:$0xff]  }
 0x547   :  { %v17091_v40 = vadd.f32 %v22019_v34, %v29026_v62  ;;  %v22041_v44 = vadd.f32 %v22040_v42, %v22039_v35  ;;  %22312 = vmatpush3.bf16.msra.mxu0 %v24298_v49  ;;  %v24310_v62 = vld [vmem:[%s30230_s1 + $0x2a18] sm:$0xff]   ;;  %v24334_v35 = vld [vmem:[%s30230_s1 + $0x2b30] sm:$0xff]   ;;  %v24337_v39 = vld [vmem:[%s30230_s1 + $0x2b68] sm:$0xff]  }
 0x548   :  { %v22021_v45 = vpop.f32.mrf.mxu0  ;;  %v22042_v47 = vpop.f32.mrf.mxu1  ;;  %22313 = vmatprep.subr.bf16.mxu0 %v24301_v53  ;;  %v24340_v42 = vld [vmem:[%s30230_s1 + $0x2ba8] sm:$0xff]   ;;  %v24347_v49 = vld [vmem:[%s30230_s1 + $0x2bd8] sm:$0xff]   ;;  %v24351_v53 = vld [vmem:[%s30230_s1 + $0x2bd0] sm:$0xff]  }
 0x549   :  { %v29131_v48 = vadd.f32 %v22041_v44, %v17091_v40  ;;  %22334 = vmatpush3.bf16.msra.mxu1 %v24300_v52  ;;  %v24338_v40 = vld [vmem:[%s30230_s1 + $0x2b28] sm:$0xff]   ;;  %v24342_v44 = vld [vmem:[%s30230_s1 + $0x2b20] sm:$0xff]   ;;  %v24345_v47 = vld [vmem:[%s30230_s1 + $0x2b58] sm:$0xff]  }
 0x54a   :  { %v22043_v51 = vpop.f32.mrf.mxu1  ;;  %22335 = vmatprep.subr.bf16.mxu1 %v24303_v55  ;;  %v24343_v45 = vld [vmem:[%s30230_s1 + $0x2be0] sm:$0xff]   ;;  %v24350_v52 = vld [vmem:[%s30230_s1 + $0x2b10] sm:$0xff]   ;;  %v24353_v55 = vld [vmem:[%s30230_s1 + $0x2b48] sm:$0xff]  }
 0x54b   :  { %22314 = vmatpush3.bf16.msra.mxu0 %v24302_v54  ;;  %v24349_v51 = vld [vmem:[%s30230_s1 + $0x2b50] sm:$0xff]  }
 0x54c   :  { %22315 = vmatprep.subr.bf16.mxu0 %v24305_v57  ;;  %v24352_v54 = vld [vmem:[%s30230_s1 + $0x2b90] sm:$0xff]   ;;  %v24355_v57 = vld [vmem:[%s30230_s1 + $0x2bc8] sm:$0xff]  }
 0x54d   :  { %22336 = vmatpush3.bf16.msra.mxu1 %v24304_v56  ;;  %v24354_v56 = vld [vmem:[%s30230_s1 + $0x2b08] sm:$0xff]  }
 0x54e   :  { %22337 = vmatprep.subr.bf16.mxu1 %v24307_v59  ;;  %v24357_v59 = vld [vmem:[%s30230_s1 + $0x2b40] sm:$0xff]  }
 0x54f   :  { %22316 = vmatpush3.bf16.msra.mxu0 %v24306_v58  ;;  %v24356_v58 = vld [vmem:[%s30230_s1 + $0x2b88] sm:$0xff]  }
 0x550   :  { %22317 = vmatprep.subr.bf16.mxu0 %v24309_v61  ;;  %v24359_v61 = vld [vmem:[%s30230_s1 + $0x2bc0] sm:$0xff]  }
 0x551   :  { %22338 = vmatpush3.bf16.msra.mxu1 %v24308_v60  ;;  %v24358_v60 = vld [vmem:[%s30230_s1 + $0x2b00] sm:$0xff]  }
 0x552   :  { %22339 = vmatprep.subr.bf16.mxu1 %v24311_v63 }
 0x553   :  { %22318 = vmatpush3.bf16.msra.mxu0 %v24310_v62  ;;  %v108_v62 = vld [vmem:[%s30229_s0 + $0x2b0] sm:$0xff] }
 0x554   :  { %22319 = vmatprep.subr.bf16.mxu0 %v24313_v1  ;;  %v18748_v1 = vcombine.high %v108_v62, %v108_v62 }
 0x555   :  { %22340 = vmatpush3.bf16.msra.mxu1 %v24312_v0  ;;  %v18747_v0 = vcombine.low %v108_v62, %v108_v62 }
 0x556   :  { %22341 = vmatprep.subr.bf16.mxu1 %v24315_v3  ;;  %v24363_v3 = vld [vmem:[%s30230_s1 + $0x2c78] sm:$0xff]  }
 0x557   :  { %22320 = vmatpush3.bf16.msra.mxu0 %v24314_v2  ;;  %v24362_v2 = vld [vmem:[%s30230_s1 + $0x2b80] sm:$0xff]  }
 0x558   :  { %22321 = vmatprep.subr.bf16.mxu0 %v24317_v5 }
 0x559   :  { %22342 = vmatpush3.bf16.msra.mxu1 %v24316_v4  ;;  %v109_v4 = vld [vmem:[%s30229_s0 + $0x2b8] sm:$0xff] }
 0x55a   :  { %22343 = vmatprep.subr.bf16.mxu1 %v24319_v7  ;;  %v18749_v7 = vcombine.low %v109_v4, %v109_v4 }
 0x55b   :  { %22322 = vmatpush3.bf16.msra.mxu0 %v24318_v6 }
 0x55c   :  { %22323 = vmatprep.subr.bf16.mxu0 %v24321_v9  ;;  %v24366_v9 = vld [vmem:[%s30230_s1 + $0x2c38] sm:$0xff]  }
 0x55d   :  { %22344 = vmatpush3.bf16.msra.mxu1 %v24320_v8  ;;  %v18750_v8 = vcombine.high %v109_v4, %v109_v4  ;;  %v24405_v4 = vld [vmem:[%s30230_s1 + $0x2d70] sm:$0xff]  }
 0x55e   :  { %22345 = vmatprep.subr.bf16.mxu1 %v24323_v11  ;;  %v24367_v11 = vld [vmem:[%s30230_s1 + $0x2cf8] sm:$0xff]  }
 0x55f   :  { %22324 = vmatpush3.bf16.msra.mxu0 %v24322_v10 }
 0x560   :  { %22353 = vmatprep.subr.bf16.mxu0 %v24327_v17  ;;  %v24369_v17 = vld [vmem:[%s30230_s1 + $0x2c70] sm:$0xff]  }
 0x561   :  { %22346 = vmatpush3.bf16.msra.mxu1 %v24326_v16 }
 0x562   :  { %v22061_v13 = vpop.f32.mrf.mxu0  ;;  %17649 = vmatmul.mubr.bf16.vlgmr.msra.gmra.mxu0 %v18743_v14  ;;  %22375 = vmatprep.subr.bf16.mxu1 %v24331_v25  ;;  %v24373_v25 = vld [vmem:[%s30230_s1 + $0x2c68] sm:$0xff]  }
 0x563   :  { %22354 = vmatpush3.bf16.msra.mxu0 %v24330_v23  ;;  %17728 = vmatprep.mubr.bf16.mxu0 %v18748_v1  ;;  %v24404_v1 = vld [vmem:[%s30230_s1 + $0x2db8] sm:$0xff]  }
 0x564   :  { %v22062_v19 = vpop.f32.mrf.mxu0  ;;  %v22083_v20 = vpop.f32.mrf.mxu1  ;;  %17689 = vmatmul.mubr.bf16.vlgmr.msra.gmra.mxu1 %v18745_v21  ;;  %22355 = vmatprep.subr.bf16.mxu0 %v24333_v31  ;;  %v24370_v21 = vld [vmem:[%s30230_s1 + $0x2c30] sm:$0xff]   ;;  %v24379_v31 = vld [vmem:[%s30230_s1 + $0x2ce0] sm:$0xff]  }
 0x565   :  { %v22063_v24 = vadd.f32 %v22062_v19, %v22061_v13  ;;  %22376 = vmatpush3.bf16.msra.mxu1 %v24332_v29  ;;  %17768 = vmatprep.mubr.bf16.mxu1 %v18750_v8  ;;  %v24377_v29 = vld [vmem:[%s30230_s1 + $0x2c60] sm:$0xff]   ;;  %v24407_v8 = vld [vmem:[%s30230_s1 + $0x2df0] sm:$0xff]  }
 0x566   :  { %v22064_v26 = vpop.f32.mrf.mxu0  ;;  %v22084_v27 = vpop.f32.mrf.mxu1  ;;  %22377 = vmatprep.subr.bf16.mxu1 %v24335_v36  ;;  %v24384_v36 = vld [vmem:[%s30230_s1 + $0x2c98] sm:$0xff]  }
 0x567   :  { %v17171_v28 = vadd.f32 %v22063_v24, %v29131_v48  ;;  %v22085_v30 = vadd.f32 %v22084_v27, %v22083_v20  ;;  %22356 = vmatpush3.bf16.msra.mxu0 %v24334_v35  ;;  %v24346_v48 = vld [vmem:[%s30230_s1 + $0x2b18] sm:$0xff]   ;;  %v24372_v24 = vld [vmem:[%s30230_s1 + $0x2cb0] sm:$0xff]   ;;  %v24374_v26 = vld [vmem:[%s30230_s1 + $0x2c28] sm:$0xff]  }
 0x568   :  { %v22065_v32 = vpop.f32.mrf.mxu0  ;;  %v22086_v33 = vpop.f32.mrf.mxu1  ;;  %22357 = vmatprep.subr.bf16.mxu0 %v24337_v39  ;;  %v24375_v27 = vld [vmem:[%s30230_s1 + $0x2ce8] sm:$0xff]   ;;  %v24383_v35 = vld [vmem:[%s30230_s1 + $0x2cd8] sm:$0xff]   ;;  %v24387_v39 = vld [vmem:[%s30230_s1 + $0x2cd0] sm:$0xff]  }
 0x569   :  { %v29236_v34 = vadd.f32 %v22085_v30, %v17171_v28  ;;  %22378 = vmatpush3.bf16.msra.mxu1 %v24336_v38  ;;  %v24376_v28 = vld [vmem:[%s30230_s1 + $0x2ca8] sm:$0xff]   ;;  %v24378_v30 = vld [vmem:[%s30230_s1 + $0x2c20] sm:$0xff]   ;;  %v24381_v33 = vld [vmem:[%s30230_s1 + $0x2c58] sm:$0xff]  }
 0x56a   :  { %v22087_v37 = vpop.f32.mrf.mxu1  ;;  %22379 = vmatprep.subr.bf16.mxu1 %v24339_v41  ;;  %v24380_v32 = vld [vmem:[%s30230_s1 + $0x2ca0] sm:$0xff]   ;;  %v24386_v38 = vld [vmem:[%s30230_s1 + $0x2c10] sm:$0xff]   ;;  %v24389_v41 = vld [vmem:[%s30230_s1 + $0x2c48] sm:$0xff]  }
 0x56b   :  { %22358 = vmatpush3.bf16.msra.mxu0 %v24338_v40  ;;  %v24385_v37 = vld [vmem:[%s30230_s1 + $0x2c50] sm:$0xff]  }
 0x56c   :  { %22359 = vmatprep.subr.bf16.mxu0 %v24341_v43  ;;  %v24388_v40 = vld [vmem:[%s30230_s1 + $0x2c90] sm:$0xff]   ;;  %v24391_v43 = vld [vmem:[%s30230_s1 + $0x2cc8] sm:$0xff]  }
 0x56d   :  { %22380 = vmatpush3.bf16.msra.mxu1 %v24340_v42  ;;  %v24390_v42 = vld [vmem:[%s30230_s1 + $0x2c08] sm:$0xff]  }
 0x56e   :  { %22381 = vmatprep.subr.bf16.mxu1 %v24343_v45  ;;  %v24393_v45 = vld [vmem:[%s30230_s1 + $0x2c40] sm:$0xff]  }
 0x56f   :  { %22360 = vmatpush3.bf16.msra.mxu0 %v24342_v44  ;;  %v24392_v44 = vld [vmem:[%s30230_s1 + $0x2c88] sm:$0xff]  }
 0x570   :  { %22361 = vmatprep.subr.bf16.mxu0 %v24345_v47  ;;  %v24395_v47 = vld [vmem:[%s30230_s1 + $0x2cc0] sm:$0xff]  }
 0x571   :  { %22382 = vmatpush3.bf16.msra.mxu1 %v24344_v46  ;;  %v24394_v46 = vld [vmem:[%s30230_s1 + $0x2c00] sm:$0xff]  }
 0x572   :  { %22383 = vmatprep.subr.bf16.mxu1 %v24347_v49 }
 0x573   :  { %22362 = vmatpush3.bf16.msra.mxu0 %v24346_v48  ;;  %v110_v48 = vld [vmem:[%s30229_s0 + $0x2c0] sm:$0xff] }
 0x574   :  { %22363 = vmatprep.subr.bf16.mxu0 %v24349_v51  ;;  %v18752_v51 = vcombine.high %v110_v48, %v110_v48 }
 0x575   :  { %22384 = vmatpush3.bf16.msra.mxu1 %v24348_v50  ;;  %v18751_v50 = vcombine.low %v110_v48, %v110_v48 }
 0x576   :  { %22385 = vmatprep.subr.bf16.mxu1 %v24351_v53  ;;  %v24399_v53 = vld [vmem:[%s30230_s1 + $0x2d78] sm:$0xff]  }
 0x577   :  { %22364 = vmatpush3.bf16.msra.mxu0 %v24350_v52  ;;  %v24398_v52 = vld [vmem:[%s30230_s1 + $0x2c80] sm:$0xff]  }
 0x578   :  { %22365 = vmatprep.subr.bf16.mxu0 %v24353_v55  ;;  %v111_v55 = vld [vmem:[%s30229_s0 + $0x2c8] sm:$0xff] }
 0x579   :  { %22386 = vmatpush3.bf16.msra.mxu1 %v24352_v54 }
 0x57a   :  { %22387 = vmatprep.subr.bf16.mxu1 %v24355_v57 }
 0x57b   :  { %22366 = vmatpush3.bf16.msra.mxu0 %v24354_v56 }
 0x57c   :  { %22367 = vmatprep.subr.bf16.mxu0 %v24357_v59  ;;  %v18754_v59 = vcombine.high %v111_v55, %v111_v55 }
 0x57d   :  { %22388 = vmatpush3.bf16.msra.mxu1 %v24356_v58  ;;  %v18753_v58 = vcombine.low %v111_v55, %v111_v55 }
 0x57e   :  { %22389 = vmatprep.subr.bf16.mxu1 %v24359_v61 }
 0x57f   :  { %22368 = vmatpush3.bf16.msra.mxu0 %v24358_v60  ;;  %v24402_v60 = vld [vmem:[%s30230_s1 + $0x2d38] sm:$0xff]  }
 0x580   :  { %22397 = vmatprep.subr.bf16.mxu0 %v24363_v3 }
 0x581   :  { %22390 = vmatpush3.bf16.msra.mxu1 %v24362_v2 }
 0x582   :  { %v22105_v63 = vpop.f32.mrf.mxu0  ;;  %17729 = vmatmul.mubr.bf16.vlgmr.msra.gmra.mxu0 %v18747_v0  ;;  %22419 = vmatprep.subr.bf16.mxu1 %v24367_v11  ;;  %v24409_v11 = vld [vmem:[%s30230_s1 + $0x2d68] sm:$0xff]  }
 0x583   :  { %22398 = vmatpush3.bf16.msra.mxu0 %v24366_v9  ;;  %17808 = vmatprep.mubr.bf16.mxu0 %v18752_v51  ;;  %v24440_v51 = vld [vmem:[%s30230_s1 + $0x2eb8] sm:$0xff]  }
 0x584   :  { %v22106_v5 = vpop.f32.mrf.mxu0  ;;  %v22127_v6 = vpop.f32.mrf.mxu1  ;;  %17769 = vmatmul.mubr.bf16.vlgmr.msra.gmra.mxu1 %v18749_v7  ;;  %22399 = vmatprep.subr.bf16.mxu0 %v24369_v17  ;;  %v24406_v7 = vld [vmem:[%s30230_s1 + $0x2d30] sm:$0xff]   ;;  %v24415_v17 = vld [vmem:[%s30230_s1 + $0x2de0] sm:$0xff]  }
 0x585   :  { %v22107_v10 = vadd.f32 %v22106_v5, %v22105_v63  ;;  %22420 = vmatpush3.bf16.msra.mxu1 %v24368_v15  ;;  %v24403_v63 = vld [vmem:[%s30230_s1 + $0x2df8] sm:$0xff]   ;;  %17848 = vmatprep.mubr.bf16.mxu1 %v18754_v59  ;;  %v24413_v15 = vld [vmem:[%s30230_s1 + $0x2d60] sm:$0xff]  }
 0x586   :  { %v22108_v12 = vpop.f32.mrf.mxu0  ;;  %v22128_v13 = vpop.f32.mrf.mxu1  ;;  %22421 = vmatprep.subr.bf16.mxu1 %v24371_v22  ;;  %v24420_v22 = vld [vmem:[%s30230_s1 + $0x2d98] sm:$0xff]  }
 0x587   :  { %v17251_v14 = vadd.f32 %v22107_v10, %v29236_v34  ;;  %v22129_v16 = vadd.f32 %v22128_v13, %v22127_v6  ;;  %22400 = vmatpush3.bf16.msra.mxu0 %v24370_v21  ;;  %v24382_v34 = vld [vmem:[%s30230_s1 + $0x2c18] sm:$0xff]   ;;  %v24408_v10 = vld [vmem:[%s30230_s1 + $0x2db0] sm:$0xff]   ;;  %v24410_v12 = vld [vmem:[%s30230_s1 + $0x2d28] sm:$0xff]  }
 0x588   :  { %v22109_v18 = vpop.f32.mrf.mxu0  ;;  %v22130_v19 = vpop.f32.mrf.mxu1  ;;  %22401 = vmatprep.subr.bf16.mxu0 %v24373_v25  ;;  %v24411_v13 = vld [vmem:[%s30230_s1 + $0x2de8] sm:$0xff]   ;;  %v24419_v21 = vld [vmem:[%s30230_s1 + $0x2dd8] sm:$0xff]   ;;  %v24423_v25 = vld [vmem:[%s30230_s1 + $0x2dd0] sm:$0xff]  }
 0x589   :  { %v29341_v20 = vadd.f32 %v22129_v16, %v17251_v14  ;;  %22422 = vmatpush3.bf16.msra.mxu1 %v24372_v24  ;;  %v24412_v14 = vld [vmem:[%s30230_s1 + $0x2da8] sm:$0xff]   ;;  %v24414_v16 = vld [vmem:[%s30230_s1 + $0x2d20] sm:$0xff]   ;;  %v24417_v19 = vld [vmem:[%s30230_s1 + $0x2d58] sm:$0xff]  }
 0x58a   :  { %v22131_v23 = vpop.f32.mrf.mxu1  ;;  %22423 = vmatprep.subr.bf16.mxu1 %v24375_v27  ;;  %v24416_v18 = vld [vmem:[%s30230_s1 + $0x2da0] sm:$0xff]   ;;  %v24422_v24 = vld [vmem:[%s30230_s1 + $0x2d10] sm:$0xff]   ;;  %v24425_v27 = vld [vmem:[%s30230_s1 + $0x2d48] sm:$0xff]  }
 0x58b   :  { %22402 = vmatpush3.bf16.msra.mxu0 %v24374_v26  ;;  %v24421_v23 = vld [vmem:[%s30230_s1 + $0x2d50] sm:$0xff]  }
 0x58c   :  { %22403 = vmatprep.subr.bf16.mxu0 %v24377_v29  ;;  %v24424_v26 = vld [vmem:[%s30230_s1 + $0x2d90] sm:$0xff]   ;;  %v24427_v29 = vld [vmem:[%s30230_s1 + $0x2dc8] sm:$0xff]  }
 0x58d   :  { %22424 = vmatpush3.bf16.msra.mxu1 %v24376_v28  ;;  %v24426_v28 = vld [vmem:[%s30230_s1 + $0x2d08] sm:$0xff]  }
 0x58e   :  { %22425 = vmatprep.subr.bf16.mxu1 %v24379_v31  ;;  %v24429_v31 = vld [vmem:[%s30230_s1 + $0x2d40] sm:$0xff]  }
 0x58f   :  { %22404 = vmatpush3.bf16.msra.mxu0 %v24378_v30  ;;  %v24428_v30 = vld [vmem:[%s30230_s1 + $0x2d88] sm:$0xff]  }
 0x590   :  { %22405 = vmatprep.subr.bf16.mxu0 %v24381_v33  ;;  %v24431_v33 = vld [vmem:[%s30230_s1 + $0x2dc0] sm:$0xff]  }
 0x591   :  { %22426 = vmatpush3.bf16.msra.mxu1 %v24380_v32  ;;  %v24430_v32 = vld [vmem:[%s30230_s1 + $0x2d00] sm:$0xff]  }
 0x592   :  { %22427 = vmatprep.subr.bf16.mxu1 %v24383_v35 }
 0x593   :  { %22406 = vmatpush3.bf16.msra.mxu0 %v24382_v34  ;;  %v112_v34 = vld [vmem:[%s30229_s0 + $0x2d0] sm:$0xff] }
 0x594   :  { %22407 = vmatprep.subr.bf16.mxu0 %v24385_v37  ;;  %v18756_v37 = vcombine.high %v112_v34, %v112_v34 }
 0x595   :  { %22428 = vmatpush3.bf16.msra.mxu1 %v24384_v36  ;;  %v18755_v36 = vcombine.low %v112_v34, %v112_v34 }
 0x596   :  { %22429 = vmatprep.subr.bf16.mxu1 %v24387_v39  ;;  %v24435_v39 = vld [vmem:[%s30230_s1 + $0x2e78] sm:$0xff]  }
 0x597   :  { %22408 = vmatpush3.bf16.msra.mxu0 %v24386_v38  ;;  %v24434_v38 = vld [vmem:[%s30230_s1 + $0x2d80] sm:$0xff]  }
 0x598   :  { %22409 = vmatprep.subr.bf16.mxu0 %v24389_v41 }
 0x599   :  { %22430 = vmatpush3.bf16.msra.mxu1 %v24388_v40  ;;  %v113_v40 = vld [vmem:[%s30229_s0 + $0x2d8] sm:$0xff] }
 0x59a   :  { %22431 = vmatprep.subr.bf16.mxu1 %v24391_v43  ;;  %v18757_v43 = vcombine.low %v113_v40, %v113_v40 }
 0x59b   :  { %22410 = vmatpush3.bf16.msra.mxu0 %v24390_v42 }
 0x59c   :  { %22411 = vmatprep.subr.bf16.mxu0 %v24393_v45  ;;  %v24438_v45 = vld [vmem:[%s30230_s1 + $0x2e38] sm:$0xff]  }
 0x59d   :  { %22432 = vmatpush3.bf16.msra.mxu1 %v24392_v44  ;;  %v18758_v44 = vcombine.high %v113_v40, %v113_v40 }
 0x59e   :  { %22433 = vmatprep.subr.bf16.mxu1 %v24395_v47  ;;  %v24439_v47 = vld [vmem:[%s30230_s1 + $0x2ef8] sm:$0xff]  }
 0x59f   :  { %22412 = vmatpush3.bf16.msra.mxu0 %v24394_v46 }
 0x5a0   :  { %22441 = vmatprep.subr.bf16.mxu0 %v24399_v53  ;;  %v24441_v53 = vld [vmem:[%s30230_s1 + $0x2e70] sm:$0xff]  }
 0x5a1   :  { %22434 = vmatpush3.bf16.msra.mxu1 %v24398_v52 }
 0x5a2   :  { %v22149_v49 = vpop.f32.mrf.mxu0  ;;  %17809 = vmatmul.mubr.bf16.vlgmr.msra.gmra.mxu0 %v18751_v50  ;;  %22463 = vmatprep.subr.bf16.mxu1 %v24403_v63  ;;  %v24447_v63 = vld [vmem:[%s30230_s1 + $0x2ee8] sm:$0xff]  }
 0x5a3   :  { %22442 = vmatpush3.bf16.msra.mxu0 %v24402_v60  ;;  %17888 = vmatprep.mubr.bf16.mxu0 %v18756_v37  ;;  %v24444_v60 = vld [vmem:[%s30230_s1 + $0x2eb0] sm:$0xff]   ;;  %v24476_v37 = vld [vmem:[%s30230_s1 + $0x2fb8] sm:$0xff]  }
 0x5a4   :  { %v22150_v54 = vpop.f32.mrf.mxu0  ;;  %v22171_v57 = vpop.f32.mrf.mxu1  ;;  %17849 = vmatmul.mubr.bf16.vlgmr.msra.gmra.mxu1 %v18753_v58  ;;  %22443 = vmatprep.subr.bf16.mxu0 %v24405_v4  ;;  %v24443_v58 = vld [vmem:[%s30230_s1 + $0x2ef0] sm:$0xff]   ;;  %v24452_v4 = vld [vmem:[%s30230_s1 + $0x2ea0] sm:$0xff]  }
 0x5a5   :  { %v22151_v56 = vadd.f32 %v22150_v54, %v22149_v49  ;;  %22464 = vmatpush3.bf16.msra.mxu1 %v24404_v1  ;;  %17928 = vmatprep.mubr.bf16.mxu1 %v18758_v44  ;;  %v24449_v1 = vld [vmem:[%s30230_s1 + $0x2e60] sm:$0xff]   ;;  %v24479_v44 = vld [vmem:[%s30230_s1 + $0x2ff0] sm:$0xff]  }
 0x5a6   :  { %v22152_v61 = vpop.f32.mrf.mxu0  ;;  %v22172_v0 = vpop.f32.mrf.mxu1  ;;  %22465 = vmatprep.subr.bf16.mxu1 %v24407_v8  ;;  %v24456_v8 = vld [vmem:[%s30230_s1 + $0x2e98] sm:$0xff]  }
 0x5a7   :  { %v17331_v62 = vadd.f32 %v22151_v56, %v29341_v20  ;;  %v22173_v2 = vadd.f32 %v22172_v0, %v22171_v57  ;;  %22444 = vmatpush3.bf16.msra.mxu0 %v24406_v7  ;;  %v24418_v20 = vld [vmem:[%s30230_s1 + $0x2d18] sm:$0xff]   ;;  %v24442_v57 = vld [vmem:[%s30230_s1 + $0x2e30] sm:$0xff]   ;;  %v24445_v61 = vld [vmem:[%s30230_s1 + $0x2e68] sm:$0xff]  }
 0x5a8   :  { %v22153_v3 = vpop.f32.mrf.mxu0  ;;  %v22174_v5 = vpop.f32.mrf.mxu1  ;;  %22445 = vmatprep.subr.bf16.mxu0 %v24409_v11  ;;  %v24448_v0 = vld [vmem:[%s30230_s1 + $0x2ea8] sm:$0xff]   ;;  %v24455_v7 = vld [vmem:[%s30230_s1 + $0x2ed8] sm:$0xff]   ;;  %v24459_v11 = vld [vmem:[%s30230_s1 + $0x2ed0] sm:$0xff]  }
 0x5a9   :  { %v29446_v6 = vadd.f32 %v22173_v2, %v17331_v62  ;;  %22466 = vmatpush3.bf16.msra.mxu1 %v24408_v10  ;;  %v24446_v62 = vld [vmem:[%s30230_s1 + $0x2e28] sm:$0xff]   ;;  %v24450_v2 = vld [vmem:[%s30230_s1 + $0x2e20] sm:$0xff]   ;;  %v24453_v5 = vld [vmem:[%s30230_s1 + $0x2e58] sm:$0xff]  }
 0x5aa   :  { %v22175_v9 = vpop.f32.mrf.mxu1  ;;  %22467 = vmatprep.subr.bf16.mxu1 %v24411_v13  ;;  %v24451_v3 = vld [vmem:[%s30230_s1 + $0x2ee0] sm:$0xff]   ;;  %v24458_v10 = vld [vmem:[%s30230_s1 + $0x2e10] sm:$0xff]   ;;  %v24461_v13 = vld [vmem:[%s30230_s1 + $0x2e48] sm:$0xff]  }
 0x5ab   :  { %22446 = vmatpush3.bf16.msra.mxu0 %v24410_v12  ;;  %v24457_v9 = vld [vmem:[%s30230_s1 + $0x2e50] sm:$0xff]  }
 0x5ac   :  { %22447 = vmatprep.subr.bf16.mxu0 %v24413_v15  ;;  %v24460_v12 = vld [vmem:[%s30230_s1 + $0x2e90] sm:$0xff]   ;;  %v24463_v15 = vld [vmem:[%s30230_s1 + $0x2ec8] sm:$0xff]  }
 0x5ad   :  { %22468 = vmatpush3.bf16.msra.mxu1 %v24412_v14  ;;  %v24462_v14 = vld [vmem:[%s30230_s1 + $0x2e08] sm:$0xff]  }
 0x5ae   :  { %22469 = vmatprep.subr.bf16.mxu1 %v24415_v17  ;;  %v24465_v17 = vld [vmem:[%s30230_s1 + $0x2e40] sm:$0xff]  }
 0x5af   :  { %22448 = vmatpush3.bf16.msra.mxu0 %v24414_v16  ;;  %v24464_v16 = vld [vmem:[%s30230_s1 + $0x2e88] sm:$0xff]  }
 0x5b0   :  { %22449 = vmatprep.subr.bf16.mxu0 %v24417_v19  ;;  %v24467_v19 = vld [vmem:[%s30230_s1 + $0x2ec0] sm:$0xff]  }
 0x5b1   :  { %22470 = vmatpush3.bf16.msra.mxu1 %v24416_v18  ;;  %v24466_v18 = vld [vmem:[%s30230_s1 + $0x2e00] sm:$0xff]  }
 0x5b2   :  { %22471 = vmatprep.subr.bf16.mxu1 %v24419_v21 }
 0x5b3   :  { %22450 = vmatpush3.bf16.msra.mxu0 %v24418_v20  ;;  %v114_v20 = vld [vmem:[%s30229_s0 + $0x2e0] sm:$0xff] }
 0x5b4   :  { %22451 = vmatprep.subr.bf16.mxu0 %v24421_v23  ;;  %v18760_v23 = vcombine.high %v114_v20, %v114_v20 }
 0x5b5   :  { %22472 = vmatpush3.bf16.msra.mxu1 %v24420_v22  ;;  %v18759_v22 = vcombine.low %v114_v20, %v114_v20 }
 0x5b6   :  { %22473 = vmatprep.subr.bf16.mxu1 %v24423_v25  ;;  %v24471_v25 = vld [vmem:[%s30230_s1 + $0x2f78] sm:$0xff]  }
 0x5b7   :  { %22452 = vmatpush3.bf16.msra.mxu0 %v24422_v24  ;;  %v24470_v24 = vld [vmem:[%s30230_s1 + $0x2e80] sm:$0xff]  }
 0x5b8   :  { %22453 = vmatprep.subr.bf16.mxu0 %v24425_v27 }
 0x5b9   :  { %22474 = vmatpush3.bf16.msra.mxu1 %v24424_v26  ;;  %v115_v26 = vld [vmem:[%s30229_s0 + $0x2e8] sm:$0xff] }
 0x5ba   :  { %22475 = vmatprep.subr.bf16.mxu1 %v24427_v29  ;;  %v18761_v29 = vcombine.low %v115_v26, %v115_v26 }
 0x5bb   :  { %22454 = vmatpush3.bf16.msra.mxu0 %v24426_v28 }
 0x5bc   :  { %22455 = vmatprep.subr.bf16.mxu0 %v24429_v31  ;;  %v24474_v31 = vld [vmem:[%s30230_s1 + $0x2f38] sm:$0xff]  }
 0x5bd   :  { %22476 = vmatpush3.bf16.msra.mxu1 %v24428_v30  ;;  %v18762_v30 = vcombine.high %v115_v26, %v115_v26  ;;  %v24513_v26 = vld [vmem:[%s30230_s1 + $0x3070] sm:$0xff]  }
 0x5be   :  { %22477 = vmatprep.subr.bf16.mxu1 %v24431_v33  ;;  %v24475_v33 = vld [vmem:[%s30230_s1 + $0x2ff8] sm:$0xff]  }
 0x5bf   :  { %22456 = vmatpush3.bf16.msra.mxu0 %v24430_v32 }
 0x5c0   :  { %22485 = vmatprep.subr.bf16.mxu0 %v24435_v39  ;;  %v24477_v39 = vld [vmem:[%s30230_s1 + $0x2f70] sm:$0xff]  }
 0x5c1   :  { %22478 = vmatpush3.bf16.msra.mxu1 %v24434_v38 }
 0x5c2   :  { %v22193_v35 = vpop.f32.mrf.mxu0  ;;  %17889 = vmatmul.mubr.bf16.vlgmr.msra.gmra.mxu0 %v18755_v36  ;;  %22507 = vmatprep.subr.bf16.mxu1 %v24439_v47  ;;  %v24481_v47 = vld [vmem:[%s30230_s1 + $0x2f68] sm:$0xff]  }
 0x5c3   :  { %22486 = vmatpush3.bf16.msra.mxu0 %v24438_v45  ;;  %17968 = vmatprep.mubr.bf16.mxu0 %v18760_v23  ;;  %v24512_v23 = vld [vmem:[%s30230_s1 + $0x30b8] sm:$0xff]  }
 0x5c4   :  { %v22194_v41 = vpop.f32.mrf.mxu0  ;;  %v22215_v42 = vpop.f32.mrf.mxu1  ;;  %17929 = vmatmul.mubr.bf16.vlgmr.msra.gmra.mxu1 %v18757_v43  ;;  %22487 = vmatprep.subr.bf16.mxu0 %v24441_v53  ;;  %v24478_v43 = vld [vmem:[%s30230_s1 + $0x2f30] sm:$0xff]   ;;  %v24487_v53 = vld [vmem:[%s30230_s1 + $0x2fe0] sm:$0xff]  }
 0x5c5   :  { %v22195_v46 = vadd.f32 %v22194_v41, %v22193_v35  ;;  %22508 = vmatpush3.bf16.msra.mxu1 %v24440_v51  ;;  %18008 = vmatprep.mubr.bf16.mxu1 %v18762_v30  ;;  %v24485_v51 = vld [vmem:[%s30230_s1 + $0x2f60] sm:$0xff]   ;;  %v24515_v30 = vld [vmem:[%s30230_s1 + $0x30f0] sm:$0xff]  }
 0x5c6   :  { %v22196_v48 = vpop.f32.mrf.mxu0  ;;  %v22216_v49 = vpop.f32.mrf.mxu1  ;;  %22509 = vmatprep.subr.bf16.mxu1 %v24443_v58  ;;  %v24492_v58 = vld [vmem:[%s30230_s1 + $0x2f98] sm:$0xff]  }
 0x5c7   :  { %v17411_v50 = vadd.f32 %v22195_v46, %v29446_v6  ;;  %v22217_v52 = vadd.f32 %v22216_v49, %v22215_v42  ;;  %22488 = vmatpush3.bf16.msra.mxu0 %v24442_v57  ;;  %v24454_v6 = vld [vmem:[%s30230_s1 + $0x2e18] sm:$0xff]   ;;  %v24480_v46 = vld [vmem:[%s30230_s1 + $0x2fb0] sm:$0xff]   ;;  %v24482_v48 = vld [vmem:[%s30230_s1 + $0x2f28] sm:$0xff]  }
 0x5c8   :  { %v22197_v54 = vpop.f32.mrf.mxu0  ;;  %v22218_v55 = vpop.f32.mrf.mxu1  ;;  %22489 = vmatprep.subr.bf16.mxu0 %v24445_v61  ;;  %v24483_v49 = vld [vmem:[%s30230_s1 + $0x2fe8] sm:$0xff]   ;;  %v24491_v57 = vld [vmem:[%s30230_s1 + $0x2fd8] sm:$0xff]   ;;  %v24495_v61 = vld [vmem:[%s30230_s1 + $0x2fd0] sm:$0xff]  }
 0x5c9   :  { %v29551_v56 = vadd.f32 %v22217_v52, %v17411_v50  ;;  %22510 = vmatpush3.bf16.msra.mxu1 %v24444_v60  ;;  %v24484_v50 = vld [vmem:[%s30230_s1 + $0x2fa8] sm:$0xff]   ;;  %v24486_v52 = vld [vmem:[%s30230_s1 + $0x2f20] sm:$0xff]   ;;  %v24489_v55 = vld [vmem:[%s30230_s1 + $0x2f58] sm:$0xff]  }
 0x5ca   :  { %v22219_v59 = vpop.f32.mrf.mxu1  ;;  %22511 = vmatprep.subr.bf16.mxu1 %v24447_v63  ;;  %v24488_v54 = vld [vmem:[%s30230_s1 + $0x2fa0] sm:$0xff]   ;;  %v24494_v60 = vld [vmem:[%s30230_s1 + $0x2f10] sm:$0xff]   ;;  %v24497_v63 = vld [vmem:[%s30230_s1 + $0x2f48] sm:$0xff]  }
 0x5cb   :  { %22490 = vmatpush3.bf16.msra.mxu0 %v24446_v62  ;;  %v24493_v59 = vld [vmem:[%s30230_s1 + $0x2f50] sm:$0xff]  }
 0x5cc   :  { %22491 = vmatprep.subr.bf16.mxu0 %v24449_v1  ;;  %v24496_v62 = vld [vmem:[%s30230_s1 + $0x2f90] sm:$0xff]   ;;  %v24499_v1 = vld [vmem:[%s30230_s1 + $0x2fc8] sm:$0xff]  }
 0x5cd   :  { %22512 = vmatpush3.bf16.msra.mxu1 %v24448_v0  ;;  %v24498_v0 = vld [vmem:[%s30230_s1 + $0x2f08] sm:$0xff]  }
 0x5ce   :  { %22513 = vmatprep.subr.bf16.mxu1 %v24451_v3  ;;  %v24501_v3 = vld [vmem:[%s30230_s1 + $0x2f40] sm:$0xff]  }
 0x5cf   :  { %22492 = vmatpush3.bf16.msra.mxu0 %v24450_v2  ;;  %v24500_v2 = vld [vmem:[%s30230_s1 + $0x2f88] sm:$0xff]  }
 0x5d0   :  { %22493 = vmatprep.subr.bf16.mxu0 %v24453_v5  ;;  %v24503_v5 = vld [vmem:[%s30230_s1 + $0x2fc0] sm:$0xff]  }
 0x5d1   :  { %22514 = vmatpush3.bf16.msra.mxu1 %v24452_v4  ;;  %v24502_v4 = vld [vmem:[%s30230_s1 + $0x2f00] sm:$0xff]  }
 0x5d2   :  { %22515 = vmatprep.subr.bf16.mxu1 %v24455_v7 }
 0x5d3   :  { %22494 = vmatpush3.bf16.msra.mxu0 %v24454_v6  ;;  %v116_v6 = vld [vmem:[%s30229_s0 + $0x2f0] sm:$0xff] }
 0x5d4   :  { %22495 = vmatprep.subr.bf16.mxu0 %v24457_v9  ;;  %v18764_v9 = vcombine.high %v116_v6, %v116_v6 }
 0x5d5   :  { %22516 = vmatpush3.bf16.msra.mxu1 %v24456_v8  ;;  %v18763_v8 = vcombine.low %v116_v6, %v116_v6 }
 0x5d6   :  { %22517 = vmatprep.subr.bf16.mxu1 %v24459_v11  ;;  %v24507_v11 = vld [vmem:[%s30230_s1 + $0x3078] sm:$0xff]  }
 0x5d7   :  { %22496 = vmatpush3.bf16.msra.mxu0 %v24458_v10  ;;  %v24506_v10 = vld [vmem:[%s30230_s1 + $0x2f80] sm:$0xff]  }
 0x5d8   :  { %22497 = vmatprep.subr.bf16.mxu0 %v24461_v13  ;;  %v117_v13 = vld [vmem:[%s30229_s0 + $0x2f8] sm:$0xff] }
 0x5d9   :  { %22518 = vmatpush3.bf16.msra.mxu1 %v24460_v12 }
 0x5da   :  { %22519 = vmatprep.subr.bf16.mxu1 %v24463_v15 }
 0x5db   :  { %22498 = vmatpush3.bf16.msra.mxu0 %v24462_v14 }
 0x5dc   :  { %22499 = vmatprep.subr.bf16.mxu0 %v24465_v17  ;;  %v18766_v17 = vcombine.high %v117_v13, %v117_v13 }
 0x5dd   :  { %22520 = vmatpush3.bf16.msra.mxu1 %v24464_v16  ;;  %v18765_v16 = vcombine.low %v117_v13, %v117_v13 }
 0x5de   :  { %22521 = vmatprep.subr.bf16.mxu1 %v24467_v19 }
 0x5df   :  { %22500 = vmatpush3.bf16.msra.mxu0 %v24466_v18  ;;  %v24510_v18 = vld [vmem:[%s30230_s1 + $0x3038] sm:$0xff]  }
 0x5e0   :  { %22529 = vmatprep.subr.bf16.mxu0 %v24471_v25 }
 0x5e1   :  { %22522 = vmatpush3.bf16.msra.mxu1 %v24470_v24 }
 0x5e2   :  { %v22237_v21 = vpop.f32.mrf.mxu0  ;;  %17969 = vmatmul.mubr.bf16.vlgmr.msra.gmra.mxu0 %v18759_v22  ;;  %22551 = vmatprep.subr.bf16.mxu1 %v24475_v33  ;;  %v24517_v33 = vld [vmem:[%s30230_s1 + $0x3068] sm:$0xff]  }
 0x5e3   :  { %22530 = vmatpush3.bf16.msra.mxu0 %v24474_v31  ;;  %18048 = vmatprep.mubr.bf16.mxu0 %v18764_v9  ;;  %v24548_v9 = vld [vmem:[%s30230_s1 + $0x31b8] sm:$0xff]  }
 0x5e4   :  { %v22238_v27 = vpop.f32.mrf.mxu0  ;;  %v22259_v28 = vpop.f32.mrf.mxu1  ;;  %18009 = vmatmul.mubr.bf16.vlgmr.msra.gmra.mxu1 %v18761_v29  ;;  %22531 = vmatprep.subr.bf16.mxu0 %v24477_v39  ;;  %v24514_v29 = vld [vmem:[%s30230_s1 + $0x3030] sm:$0xff]   ;;  %v24523_v39 = vld [vmem:[%s30230_s1 + $0x30e0] sm:$0xff]  }
 0x5e5   :  { %v22239_v32 = vadd.f32 %v22238_v27, %v22237_v21  ;;  %22552 = vmatpush3.bf16.msra.mxu1 %v24476_v37  ;;  %v24511_v21 = vld [vmem:[%s30230_s1 + $0x30f8] sm:$0xff]   ;;  %18088 = vmatprep.mubr.bf16.mxu1 %v18766_v17  ;;  %v24521_v37 = vld [vmem:[%s30230_s1 + $0x3060] sm:$0xff]  }
 0x5e6   :  { %v22240_v34 = vpop.f32.mrf.mxu0  ;;  %v22260_v35 = vpop.f32.mrf.mxu1  ;;  %22553 = vmatprep.subr.bf16.mxu1 %v24479_v44  ;;  %v24528_v44 = vld [vmem:[%s30230_s1 + $0x3098] sm:$0xff]  }
 0x5e7   :  { %v17491_v36 = vadd.f32 %v22239_v32, %v29551_v56  ;;  %v22261_v38 = vadd.f32 %v22260_v35, %v22259_v28  ;;  %22532 = vmatpush3.bf16.msra.mxu0 %v24478_v43  ;;  %v24490_v56 = vld [vmem:[%s30230_s1 + $0x2f18] sm:$0xff]   ;;  %v24516_v32 = vld [vmem:[%s30230_s1 + $0x30b0] sm:$0xff]   ;;  %v24518_v34 = vld [vmem:[%s30230_s1 + $0x3028] sm:$0xff]  }
 0x5e8   :  { %v22241_v40 = vpop.f32.mrf.mxu0  ;;  %v22262_v41 = vpop.f32.mrf.mxu1  ;;  %22533 = vmatprep.subr.bf16.mxu0 %v24481_v47  ;;  %v24519_v35 = vld [vmem:[%s30230_s1 + $0x30e8] sm:$0xff]   ;;  %v24527_v43 = vld [vmem:[%s30230_s1 + $0x30d8] sm:$0xff]   ;;  %v24531_v47 = vld [vmem:[%s30230_s1 + $0x30d0] sm:$0xff]  }
 0x5e9   :  { %v29656_v42 = vadd.f32 %v22261_v38, %v17491_v36  ;;  %22554 = vmatpush3.bf16.msra.mxu1 %v24480_v46  ;;  %v24520_v36 = vld [vmem:[%s30230_s1 + $0x30a8] sm:$0xff]   ;;  %v24522_v38 = vld [vmem:[%s30230_s1 + $0x3020] sm:$0xff]   ;;  %v24525_v41 = vld [vmem:[%s30230_s1 + $0x3058] sm:$0xff]  }
 0x5ea   :  { %v22263_v45 = vpop.f32.mrf.mxu1  ;;  %22555 = vmatprep.subr.bf16.mxu1 %v24483_v49  ;;  %v24524_v40 = vld [vmem:[%s30230_s1 + $0x30a0] sm:$0xff]   ;;  %v24530_v46 = vld [vmem:[%s30230_s1 + $0x3010] sm:$0xff]   ;;  %v24533_v49 = vld [vmem:[%s30230_s1 + $0x3048] sm:$0xff]  }
 0x5eb   :  { %22534 = vmatpush3.bf16.msra.mxu0 %v24482_v48  ;;  %v24529_v45 = vld [vmem:[%s30230_s1 + $0x3050] sm:$0xff]  }
 0x5ec   :  { %22535 = vmatprep.subr.bf16.mxu0 %v24485_v51  ;;  %v24532_v48 = vld [vmem:[%s30230_s1 + $0x3090] sm:$0xff]   ;;  %v24535_v51 = vld [vmem:[%s30230_s1 + $0x30c8] sm:$0xff]  }
 0x5ed   :  { %22556 = vmatpush3.bf16.msra.mxu1 %v24484_v50  ;;  %v24534_v50 = vld [vmem:[%s30230_s1 + $0x3008] sm:$0xff]  }
 0x5ee   :  { %22557 = vmatprep.subr.bf16.mxu1 %v24487_v53  ;;  %v24537_v53 = vld [vmem:[%s30230_s1 + $0x3040] sm:$0xff]  }
 0x5ef   :  { %22536 = vmatpush3.bf16.msra.mxu0 %v24486_v52  ;;  %v24536_v52 = vld [vmem:[%s30230_s1 + $0x3088] sm:$0xff]  }
 0x5f0   :  { %22537 = vmatprep.subr.bf16.mxu0 %v24489_v55  ;;  %v24539_v55 = vld [vmem:[%s30230_s1 + $0x30c0] sm:$0xff]  }
 0x5f1   :  { %22558 = vmatpush3.bf16.msra.mxu1 %v24488_v54  ;;  %v24538_v54 = vld [vmem:[%s30230_s1 + $0x3000] sm:$0xff]  }
 0x5f2   :  { %22559 = vmatprep.subr.bf16.mxu1 %v24491_v57 }
 0x5f3   :  { %22538 = vmatpush3.bf16.msra.mxu0 %v24490_v56  ;;  %v118_v56 = vld [vmem:[%s30229_s0 + $0x300] sm:$0xff] }
 0x5f4   :  { %22539 = vmatprep.subr.bf16.mxu0 %v24493_v59  ;;  %v18768_v59 = vcombine.high %v118_v56, %v118_v56 }
 0x5f5   :  { %22560 = vmatpush3.bf16.msra.mxu1 %v24492_v58  ;;  %v18767_v58 = vcombine.low %v118_v56, %v118_v56 }
 0x5f6   :  { %22561 = vmatprep.subr.bf16.mxu1 %v24495_v61  ;;  %v24543_v61 = vld [vmem:[%s30230_s1 + $0x3178] sm:$0xff]  }
 0x5f7   :  { %22540 = vmatpush3.bf16.msra.mxu0 %v24494_v60  ;;  %v24542_v60 = vld [vmem:[%s30230_s1 + $0x3080] sm:$0xff]  }
 0x5f8   :  { %22541 = vmatprep.subr.bf16.mxu0 %v24497_v63 }
 0x5f9   :  { %22562 = vmatpush3.bf16.msra.mxu1 %v24496_v62  ;;  %v119_v62 = vld [vmem:[%s30229_s0 + $0x308] sm:$0xff] }
 0x5fa   :  { %22563 = vmatprep.subr.bf16.mxu1 %v24499_v1  ;;  %v18769_v1 = vcombine.low %v119_v62, %v119_v62 }
 0x5fb   :  { %22542 = vmatpush3.bf16.msra.mxu0 %v24498_v0 }
 0x5fc   :  { %22543 = vmatprep.subr.bf16.mxu0 %v24501_v3  ;;  %v24546_v3 = vld [vmem:[%s30230_s1 + $0x3138] sm:$0xff]  }
 0x5fd   :  { %22564 = vmatpush3.bf16.msra.mxu1 %v24500_v2  ;;  %v18770_v2 = vcombine.high %v119_v62, %v119_v62 }
 0x5fe   :  { %22565 = vmatprep.subr.bf16.mxu1 %v24503_v5  ;;  %v24547_v5 = vld [vmem:[%s30230_s1 + $0x31f8] sm:$0xff]  }
 0x5ff   :  { %22544 = vmatpush3.bf16.msra.mxu0 %v24502_v4 }
 0x600   :  { %22573 = vmatprep.subr.bf16.mxu0 %v24507_v11  ;;  %v24549_v11 = vld [vmem:[%s30230_s1 + $0x3170] sm:$0xff]  }
 0x601   :  { %22566 = vmatpush3.bf16.msra.mxu1 %v24506_v10 }
 0x602   :  { %v22281_v7 = vpop.f32.mrf.mxu0  ;;  %18049 = vmatmul.mubr.bf16.vlgmr.msra.gmra.mxu0 %v18763_v8  ;;  %22595 = vmatprep.subr.bf16.mxu1 %v24511_v21  ;;  %v24555_v21 = vld [vmem:[%s30230_s1 + $0x31e8] sm:$0xff]  }
 0x603   :  { %22574 = vmatpush3.bf16.msra.mxu0 %v24510_v18  ;;  %18128 = vmatprep.mubr.bf16.mxu0 %v18768_v59  ;;  %v24552_v18 = vld [vmem:[%s30230_s1 + $0x31b0] sm:$0xff]   ;;  %v24584_v59 = vld [vmem:[%s30230_s1 + $0x32b8] sm:$0xff]  }
 0x604   :  { %v22282_v12 = vpop.f32.mrf.mxu0  ;;  %v22303_v15 = vpop.f32.mrf.mxu1  ;;  %18089 = vmatmul.mubr.bf16.vlgmr.msra.gmra.mxu1 %v18765_v16  ;;  %22575 = vmatprep.subr.bf16.mxu0 %v24513_v26  ;;  %v24551_v16 = vld [vmem:[%s30230_s1 + $0x31f0] sm:$0xff]   ;;  %v24560_v26 = vld [vmem:[%s30230_s1 + $0x31a0] sm:$0xff]  }
 0x605   :  { %v22283_v14 = vadd.f32 %v22282_v12, %v22281_v7  ;;  %22596 = vmatpush3.bf16.msra.mxu1 %v24512_v23  ;;  %18168 = vmatprep.mubr.bf16.mxu1 %v18770_v2  ;;  %v24557_v23 = vld [vmem:[%s30230_s1 + $0x3160] sm:$0xff]   ;;  %v24587_v2 = vld [vmem:[%s30230_s1 + $0x32f0] sm:$0xff]  }
 0x606   :  { %v22284_v19 = vpop.f32.mrf.mxu0  ;;  %v22304_v22 = vpop.f32.mrf.mxu1  ;;  %22597 = vmatprep.subr.bf16.mxu1 %v24515_v30  ;;  %v24564_v30 = vld [vmem:[%s30230_s1 + $0x3198] sm:$0xff]  }
 0x607   :  { %v17571_v20 = vadd.f32 %v22283_v14, %v29656_v42  ;;  %v22305_v24 = vadd.f32 %v22304_v22, %v22303_v15  ;;  %22576 = vmatpush3.bf16.msra.mxu0 %v24514_v29  ;;  %v24526_v42 = vld [vmem:[%s30230_s1 + $0x3018] sm:$0xff]   ;;  %v24550_v15 = vld [vmem:[%s30230_s1 + $0x3130] sm:$0xff]   ;;  %v24553_v19 = vld [vmem:[%s30230_s1 + $0x3168] sm:$0xff]  }
 0x608   :  { %v22285_v25 = vpop.f32.mrf.mxu0  ;;  %v22306_v27 = vpop.f32.mrf.mxu1  ;;  %22577 = vmatprep.subr.bf16.mxu0 %v24517_v33  ;;  %v24556_v22 = vld [vmem:[%s30230_s1 + $0x31a8] sm:$0xff]   ;;  %v24563_v29 = vld [vmem:[%s30230_s1 + $0x31d8] sm:$0xff]   ;;  %v24567_v33 = vld [vmem:[%s30230_s1 + $0x31d0] sm:$0xff]  }
 0x609   :  { %v29761_v28 = vadd.f32 %v22305_v24, %v17571_v20  ;;  %22598 = vmatpush3.bf16.msra.mxu1 %v24516_v32  ;;  %v24554_v20 = vld [vmem:[%s30230_s1 + $0x3128] sm:$0xff]   ;;  %v24558_v24 = vld [vmem:[%s30230_s1 + $0x3120] sm:$0xff]   ;;  %v24561_v27 = vld [vmem:[%s30230_s1 + $0x3158] sm:$0xff]  }
 0x60a   :  { %v22307_v31 = vpop.f32.mrf.mxu1  ;;  %22599 = vmatprep.subr.bf16.mxu1 %v24519_v35  ;;  %v24559_v25 = vld [vmem:[%s30230_s1 + $0x31e0] sm:$0xff]   ;;  %v24566_v32 = vld [vmem:[%s30230_s1 + $0x3110] sm:$0xff]   ;;  %v24569_v35 = vld [vmem:[%s30230_s1 + $0x3148] sm:$0xff]  }
 0x60b   :  { %22578 = vmatpush3.bf16.msra.mxu0 %v24518_v34  ;;  %v24565_v31 = vld [vmem:[%s30230_s1 + $0x3150] sm:$0xff]  }
 0x60c   :  { %22579 = vmatprep.subr.bf16.mxu0 %v24521_v37  ;;  %v24568_v34 = vld [vmem:[%s30230_s1 + $0x3190] sm:$0xff]   ;;  %v24571_v37 = vld [vmem:[%s30230_s1 + $0x31c8] sm:$0xff]  }
 0x60d   :  { %22600 = vmatpush3.bf16.msra.mxu1 %v24520_v36  ;;  %v24570_v36 = vld [vmem:[%s30230_s1 + $0x3108] sm:$0xff]  }
 0x60e   :  { %22601 = vmatprep.subr.bf16.mxu1 %v24523_v39  ;;  %v24573_v39 = vld [vmem:[%s30230_s1 + $0x3140] sm:$0xff]  }
 0x60f   :  { %22580 = vmatpush3.bf16.msra.mxu0 %v24522_v38  ;;  %v24572_v38 = vld [vmem:[%s30230_s1 + $0x3188] sm:$0xff]  }
 0x610   :  { %22581 = vmatprep.subr.bf16.mxu0 %v24525_v41  ;;  %v24575_v41 = vld [vmem:[%s30230_s1 + $0x31c0] sm:$0xff]  }
 0x611   :  { %22602 = vmatpush3.bf16.msra.mxu1 %v24524_v40  ;;  %v24574_v40 = vld [vmem:[%s30230_s1 + $0x3100] sm:$0xff]  }
 0x612   :  { %22603 = vmatprep.subr.bf16.mxu1 %v24527_v43 }
 0x613   :  { %22582 = vmatpush3.bf16.msra.mxu0 %v24526_v42  ;;  %v120_v42 = vld [vmem:[%s30229_s0 + $0x310] sm:$0xff] }
 0x614   :  { %22583 = vmatprep.subr.bf16.mxu0 %v24529_v45  ;;  %v18772_v45 = vcombine.high %v120_v42, %v120_v42 }
 0x615   :  { %22604 = vmatpush3.bf16.msra.mxu1 %v24528_v44  ;;  %v18771_v44 = vcombine.low %v120_v42, %v120_v42 }
 0x616   :  { %22605 = vmatprep.subr.bf16.mxu1 %v24531_v47  ;;  %v24579_v47 = vld [vmem:[%s30230_s1 + $0x3278] sm:$0xff]  }
 0x617   :  { %22584 = vmatpush3.bf16.msra.mxu0 %v24530_v46  ;;  %v24578_v46 = vld [vmem:[%s30230_s1 + $0x3180] sm:$0xff]  }
 0x618   :  { %22585 = vmatprep.subr.bf16.mxu0 %v24533_v49 }
 0x619   :  { %22606 = vmatpush3.bf16.msra.mxu1 %v24532_v48  ;;  %v121_v48 = vld [vmem:[%s30229_s0 + $0x318] sm:$0xff] }
 0x61a   :  { %22607 = vmatprep.subr.bf16.mxu1 %v24535_v51  ;;  %v18773_v51 = vcombine.low %v121_v48, %v121_v48 }
 0x61b   :  { %22586 = vmatpush3.bf16.msra.mxu0 %v24534_v50 }
 0x61c   :  { %22587 = vmatprep.subr.bf16.mxu0 %v24537_v53  ;;  %v24582_v53 = vld [vmem:[%s30230_s1 + $0x3238] sm:$0xff]  }
 0x61d   :  { %22608 = vmatpush3.bf16.msra.mxu1 %v24536_v52  ;;  %v18774_v52 = vcombine.high %v121_v48, %v121_v48  ;;  %v24621_v48 = vld [vmem:[%s30230_s1 + $0x3370] sm:$0xff]  }
 0x61e   :  { %22609 = vmatprep.subr.bf16.mxu1 %v24539_v55  ;;  %v24583_v55 = vld [vmem:[%s30230_s1 + $0x32f8] sm:$0xff]  }
 0x61f   :  { %22588 = vmatpush3.bf16.msra.mxu0 %v24538_v54 }
 0x620   :  { %22617 = vmatprep.subr.bf16.mxu0 %v24543_v61  ;;  %v24585_v61 = vld [vmem:[%s30230_s1 + $0x3270] sm:$0xff]  }
 0x621   :  { %22610 = vmatpush3.bf16.msra.mxu1 %v24542_v60 }
 0x622   :  { %v22325_v57 = vpop.f32.mrf.mxu0  ;;  %18129 = vmatmul.mubr.bf16.vlgmr.msra.gmra.mxu0 %v18767_v58  ;;  %22639 = vmatprep.subr.bf16.mxu1 %v24547_v5  ;;  %v24589_v5 = vld [vmem:[%s30230_s1 + $0x3268] sm:$0xff]  }
 0x623   :  { %22618 = vmatpush3.bf16.msra.mxu0 %v24546_v3  ;;  %18208 = vmatprep.mubr.bf16.mxu0 %v18772_v45  ;;  %v24620_v45 = vld [vmem:[%s30230_s1 + $0x33b8] sm:$0xff]  }
 0x624   :  { %v22326_v63 = vpop.f32.mrf.mxu0  ;;  %v22347_v0 = vpop.f32.mrf.mxu1  ;;  %18169 = vmatmul.mubr.bf16.vlgmr.msra.gmra.mxu1 %v18769_v1  ;;  %22619 = vmatprep.subr.bf16.mxu0 %v24549_v11  ;;  %v24586_v1 = vld [vmem:[%s30230_s1 + $0x3230] sm:$0xff]   ;;  %v24595_v11 = vld [vmem:[%s30230_s1 + $0x32e0] sm:$0xff]  }
 0x625   :  { %v22327_v4 = vadd.f32 %v22326_v63, %v22325_v57  ;;  %22640 = vmatpush3.bf16.msra.mxu1 %v24548_v9  ;;  %18248 = vmatprep.mubr.bf16.mxu1 %v18774_v52  ;;  %v24593_v9 = vld [vmem:[%s30230_s1 + $0x3260] sm:$0xff]   ;;  %v24623_v52 = vld [vmem:[%s30230_s1 + $0x33f0] sm:$0xff]  }
 0x626   :  { %v22328_v6 = vpop.f32.mrf.mxu0  ;;  %v22348_v7 = vpop.f32.mrf.mxu1  ;;  %22641 = vmatprep.subr.bf16.mxu1 %v24551_v16  ;;  %v24600_v16 = vld [vmem:[%s30230_s1 + $0x3298] sm:$0xff]  }
 0x627   :  { %v17651_v8 = vadd.f32 %v22327_v4, %v29761_v28  ;;  %v22349_v10 = vadd.f32 %v22348_v7, %v22347_v0  ;;  %22620 = vmatpush3.bf16.msra.mxu0 %v24550_v15  ;;  %v24562_v28 = vld [vmem:[%s30230_s1 + $0x3118] sm:$0xff]   ;;  %v24588_v4 = vld [vmem:[%s30230_s1 + $0x32b0] sm:$0xff]   ;;  %v24590_v6 = vld [vmem:[%s30230_s1 + $0x3228] sm:$0xff]  }
 0x628   :  { %v22329_v12 = vpop.f32.mrf.mxu0  ;;  %v22350_v13 = vpop.f32.mrf.mxu1  ;;  %22621 = vmatprep.subr.bf16.mxu0 %v24553_v19  ;;  %v24591_v7 = vld [vmem:[%s30230_s1 + $0x32e8] sm:$0xff]   ;;  %v24599_v15 = vld [vmem:[%s30230_s1 + $0x32d8] sm:$0xff]   ;;  %v24603_v19 = vld [vmem:[%s30230_s1 + $0x32d0] sm:$0xff]  }
 0x629   :  { %v29866_v14 = vadd.f32 %v22349_v10, %v17651_v8  ;;  %22642 = vmatpush3.bf16.msra.mxu1 %v24552_v18  ;;  %v24592_v8 = vld [vmem:[%s30230_s1 + $0x32a8] sm:$0xff]   ;;  %v24594_v10 = vld [vmem:[%s30230_s1 + $0x3220] sm:$0xff]   ;;  %v24597_v13 = vld [vmem:[%s30230_s1 + $0x3258] sm:$0xff]  }
 0x62a   :  { %v22351_v17 = vpop.f32.mrf.mxu1  ;;  %22643 = vmatprep.subr.bf16.mxu1 %v24555_v21  ;;  %v24596_v12 = vld [vmem:[%s30230_s1 + $0x32a0] sm:$0xff]   ;;  %v24602_v18 = vld [vmem:[%s30230_s1 + $0x3210] sm:$0xff]   ;;  %v24605_v21 = vld [vmem:[%s30230_s1 + $0x3248] sm:$0xff]  }
 0x62b   :  { %22622 = vmatpush3.bf16.msra.mxu0 %v24554_v20  ;;  %v24601_v17 = vld [vmem:[%s30230_s1 + $0x3250] sm:$0xff]  }
 0x62c   :  { %22623 = vmatprep.subr.bf16.mxu0 %v24557_v23  ;;  %v24604_v20 = vld [vmem:[%s30230_s1 + $0x3290] sm:$0xff]   ;;  %v24607_v23 = vld [vmem:[%s30230_s1 + $0x32c8] sm:$0xff]  }
 0x62d   :  { %22644 = vmatpush3.bf16.msra.mxu1 %v24556_v22  ;;  %v24606_v22 = vld [vmem:[%s30230_s1 + $0x3208] sm:$0xff]  }
 0x62e   :  { %22645 = vmatprep.subr.bf16.mxu1 %v24559_v25  ;;  %v24609_v25 = vld [vmem:[%s30230_s1 + $0x3240] sm:$0xff]  }
 0x62f   :  { %22624 = vmatpush3.bf16.msra.mxu0 %v24558_v24  ;;  %v24608_v24 = vld [vmem:[%s30230_s1 + $0x3288] sm:$0xff]  }
 0x630   :  { %22625 = vmatprep.subr.bf16.mxu0 %v24561_v27  ;;  %v24611_v27 = vld [vmem:[%s30230_s1 + $0x32c0] sm:$0xff]  }
 0x631   :  { %22646 = vmatpush3.bf16.msra.mxu1 %v24560_v26  ;;  %v24610_v26 = vld [vmem:[%s30230_s1 + $0x3200] sm:$0xff]  }
 0x632   :  { %22647 = vmatprep.subr.bf16.mxu1 %v24563_v29 }
 0x633   :  { %22626 = vmatpush3.bf16.msra.mxu0 %v24562_v28  ;;  %v122_v28 = vld [vmem:[%s30229_s0 + $0x320] sm:$0xff] }
 0x634   :  { %22627 = vmatprep.subr.bf16.mxu0 %v24565_v31  ;;  %v18776_v31 = vcombine.high %v122_v28, %v122_v28 }
 0x635   :  { %22648 = vmatpush3.bf16.msra.mxu1 %v24564_v30  ;;  %v18775_v30 = vcombine.low %v122_v28, %v122_v28 }
 0x636   :  { %22649 = vmatprep.subr.bf16.mxu1 %v24567_v33  ;;  %v24615_v33 = vld [vmem:[%s30230_s1 + $0x3378] sm:$0xff]  }
 0x637   :  { %22628 = vmatpush3.bf16.msra.mxu0 %v24566_v32  ;;  %v24614_v32 = vld [vmem:[%s30230_s1 + $0x3280] sm:$0xff]  }
 0x638   :  { %22629 = vmatprep.subr.bf16.mxu0 %v24569_v35  ;;  %v123_v35 = vld [vmem:[%s30229_s0 + $0x328] sm:$0xff] }
 0x639   :  { %22650 = vmatpush3.bf16.msra.mxu1 %v24568_v34 }
 0x63a   :  { %22651 = vmatprep.subr.bf16.mxu1 %v24571_v37 }
 0x63b   :  { %22630 = vmatpush3.bf16.msra.mxu0 %v24570_v36 }
 0x63c   :  { %22631 = vmatprep.subr.bf16.mxu0 %v24573_v39  ;;  %v18778_v39 = vcombine.high %v123_v35, %v123_v35 }
 0x63d   :  { %22652 = vmatpush3.bf16.msra.mxu1 %v24572_v38  ;;  %v18777_v38 = vcombine.low %v123_v35, %v123_v35 }
 0x63e   :  { %22653 = vmatprep.subr.bf16.mxu1 %v24575_v41 }
 0x63f   :  { %22632 = vmatpush3.bf16.msra.mxu0 %v24574_v40  ;;  %v24618_v40 = vld [vmem:[%s30230_s1 + $0x3338] sm:$0xff]  }
 0x640   :  { %22661 = vmatprep.subr.bf16.mxu0 %v24579_v47 }
 0x641   :  { %22654 = vmatpush3.bf16.msra.mxu1 %v24578_v46 }
 0x642   :  { %v22369_v43 = vpop.f32.mrf.mxu0  ;;  %18209 = vmatmul.mubr.bf16.vlgmr.msra.gmra.mxu0 %v18771_v44  ;;  %22683 = vmatprep.subr.bf16.mxu1 %v24583_v55  ;;  %v24625_v55 = vld [vmem:[%s30230_s1 + $0x3368] sm:$0xff]  }
 0x643   :  { %22662 = vmatpush3.bf16.msra.mxu0 %v24582_v53  ;;  %18288 = vmatprep.mubr.bf16.mxu0 %v18776_v31  ;;  %v24654_v31 = vld [vmem:[%s30230_s1 + $0x3430] sm:$0xff]  }
 0x644   :  { %v22370_v49 = vpop.f32.mrf.mxu0  ;;  %v22391_v50 = vpop.f32.mrf.mxu1  ;;  %18249 = vmatmul.mubr.bf16.vlgmr.msra.gmra.mxu1 %v18773_v51  ;;  %22663 = vmatprep.subr.bf16.mxu0 %v24585_v61  ;;  %v24622_v51 = vld [vmem:[%s30230_s1 + $0x3330] sm:$0xff]   ;;  %v24631_v61 = vld [vmem:[%s30230_s1 + $0x33e0] sm:$0xff]  }
 0x645   :  { %v22371_v54 = vadd.f32 %v22370_v49, %v22369_v43  ;;  %22684 = vmatpush3.bf16.msra.mxu1 %v24584_v59  ;;  %v24619_v43 = vld [vmem:[%s30230_s1 + $0x33f8] sm:$0xff]   ;;  %18328 = vmatprep.mubr.bf16.mxu1 %v18778_v39  ;;  %v24629_v59 = vld [vmem:[%s30230_s1 + $0x3360] sm:$0xff]  }
 0x646   :  { %v22372_v56 = vpop.f32.mrf.mxu0  ;;  %v22392_v57 = vpop.f32.mrf.mxu1  ;;  %22685 = vmatprep.subr.bf16.mxu1 %v24587_v2  ;;  %v24636_v2 = vld [vmem:[%s30230_s1 + $0x3398] sm:$0xff]  }
 0x647   :  { %v17731_v58 = vadd.f32 %v22371_v54, %v29866_v14  ;;  %v22393_v60 = vadd.f32 %v22392_v57, %v22391_v50  ;;  %22664 = vmatpush3.bf16.msra.mxu0 %v24586_v1  ;;  %v24598_v14 = vld [vmem:[%s30230_s1 + $0x3218] sm:$0xff]   ;;  %v24624_v54 = vld [vmem:[%s30230_s1 + $0x33b0] sm:$0xff]   ;;  %v24626_v56 = vld [vmem:[%s30230_s1 + $0x3328] sm:$0xff]  }
 0x648   :  { %v22373_v62 = vpop.f32.mrf.mxu0  ;;  %v22394_v63 = vpop.f32.mrf.mxu1  ;;  %22665 = vmatprep.subr.bf16.mxu0 %v24589_v5  ;;  %v24627_v57 = vld [vmem:[%s30230_s1 + $0x33e8] sm:$0xff]   ;;  %v24635_v1 = vld [vmem:[%s30230_s1 + $0x33d8] sm:$0xff]   ;;  %v24639_v5 = vld [vmem:[%s30230_s1 + $0x33d0] sm:$0xff]  }
 0x649   :  { %v29971_v0 = vadd.f32 %v22393_v60, %v17731_v58  ;;  %22686 = vmatpush3.bf16.msra.mxu1 %v24588_v4  ;;  %v24628_v58 = vld [vmem:[%s30230_s1 + $0x33a8] sm:$0xff]   ;;  %v24630_v60 = vld [vmem:[%s30230_s1 + $0x3320] sm:$0xff]   ;;  %v24633_v63 = vld [vmem:[%s30230_s1 + $0x3358] sm:$0xff]  }
 0x64a   :  { %v22395_v3 = vpop.f32.mrf.mxu1  ;;  %22687 = vmatprep.subr.bf16.mxu1 %v24591_v7  ;;  %v24632_v62 = vld [vmem:[%s30230_s1 + $0x33a0] sm:$0xff]   ;;  %v24638_v4 = vld [vmem:[%s30230_s1 + $0x3310] sm:$0xff]   ;;  %v24641_v7 = vld [vmem:[%s30230_s1 + $0x3348] sm:$0xff]  }
 0x64b   :  { %22666 = vmatpush3.bf16.msra.mxu0 %v24590_v6  ;;  %v24637_v3 = vld [vmem:[%s30230_s1 + $0x3350] sm:$0xff]  }
 0x64c   :  { %22667 = vmatprep.subr.bf16.mxu0 %v24593_v9  ;;  %v24640_v6 = vld [vmem:[%s30230_s1 + $0x3390] sm:$0xff]   ;;  %v24643_v9 = vld [vmem:[%s30230_s1 + $0x33c8] sm:$0xff]  }
 0x64d   :  { %22688 = vmatpush3.bf16.msra.mxu1 %v24592_v8  ;;  %v24642_v8 = vld [vmem:[%s30230_s1 + $0x3308] sm:$0xff]  }
 0x64e   :  { %22689 = vmatprep.subr.bf16.mxu1 %v24595_v11  ;;  %v24645_v11 = vld [vmem:[%s30230_s1 + $0x3340] sm:$0xff]  }
 0x64f   :  { %22668 = vmatpush3.bf16.msra.mxu0 %v24594_v10  ;;  %v24644_v10 = vld [vmem:[%s30230_s1 + $0x3388] sm:$0xff]  }
 0x650   :  { %22669 = vmatprep.subr.bf16.mxu0 %v24597_v13  ;;  %v24647_v13 = vld [vmem:[%s30230_s1 + $0x33c0] sm:$0xff]  }
 0x651   :  { %22690 = vmatpush3.bf16.msra.mxu1 %v24596_v12  ;;  %v24646_v12 = vld [vmem:[%s30230_s1 + $0x3300] sm:$0xff]  }
 0x652   :  { %22691 = vmatprep.subr.bf16.mxu1 %v24599_v15 }
 0x653   :  { %22670 = vmatpush3.bf16.msra.mxu0 %v24598_v14  ;;  %v124_v14 = vld [vmem:[%s30229_s0 + $0x330] sm:$0xff] }
 0x654   :  { %22671 = vmatprep.subr.bf16.mxu0 %v24601_v17  ;;  %v18780_v17 = vcombine.high %v124_v14, %v124_v14 }
 0x655   :  { %22692 = vmatpush3.bf16.msra.mxu1 %v24600_v16  ;;  %v18779_v16 = vcombine.low %v124_v14, %v124_v14 }
 0x656   :  { %22693 = vmatprep.subr.bf16.mxu1 %v24603_v19  ;;  %v125_v19 = vld [vmem:[%s30229_s0 + $0x338] sm:$0xff] }
 0x657   :  { %22672 = vmatpush3.bf16.msra.mxu0 %v24602_v18  ;;  %v24650_v18 = vld [vmem:[%s30230_s1 + $0x3380] sm:$0xff]  }
 0x658   :  { %22673 = vmatprep.subr.bf16.mxu0 %v24605_v21  ;;  %v18781_v21 = vcombine.low %v125_v19, %v125_v19 }
 0x659   :  { %22694 = vmatpush3.bf16.msra.mxu1 %v24604_v20  ;;  %v24690_v20 = vmov 0  }
 0x65a   :  { %22695 = vmatprep.subr.bf16.mxu1 %v24607_v23  ;;  %v24653_v23 = vld [vmem:[%s30230_s1 + $0x3438] sm:$0xff]  }
 0x65b   :  { %22674 = vmatpush3.bf16.msra.mxu0 %v24606_v22  ;;  %v18782_v22 = vcombine.high %v125_v19, %v125_v19 }
 0x65c   :  { %22675 = vmatprep.subr.bf16.mxu0 %v24609_v25 }
 0x65d   :  { %22696 = vmatpush3.bf16.msra.mxu1 %v24608_v24 }
 0x65e   :  { %22697 = vmatprep.subr.bf16.mxu1 %v24611_v27 }
 0x65f   :  { %22676 = vmatpush3.bf16.msra.mxu0 %v24610_v26 }
 0x660   :  { %22705 = vmatprep.subr.bf16.mxu0 %v24615_v33 }
 0x661   :  { %22698 = vmatpush3.bf16.msra.mxu1 %v24614_v32 }
 0x662   :  { %v22413_v29 = vpop.f32.mrf.mxu0  ;;  %18289 = vmatmul.mubr.bf16.vlgmr.msra.gmra.mxu0 %v18775_v30  ;;  %22727 = vmatprep.subr.bf16.mxu1 %v24619_v43 }
 0x663   :  { %22706 = vmatpush3.bf16.msra.mxu0 %v24618_v40  ;;  %18368 = vmatprep.mubr.bf16.mxu0 %v18780_v17 }
 0x664   :  { %v22414_v34 = vpop.f32.mrf.mxu0  ;;  %v22435_v37 = vpop.f32.mrf.mxu1  ;;  %18329 = vmatmul.mubr.bf16.vlgmr.msra.gmra.mxu1 %v18777_v38  ;;  %22707 = vmatprep.subr.bf16.mxu0 %v24621_v48 }
 0x665   :  { %v22415_v36 = vadd.f32 %v22414_v34, %v22413_v29  ;;  %22728 = vmatpush3.bf16.msra.mxu1 %v24620_v45  ;;  %18408 = vmatprep.mubr.bf16.mxu1 %v18782_v22 }
 0x666   :  { %v22416_v41 = vpop.f32.mrf.mxu0  ;;  %v22436_v44 = vpop.f32.mrf.mxu1  ;;  %22729 = vmatprep.subr.bf16.mxu1 %v24623_v52 }
 0x667   :  { %v17811_v42 = vadd.f32 %v22415_v36, %v29971_v0  ;;  %v22437_v46 = vadd.f32 %v22436_v44, %v22435_v37  ;;  %22708 = vmatpush3.bf16.msra.mxu0 %v24622_v51  ;;  %v24634_v0 = vld [vmem:[%s30230_s1 + $0x3318] sm:$0xff]   ;;  %v24655_v36 = vld [vmem:[%s30230_s1 + $0x3428] sm:$0xff]   ;;  %v126_v37 = vld [vmem:[%s30229_s0 + $0x340] sm:$0xff] }
 0x668   :  { %v22417_v47 = vpop.f32.mrf.mxu0  ;;  %v22438_v49 = vpop.f32.mrf.mxu1  ;;  %22709 = vmatprep.subr.bf16.mxu0 %v24625_v55  ;;  %v18784_v38 = vcombine.high %v126_v37, %v126_v37 }
 0x669   :  { %v30076_v50 = vadd.f32 %v22437_v46, %v17811_v42  ;;  %22730 = vmatpush3.bf16.msra.mxu1 %v24624_v54 }
 0x66a   :  { %v22439_v53 = vpop.f32.mrf.mxu1  ;;  %22731 = vmatprep.subr.bf16.mxu1 %v24627_v57 }
 0x66b   :  { %22710 = vmatpush3.bf16.msra.mxu0 %v24626_v56 }
 0x66c   :  { %22711 = vmatprep.subr.bf16.mxu0 %v24629_v59 }
 0x66d   :  { %22732 = vmatpush3.bf16.msra.mxu1 %v24628_v58 }
 0x66e   :  { %22733 = vmatprep.subr.bf16.mxu1 %v24631_v61 }
 0x66f   :  { %22712 = vmatpush3.bf16.msra.mxu0 %v24630_v60 }
 0x670   :  { %22713 = vmatprep.subr.bf16.mxu0 %v24633_v63 }
 0x671   :  { %22734 = vmatpush3.bf16.msra.mxu1 %v24632_v62 }
 0x672   :  { %22735 = vmatprep.subr.bf16.mxu1 %v24635_v1 }
 0x673   :  { %22714 = vmatpush3.bf16.msra.mxu0 %v24634_v0 }
 0x674   :  { %22715 = vmatprep.subr.bf16.mxu0 %v24637_v3 }
 0x675   :  { %22736 = vmatpush3.bf16.msra.mxu1 %v24636_v2 }
 0x676   :  { %22737 = vmatprep.subr.bf16.mxu1 %v24639_v5 }
 0x677   :  { %22716 = vmatpush3.bf16.msra.mxu0 %v24638_v4 }
 0x678   :  { %22717 = vmatprep.subr.bf16.mxu0 %v24641_v7 }
 0x679   :  { %22738 = vmatpush3.bf16.msra.mxu1 %v24640_v6 }
 0x67a   :  { %22739 = vmatprep.subr.bf16.mxu1 %v24643_v9 }
 0x67b   :  { %22718 = vmatpush3.bf16.msra.mxu0 %v24642_v8 }
 0x67c   :  { %22719 = vmatprep.subr.bf16.mxu0 %v24645_v11 }
 0x67d   :  { %22740 = vmatpush3.bf16.msra.mxu1 %v24644_v10 }
 0x67e   :  { %22741 = vmatprep.subr.bf16.mxu1 %v24647_v13 }
 0x67f   :  { %22720 = vmatpush3.bf16.msra.mxu0 %v24646_v12 }
 0x680   :  { %18416 = vmatprep.subr.bf16.mxu0 %v24690_v20 }
 0x681   :  { %22742 = vmatpush3.bf16.msra.mxu1 %v24650_v18 }
 0x682   :  { %v22457_v15 = vpop.f32.mrf.mxu0  ;;  %18369 = vmatmul.mubr.bf16.vlgmr.msra.gmra.mxu0 %v18779_v16 }
 0x683   :  { %18417 = vmatpush1.bf16.msra.mxu0 %v24653_v23 }
 0x684   :  { %v22458_v24 = vpop.f32.mrf.mxu0  ;;  %v22479_v25 = vpop.f32.mrf.mxu1  ;;  %18409 = vmatmul.mubr.bf16.vlgmr.msra.gmra.mxu1 %v18781_v21  ;;  %18418 = vmatprep.subr.bf16.mxu0 %v24690_v20 }
 0x685   :  { %v22459_v26 = vadd.f32 %v22458_v24, %v22457_v15 }
 0x686   :  { %v22460_v27 = vpop.f32.mrf.mxu0  ;;  %v22480_v28 = vpop.f32.mrf.mxu1 }
 0x687   :  { %v17891_v29 = vadd.f32 %v22459_v26, %v30076_v50  ;;  %v22481_v30 = vadd.f32 %v22480_v28, %v22479_v25  ;;  %18419 = vmatpush1.bf16.msra.mxu0 %v24654_v31 }
 0x688   :  { %v22461_v32 = vpop.f32.mrf.mxu0  ;;  %v22482_v33 = vpop.f32.mrf.mxu1  ;;  %18420 = vmatprep.subr.bf16.mxu0 %v24690_v20 }
 0x689   :  { %v17931_v34 = vadd.f32 %v22481_v30, %v17891_v29 }
 0x68a   :  { %v22483_v35 = vpop.f32.mrf.mxu1 }
 0x68b   :  { %10 = vsyncpa [#allocation3], 0  ;;  %18421 = vmatpush1.bf16.msra.mxu0 %v24655_v36  ;;  %v24656_v39 = vld [vmem:[%s30230_s1 + $0x3420] sm:$0xff]   ;;  %20458 = vmatprep.mubr.msk.bf16.mxu0 %vm14248_vm0, %v18784_v38  ;;  %v24657_v40 = vld [vmem:[%s30230_s1 + $0x3418] sm:$0xff]   ;;  %vm14252_vm1 = vcmask 1040384   ;;  %v18783_v50 = vcombine.low %v126_v37, %v126_v37  ;;  %v24691_v8 = vmov 0.0  }
 0x68c   :  { %18422 = vmatprep.subr.bf16.mxu0 %v24690_v20  ;;  %v24658_v41 = vld [vmem:[%s30230_s1 + $0x3410] sm:$0xff]   ;;  %v24659_v42 = vld [vmem:[%s30230_s1 + $0x3408] sm:$0xff]   ;;  %v24660_v43 = vld [vmem:[%s30230_s1 + $0x3400] sm:$0xff]   ;;  %22758 = vmatprep.subr.mxu1 %v24691_v8  ;;  %vm24692_vm2 = vmmov 0   ;;  %vm18472_vm3 = vcmask 523264   ;;  %vm18547_vm4 = vcmask 80896  }
 0x68d   :  { %v24661_v44 = vld [vmem:[%s30230_s1 + $0x3440] ss:$0 sps:$4 sm:$0x11]   ;;  %v18464_v7 = vld [vmem:[%s30232_s3 + $0x38] sm:$0xff]  ;;  %v18463_v9 = vld [vmem:[%s30232_s3 + $0x30] sm:$0xff]  ;;  %22774 = vmatprep.mubr.msk.f32.mxu1 %vm24692_vm2, %v24691_v8  ;;  %s24693_s22 = smov [#allocation2]  }
 0x68e   :  { %v14254_v46 = vsel %vm14252_vm1, %v24661_v44, 0  ;;  %22759 = vmatpush3.msra.mxu1 %v18464_v7  ;;  %v18462_v10 = vld [vmem:[%s30232_s3 + $0x28] sm:$0xff]  ;;  %v18461_v11 = vld [vmem:[%s30232_s3 + $0x20] sm:$0xff]  ;;  %v18460_v12 = vld [vmem:[%s30232_s3 + $0x18] sm:$0xff] }
 0x68f   :  { %18423 = vmatpush1.bf16.msra.mxu0 %v24656_v39  ;;  %22760 = vmatprep.subr.mxu1 %v24691_v8  ;;  %v18459_v21 = vld [vmem:[%s30232_s3 + $0x10] sm:$0xff]  ;;  %v18458_v25 = vld [vmem:[%s30232_s3 + $0x8] sm:$0xff]  ;;  %v18457_v27 = vld [vmem:[%s30232_s3] sm:$0xff] }
 0x690   :  { %18424 = vmatprep.subr.bf16.mxu0 %v24690_v20  ;;  %22761 = vmatpush3.msra.mxu1 %v18463_v9 }
 0x691   :  { %22762 = vmatprep.subr.mxu1 %v24691_v8 }
 0x692   :  { %22763 = vmatpush3.msra.mxu1 %v18462_v10 }
 0x693   :  { %18425 = vmatpush1.bf16.msra.mxu0 %v24657_v40  ;;  %22764 = vmatprep.subr.mxu1 %v24691_v8 }
 0x694   :  { %18426 = vmatprep.subr.bf16.mxu0 %v24690_v20  ;;  %22765 = vmatpush3.msra.mxu1 %v18461_v11 }
 0x695   :  { %22766 = vmatprep.subr.mxu1 %v24691_v8 }
 0x696   :  { %22767 = vmatpush3.msra.mxu1 %v18460_v12 }
 0x697   :  { %18427 = vmatpush1.bf16.msra.mxu0 %v24658_v41  ;;  %22768 = vmatprep.subr.mxu1 %v24691_v8 }
 0x698   :  { %18428 = vmatprep.subr.bf16.mxu0 %v24690_v20  ;;  %22769 = vmatpush3.msra.mxu1 %v18459_v21 }
 0x699   :  { %22770 = vmatprep.subr.mxu1 %v24691_v8 }
 0x69a   :  { %22771 = vmatpush3.msra.mxu1 %v18458_v25 }
 0x69b   :  { %18429 = vmatpush1.bf16.msra.mxu0 %v24659_v42  ;;  %22772 = vmatprep.subr.mxu1 %v24691_v8 }
 0x69c   :  { %18430 = vmatprep.subr.bf16.mxu0 %v24690_v20  ;;  %22773 = vmatpush3.msra.mxu1 %v18457_v27 }
 0x69f   :  { %18431 = vmatpush1.bf16.msra.mxu0 %v24660_v43 }
 0x6a0   :  { %18446 = vmatprep.subr.bf16.mxu0 %v24690_v20 }
 0x6a2   :  { %v22501_v45 = vpop.f32.mrf.mxu0 }
 0x6a3   :  { %18447 = vmatpush2.bf16.msra.mxu0 %v14254_v46 }
 0x6a4   :  { %v22502_v47 = vpop.f32.mrf.mxu0  ;;  %v22523_v48 = vpop.f32.mrf.mxu1 }
 0x6a5   :  { %v22503_v49 = vadd.f32 %v22502_v47, %v22501_v45 }
 0x6a6   :  { %v22504_v51 = vpop.f32.mrf.mxu0  ;;  %v22524_v52 = vpop.f32.mrf.mxu1  ;;  %18449 = vmatmul.mubr.bf16.vlgmr.msra.gmra.mxu0 %v18783_v50 }
 0x6a7   :  { %v17971_v53 = vadd.f32 %v22503_v49, %v17931_v34  ;;  %v22525_v54 = vadd.f32 %v22524_v52, %v22523_v48 }
 0x6a8   :  { %v22505_v55 = vpop.f32.mrf.mxu0  ;;  %v22526_v56 = vpop.f32.mrf.mxu1 }
 0x6a9   :  { %v18011_v57 = vadd.f32 %v22525_v54, %v17971_v53 }
 0x6aa   :  { %v22527_v58 = vpop.f32.mrf.mxu1 }
 0x6c2   :  { %v22545_v59 = vpop.f32.mrf.mxu0 }
 0x6c4   :  { %v22546_v60 = vpop.f32.mrf.mxu0  ;;  %v22567_v62 = vpop.f32.mrf.mxu1 }
 0x6c5   :  { %v22547_v61 = vadd.f32 %v22546_v60, %v22545_v59 }
 0x6c6   :  { %v22548_v63 = vpop.f32.mrf.mxu0  ;;  %v22568_v1 = vpop.f32.mrf.mxu1 }
 0x6c7   :  { %v18051_v0 = vadd.f32 %v22547_v61, %v18011_v57  ;;  %v22569_v2 = vadd.f32 %v22568_v1, %v22567_v62 }
 0x6c8   :  { %v22549_v3 = vpop.f32.mrf.mxu0  ;;  %v22570_v4 = vpop.f32.mrf.mxu1 }
 0x6c9   :  { %v18091_v5 = vadd.f32 %v22569_v2, %v18051_v0 }
 0x6ca   :  { %v22571_v6 = vpop.f32.mrf.mxu1 }
 0x6cb   :  { %v20459_v6 = vld [vmem:[%s30233_s4] ss:$0 sm:$0xff]  ;;  %s18566_s4 = sshll.u32 %s24693_s22, 4  ;;  %s18567_s4 = int_to_ptr.vmem [resolvable:$true] %s18566_s4 }
 0x6cc   :  { %s24668_s23 = scalar_lea.vmem %s18567_s4, 128  ;;  %p24673_p1 = scmp.lt.s32.totalorder %s18567_s4, %s18567_s4 }
 0x6cd   :  { %p24669_p0 = scmp.ne.s32.totalorder %s18567_s4, %s24668_s23  ;;  %p24674_p2 = scmp.lt.s32.totalorder %s24668_s23, %s24668_s23 }
 0x6cf   :  { %p24675_p3 = por %p24674_p2, %p24673_p1 }
 0x6d1   :  { %p24676_p4 = pnand %p24675_p3, %p24669_p0 }
 0x6e2   :  { %v22589_v13 = vpop.f32.mrf.mxu0 }
 0x6e4   :  { %v22590_v14 = vpop.f32.mrf.mxu0  ;;  %v22611_v15 = vpop.f32.mrf.mxu1 }
 0x6e5   :  { %v22591_v16 = vadd.f32 %v22590_v14, %v22589_v13 }
 0x6e6   :  { %v22592_v17 = vpop.f32.mrf.mxu0  ;;  %v22612_v18 = vpop.f32.mrf.mxu1 }
 0x6e7   :  { %v18131_v19 = vadd.f32 %v22591_v16, %v18091_v5  ;;  %v22613_v20 = vadd.f32 %v22612_v18, %v22611_v15 }
 0x6e8   :  { %v22593_v22 = vpop.f32.mrf.mxu0  ;;  %v22614_v23 = vpop.f32.mrf.mxu1 }
 0x6e9   :  { %v18171_v24 = vadd.f32 %v22613_v20, %v18131_v19 }
 0x6ea   :  { %v22615_v26 = vpop.f32.mrf.mxu1 }
 0x702   :  { %v22633_v28 = vpop.f32.mrf.mxu0 }
 0x704   :  { %v22634_v29 = vpop.f32.mrf.mxu0  ;;  %v22655_v30 = vpop.f32.mrf.mxu1 }
 0x705   :  { %v22635_v31 = vadd.f32 %v22634_v29, %v22633_v28 }
 0x706   :  { %v22636_v32 = vpop.f32.mrf.mxu0  ;;  %v22656_v33 = vpop.f32.mrf.mxu1 }
 0x707   :  { %v18211_v34 = vadd.f32 %v22635_v31, %v18171_v24  ;;  %v22657_v35 = vadd.f32 %v22656_v33, %v22655_v30 }
 0x708   :  { %v22637_v36 = vpop.f32.mrf.mxu0  ;;  %v22658_v37 = vpop.f32.mrf.mxu1 }
 0x709   :  { %v18251_v38 = vadd.f32 %v22657_v35, %v18211_v34 }
 0x70a   :  { %v22659_v39 = vpop.f32.mrf.mxu1 }
 0x722   :  { %v22677_v40 = vpop.f32.mrf.mxu0 }
 0x724   :  { %v22678_v41 = vpop.f32.mrf.mxu0  ;;  %v22699_v42 = vpop.f32.mrf.mxu1 }
 0x725   :  { %v22679_v56 = vadd.f32 %v22678_v41, %v22677_v40 }
 0x726   :  { %v22680_v43 = vpop.f32.mrf.mxu0  ;;  %v22700_v44 = vpop.f32.mrf.mxu1 }
 0x727   :  { %v18291_v57 = vadd.f32 %v22679_v56, %v18251_v38  ;;  %v22701_v58 = vadd.f32 %v22700_v44, %v22699_v42 }
 0x728   :  { %v22681_v45 = vpop.f32.mrf.mxu0  ;;  %v22702_v46 = vpop.f32.mrf.mxu1 }
 0x729   :  { %v18331_v60 = vadd.f32 %v22701_v58, %v18291_v57 }
 0x72a   :  { %v22703_v47 = vpop.f32.mrf.mxu1 }
 0x742   :  { %v22721_v48 = vpop.f32.mrf.mxu0 }
 0x744   :  { %v22722_v49 = vpop.f32.mrf.mxu0  ;;  %v22743_v50 = vpop.f32.mrf.mxu1 }
 0x745   :  { %v22723_v59 = vadd.f32 %v22722_v49, %v22721_v48 }
 0x746   :  { %v22724_v51 = vpop.f32.mrf.mxu0  ;;  %v22744_v52 = vpop.f32.mrf.mxu1 }
 0x747   :  { %v18371_v61 = vadd.f32 %v22723_v59, %v18331_v60  ;;  %v22745_v62 = vadd.f32 %v22744_v52, %v22743_v50 }
 0x748   :  { %v22725_v53 = vpop.f32.mrf.mxu0  ;;  %v22746_v54 = vpop.f32.mrf.mxu1 }
 0x749   :  { %v18411_v63 = vadd.f32 %v22745_v62, %v18371_v61 }
 0x74a   :  { %v22747_v55 = vpop.f32.mrf.mxu1 }
 0x766   :  { %v18450_v0 = vpop.f32.mrf.mxu0 }
 0x767   :  { %v18451_v1 = vadd.f32 %v18450_v0, %v18411_v63 }
 0x768   :  { %v18452_v2 = vpop.f32.mrf.mxu0 }
 0x769   :  { %v18456_v3 = vmax.f32 %v18451_v1, 0.0 }
 0x76a   :  { %v18453_v4 = vpop.f32.mrf.mxu0 }
 0x76b   :  { %22775 = vmatmul.mubr.msk.f32.vlgmr.msra.gmra.mxu1 %vm18472_vm3, %v18456_v3 }
 0x76c   :  { %v18454_v5 = vpop.f32.mrf.mxu0 }
 0x82b   :  { %v18542_v7 = vpop.f32.mrf.mxu1 }
 0x82c   :  { %v18543_v8 = vadd.f32 %v20459_v6, %v18542_v7 }
 0x82d   :  { %v22776_v9 = vpop.f32.mrf.mxu1 }
 0x82e   :  { %v18546_v10 = vmax.f32 %v18543_v8, 0.0 }
 0x830   :  { %v18548_v11 = vsel %vm18547_vm4, %v18546_v10, -inf }
 0x831   :  { %18549 = vmax.xlane.f32.xlu0 %v18548_v11 }
 0x8ba   :  { %v18550_v12 = vpop.xlane.xlu0 %18549 }
 0x8bb   :  { %v18551_v13 = vsub.f32 %v18546_v10, %v18550_v12 }
 0x8bd   :  { %v18552_v14 = vmul.f32 1.442695, %v18551_v13 }
 0x8bf   :  { %24664 = vpow2.f32 %v18552_v14 }
 0x8cc   :  { %v24665_v15 = vpop.eup %24664 }
 0x8cd   :  { %v18554_v16 = vsel %vm18547_vm4, %v24665_v15, 0.0 }
 0x8ce   :  { %18555 = vadd.xlane.f32.xlu0 %v18554_v16 }
 0x957   :  { %v18556_v17 = vpop.xlane.xlu0 %18555 }
 0x958   :  { %24666 = vrcp.f32 %v18556_v17 }
 0x965   :  { %v24667_v18 = vpop.eup %24666 }
 0x966   :  { %v18558_v19 = vmul.f32 %v24667_v18, %v24665_v15 }
 0x968   :  { %18559 = vst.msk [vmem:[#allocation2] sm:$0xff] %vm18547_vm4, %v18558_v19 }
 0x969   :  { %24679 = shalt.err (!%p24676_p4)
}
 0x96a   :  { %18569 = dma.vmem_to_hbm [thread:$0]  %s18567_s4, 128, %s30234_s5, [#allocation3]  }
 0x96b   :  { %24688 = dma.done.wait [#allocation3], 128  }
 0x96c   :  { %24689 = vsyncadd [#allocation3], 4294967168 }
 0x96d   :  { %18573 = vsyncpa [#allocation3], 1 }

</bundles_post_ra>
